<compile_context>
chip_gen: v5e
topology: v5e:2x2
jax: 0.10.0
libtpu: 0.0.40
codegen_flags: <defaults>
</compile_context>

<pallas_src>
import functools

import jax
import jax.numpy as jnp
import numpy as np
from jax import lax
from jax.experimental import pallas as pl
from jax.experimental.pallas import tpu as pltpu

EPS = 1e-5  # PyTorch BatchNorm1d default eps
PAD = 8     # aligned sublane margin inside activation scratch buffers (>= max conv pad)


# ----------------------------- fused Pallas kernel -----------------------------

def _resnet_kernel(*refs, L, pad):
    # ref layout: x, 11 folded conv weights, 11 folded biases, bn7 scale, bn7 bias,
    #             fc_w^T, fc_b  |  probs_out, gap_out  |  5 VMEM scratch buffers.
    x_ref = refs[0]
    w = refs[1:12]                   # (K, Cin, Cout), BN scale folded in
    b = refs[12:23]                  # (1, Cout), BN + conv bias folded
    sc7_ref, bi7_ref, fcw_ref, fcb_ref, probs_ref, gap_ref = refs[23:29]
    xbuf, a32, b32, a64, b64 = refs[29:34]

    # Zero scratch so the padding margins (rows [0,pad) and [pad+L, pad+L+pad))
    # read as zeros; the data region [pad, pad+L) is fully overwritten per layer.
    for buf in (xbuf, a32, b32, a64, b64):
        buf[...] = jnp.zeros_like(buf)
    xbuf[pl.ds(pad, L), :] = x_ref[0]            # aligned store at sublane offset 8

    def conv(src_ref, wi, K, relu=True):
        """'same' conv + folded BN (+ReLU) on the activation resident in src_ref."""
        pad_l = (K - 1) // 2
        cout = w[wi].shape[2]
        acc = jnp.zeros((L, cout), jnp.float32)
        for k in range(K):                       # static unroll over the taps
            acc = acc + jnp.dot(src_ref[pl.ds(pad - pad_l + k, L), :], w[wi][k],
                                preferred_element_type=jnp.float32)
        y = acc + b[wi][...]
        if relu:
            y = jnp.maximum(y, 0.0)
        return y

    def store(dst_ref, val):
        dst_ref[pl.ds(pad, L), :] = val          # aligned (offset 8) data-region store

    # ---- residual block 1 (dropouts are identity at inference) ----
    store(a32, conv(xbuf, 0, 8))                 # conv1 + bn1 + relu
    store(b32, conv(a32, 1, 5))                  # conv2 + bn2 + relu
    cz = conv(b32, 2, 3)                         # conv3 + bn3 + relu
    sh = conv(xbuf, 3, 1, relu=False)            # shortcut1 + bn1 (module reuses bn1)
    store(a32, jnp.maximum(cz + sh, 0.0))        # ob1

    # ---- residual block 2 ----
    store(a64, conv(a32, 4, 8))                  # conv4 + bn4 + relu
    store(b64, conv(a64, 5, 5))                  # conv5 + bn5 + relu
    cz = conv(b64, 6, 3)                         # conv6 + bn6 + relu
    sh = conv(a32, 7, 1, relu=False)             # shortcut2 + bn4 (module reuses bn4)
    store(a64, jnp.maximum(cz + sh, 0.0))        # ob2

    # ---- residual block 3 ----
    store(b64, conv(a64, 8, 8))                  # conv7 + bn7 + relu
    store(b64, conv(b64, 9, 5))                  # conv8 + bn8 + relu
    cz = conv(b64, 10, 3)                        # conv9 + bn9 + relu
    sh = a64[pl.ds(pad, L), :] * sc7_ref[...] + bi7_ref[...]   # bn7(ob2), no conv
    ob3 = jnp.maximum(cz + sh, 0.0)              # (L, 64), never leaves VMEM

    # ---- head: GAP over the CHANNEL axis -> Linear -> softmax (fused) ----
    gap = jnp.mean(ob3[None, :, :], axis=-1)                       # (1, L)
    logits = jnp.dot(gap, fcw_ref[...],
                     preferred_element_type=jnp.float32) + fcb_ref[...]
    m = jnp.max(logits, axis=-1, keepdims=True)
    e = jnp.exp(logits - m)
    probs_ref[0] = e / jnp.sum(e, axis=-1, keepdims=True)          # softmax(dim=1)
    gap_ref[0] = gap


# ----------------------------- model glue -----------------------------

def fold_bn(conv_bias, gamma, beta, mean, var):
    scale = gamma / jnp.sqrt(var + EPS)
    bias = beta - mean * scale
    if conv_bias is not None:
        bias = bias + conv_bias * scale
    return scale, bias


_LAYERS = [  # (conv name, bn name it feeds, kernel size) in execution order
    ("conv1", "bn1", 8), ("conv2", "bn2", 5), ("conv3", "bn3", 3), ("shortcut1", "bn1", 1),
    ("conv4", "bn4", 8), ("conv5", "bn5", 5), ("conv6", "bn6", 3), ("shortcut2", "bn4", 1),
    ("conv7", "bn7", 8), ("conv8", "bn8", 5), ("conv9", "bn9", 3),
]


def resnet_forward_pallas(x_ncl, P):
    N, Cin, L = x_ncl.shape
    x_nlc = jnp.transpose(x_ncl, (0, 2, 1)).astype(jnp.float32)    # NCL -> NLC
    nb = P["fc_b"].shape[0]

    # Fold BN (inference) + conv bias into per-layer weights/bias, once per forward.
    ws, bs = [], []
    for conv_name, bn_name, _K in _LAYERS:
        scale, bias = fold_bn(P[conv_name + "_b"], P[bn_name + "_gamma"],
                              P[bn_name + "_beta"], P[bn_name + "_mean"],
                              P[bn_name + "_var"])
        wk = jnp.transpose(P[conv_name + "_w"], (2, 1, 0))         # (K, Cin, Cout)
        ws.append((wk * scale[None, None, :]).astype(jnp.float32))
        bs.append(bias.reshape(1, -1).astype(jnp.float32))
    sc7, bi7 = fold_bn(None, P["bn7_gamma"], P["bn7_beta"], P["bn7_mean"], P["bn7_var"])
    sc7 = sc7.reshape(1, -1).astype(jnp.float32)
    bi7 = bi7.reshape(1, -1).astype(jnp.float32)
    fc_wt = jnp.transpose(P["fc_w"]).astype(jnp.float32)           # (L, nb)
    fc_b = P["fc_b"].reshape(1, -1).astype(jnp.float32)

    c32 = ws[0].shape[2]     # 32 feature maps (block 1)
    c64 = ws[4].shape[2]     # 64 feature maps (blocks 2/3)

    c2 = lambda n: (0, 0)
    c3 = lambda n: (0, 0, 0)
    in_specs = ([pl.BlockSpec((1, L, Cin), lambda n: (n, 0, 0))]
                + [pl.BlockSpec(wk.shape, c3) for wk in ws]
                + [pl.BlockSpec(bi.shape, c2) for bi in bs]
                + [pl.BlockSpec(sc7.shape, c2), pl.BlockSpec(bi7.shape, c2),
                   pl.BlockSpec(fc_wt.shape, c2), pl.BlockSpec(fc_b.shape, c2)])
    out_specs = (pl.BlockSpec((1, 1, nb), lambda n: (n, 0, 0)),
                 pl.BlockSpec((1, 1, L), lambda n: (n, 0, 0)))
    out_shape = (jax.ShapeDtypeStruct((N, 1, nb), jnp.float32),
                 jax.ShapeDtypeStruct((N, 1, L), jnp.float32))
    scratch = [pltpu.VMEM((L + 2 * PAD, Cin), jnp.float32),   # input (zero-margined)
               pltpu.VMEM((L + 2 * PAD, c32), jnp.float32),   # block-1 ping
               pltpu.VMEM((L + 2 * PAD, c32), jnp.float32),   # block-1 pong
               pltpu.VMEM((L + 2 * PAD, c64), jnp.float32),   # block-2/3 ping
               pltpu.VMEM((L + 2 * PAD, c64), jnp.float32)]   # block-2/3 pong

    probs, gap = pl.pallas_call(
        functools.partial(_resnet_kernel, L=L, pad=PAD),
        out_shape=out_shape,
        grid=(N,),
        in_specs=in_specs,
        out_specs=out_specs,
        scratch_shapes=scratch,
        compiler_params=pltpu.CompilerParams(dimension_semantics=("parallel",)),
    )(x_nlc, *ws, *bs, sc7, bi7, fc_wt, fc_b)

    return probs.reshape(N, nb), gap.reshape(N, L)


def init_params(key, c_in, seq_len, nb_classes):
    nfm = 32
    convs = [  # name, Cout, Cin, K
        ("conv1", nfm, c_in, 8), ("conv2", nfm, nfm, 5), ("conv3", nfm, nfm, 3),
        ("shortcut1", nfm, c_in, 1),
        ("conv4", 2 * nfm, nfm, 8), ("conv5", 2 * nfm, 2 * nfm, 5),
        ("conv6", 2 * nfm, 2 * nfm, 3), ("shortcut2", 2 * nfm, nfm, 1),
        ("conv7", 2 * nfm, 2 * nfm, 8), ("conv8", 2 * nfm, 2 * nfm, 5),
        ("conv9", 2 * nfm, 2 * nfm, 3),
    ]
    bns = [("bn1", nfm), ("bn2", nfm), ("bn3", nfm),
           ("bn4", 2 * nfm), ("bn5", 2 * nfm), ("bn6", 2 * nfm),
           ("bn7", 2 * nfm), ("bn8", 2 * nfm), ("bn9", 2 * nfm)]
    keys = iter(jax.random.split(key, 2 * len(convs) + 4 * len(bns) + 2))
    P = {}
    for name, co, ci, k in convs:
        P[name + "_w"] = 0.1 * jax.random.normal(next(keys), (co, ci, k), jnp.float32)
        P[name + "_b"] = 0.1 * jax.random.normal(next(keys), (co,), jnp.float32)
    for name, c in bns:
        P[name + "_gamma"] = 1.0 + 0.1 * jax.random.normal(next(keys), (c,), jnp.float32)
        P[name + "_beta"] = 0.1 * jax.random.normal(next(keys), (c,), jnp.float32)
        P[name + "_mean"] = 0.1 * jax.random.normal(next(keys), (c,), jnp.float32)
        P[name + "_var"] = 0.5 + jax.random.uniform(next(keys), (c,), jnp.float32)
    P["fc_w"] = 0.1 * jax.random.normal(next(keys), (nb_classes, seq_len), jnp.float32)
    P["fc_b"] = 0.1 * jax.random.normal(next(keys), (nb_classes,), jnp.float32)
    return P


# ----------------------------- plain-JAX reference -----------------------------

def resnet_forward_ref(x_ncl, P):
    def conv(x, name):
        w, b = P[name + "_w"], P[name + "_b"]
        K = w.shape[2]
        pad_l = (K - 1) // 2
        y = lax.conv_general_dilated(x, w, (1,), [(pad_l, K - 1 - pad_l)],
                                     dimension_numbers=("NCH", "OIH", "NCH"))
        return y + b[None, :, None]

    def bn(x, name):
        g, be = P[name + "_gamma"], P[name + "_beta"]
        m, v = P[name + "_mean"], P[name + "_var"]
        return ((x - m[None, :, None]) / jnp.sqrt(v[None, :, None] + EPS)
                * g[None, :, None] + be[None, :, None])

    relu = jax.nn.relu
    x = x_ncl.astype(jnp.float32)
    a = relu(bn(conv(x, "conv1"), "bn1"))
    a = relu(bn(conv(a, "conv2"), "bn2"))
    a = relu(bn(conv(a, "conv3"), "bn3"))
    ob1 = relu(a + bn(conv(x, "shortcut1"), "bn1"))
    a = relu(bn(conv(ob1, "conv4"), "bn4"))
    a = relu(bn(conv(a, "conv5"), "bn5"))
    a = relu(bn(conv(a, "conv6"), "bn6"))
    ob2 = relu(a + bn(conv(ob1, "shortcut2"), "bn4"))
    a = relu(bn(conv(ob2, "conv7"), "bn7"))
    a = relu(bn(conv(a, "conv8"), "bn8"))
    a = relu(bn(conv(a, "conv9"), "bn9"))
    ob3 = relu(a + bn(ob2, "bn7"))
    gap = jnp.mean(ob3, axis=1)                    # average over channels -> (N, L)
    logits = gap @ P["fc_w"].T + P["fc_b"]
    return jax.nn.softmax(logits, axis=1), gap


# ----------------------------- main -----------------------------

if __name__ == "__main__":
    key = jax.random.PRNGKey(0)
    N, C_in, L, NB_CLASSES = 2, 4, 128, 10   # L=128 stands in for the hard-coded 1280
    kp, kx = jax.random.split(key)
    params = init_params(kp, C_in, L, NB_CLASSES)
    x = jax.random.normal(kx, (N, C_in, L), jnp.float32)  # PyTorch-style NCL input

    fwd = jax.jit(resnet_forward_pallas)
    probs, gap = jax.block_until_ready(fwd(x, params))
    probs_ref, gap_ref = resnet_forward_ref(x, params)

    np.testing.assert_allclose(np.asarray(gap), np.asarray(gap_ref), rtol=2e-3, atol=2e-3)
    np.testing.assert_allclose(np.asarray(probs), np.asarray(probs_ref), rtol=2e-3, atol=2e-3)
    assert probs.shape == (N, NB_CLASSES) and gap.shape == (N, L)
    print("KERNEL_OK")
</pallas_src>

<mosaic_0001>
module attributes {stable_mosaic.version = 11 : i64} {
  func.func @_resnet_kernel(%arg0: i32, %arg1: memref<1x128x4xf32, #tpu.memory_space<vmem>>, %arg2: memref<8x4x32xf32, #tpu.memory_space<vmem>>, %arg3: memref<5x32x32xf32, #tpu.memory_space<vmem>>, %arg4: memref<3x32x32xf32, #tpu.memory_space<vmem>>, %arg5: memref<1x4x32xf32, #tpu.memory_space<vmem>>, %arg6: memref<8x32x64xf32, #tpu.memory_space<vmem>>, %arg7: memref<5x64x64xf32, #tpu.memory_space<vmem>>, %arg8: memref<3x64x64xf32, #tpu.memory_space<vmem>>, %arg9: memref<1x32x64xf32, #tpu.memory_space<vmem>>, %arg10: memref<8x64x64xf32, #tpu.memory_space<vmem>>, %arg11: memref<5x64x64xf32, #tpu.memory_space<vmem>>, %arg12: memref<3x64x64xf32, #tpu.memory_space<vmem>>, %arg13: memref<1x32xf32, #tpu.memory_space<vmem>>, %arg14: memref<1x32xf32, #tpu.memory_space<vmem>>, %arg15: memref<1x32xf32, #tpu.memory_space<vmem>>, %arg16: memref<1x32xf32, #tpu.memory_space<vmem>>, %arg17: memref<1x64xf32, #tpu.memory_space<vmem>>, %arg18: memref<1x64xf32, #tpu.memory_space<vmem>>, %arg19: memref<1x64xf32, #tpu.memory_space<vmem>>, %arg20: memref<1x64xf32, #tpu.memory_space<vmem>>, %arg21: memref<1x64xf32, #tpu.memory_space<vmem>>, %arg22: memref<1x64xf32, #tpu.memory_space<vmem>>, %arg23: memref<1x64xf32, #tpu.memory_space<vmem>>, %arg24: memref<1x64xf32, #tpu.memory_space<vmem>>, %arg25: memref<1x64xf32, #tpu.memory_space<vmem>>, %arg26: memref<128x10xf32, #tpu.memory_space<vmem>>, %arg27: memref<1x10xf32, #tpu.memory_space<vmem>>, %arg28: memref<1x1x10xf32, #tpu.memory_space<vmem>>, %arg29: memref<1x1x128xf32, #tpu.memory_space<vmem>>, %arg30: memref<144x4xf32, #tpu.memory_space<vmem>>, %arg31: memref<144x32xf32, #tpu.memory_space<vmem>>, %arg32: memref<144x32xf32, #tpu.memory_space<vmem>>, %arg33: memref<144x64xf32, #tpu.memory_space<vmem>>, %arg34: memref<144x64xf32, #tpu.memory_space<vmem>>) attributes {dimension_semantics = [#tpu.dimension_semantics<parallel>], iteration_bounds = array<i64: 2>, scalar_prefetch = 0 : i64, scratch_operands = 5 : i64, tpu.core_type = #tpu.core_type<tc>, window_params = [{transform_indices = @transform_0, window_bounds = array<i64: 1, 128, 4>}, {pipeline_mode = #tpu.pipeline_mode<synchronous>, transform_indices = @transform_1, window_bounds = array<i64: 8, 4, 32>}, {pipeline_mode = #tpu.pipeline_mode<synchronous>, transform_indices = @transform_2, window_bounds = array<i64: 5, 32, 32>}, {pipeline_mode = #tpu.pipeline_mode<synchronous>, transform_indices = @transform_3, window_bounds = array<i64: 3, 32, 32>}, {pipeline_mode = #tpu.pipeline_mode<synchronous>, transform_indices = @transform_4, window_bounds = array<i64: 1, 4, 32>}, {pipeline_mode = #tpu.pipeline_mode<synchronous>, transform_indices = @transform_5, window_bounds = array<i64: 8, 32, 64>}, {pipeline_mode = #tpu.pipeline_mode<synchronous>, transform_indices = @transform_6, window_bounds = array<i64: 5, 64, 64>}, {pipeline_mode = #tpu.pipeline_mode<synchronous>, transform_indices = @transform_7, window_bounds = array<i64: 3, 64, 64>}, {pipeline_mode = #tpu.pipeline_mode<synchronous>, transform_indices = @transform_8, window_bounds = array<i64: 1, 32, 64>}, {pipeline_mode = #tpu.pipeline_mode<synchronous>, transform_indices = @transform_9, window_bounds = array<i64: 8, 64, 64>}, {pipeline_mode = #tpu.pipeline_mode<synchronous>, transform_indices = @transform_10, window_bounds = array<i64: 5, 64, 64>}, {pipeline_mode = #tpu.pipeline_mode<synchronous>, transform_indices = @transform_11, window_bounds = array<i64: 3, 64, 64>}, {pipeline_mode = #tpu.pipeline_mode<synchronous>, transform_indices = @transform_12, window_bounds = array<i64: 1, 32>}, {pipeline_mode = #tpu.pipeline_mode<synchronous>, transform_indices = @transform_13, window_bounds = array<i64: 1, 32>}, {pipeline_mode = #tpu.pipeline_mode<synchronous>, transform_indices = @transform_14, window_bounds = array<i64: 1, 32>}, {pipeline_mode = #tpu.pipeline_mode<synchronous>, transform_indices = @transform_15, window_bounds = array<i64: 1, 32>}, {pipeline_mode = #tpu.pipeline_mode<synchronous>, transform_indices = @transform_16, window_bounds = array<i64: 1, 64>}, {pipeline_mode = #tpu.pipeline_mode<synchronous>, transform_indices = @transform_17, window_bounds = array<i64: 1, 64>}, {pipeline_mode = #tpu.pipeline_mode<synchronous>, transform_indices = @transform_18, window_bounds = array<i64: 1, 64>}, {pipeline_mode = #tpu.pipeline_mode<synchronous>, transform_indices = @transform_19, window_bounds = array<i64: 1, 64>}, {pipeline_mode = #tpu.pipeline_mode<synchronous>, transform_indices = @transform_20, window_bounds = array<i64: 1, 64>}, {pipeline_mode = #tpu.pipeline_mode<synchronous>, transform_indices = @transform_21, window_bounds = array<i64: 1, 64>}, {pipeline_mode = #tpu.pipeline_mode<synchronous>, transform_indices = @transform_22, window_bounds = array<i64: 1, 64>}, {pipeline_mode = #tpu.pipeline_mode<synchronous>, transform_indices = @transform_23, window_bounds = array<i64: 1, 64>}, {pipeline_mode = #tpu.pipeline_mode<synchronous>, transform_indices = @transform_24, window_bounds = array<i64: 1, 64>}, {pipeline_mode = #tpu.pipeline_mode<synchronous>, transform_indices = @transform_25, window_bounds = array<i64: 128, 10>}, {pipeline_mode = #tpu.pipeline_mode<synchronous>, transform_indices = @transform_26, window_bounds = array<i64: 1, 10>}, {transform_indices = @transform_27, window_bounds = array<i64: 1, 1, 10>}, {transform_indices = @transform_28, window_bounds = array<i64: 1, 1, 128>}]} {
    %cst = arith.constant 0.000000e+00 : f32
    %0 = vector.broadcast %cst : f32 to vector<144x4xf32>
    %c0 = arith.constant 0 : index
    %c0_0 = arith.constant 0 : index
    %1 = vector.load %arg30[%c0, %c0_0] : memref<144x4xf32, #tpu.memory_space<vmem>>, vector<144x4xf32>
    tpu.vector_store %arg30[%c0, %c0_0], %0 {strides = array<i32>} : memref<144x4xf32, #tpu.memory_space<vmem>>, vector<144x4xf32>,
    %cst_1 = arith.constant 0.000000e+00 : f32
    %2 = vector.broadcast %cst_1 : f32 to vector<144x32xf32>
    %c0_2 = arith.constant 0 : index
    %c0_3 = arith.constant 0 : index
    %3 = vector.load %arg31[%c0_2, %c0_3] : memref<144x32xf32, #tpu.memory_space<vmem>>, vector<144x32xf32>
    tpu.vector_store %arg31[%c0_2, %c0_3], %2 {strides = array<i32>} : memref<144x32xf32, #tpu.memory_space<vmem>>, vector<144x32xf32>,
    %cst_4 = arith.constant 0.000000e+00 : f32
    %4 = vector.broadcast %cst_4 : f32 to vector<144x32xf32>
    %c0_5 = arith.constant 0 : index
    %c0_6 = arith.constant 0 : index
    %5 = vector.load %arg32[%c0_5, %c0_6] : memref<144x32xf32, #tpu.memory_space<vmem>>, vector<144x32xf32>
    tpu.vector_store %arg32[%c0_5, %c0_6], %4 {strides = array<i32>} : memref<144x32xf32, #tpu.memory_space<vmem>>, vector<144x32xf32>,
    %cst_7 = arith.constant 0.000000e+00 : f32
    %6 = vector.broadcast %cst_7 : f32 to vector<144x64xf32>
    %c0_8 = arith.constant 0 : index
    %c0_9 = arith.constant 0 : index
    %7 = vector.load %arg33[%c0_8, %c0_9] : memref<144x64xf32, #tpu.memory_space<vmem>>, vector<144x64xf32>
    tpu.vector_store %arg33[%c0_8, %c0_9], %6 {strides = array<i32>} : memref<144x64xf32, #tpu.memory_space<vmem>>, vector<144x64xf32>,
    %cst_10 = arith.constant 0.000000e+00 : f32
    %8 = vector.broadcast %cst_10 : f32 to vector<144x64xf32>
    %c0_11 = arith.constant 0 : index
    %c0_12 = arith.constant 0 : index
    %9 = vector.load %arg34[%c0_11, %c0_12] : memref<144x64xf32, #tpu.memory_space<vmem>>, vector<144x64xf32>
    tpu.vector_store %arg34[%c0_11, %c0_12], %8 {strides = array<i32>} : memref<144x64xf32, #tpu.memory_space<vmem>>, vector<144x64xf32>,
    %c0_13 = arith.constant 0 : index
    %c0_14 = arith.constant 0 : index
    %c0_15 = arith.constant 0 : index
    %10 = vector.load %arg1[%c0_13, %c0_14, %c0_15] : memref<1x128x4xf32, #tpu.memory_space<vmem>>, vector<1x128x4xf32>
    %11 = vector.shape_cast %10 : vector<1x128x4xf32> to vector<128x4xf32>
    %c8 = arith.constant 8 : index
    %c0_16 = arith.constant 0 : index
    %12 = vector.load %arg30[%c8, %c0_16] : memref<144x4xf32, #tpu.memory_space<vmem>>, vector<128x4xf32>
    tpu.vector_store %arg30[%c8, %c0_16], %11 {strides = array<i32>} : memref<144x4xf32, #tpu.memory_space<vmem>>, vector<128x4xf32>,
    %cst_17 = arith.constant 0.000000e+00 : f32
    %13 = vector.broadcast %cst_17 : f32 to vector<128x32xf32>
    %c5 = arith.constant 5 : index
    %c0_18 = arith.constant 0 : index
    %14 = vector.load %arg30[%c5, %c0_18] : memref<144x4xf32, #tpu.memory_space<vmem>>, vector<128x4xf32>
    %c0_19 = arith.constant 0 : index
    %c0_20 = arith.constant 0 : index
    %c0_21 = arith.constant 0 : index
    %15 = vector.load %arg2[%c0_19, %c0_20, %c0_21] : memref<8x4x32xf32, #tpu.memory_space<vmem>>, vector<1x4x32xf32>
    %16 = vector.shape_cast %15 : vector<1x4x32xf32> to vector<4x32xf32>
    %cst_22 = arith.constant dense<0.000000e+00> : vector<128x32xf32>
    %17 = tpu.matmul %14, %16, %cst_22 {dimension_numbers = #tpu.dot_dimension_numbers<[1], [0], [0], [1], [0, 0, 1, 1], [], []>} : vector<128x4xf32>, vector<4x32xf32>, vector<128x32xf32> -> vector<128x32xf32>
    %18 = arith.addf %13, %17 : vector<128x32xf32>
    %c6 = arith.constant 6 : index
    %c0_23 = arith.constant 0 : index
    %19 = vector.load %arg30[%c6, %c0_23] : memref<144x4xf32, #tpu.memory_space<vmem>>, vector<128x4xf32>
    %c1 = arith.constant 1 : index
    %c0_24 = arith.constant 0 : index
    %c0_25 = arith.constant 0 : index
    %20 = vector.load %arg2[%c1, %c0_24, %c0_25] : memref<8x4x32xf32, #tpu.memory_space<vmem>>, vector<1x4x32xf32>
    %21 = vector.shape_cast %20 : vector<1x4x32xf32> to vector<4x32xf32>
    %cst_26 = arith.constant dense<0.000000e+00> : vector<128x32xf32>
    %22 = tpu.matmul %19, %21, %cst_26 {dimension_numbers = #tpu.dot_dimension_numbers<[1], [0], [0], [1], [0, 0, 1, 1], [], []>} : vector<128x4xf32>, vector<4x32xf32>, vector<128x32xf32> -> vector<128x32xf32>
    %23 = arith.addf %18, %22 : vector<128x32xf32>
    %c7 = arith.constant 7 : index
    %c0_27 = arith.constant 0 : index
    %24 = vector.load %arg30[%c7, %c0_27] : memref<144x4xf32, #tpu.memory_space<vmem>>, vector<128x4xf32>
    %c2 = arith.constant 2 : index
    %c0_28 = arith.constant 0 : index
    %c0_29 = arith.constant 0 : index
    %25 = vector.load %arg2[%c2, %c0_28, %c0_29] : memref<8x4x32xf32, #tpu.memory_space<vmem>>, vector<1x4x32xf32>
    %26 = vector.shape_cast %25 : vector<1x4x32xf32> to vector<4x32xf32>
    %cst_30 = arith.constant dense<0.000000e+00> : vector<128x32xf32>
    %27 = tpu.matmul %24, %26, %cst_30 {dimension_numbers = #tpu.dot_dimension_numbers<[1], [0], [0], [1], [0, 0, 1, 1], [], []>} : vector<128x4xf32>, vector<4x32xf32>, vector<128x32xf32> -> vector<128x32xf32>
    %28 = arith.addf %23, %27 : vector<128x32xf32>
    %c8_31 = arith.constant 8 : index
    %c0_32 = arith.constant 0 : index
    %29 = vector.load %arg30[%c8_31, %c0_32] : memref<144x4xf32, #tpu.memory_space<vmem>>, vector<128x4xf32>
    %c3 = arith.constant 3 : index
    %c0_33 = arith.constant 0 : index
    %c0_34 = arith.constant 0 : index
    %30 = vector.load %arg2[%c3, %c0_33, %c0_34] : memref<8x4x32xf32, #tpu.memory_space<vmem>>, vector<1x4x32xf32>
    %31 = vector.shape_cast %30 : vector<1x4x32xf32> to vector<4x32xf32>
    %cst_35 = arith.constant dense<0.000000e+00> : vector<128x32xf32>
    %32 = tpu.matmul %29, %31, %cst_35 {dimension_numbers = #tpu.dot_dimension_numbers<[1], [0], [0], [1], [0, 0, 1, 1], [], []>} : vector<128x4xf32>, vector<4x32xf32>, vector<128x32xf32> -> vector<128x32xf32>
    %33 = arith.addf %28, %32 : vector<128x32xf32>
    %c9 = arith.constant 9 : index
    %c0_36 = arith.constant 0 : index
    %34 = vector.load %arg30[%c9, %c0_36] : memref<144x4xf32, #tpu.memory_space<vmem>>, vector<128x4xf32>
    %c4 = arith.constant 4 : index
    %c0_37 = arith.constant 0 : index
    %c0_38 = arith.constant 0 : index
    %35 = vector.load %arg2[%c4, %c0_37, %c0_38] : memref<8x4x32xf32, #tpu.memory_space<vmem>>, vector<1x4x32xf32>
    %36 = vector.shape_cast %35 : vector<1x4x32xf32> to vector<4x32xf32>
    %cst_39 = arith.constant dense<0.000000e+00> : vector<128x32xf32>
    %37 = tpu.matmul %34, %36, %cst_39 {dimension_numbers = #tpu.dot_dimension_numbers<[1], [0], [0], [1], [0, 0, 1, 1], [], []>} : vector<128x4xf32>, vector<4x32xf32>, vector<128x32xf32> -> vector<128x32xf32>
    %38 = arith.addf %33, %37 : vector<128x32xf32>
    %c10 = arith.constant 10 : index
    %c0_40 = arith.constant 0 : index
    %39 = vector.load %arg30[%c10, %c0_40] : memref<144x4xf32, #tpu.memory_space<vmem>>, vector<128x4xf32>
    %c5_41 = arith.constant 5 : index
    %c0_42 = arith.constant 0 : index
    %c0_43 = arith.constant 0 : index
    %40 = vector.load %arg2[%c5_41, %c0_42, %c0_43] : memref<8x4x32xf32, #tpu.memory_space<vmem>>, vector<1x4x32xf32>
    %41 = vector.shape_cast %40 : vector<1x4x32xf32> to vector<4x32xf32>
    %cst_44 = arith.constant dense<0.000000e+00> : vector<128x32xf32>
    %42 = tpu.matmul %39, %41, %cst_44 {dimension_numbers = #tpu.dot_dimension_numbers<[1], [0], [0], [1], [0, 0, 1, 1], [], []>} : vector<128x4xf32>, vector<4x32xf32>, vector<128x32xf32> -> vector<128x32xf32>
    %43 = arith.addf %38, %42 : vector<128x32xf32>
    %c11 = arith.constant 11 : index
    %c0_45 = arith.constant 0 : index
    %44 = vector.load %arg30[%c11, %c0_45] : memref<144x4xf32, #tpu.memory_space<vmem>>, vector<128x4xf32>
    %c6_46 = arith.constant 6 : index
    %c0_47 = arith.constant 0 : index
    %c0_48 = arith.constant 0 : index
    %45 = vector.load %arg2[%c6_46, %c0_47, %c0_48] : memref<8x4x32xf32, #tpu.memory_space<vmem>>, vector<1x4x32xf32>
    %46 = vector.shape_cast %45 : vector<1x4x32xf32> to vector<4x32xf32>
    %cst_49 = arith.constant dense<0.000000e+00> : vector<128x32xf32>
    %47 = tpu.matmul %44, %46, %cst_49 {dimension_numbers = #tpu.dot_dimension_numbers<[1], [0], [0], [1], [0, 0, 1, 1], [], []>} : vector<128x4xf32>, vector<4x32xf32>, vector<128x32xf32> -> vector<128x32xf32>
    %48 = arith.addf %43, %47 : vector<128x32xf32>
    %c12 = arith.constant 12 : index
    %c0_50 = arith.constant 0 : index
    %49 = vector.load %arg30[%c12, %c0_50] : memref<144x4xf32, #tpu.memory_space<vmem>>, vector<128x4xf32>
    %c7_51 = arith.constant 7 : index
    %c0_52 = arith.constant 0 : index
    %c0_53 = arith.constant 0 : index
    %50 = vector.load %arg2[%c7_51, %c0_52, %c0_53] : memref<8x4x32xf32, #tpu.memory_space<vmem>>, vector<1x4x32xf32>
    %51 = vector.shape_cast %50 : vector<1x4x32xf32> to vector<4x32xf32>
    %cst_54 = arith.constant dense<0.000000e+00> : vector<128x32xf32>
    %52 = tpu.matmul %49, %51, %cst_54 {dimension_numbers = #tpu.dot_dimension_numbers<[1], [0], [0], [1], [0, 0, 1, 1], [], []>} : vector<128x4xf32>, vector<4x32xf32>, vector<128x32xf32> -> vector<128x32xf32>
    %53 = arith.addf %48, %52 : vector<128x32xf32>
    %c0_55 = arith.constant 0 : index
    %c0_56 = arith.constant 0 : index
    %54 = vector.load %arg13[%c0_55, %c0_56] : memref<1x32xf32, #tpu.memory_space<vmem>>, vector<1x32xf32>
    %55 = vector.broadcast %54 : vector<1x32xf32> to vector<128x32xf32>
    %56 = arith.addf %53, %55 : vector<128x32xf32>
    %cst_57 = arith.constant 0.000000e+00 : f32
    %57 = vector.broadcast %cst_57 : f32 to vector<128x32xf32>
    %58 = arith.maximumf %56, %57 : vector<128x32xf32>
    %c8_58 = arith.constant 8 : index
    %c0_59 = arith.constant 0 : index
    %59 = vector.load %arg31[%c8_58, %c0_59] : memref<144x32xf32, #tpu.memory_space<vmem>>, vector<128x32xf32>
    tpu.vector_store %arg31[%c8_58, %c0_59], %58 {strides = array<i32>} : memref<144x32xf32, #tpu.memory_space<vmem>>, vector<128x32xf32>,
    %cst_60 = arith.constant 0.000000e+00 : f32
    %60 = vector.broadcast %cst_60 : f32 to vector<128x32xf32>
    %c6_61 = arith.constant 6 : index
    %c0_62 = arith.constant 0 : index
    %61 = vector.load %arg31[%c6_61, %c0_62] : memref<144x32xf32, #tpu.memory_space<vmem>>, vector<128x32xf32>
    %c0_63 = arith.constant 0 : index
    %c0_64 = arith.constant 0 : index
    %c0_65 = arith.constant 0 : index
    %62 = vector.load %arg3[%c0_63, %c0_64, %c0_65] : memref<5x32x32xf32, #tpu.memory_space<vmem>>, vector<1x32x32xf32>
    %63 = vector.shape_cast %62 : vector<1x32x32xf32> to vector<32x32xf32>
    %cst_66 = arith.constant dense<0.000000e+00> : vector<128x32xf32>
    %64 = tpu.matmul %61, %63, %cst_66 {dimension_numbers = #tpu.dot_dimension_numbers<[1], [0], [0], [1], [0, 0, 1, 1], [], []>} : vector<128x32xf32>, vector<32x32xf32>, vector<128x32xf32> -> vector<128x32xf32>
    %65 = arith.addf %60, %64 : vector<128x32xf32>
    %c7_67 = arith.constant 7 : index
    %c0_68 = arith.constant 0 : index
    %66 = vector.load %arg31[%c7_67, %c0_68] : memref<144x32xf32, #tpu.memory_space<vmem>>, vector<128x32xf32>
    %c1_69 = arith.constant 1 : index
    %c0_70 = arith.constant 0 : index
    %c0_71 = arith.constant 0 : index
    %67 = vector.load %arg3[%c1_69, %c0_70, %c0_71] : memref<5x32x32xf32, #tpu.memory_space<vmem>>, vector<1x32x32xf32>
    %68 = vector.shape_cast %67 : vector<1x32x32xf32> to vector<32x32xf32>
    %cst_72 = arith.constant dense<0.000000e+00> : vector<128x32xf32>
    %69 = tpu.matmul %66, %68, %cst_72 {dimension_numbers = #tpu.dot_dimension_numbers<[1], [0], [0], [1], [0, 0, 1, 1], [], []>} : vector<128x32xf32>, vector<32x32xf32>, vector<128x32xf32> -> vector<128x32xf32>
    %70 = arith.addf %65, %69 : vector<128x32xf32>
    %c8_73 = arith.constant 8 : index
    %c0_74 = arith.constant 0 : index
    %71 = vector.load %arg31[%c8_73, %c0_74] : memref<144x32xf32, #tpu.memory_space<vmem>>, vector<128x32xf32>
    %c2_75 = arith.constant 2 : index
    %c0_76 = arith.constant 0 : index
    %c0_77 = arith.constant 0 : index
    %72 = vector.load %arg3[%c2_75, %c0_76, %c0_77] : memref<5x32x32xf32, #tpu.memory_space<vmem>>, vector<1x32x32xf32>
    %73 = vector.shape_cast %72 : vector<1x32x32xf32> to vector<32x32xf32>
    %cst_78 = arith.constant dense<0.000000e+00> : vector<128x32xf32>
    %74 = tpu.matmul %71, %73, %cst_78 {dimension_numbers = #tpu.dot_dimension_numbers<[1], [0], [0], [1], [0, 0, 1, 1], [], []>} : vector<128x32xf32>, vector<32x32xf32>, vector<128x32xf32> -> vector<128x32xf32>
    %75 = arith.addf %70, %74 : vector<128x32xf32>
    %c9_79 = arith.constant 9 : index
    %c0_80 = arith.constant 0 : index
    %76 = vector.load %arg31[%c9_79, %c0_80] : memref<144x32xf32, #tpu.memory_space<vmem>>, vector<128x32xf32>
    %c3_81 = arith.constant 3 : index
    %c0_82 = arith.constant 0 : index
    %c0_83 = arith.constant 0 : index
    %77 = vector.load %arg3[%c3_81, %c0_82, %c0_83] : memref<5x32x32xf32, #tpu.memory_space<vmem>>, vector<1x32x32xf32>
    %78 = vector.shape_cast %77 : vector<1x32x32xf32> to vector<32x32xf32>
    %cst_84 = arith.constant dense<0.000000e+00> : vector<128x32xf32>
    %79 = tpu.matmul %76, %78, %cst_84 {dimension_numbers = #tpu.dot_dimension_numbers<[1], [0], [0], [1], [0, 0, 1, 1], [], []>} : vector<128x32xf32>, vector<32x32xf32>, vector<128x32xf32> -> vector<128x32xf32>
    %80 = arith.addf %75, %79 : vector<128x32xf32>
    %c10_85 = arith.constant 10 : index
    %c0_86 = arith.constant 0 : index
    %81 = vector.load %arg31[%c10_85, %c0_86] : memref<144x32xf32, #tpu.memory_space<vmem>>, vector<128x32xf32>
    %c4_87 = arith.constant 4 : index
    %c0_88 = arith.constant 0 : index
    %c0_89 = arith.constant 0 : index
    %82 = vector.load %arg3[%c4_87, %c0_88, %c0_89] : memref<5x32x32xf32, #tpu.memory_space<vmem>>, vector<1x32x32xf32>
    %83 = vector.shape_cast %82 : vector<1x32x32xf32> to vector<32x32xf32>
    %cst_90 = arith.constant dense<0.000000e+00> : vector<128x32xf32>
    %84 = tpu.matmul %81, %83, %cst_90 {dimension_numbers = #tpu.dot_dimension_numbers<[1], [0], [0], [1], [0, 0, 1, 1], [], []>} : vector<128x32xf32>, vector<32x32xf32>, vector<128x32xf32> -> vector<128x32xf32>
    %85 = arith.addf %80, %84 : vector<128x32xf32>
    %c0_91 = arith.constant 0 : index
    %c0_92 = arith.constant 0 : index
    %86 = vector.load %arg14[%c0_91, %c0_92] : memref<1x32xf32, #tpu.memory_space<vmem>>, vector<1x32xf32>
    %87 = vector.broadcast %86 : vector<1x32xf32> to vector<128x32xf32>
    %88 = arith.addf %85, %87 : vector<128x32xf32>
    %cst_93 = arith.constant 0.000000e+00 : f32
    %89 = vector.broadcast %cst_93 : f32 to vector<128x32xf32>
    %90 = arith.maximumf %88, %89 : vector<128x32xf32>
    %c8_94 = arith.constant 8 : index
    %c0_95 = arith.constant 0 : index
    %91 = vector.load %arg32[%c8_94, %c0_95] : memref<144x32xf32, #tpu.memory_space<vmem>>, vector<128x32xf32>
    tpu.vector_store %arg32[%c8_94, %c0_95], %90 {strides = array<i32>} : memref<144x32xf32, #tpu.memory_space<vmem>>, vector<128x32xf32>,
    %cst_96 = arith.constant 0.000000e+00 : f32
    %92 = vector.broadcast %cst_96 : f32 to vector<128x32xf32>
    %c7_97 = arith.constant 7 : index
    %c0_98 = arith.constant 0 : index
    %93 = vector.load %arg32[%c7_97, %c0_98] : memref<144x32xf32, #tpu.memory_space<vmem>>, vector<128x32xf32>
    %c0_99 = arith.constant 0 : index
    %c0_100 = arith.constant 0 : index
    %c0_101 = arith.constant 0 : index
    %94 = vector.load %arg4[%c0_99, %c0_100, %c0_101] : memref<3x32x32xf32, #tpu.memory_space<vmem>>, vector<1x32x32xf32>
    %95 = vector.shape_cast %94 : vector<1x32x32xf32> to vector<32x32xf32>
    %cst_102 = arith.constant dense<0.000000e+00> : vector<128x32xf32>
    %96 = tpu.matmul %93, %95, %cst_102 {dimension_numbers = #tpu.dot_dimension_numbers<[1], [0], [0], [1], [0, 0, 1, 1], [], []>} : vector<128x32xf32>, vector<32x32xf32>, vector<128x32xf32> -> vector<128x32xf32>
    %97 = arith.addf %92, %96 : vector<128x32xf32>
    %c8_103 = arith.constant 8 : index
    %c0_104 = arith.constant 0 : index
    %98 = vector.load %arg32[%c8_103, %c0_104] : memref<144x32xf32, #tpu.memory_space<vmem>>, vector<128x32xf32>
    %c1_105 = arith.constant 1 : index
    %c0_106 = arith.constant 0 : index
    %c0_107 = arith.constant 0 : index
    %99 = vector.load %arg4[%c1_105, %c0_106, %c0_107] : memref<3x32x32xf32, #tpu.memory_space<vmem>>, vector<1x32x32xf32>
    %100 = vector.shape_cast %99 : vector<1x32x32xf32> to vector<32x32xf32>
    %cst_108 = arith.constant dense<0.000000e+00> : vector<128x32xf32>
    %101 = tpu.matmul %98, %100, %cst_108 {dimension_numbers = #tpu.dot_dimension_numbers<[1], [0], [0], [1], [0, 0, 1, 1], [], []>} : vector<128x32xf32>, vector<32x32xf32>, vector<128x32xf32> -> vector<128x32xf32>
    %102 = arith.addf %97, %101 : vector<128x32xf32>
    %c9_109 = arith.constant 9 : index
    %c0_110 = arith.constant 0 : index
    %103 = vector.load %arg32[%c9_109, %c0_110] : memref<144x32xf32, #tpu.memory_space<vmem>>, vector<128x32xf32>
    %c2_111 = arith.constant 2 : index
    %c0_112 = arith.constant 0 : index
    %c0_113 = arith.constant 0 : index
    %104 = vector.load %arg4[%c2_111, %c0_112, %c0_113] : memref<3x32x32xf32, #tpu.memory_space<vmem>>, vector<1x32x32xf32>
    %105 = vector.shape_cast %104 : vector<1x32x32xf32> to vector<32x32xf32>
    %cst_114 = arith.constant dense<0.000000e+00> : vector<128x32xf32>
    %106 = tpu.matmul %103, %105, %cst_114 {dimension_numbers = #tpu.dot_dimension_numbers<[1], [0], [0], [1], [0, 0, 1, 1], [], []>} : vector<128x32xf32>, vector<32x32xf32>, vector<128x32xf32> -> vector<128x32xf32>
    %107 = arith.addf %102, %106 : vector<128x32xf32>
    %c0_115 = arith.constant 0 : index
    %c0_116 = arith.constant 0 : index
    %108 = vector.load %arg15[%c0_115, %c0_116] : memref<1x32xf32, #tpu.memory_space<vmem>>, vector<1x32xf32>
    %109 = vector.broadcast %108 : vector<1x32xf32> to vector<128x32xf32>
    %110 = arith.addf %107, %109 : vector<128x32xf32>
    %cst_117 = arith.constant 0.000000e+00 : f32
    %111 = vector.broadcast %cst_117 : f32 to vector<128x32xf32>
    %112 = arith.maximumf %110, %111 : vector<128x32xf32>
    %cst_118 = arith.constant 0.000000e+00 : f32
    %113 = vector.broadcast %cst_118 : f32 to vector<128x32xf32>
    %c8_119 = arith.constant 8 : index
    %c0_120 = arith.constant 0 : index
    %114 = vector.load %arg30[%c8_119, %c0_120] : memref<144x4xf32, #tpu.memory_space<vmem>>, vector<128x4xf32>
    %c0_121 = arith.constant 0 : index
    %c0_122 = arith.constant 0 : index
    %c0_123 = arith.constant 0 : index
    %115 = vector.load %arg5[%c0_121, %c0_122, %c0_123] : memref<1x4x32xf32, #tpu.memory_space<vmem>>, vector<1x4x32xf32>
    %116 = vector.shape_cast %115 : vector<1x4x32xf32> to vector<4x32xf32>
    %cst_124 = arith.constant dense<0.000000e+00> : vector<128x32xf32>
    %117 = tpu.matmul %114, %116, %cst_124 {dimension_numbers = #tpu.dot_dimension_numbers<[1], [0], [0], [1], [0, 0, 1, 1], [], []>} : vector<128x4xf32>, vector<4x32xf32>, vector<128x32xf32> -> vector<128x32xf32>
    %118 = arith.addf %113, %117 : vector<128x32xf32>
    %c0_125 = arith.constant 0 : index
    %c0_126 = arith.constant 0 : index
    %119 = vector.load %arg16[%c0_125, %c0_126] : memref<1x32xf32, #tpu.memory_space<vmem>>, vector<1x32xf32>
    %120 = vector.broadcast %119 : vector<1x32xf32> to vector<128x32xf32>
    %121 = arith.addf %118, %120 : vector<128x32xf32>
    %122 = arith.addf %112, %121 : vector<128x32xf32>
    %cst_127 = arith.constant 0.000000e+00 : f32
    %123 = vector.broadcast %cst_127 : f32 to vector<128x32xf32>
    %124 = arith.maximumf %122, %123 : vector<128x32xf32>
    %c8_128 = arith.constant 8 : index
    %c0_129 = arith.constant 0 : index
    %125 = vector.load %arg31[%c8_128, %c0_129] : memref<144x32xf32, #tpu.memory_space<vmem>>, vector<128x32xf32>
    tpu.vector_store %arg31[%c8_128, %c0_129], %124 {strides = array<i32>} : memref<144x32xf32, #tpu.memory_space<vmem>>, vector<128x32xf32>,
    %cst_130 = arith.constant 0.000000e+00 : f32
    %126 = vector.broadcast %cst_130 : f32 to vector<128x64xf32>
    %c5_131 = arith.constant 5 : index
    %c0_132 = arith.constant 0 : index
    %127 = vector.load %arg31[%c5_131, %c0_132] : memref<144x32xf32, #tpu.memory_space<vmem>>, vector<128x32xf32>
    %c0_133 = arith.constant 0 : index
    %c0_134 = arith.constant 0 : index
    %c0_135 = arith.constant 0 : index
    %128 = vector.load %arg6[%c0_133, %c0_134, %c0_135] : memref<8x32x64xf32, #tpu.memory_space<vmem>>, vector<1x32x64xf32>
    %129 = vector.shape_cast %128 : vector<1x32x64xf32> to vector<32x64xf32>
    %cst_136 = arith.constant dense<0.000000e+00> : vector<128x64xf32>
    %130 = tpu.matmul %127, %129, %cst_136 {dimension_numbers = #tpu.dot_dimension_numbers<[1], [0], [0], [1], [0, 0, 1, 1], [], []>} : vector<128x32xf32>, vector<32x64xf32>, vector<128x64xf32> -> vector<128x64xf32>
    %131 = arith.addf %126, %130 : vector<128x64xf32>
    %c6_137 = arith.constant 6 : index
    %c0_138 = arith.constant 0 : index
    %132 = vector.load %arg31[%c6_137, %c0_138] : memref<144x32xf32, #tpu.memory_space<vmem>>, vector<128x32xf32>
    %c1_139 = arith.constant 1 : index
    %c0_140 = arith.constant 0 : index
    %c0_141 = arith.constant 0 : index
    %133 = vector.load %arg6[%c1_139, %c0_140, %c0_141] : memref<8x32x64xf32, #tpu.memory_space<vmem>>, vector<1x32x64xf32>
    %134 = vector.shape_cast %133 : vector<1x32x64xf32> to vector<32x64xf32>
    %cst_142 = arith.constant dense<0.000000e+00> : vector<128x64xf32>
    %135 = tpu.matmul %132, %134, %cst_142 {dimension_numbers = #tpu.dot_dimension_numbers<[1], [0], [0], [1], [0, 0, 1, 1], [], []>} : vector<128x32xf32>, vector<32x64xf32>, vector<128x64xf32> -> vector<128x64xf32>
    %136 = arith.addf %131, %135 : vector<128x64xf32>
    %c7_143 = arith.constant 7 : index
    %c0_144 = arith.constant 0 : index
    %137 = vector.load %arg31[%c7_143, %c0_144] : memref<144x32xf32, #tpu.memory_space<vmem>>, vector<128x32xf32>
    %c2_145 = arith.constant 2 : index
    %c0_146 = arith.constant 0 : index
    %c0_147 = arith.constant 0 : index
    %138 = vector.load %arg6[%c2_145, %c0_146, %c0_147] : memref<8x32x64xf32, #tpu.memory_space<vmem>>, vector<1x32x64xf32>
    %139 = vector.shape_cast %138 : vector<1x32x64xf32> to vector<32x64xf32>
    %cst_148 = arith.constant dense<0.000000e+00> : vector<128x64xf32>
    %140 = tpu.matmul %137, %139, %cst_148 {dimension_numbers = #tpu.dot_dimension_numbers<[1], [0], [0], [1], [0, 0, 1, 1], [], []>} : vector<128x32xf32>, vector<32x64xf32>, vector<128x64xf32> -> vector<128x64xf32>
    %141 = arith.addf %136, %140 : vector<128x64xf32>
    %c8_149 = arith.constant 8 : index
    %c0_150 = arith.constant 0 : index
    %142 = vector.load %arg31[%c8_149, %c0_150] : memref<144x32xf32, #tpu.memory_space<vmem>>, vector<128x32xf32>
    %c3_151 = arith.constant 3 : index
    %c0_152 = arith.constant 0 : index
    %c0_153 = arith.constant 0 : index
    %143 = vector.load %arg6[%c3_151, %c0_152, %c0_153] : memref<8x32x64xf32, #tpu.memory_space<vmem>>, vector<1x32x64xf32>
    %144 = vector.shape_cast %143 : vector<1x32x64xf32> to vector<32x64xf32>
    %cst_154 = arith.constant dense<0.000000e+00> : vector<128x64xf32>
    %145 = tpu.matmul %142, %144, %cst_154 {dimension_numbers = #tpu.dot_dimension_numbers<[1], [0], [0], [1], [0, 0, 1, 1], [], []>} : vector<128x32xf32>, vector<32x64xf32>, vector<128x64xf32> -> vector<128x64xf32>
    %146 = arith.addf %141, %145 : vector<128x64xf32>
    %c9_155 = arith.constant 9 : index
    %c0_156 = arith.constant 0 : index
    %147 = vector.load %arg31[%c9_155, %c0_156] : memref<144x32xf32, #tpu.memory_space<vmem>>, vector<128x32xf32>
    %c4_157 = arith.constant 4 : index
    %c0_158 = arith.constant 0 : index
    %c0_159 = arith.constant 0 : index
    %148 = vector.load %arg6[%c4_157, %c0_158, %c0_159] : memref<8x32x64xf32, #tpu.memory_space<vmem>>, vector<1x32x64xf32>
    %149 = vector.shape_cast %148 : vector<1x32x64xf32> to vector<32x64xf32>
    %cst_160 = arith.constant dense<0.000000e+00> : vector<128x64xf32>
    %150 = tpu.matmul %147, %149, %cst_160 {dimension_numbers = #tpu.dot_dimension_numbers<[1], [0], [0], [1], [0, 0, 1, 1], [], []>} : vector<128x32xf32>, vector<32x64xf32>, vector<128x64xf32> -> vector<128x64xf32>
    %151 = arith.addf %146, %150 : vector<128x64xf32>
    %c10_161 = arith.constant 10 : index
    %c0_162 = arith.constant 0 : index
    %152 = vector.load %arg31[%c10_161, %c0_162] : memref<144x32xf32, #tpu.memory_space<vmem>>, vector<128x32xf32>
    %c5_163 = arith.constant 5 : index
    %c0_164 = arith.constant 0 : index
    %c0_165 = arith.constant 0 : index
    %153 = vector.load %arg6[%c5_163, %c0_164, %c0_165] : memref<8x32x64xf32, #tpu.memory_space<vmem>>, vector<1x32x64xf32>
    %154 = vector.shape_cast %153 : vector<1x32x64xf32> to vector<32x64xf32>
    %cst_166 = arith.constant dense<0.000000e+00> : vector<128x64xf32>
    %155 = tpu.matmul %152, %154, %cst_166 {dimension_numbers = #tpu.dot_dimension_numbers<[1], [0], [0], [1], [0, 0, 1, 1], [], []>} : vector<128x32xf32>, vector<32x64xf32>, vector<128x64xf32> -> vector<128x64xf32>
    %156 = arith.addf %151, %155 : vector<128x64xf32>
    %c11_167 = arith.constant 11 : index
    %c0_168 = arith.constant 0 : index
    %157 = vector.load %arg31[%c11_167, %c0_168] : memref<144x32xf32, #tpu.memory_space<vmem>>, vector<128x32xf32>
    %c6_169 = arith.constant 6 : index
    %c0_170 = arith.constant 0 : index
    %c0_171 = arith.constant 0 : index
    %158 = vector.load %arg6[%c6_169, %c0_170, %c0_171] : memref<8x32x64xf32, #tpu.memory_space<vmem>>, vector<1x32x64xf32>
    %159 = vector.shape_cast %158 : vector<1x32x64xf32> to vector<32x64xf32>
    %cst_172 = arith.constant dense<0.000000e+00> : vector<128x64xf32>
    %160 = tpu.matmul %157, %159, %cst_172 {dimension_numbers = #tpu.dot_dimension_numbers<[1], [0], [0], [1], [0, 0, 1, 1], [], []>} : vector<128x32xf32>, vector<32x64xf32>, vector<128x64xf32> -> vector<128x64xf32>
    %161 = arith.addf %156, %160 : vector<128x64xf32>
    %c12_173 = arith.constant 12 : index
    %c0_174 = arith.constant 0 : index
    %162 = vector.load %arg31[%c12_173, %c0_174] : memref<144x32xf32, #tpu.memory_space<vmem>>, vector<128x32xf32>
    %c7_175 = arith.constant 7 : index
    %c0_176 = arith.constant 0 : index
    %c0_177 = arith.constant 0 : index
    %163 = vector.load %arg6[%c7_175, %c0_176, %c0_177] : memref<8x32x64xf32, #tpu.memory_space<vmem>>, vector<1x32x64xf32>
    %164 = vector.shape_cast %163 : vector<1x32x64xf32> to vector<32x64xf32>
    %cst_178 = arith.constant dense<0.000000e+00> : vector<128x64xf32>
    %165 = tpu.matmul %162, %164, %cst_178 {dimension_numbers = #tpu.dot_dimension_numbers<[1], [0], [0], [1], [0, 0, 1, 1], [], []>} : vector<128x32xf32>, vector<32x64xf32>, vector<128x64xf32> -> vector<128x64xf32>
    %166 = arith.addf %161, %165 : vector<128x64xf32>
    %c0_179 = arith.constant 0 : index
    %c0_180 = arith.constant 0 : index
    %167 = vector.load %arg17[%c0_179, %c0_180] : memref<1x64xf32, #tpu.memory_space<vmem>>, vector<1x64xf32>
    %168 = vector.broadcast %167 : vector<1x64xf32> to vector<128x64xf32>
    %169 = arith.addf %166, %168 : vector<128x64xf32>
    %cst_181 = arith.constant 0.000000e+00 : f32
    %170 = vector.broadcast %cst_181 : f32 to vector<128x64xf32>
    %171 = arith.maximumf %169, %170 : vector<128x64xf32>
    %c8_182 = arith.constant 8 : index
    %c0_183 = arith.constant 0 : index
    %172 = vector.load %arg33[%c8_182, %c0_183] : memref<144x64xf32, #tpu.memory_space<vmem>>, vector<128x64xf32>
    tpu.vector_store %arg33[%c8_182, %c0_183], %171 {strides = array<i32>} : memref<144x64xf32, #tpu.memory_space<vmem>>, vector<128x64xf32>,
    %cst_184 = arith.constant 0.000000e+00 : f32
    %173 = vector.broadcast %cst_184 : f32 to vector<128x64xf32>
    %c6_185 = arith.constant 6 : index
    %c0_186 = arith.constant 0 : index
    %174 = vector.load %arg33[%c6_185, %c0_186] : memref<144x64xf32, #tpu.memory_space<vmem>>, vector<128x64xf32>
    %c0_187 = arith.constant 0 : index
    %c0_188 = arith.constant 0 : index
    %c0_189 = arith.constant 0 : index
    %175 = vector.load %arg7[%c0_187, %c0_188, %c0_189] : memref<5x64x64xf32, #tpu.memory_space<vmem>>, vector<1x64x64xf32>
    %176 = vector.shape_cast %175 : vector<1x64x64xf32> to vector<64x64xf32>
    %cst_190 = arith.constant dense<0.000000e+00> : vector<128x64xf32>
    %177 = tpu.matmul %174, %176, %cst_190 {dimension_numbers = #tpu.dot_dimension_numbers<[1], [0], [0], [1], [0, 0, 1, 1], [], []>} : vector<128x64xf32>, vector<64x64xf32>, vector<128x64xf32> -> vector<128x64xf32>
    %178 = arith.addf %173, %177 : vector<128x64xf32>
    %c7_191 = arith.constant 7 : index
    %c0_192 = arith.constant 0 : index
    %179 = vector.load %arg33[%c7_191, %c0_192] : memref<144x64xf32, #tpu.memory_space<vmem>>, vector<128x64xf32>
    %c1_193 = arith.constant 1 : index
    %c0_194 = arith.constant 0 : index
    %c0_195 = arith.constant 0 : index
    %180 = vector.load %arg7[%c1_193, %c0_194, %c0_195] : memref<5x64x64xf32, #tpu.memory_space<vmem>>, vector<1x64x64xf32>
    %181 = vector.shape_cast %180 : vector<1x64x64xf32> to vector<64x64xf32>
    %cst_196 = arith.constant dense<0.000000e+00> : vector<128x64xf32>
    %182 = tpu.matmul %179, %181, %cst_196 {dimension_numbers = #tpu.dot_dimension_numbers<[1], [0], [0], [1], [0, 0, 1, 1], [], []>} : vector<128x64xf32>, vector<64x64xf32>, vector<128x64xf32> -> vector<128x64xf32>
    %183 = arith.addf %178, %182 : vector<128x64xf32>
    %c8_197 = arith.constant 8 : index
    %c0_198 = arith.constant 0 : index
    %184 = vector.load %arg33[%c8_197, %c0_198] : memref<144x64xf32, #tpu.memory_space<vmem>>, vector<128x64xf32>
    %c2_199 = arith.constant 2 : index
    %c0_200 = arith.constant 0 : index
    %c0_201 = arith.constant 0 : index
    %185 = vector.load %arg7[%c2_199, %c0_200, %c0_201] : memref<5x64x64xf32, #tpu.memory_space<vmem>>, vector<1x64x64xf32>
    %186 = vector.shape_cast %185 : vector<1x64x64xf32> to vector<64x64xf32>
    %cst_202 = arith.constant dense<0.000000e+00> : vector<128x64xf32>
    %187 = tpu.matmul %184, %186, %cst_202 {dimension_numbers = #tpu.dot_dimension_numbers<[1], [0], [0], [1], [0, 0, 1, 1], [], []>} : vector<128x64xf32>, vector<64x64xf32>, vector<128x64xf32> -> vector<128x64xf32>
    %188 = arith.addf %183, %187 : vector<128x64xf32>
    %c9_203 = arith.constant 9 : index
    %c0_204 = arith.constant 0 : index
    %189 = vector.load %arg33[%c9_203, %c0_204] : memref<144x64xf32, #tpu.memory_space<vmem>>, vector<128x64xf32>
    %c3_205 = arith.constant 3 : index
    %c0_206 = arith.constant 0 : index
    %c0_207 = arith.constant 0 : index
    %190 = vector.load %arg7[%c3_205, %c0_206, %c0_207] : memref<5x64x64xf32, #tpu.memory_space<vmem>>, vector<1x64x64xf32>
    %191 = vector.shape_cast %190 : vector<1x64x64xf32> to vector<64x64xf32>
    %cst_208 = arith.constant dense<0.000000e+00> : vector<128x64xf32>
    %192 = tpu.matmul %189, %191, %cst_208 {dimension_numbers = #tpu.dot_dimension_numbers<[1], [0], [0], [1], [0, 0, 1, 1], [], []>} : vector<128x64xf32>, vector<64x64xf32>, vector<128x64xf32> -> vector<128x64xf32>
    %193 = arith.addf %188, %192 : vector<128x64xf32>
    %c10_209 = arith.constant 10 : index
    %c0_210 = arith.constant 0 : index
    %194 = vector.load %arg33[%c10_209, %c0_210] : memref<144x64xf32, #tpu.memory_space<vmem>>, vector<128x64xf32>
    %c4_211 = arith.constant 4 : index
    %c0_212 = arith.constant 0 : index
    %c0_213 = arith.constant 0 : index
    %195 = vector.load %arg7[%c4_211, %c0_212, %c0_213] : memref<5x64x64xf32, #tpu.memory_space<vmem>>, vector<1x64x64xf32>
    %196 = vector.shape_cast %195 : vector<1x64x64xf32> to vector<64x64xf32>
    %cst_214 = arith.constant dense<0.000000e+00> : vector<128x64xf32>
    %197 = tpu.matmul %194, %196, %cst_214 {dimension_numbers = #tpu.dot_dimension_numbers<[1], [0], [0], [1], [0, 0, 1, 1], [], []>} : vector<128x64xf32>, vector<64x64xf32>, vector<128x64xf32> -> vector<128x64xf32>
    %198 = arith.addf %193, %197 : vector<128x64xf32>
    %c0_215 = arith.constant 0 : index
    %c0_216 = arith.constant 0 : index
    %199 = vector.load %arg18[%c0_215, %c0_216] : memref<1x64xf32, #tpu.memory_space<vmem>>, vector<1x64xf32>
    %200 = vector.broadcast %199 : vector<1x64xf32> to vector<128x64xf32>
    %201 = arith.addf %198, %200 : vector<128x64xf32>
    %cst_217 = arith.constant 0.000000e+00 : f32
    %202 = vector.broadcast %cst_217 : f32 to vector<128x64xf32>
    %203 = arith.maximumf %201, %202 : vector<128x64xf32>
    %c8_218 = arith.constant 8 : index
    %c0_219 = arith.constant 0 : index
    %204 = vector.load %arg34[%c8_218, %c0_219] : memref<144x64xf32, #tpu.memory_space<vmem>>, vector<128x64xf32>
    tpu.vector_store %arg34[%c8_218, %c0_219], %203 {strides = array<i32>} : memref<144x64xf32, #tpu.memory_space<vmem>>, vector<128x64xf32>,
    %cst_220 = arith.constant 0.000000e+00 : f32
    %205 = vector.broadcast %cst_220 : f32 to vector<128x64xf32>
    %c7_221 = arith.constant 7 : index
    %c0_222 = arith.constant 0 : index
    %206 = vector.load %arg34[%c7_221, %c0_222] : memref<144x64xf32, #tpu.memory_space<vmem>>, vector<128x64xf32>
    %c0_223 = arith.constant 0 : index
    %c0_224 = arith.constant 0 : index
    %c0_225 = arith.constant 0 : index
    %207 = vector.load %arg8[%c0_223, %c0_224, %c0_225] : memref<3x64x64xf32, #tpu.memory_space<vmem>>, vector<1x64x64xf32>
    %208 = vector.shape_cast %207 : vector<1x64x64xf32> to vector<64x64xf32>
    %cst_226 = arith.constant dense<0.000000e+00> : vector<128x64xf32>
    %209 = tpu.matmul %206, %208, %cst_226 {dimension_numbers = #tpu.dot_dimension_numbers<[1], [0], [0], [1], [0, 0, 1, 1], [], []>} : vector<128x64xf32>, vector<64x64xf32>, vector<128x64xf32> -> vector<128x64xf32>
    %210 = arith.addf %205, %209 : vector<128x64xf32>
    %c8_227 = arith.constant 8 : index
    %c0_228 = arith.constant 0 : index
    %211 = vector.load %arg34[%c8_227, %c0_228] : memref<144x64xf32, #tpu.memory_space<vmem>>, vector<128x64xf32>
    %c1_229 = arith.constant 1 : index
    %c0_230 = arith.constant 0 : index
    %c0_231 = arith.constant 0 : index
    %212 = vector.load %arg8[%c1_229, %c0_230, %c0_231] : memref<3x64x64xf32, #tpu.memory_space<vmem>>, vector<1x64x64xf32>
    %213 = vector.shape_cast %212 : vector<1x64x64xf32> to vector<64x64xf32>
    %cst_232 = arith.constant dense<0.000000e+00> : vector<128x64xf32>
    %214 = tpu.matmul %211, %213, %cst_232 {dimension_numbers = #tpu.dot_dimension_numbers<[1], [0], [0], [1], [0, 0, 1, 1], [], []>} : vector<128x64xf32>, vector<64x64xf32>, vector<128x64xf32> -> vector<128x64xf32>
    %215 = arith.addf %210, %214 : vector<128x64xf32>
    %c9_233 = arith.constant 9 : index
    %c0_234 = arith.constant 0 : index
    %216 = vector.load %arg34[%c9_233, %c0_234] : memref<144x64xf32, #tpu.memory_space<vmem>>, vector<128x64xf32>
    %c2_235 = arith.constant 2 : index
    %c0_236 = arith.constant 0 : index
    %c0_237 = arith.constant 0 : index
    %217 = vector.load %arg8[%c2_235, %c0_236, %c0_237] : memref<3x64x64xf32, #tpu.memory_space<vmem>>, vector<1x64x64xf32>
    %218 = vector.shape_cast %217 : vector<1x64x64xf32> to vector<64x64xf32>
    %cst_238 = arith.constant dense<0.000000e+00> : vector<128x64xf32>
    %219 = tpu.matmul %216, %218, %cst_238 {dimension_numbers = #tpu.dot_dimension_numbers<[1], [0], [0], [1], [0, 0, 1, 1], [], []>} : vector<128x64xf32>, vector<64x64xf32>, vector<128x64xf32> -> vector<128x64xf32>
    %220 = arith.addf %215, %219 : vector<128x64xf32>
    %c0_239 = arith.constant 0 : index
    %c0_240 = arith.constant 0 : index
    %221 = vector.load %arg19[%c0_239, %c0_240] : memref<1x64xf32, #tpu.memory_space<vmem>>, vector<1x64xf32>
    %222 = vector.broadcast %221 : vector<1x64xf32> to vector<128x64xf32>
    %223 = arith.addf %220, %222 : vector<128x64xf32>
    %cst_241 = arith.constant 0.000000e+00 : f32
    %224 = vector.broadcast %cst_241 : f32 to vector<128x64xf32>
    %225 = arith.maximumf %223, %224 : vector<128x64xf32>
    %cst_242 = arith.constant 0.000000e+00 : f32
    %226 = vector.broadcast %cst_242 : f32 to vector<128x64xf32>
    %c8_243 = arith.constant 8 : index
    %c0_244 = arith.constant 0 : index
    %227 = vector.load %arg31[%c8_243, %c0_244] : memref<144x32xf32, #tpu.memory_space<vmem>>, vector<128x32xf32>
    %c0_245 = arith.constant 0 : index
    %c0_246 = arith.constant 0 : index
    %c0_247 = arith.constant 0 : index
    %228 = vector.load %arg9[%c0_245, %c0_246, %c0_247] : memref<1x32x64xf32, #tpu.memory_space<vmem>>, vector<1x32x64xf32>
    %229 = vector.shape_cast %228 : vector<1x32x64xf32> to vector<32x64xf32>
    %cst_248 = arith.constant dense<0.000000e+00> : vector<128x64xf32>
    %230 = tpu.matmul %227, %229, %cst_248 {dimension_numbers = #tpu.dot_dimension_numbers<[1], [0], [0], [1], [0, 0, 1, 1], [], []>} : vector<128x32xf32>, vector<32x64xf32>, vector<128x64xf32> -> vector<128x64xf32>
    %231 = arith.addf %226, %230 : vector<128x64xf32>
    %c0_249 = arith.constant 0 : index
    %c0_250 = arith.constant 0 : index
    %232 = vector.load %arg20[%c0_249, %c0_250] : memref<1x64xf32, #tpu.memory_space<vmem>>, vector<1x64xf32>
    %233 = vector.broadcast %232 : vector<1x64xf32> to vector<128x64xf32>
    %234 = arith.addf %231, %233 : vector<128x64xf32>
    %235 = arith.addf %225, %234 : vector<128x64xf32>
    %cst_251 = arith.constant 0.000000e+00 : f32
    %236 = vector.broadcast %cst_251 : f32 to vector<128x64xf32>
    %237 = arith.maximumf %235, %236 : vector<128x64xf32>
    %c8_252 = arith.constant 8 : index
    %c0_253 = arith.constant 0 : index
    %238 = vector.load %arg33[%c8_252, %c0_253] : memref<144x64xf32, #tpu.memory_space<vmem>>, vector<128x64xf32>
    tpu.vector_store %arg33[%c8_252, %c0_253], %237 {strides = array<i32>} : memref<144x64xf32, #tpu.memory_space<vmem>>, vector<128x64xf32>,
    %cst_254 = arith.constant 0.000000e+00 : f32
    %239 = vector.broadcast %cst_254 : f32 to vector<128x64xf32>
    %c5_255 = arith.constant 5 : index
    %c0_256 = arith.constant 0 : index
    %240 = vector.load %arg33[%c5_255, %c0_256] : memref<144x64xf32, #tpu.memory_space<vmem>>, vector<128x64xf32>
    %c0_257 = arith.constant 0 : index
    %c0_258 = arith.constant 0 : index
    %c0_259 = arith.constant 0 : index
    %241 = vector.load %arg10[%c0_257, %c0_258, %c0_259] : memref<8x64x64xf32, #tpu.memory_space<vmem>>, vector<1x64x64xf32>
    %242 = vector.shape_cast %241 : vector<1x64x64xf32> to vector<64x64xf32>
    %cst_260 = arith.constant dense<0.000000e+00> : vector<128x64xf32>
    %243 = tpu.matmul %240, %242, %cst_260 {dimension_numbers = #tpu.dot_dimension_numbers<[1], [0], [0], [1], [0, 0, 1, 1], [], []>} : vector<128x64xf32>, vector<64x64xf32>, vector<128x64xf32> -> vector<128x64xf32>
    %244 = arith.addf %239, %243 : vector<128x64xf32>
    %c6_261 = arith.constant 6 : index
    %c0_262 = arith.constant 0 : index
    %245 = vector.load %arg33[%c6_261, %c0_262] : memref<144x64xf32, #tpu.memory_space<vmem>>, vector<128x64xf32>
    %c1_263 = arith.constant 1 : index
    %c0_264 = arith.constant 0 : index
    %c0_265 = arith.constant 0 : index
    %246 = vector.load %arg10[%c1_263, %c0_264, %c0_265] : memref<8x64x64xf32, #tpu.memory_space<vmem>>, vector<1x64x64xf32>
    %247 = vector.shape_cast %246 : vector<1x64x64xf32> to vector<64x64xf32>
    %cst_266 = arith.constant dense<0.000000e+00> : vector<128x64xf32>
    %248 = tpu.matmul %245, %247, %cst_266 {dimension_numbers = #tpu.dot_dimension_numbers<[1], [0], [0], [1], [0, 0, 1, 1], [], []>} : vector<128x64xf32>, vector<64x64xf32>, vector<128x64xf32> -> vector<128x64xf32>
    %249 = arith.addf %244, %248 : vector<128x64xf32>
    %c7_267 = arith.constant 7 : index
    %c0_268 = arith.constant 0 : index
    %250 = vector.load %arg33[%c7_267, %c0_268] : memref<144x64xf32, #tpu.memory_space<vmem>>, vector<128x64xf32>
    %c2_269 = arith.constant 2 : index
    %c0_270 = arith.constant 0 : index
    %c0_271 = arith.constant 0 : index
    %251 = vector.load %arg10[%c2_269, %c0_270, %c0_271] : memref<8x64x64xf32, #tpu.memory_space<vmem>>, vector<1x64x64xf32>
    %252 = vector.shape_cast %251 : vector<1x64x64xf32> to vector<64x64xf32>
    %cst_272 = arith.constant dense<0.000000e+00> : vector<128x64xf32>
    %253 = tpu.matmul %250, %252, %cst_272 {dimension_numbers = #tpu.dot_dimension_numbers<[1], [0], [0], [1], [0, 0, 1, 1], [], []>} : vector<128x64xf32>, vector<64x64xf32>, vector<128x64xf32> -> vector<128x64xf32>
    %254 = arith.addf %249, %253 : vector<128x64xf32>
    %c8_273 = arith.constant 8 : index
    %c0_274 = arith.constant 0 : index
    %255 = vector.load %arg33[%c8_273, %c0_274] : memref<144x64xf32, #tpu.memory_space<vmem>>, vector<128x64xf32>
    %c3_275 = arith.constant 3 : index
    %c0_276 = arith.constant 0 : index
    %c0_277 = arith.constant 0 : index
    %256 = vector.load %arg10[%c3_275, %c0_276, %c0_277] : memref<8x64x64xf32, #tpu.memory_space<vmem>>, vector<1x64x64xf32>
    %257 = vector.shape_cast %256 : vector<1x64x64xf32> to vector<64x64xf32>
    %cst_278 = arith.constant dense<0.000000e+00> : vector<128x64xf32>
    %258 = tpu.matmul %255, %257, %cst_278 {dimension_numbers = #tpu.dot_dimension_numbers<[1], [0], [0], [1], [0, 0, 1, 1], [], []>} : vector<128x64xf32>, vector<64x64xf32>, vector<128x64xf32> -> vector<128x64xf32>
    %259 = arith.addf %254, %258 : vector<128x64xf32>
    %c9_279 = arith.constant 9 : index
    %c0_280 = arith.constant 0 : index
    %260 = vector.load %arg33[%c9_279, %c0_280] : memref<144x64xf32, #tpu.memory_space<vmem>>, vector<128x64xf32>
    %c4_281 = arith.constant 4 : index
    %c0_282 = arith.constant 0 : index
    %c0_283 = arith.constant 0 : index
    %261 = vector.load %arg10[%c4_281, %c0_282, %c0_283] : memref<8x64x64xf32, #tpu.memory_space<vmem>>, vector<1x64x64xf32>
    %262 = vector.shape_cast %261 : vector<1x64x64xf32> to vector<64x64xf32>
    %cst_284 = arith.constant dense<0.000000e+00> : vector<128x64xf32>
    %263 = tpu.matmul %260, %262, %cst_284 {dimension_numbers = #tpu.dot_dimension_numbers<[1], [0], [0], [1], [0, 0, 1, 1], [], []>} : vector<128x64xf32>, vector<64x64xf32>, vector<128x64xf32> -> vector<128x64xf32>
    %264 = arith.addf %259, %263 : vector<128x64xf32>
    %c10_285 = arith.constant 10 : index
    %c0_286 = arith.constant 0 : index
    %265 = vector.load %arg33[%c10_285, %c0_286] : memref<144x64xf32, #tpu.memory_space<vmem>>, vector<128x64xf32>
    %c5_287 = arith.constant 5 : index
    %c0_288 = arith.constant 0 : index
    %c0_289 = arith.constant 0 : index
    %266 = vector.load %arg10[%c5_287, %c0_288, %c0_289] : memref<8x64x64xf32, #tpu.memory_space<vmem>>, vector<1x64x64xf32>
    %267 = vector.shape_cast %266 : vector<1x64x64xf32> to vector<64x64xf32>
    %cst_290 = arith.constant dense<0.000000e+00> : vector<128x64xf32>
    %268 = tpu.matmul %265, %267, %cst_290 {dimension_numbers = #tpu.dot_dimension_numbers<[1], [0], [0], [1], [0, 0, 1, 1], [], []>} : vector<128x64xf32>, vector<64x64xf32>, vector<128x64xf32> -> vector<128x64xf32>
    %269 = arith.addf %264, %268 : vector<128x64xf32>
    %c11_291 = arith.constant 11 : index
    %c0_292 = arith.constant 0 : index
    %270 = vector.load %arg33[%c11_291, %c0_292] : memref<144x64xf32, #tpu.memory_space<vmem>>, vector<128x64xf32>
    %c6_293 = arith.constant 6 : index
    %c0_294 = arith.constant 0 : index
    %c0_295 = arith.constant 0 : index
    %271 = vector.load %arg10[%c6_293, %c0_294, %c0_295] : memref<8x64x64xf32, #tpu.memory_space<vmem>>, vector<1x64x64xf32>
    %272 = vector.shape_cast %271 : vector<1x64x64xf32> to vector<64x64xf32>
    %cst_296 = arith.constant dense<0.000000e+00> : vector<128x64xf32>
    %273 = tpu.matmul %270, %272, %cst_296 {dimension_numbers = #tpu.dot_dimension_numbers<[1], [0], [0], [1], [0, 0, 1, 1], [], []>} : vector<128x64xf32>, vector<64x64xf32>, vector<128x64xf32> -> vector<128x64xf32>
    %274 = arith.addf %269, %273 : vector<128x64xf32>
    %c12_297 = arith.constant 12 : index
    %c0_298 = arith.constant 0 : index
    %275 = vector.load %arg33[%c12_297, %c0_298] : memref<144x64xf32, #tpu.memory_space<vmem>>, vector<128x64xf32>
    %c7_299 = arith.constant 7 : index
    %c0_300 = arith.constant 0 : index
    %c0_301 = arith.constant 0 : index
    %276 = vector.load %arg10[%c7_299, %c0_300, %c0_301] : memref<8x64x64xf32, #tpu.memory_space<vmem>>, vector<1x64x64xf32>
    %277 = vector.shape_cast %276 : vector<1x64x64xf32> to vector<64x64xf32>
    %cst_302 = arith.constant dense<0.000000e+00> : vector<128x64xf32>
    %278 = tpu.matmul %275, %277, %cst_302 {dimension_numbers = #tpu.dot_dimension_numbers<[1], [0], [0], [1], [0, 0, 1, 1], [], []>} : vector<128x64xf32>, vector<64x64xf32>, vector<128x64xf32> -> vector<128x64xf32>
    %279 = arith.addf %274, %278 : vector<128x64xf32>
    %c0_303 = arith.constant 0 : index
    %c0_304 = arith.constant 0 : index
    %280 = vector.load %arg21[%c0_303, %c0_304] : memref<1x64xf32, #tpu.memory_space<vmem>>, vector<1x64xf32>
    %281 = vector.broadcast %280 : vector<1x64xf32> to vector<128x64xf32>
    %282 = arith.addf %279, %281 : vector<128x64xf32>
    %cst_305 = arith.constant 0.000000e+00 : f32
    %283 = vector.broadcast %cst_305 : f32 to vector<128x64xf32>
    %284 = arith.maximumf %282, %283 : vector<128x64xf32>
    %c8_306 = arith.constant 8 : index
    %c0_307 = arith.constant 0 : index
    %285 = vector.load %arg34[%c8_306, %c0_307] : memref<144x64xf32, #tpu.memory_space<vmem>>, vector<128x64xf32>
    tpu.vector_store %arg34[%c8_306, %c0_307], %284 {strides = array<i32>} : memref<144x64xf32, #tpu.memory_space<vmem>>, vector<128x64xf32>,
    %cst_308 = arith.constant 0.000000e+00 : f32
    %286 = vector.broadcast %cst_308 : f32 to vector<128x64xf32>
    %c6_309 = arith.constant 6 : index
    %c0_310 = arith.constant 0 : index
    %287 = vector.load %arg34[%c6_309, %c0_310] : memref<144x64xf32, #tpu.memory_space<vmem>>, vector<128x64xf32>
    %c0_311 = arith.constant 0 : index
    %c0_312 = arith.constant 0 : index
    %c0_313 = arith.constant 0 : index
    %288 = vector.load %arg11[%c0_311, %c0_312, %c0_313] : memref<5x64x64xf32, #tpu.memory_space<vmem>>, vector<1x64x64xf32>
    %289 = vector.shape_cast %288 : vector<1x64x64xf32> to vector<64x64xf32>
    %cst_314 = arith.constant dense<0.000000e+00> : vector<128x64xf32>
    %290 = tpu.matmul %287, %289, %cst_314 {dimension_numbers = #tpu.dot_dimension_numbers<[1], [0], [0], [1], [0, 0, 1, 1], [], []>} : vector<128x64xf32>, vector<64x64xf32>, vector<128x64xf32> -> vector<128x64xf32>
    %291 = arith.addf %286, %290 : vector<128x64xf32>
    %c7_315 = arith.constant 7 : index
    %c0_316 = arith.constant 0 : index
    %292 = vector.load %arg34[%c7_315, %c0_316] : memref<144x64xf32, #tpu.memory_space<vmem>>, vector<128x64xf32>
    %c1_317 = arith.constant 1 : index
    %c0_318 = arith.constant 0 : index
    %c0_319 = arith.constant 0 : index
    %293 = vector.load %arg11[%c1_317, %c0_318, %c0_319] : memref<5x64x64xf32, #tpu.memory_space<vmem>>, vector<1x64x64xf32>
    %294 = vector.shape_cast %293 : vector<1x64x64xf32> to vector<64x64xf32>
    %cst_320 = arith.constant dense<0.000000e+00> : vector<128x64xf32>
    %295 = tpu.matmul %292, %294, %cst_320 {dimension_numbers = #tpu.dot_dimension_numbers<[1], [0], [0], [1], [0, 0, 1, 1], [], []>} : vector<128x64xf32>, vector<64x64xf32>, vector<128x64xf32> -> vector<128x64xf32>
    %296 = arith.addf %291, %295 : vector<128x64xf32>
    %c8_321 = arith.constant 8 : index
    %c0_322 = arith.constant 0 : index
    %297 = vector.load %arg34[%c8_321, %c0_322] : memref<144x64xf32, #tpu.memory_space<vmem>>, vector<128x64xf32>
    %c2_323 = arith.constant 2 : index
    %c0_324 = arith.constant 0 : index
    %c0_325 = arith.constant 0 : index
    %298 = vector.load %arg11[%c2_323, %c0_324, %c0_325] : memref<5x64x64xf32, #tpu.memory_space<vmem>>, vector<1x64x64xf32>
    %299 = vector.shape_cast %298 : vector<1x64x64xf32> to vector<64x64xf32>
    %cst_326 = arith.constant dense<0.000000e+00> : vector<128x64xf32>
    %300 = tpu.matmul %297, %299, %cst_326 {dimension_numbers = #tpu.dot_dimension_numbers<[1], [0], [0], [1], [0, 0, 1, 1], [], []>} : vector<128x64xf32>, vector<64x64xf32>, vector<128x64xf32> -> vector<128x64xf32>
    %301 = arith.addf %296, %300 : vector<128x64xf32>
    %c9_327 = arith.constant 9 : index
    %c0_328 = arith.constant 0 : index
    %302 = vector.load %arg34[%c9_327, %c0_328] : memref<144x64xf32, #tpu.memory_space<vmem>>, vector<128x64xf32>
    %c3_329 = arith.constant 3 : index
    %c0_330 = arith.constant 0 : index
    %c0_331 = arith.constant 0 : index
    %303 = vector.load %arg11[%c3_329, %c0_330, %c0_331] : memref<5x64x64xf32, #tpu.memory_space<vmem>>, vector<1x64x64xf32>
    %304 = vector.shape_cast %303 : vector<1x64x64xf32> to vector<64x64xf32>
    %cst_332 = arith.constant dense<0.000000e+00> : vector<128x64xf32>
    %305 = tpu.matmul %302, %304, %cst_332 {dimension_numbers = #tpu.dot_dimension_numbers<[1], [0], [0], [1], [0, 0, 1, 1], [], []>} : vector<128x64xf32>, vector<64x64xf32>, vector<128x64xf32> -> vector<128x64xf32>
    %306 = arith.addf %301, %305 : vector<128x64xf32>
    %c10_333 = arith.constant 10 : index
    %c0_334 = arith.constant 0 : index
    %307 = vector.load %arg34[%c10_333, %c0_334] : memref<144x64xf32, #tpu.memory_space<vmem>>, vector<128x64xf32>
    %c4_335 = arith.constant 4 : index
    %c0_336 = arith.constant 0 : index
    %c0_337 = arith.constant 0 : index
    %308 = vector.load %arg11[%c4_335, %c0_336, %c0_337] : memref<5x64x64xf32, #tpu.memory_space<vmem>>, vector<1x64x64xf32>
    %309 = vector.shape_cast %308 : vector<1x64x64xf32> to vector<64x64xf32>
    %cst_338 = arith.constant dense<0.000000e+00> : vector<128x64xf32>
    %310 = tpu.matmul %307, %309, %cst_338 {dimension_numbers = #tpu.dot_dimension_numbers<[1], [0], [0], [1], [0, 0, 1, 1], [], []>} : vector<128x64xf32>, vector<64x64xf32>, vector<128x64xf32> -> vector<128x64xf32>
    %311 = arith.addf %306, %310 : vector<128x64xf32>
    %c0_339 = arith.constant 0 : index
    %c0_340 = arith.constant 0 : index
    %312 = vector.load %arg22[%c0_339, %c0_340] : memref<1x64xf32, #tpu.memory_space<vmem>>, vector<1x64xf32>
    %313 = vector.broadcast %312 : vector<1x64xf32> to vector<128x64xf32>
    %314 = arith.addf %311, %313 : vector<128x64xf32>
    %cst_341 = arith.constant 0.000000e+00 : f32
    %315 = vector.broadcast %cst_341 : f32 to vector<128x64xf32>
    %316 = arith.maximumf %314, %315 : vector<128x64xf32>
    %c8_342 = arith.constant 8 : index
    %c0_343 = arith.constant 0 : index
    %317 = vector.load %arg34[%c8_342, %c0_343] : memref<144x64xf32, #tpu.memory_space<vmem>>, vector<128x64xf32>
    tpu.vector_store %arg34[%c8_342, %c0_343], %316 {strides = array<i32>} : memref<144x64xf32, #tpu.memory_space<vmem>>, vector<128x64xf32>,
    %cst_344 = arith.constant 0.000000e+00 : f32
    %318 = vector.broadcast %cst_344 : f32 to vector<128x64xf32>
    %c7_345 = arith.constant 7 : index
    %c0_346 = arith.constant 0 : index
    %319 = vector.load %arg34[%c7_345, %c0_346] : memref<144x64xf32, #tpu.memory_space<vmem>>, vector<128x64xf32>
    %c0_347 = arith.constant 0 : index
    %c0_348 = arith.constant 0 : index
    %c0_349 = arith.constant 0 : index
    %320 = vector.load %arg12[%c0_347, %c0_348, %c0_349] : memref<3x64x64xf32, #tpu.memory_space<vmem>>, vector<1x64x64xf32>
    %321 = vector.shape_cast %320 : vector<1x64x64xf32> to vector<64x64xf32>
    %cst_350 = arith.constant dense<0.000000e+00> : vector<128x64xf32>
    %322 = tpu.matmul %319, %321, %cst_350 {dimension_numbers = #tpu.dot_dimension_numbers<[1], [0], [0], [1], [0, 0, 1, 1], [], []>} : vector<128x64xf32>, vector<64x64xf32>, vector<128x64xf32> -> vector<128x64xf32>
    %323 = arith.addf %318, %322 : vector<128x64xf32>
    %c8_351 = arith.constant 8 : index
    %c0_352 = arith.constant 0 : index
    %324 = vector.load %arg34[%c8_351, %c0_352] : memref<144x64xf32, #tpu.memory_space<vmem>>, vector<128x64xf32>
    %c1_353 = arith.constant 1 : index
    %c0_354 = arith.constant 0 : index
    %c0_355 = arith.constant 0 : index
    %325 = vector.load %arg12[%c1_353, %c0_354, %c0_355] : memref<3x64x64xf32, #tpu.memory_space<vmem>>, vector<1x64x64xf32>
    %326 = vector.shape_cast %325 : vector<1x64x64xf32> to vector<64x64xf32>
    %cst_356 = arith.constant dense<0.000000e+00> : vector<128x64xf32>
    %327 = tpu.matmul %324, %326, %cst_356 {dimension_numbers = #tpu.dot_dimension_numbers<[1], [0], [0], [1], [0, 0, 1, 1], [], []>} : vector<128x64xf32>, vector<64x64xf32>, vector<128x64xf32> -> vector<128x64xf32>
    %328 = arith.addf %323, %327 : vector<128x64xf32>
    %c9_357 = arith.constant 9 : index
    %c0_358 = arith.constant 0 : index
    %329 = vector.load %arg34[%c9_357, %c0_358] : memref<144x64xf32, #tpu.memory_space<vmem>>, vector<128x64xf32>
    %c2_359 = arith.constant 2 : index
    %c0_360 = arith.constant 0 : index
    %c0_361 = arith.constant 0 : index
    %330 = vector.load %arg12[%c2_359, %c0_360, %c0_361] : memref<3x64x64xf32, #tpu.memory_space<vmem>>, vector<1x64x64xf32>
    %331 = vector.shape_cast %330 : vector<1x64x64xf32> to vector<64x64xf32>
    %cst_362 = arith.constant dense<0.000000e+00> : vector<128x64xf32>
    %332 = tpu.matmul %329, %331, %cst_362 {dimension_numbers = #tpu.dot_dimension_numbers<[1], [0], [0], [1], [0, 0, 1, 1], [], []>} : vector<128x64xf32>, vector<64x64xf32>, vector<128x64xf32> -> vector<128x64xf32>
    %333 = arith.addf %328, %332 : vector<128x64xf32>
    %c0_363 = arith.constant 0 : index
    %c0_364 = arith.constant 0 : index
    %334 = vector.load %arg23[%c0_363, %c0_364] : memref<1x64xf32, #tpu.memory_space<vmem>>, vector<1x64xf32>
    %335 = vector.broadcast %334 : vector<1x64xf32> to vector<128x64xf32>
    %336 = arith.addf %333, %335 : vector<128x64xf32>
    %cst_365 = arith.constant 0.000000e+00 : f32
    %337 = vector.broadcast %cst_365 : f32 to vector<128x64xf32>
    %338 = arith.maximumf %336, %337 : vector<128x64xf32>
    %c8_366 = arith.constant 8 : index
    %c0_367 = arith.constant 0 : index
    %339 = vector.load %arg33[%c8_366, %c0_367] : memref<144x64xf32, #tpu.memory_space<vmem>>, vector<128x64xf32>
    %c0_368 = arith.constant 0 : index
    %c0_369 = arith.constant 0 : index
    %340 = vector.load %arg24[%c0_368, %c0_369] : memref<1x64xf32, #tpu.memory_space<vmem>>, vector<1x64xf32>
    %341 = vector.broadcast %340 : vector<1x64xf32> to vector<128x64xf32>
    %342 = arith.mulf %339, %341 : vector<128x64xf32>
    %c0_370 = arith.constant 0 : index
    %c0_371 = arith.constant 0 : index
    %343 = vector.load %arg25[%c0_370, %c0_371] : memref<1x64xf32, #tpu.memory_space<vmem>>, vector<1x64xf32>
    %344 = vector.broadcast %343 : vector<1x64xf32> to vector<128x64xf32>
    %345 = arith.addf %342, %344 : vector<128x64xf32>
    %346 = arith.addf %338, %345 : vector<128x64xf32>
    %cst_372 = arith.constant 0.000000e+00 : f32
    %347 = vector.broadcast %cst_372 : f32 to vector<128x64xf32>
    %348 = arith.maximumf %346, %347 : vector<128x64xf32>
    %349 = vector.shape_cast %348 : vector<128x64xf32> to vector<1x128x64xf32>
    %cst_373 = arith.constant dense<0.000000e+00> : vector<1x128xf32>
    %350 = vector.multi_reduction <add>, %349, %cst_373 [2] : vector<1x128x64xf32> to vector<1x128xf32>
    %cst_374 = arith.constant 6.400000e+01 : f32
    %351 = vector.broadcast %cst_374 : f32 to vector<1x128xf32>
    %352 = arith.divf %350, %351 : vector<1x128xf32>
    %c0_375 = arith.constant 0 : index
    %c0_376 = arith.constant 0 : index
    %353 = vector.load %arg26[%c0_375, %c0_376] : memref<128x10xf32, #tpu.memory_space<vmem>>, vector<128x10xf32>
    %cst_377 = arith.constant dense<0.000000e+00> : vector<1x10xf32>
    %354 = tpu.matmul %352, %353, %cst_377 {dimension_numbers = #tpu.dot_dimension_numbers<[1], [0], [0], [1], [0, 0, 1, 1], [], []>} : vector<1x128xf32>, vector<128x10xf32>, vector<1x10xf32> -> vector<1x10xf32>
    %c0_378 = arith.constant 0 : index
    %c0_379 = arith.constant 0 : index
    %355 = vector.load %arg27[%c0_378, %c0_379] : memref<1x10xf32, #tpu.memory_space<vmem>>, vector<1x10xf32>
    %356 = arith.addf %354, %355 : vector<1x10xf32>
    %cst_380 = arith.constant dense<0xFF800000> : vector<1xf32>
    %357 = vector.multi_reduction <maximumf>, %356, %cst_380 [1] : vector<1x10xf32> to vector<1xf32>
    %358 = vector.shape_cast %357 : vector<1xf32> to vector<1x1xf32>
    %359 = vector.broadcast %358 : vector<1x1xf32> to vector<1x10xf32>
    %360 = arith.subf %356, %359 : vector<1x10xf32>
    %361 = math.exp %360 : vector<1x10xf32>
    %cst_381 = arith.constant dense<0.000000e+00> : vector<1xf32>
    %362 = vector.multi_reduction <add>, %361, %cst_381 [1] : vector<1x10xf32> to vector<1xf32>
    %363 = vector.shape_cast %362 : vector<1xf32> to vector<1x1xf32>
    %364 = vector.broadcast %363 : vector<1x1xf32> to vector<1x10xf32>
    %365 = arith.divf %361, %364 : vector<1x10xf32>
    %c0_382 = arith.constant 0 : index
    %c0_383 = arith.constant 0 : index
    %c0_384 = arith.constant 0 : index
    %366 = vector.load %arg28[%c0_382, %c0_383, %c0_384] : memref<1x1x10xf32, #tpu.memory_space<vmem>>, vector<1x1x10xf32>
    %367 = vector.shape_cast %366 : vector<1x1x10xf32> to vector<1x10xf32>
    %368 = vector.shape_cast %365 : vector<1x10xf32> to vector<1x1x10xf32>
    tpu.vector_store %arg28[%c0_382, %c0_383, %c0_384], %368 {strides = array<i32>} : memref<1x1x10xf32, #tpu.memory_space<vmem>>, vector<1x1x10xf32>,
    %c0_385 = arith.constant 0 : index
    %c0_386 = arith.constant 0 : index
    %c0_387 = arith.constant 0 : index
    %369 = vector.load %arg29[%c0_385, %c0_386, %c0_387] : memref<1x1x128xf32, #tpu.memory_space<vmem>>, vector<1x1x128xf32>
    %370 = vector.shape_cast %369 : vector<1x1x128xf32> to vector<1x128xf32>
    %371 = vector.shape_cast %352 : vector<1x128xf32> to vector<1x1x128xf32>
    tpu.vector_store %arg29[%c0_385, %c0_386, %c0_387], %371 {strides = array<i32>} : memref<1x1x128xf32, #tpu.memory_space<vmem>>, vector<1x1x128xf32>,
    return
  }
  func.func @transform_0(%arg0: i32) -> (i32, i32, i32) {
    %c0_i32 = arith.constant 0 : i32
    %c0_i32_0 = arith.constant 0 : i32
    %c0_i32_1 = arith.constant 0 : i32
    return %arg0, %c0_i32, %c0_i32_0 : i32, i32, i32
  }
  func.func @transform_1(%arg0: i32) -> (i32, i32, i32) {
    %c0_i32 = arith.constant 0 : i32
    %c0_i32_0 = arith.constant 0 : i32
    %c0_i32_1 = arith.constant 0 : i32
    %c0_i32_2 = arith.constant 0 : i32
    return %c0_i32, %c0_i32_0, %c0_i32_1 : i32, i32, i32
  }
  func.func @transform_2(%arg0: i32) -> (i32, i32, i32) {
    %c0_i32 = arith.constant 0 : i32
    %c0_i32_0 = arith.constant 0 : i32
    %c0_i32_1 = arith.constant 0 : i32
    %c0_i32_2 = arith.constant 0 : i32
    return %c0_i32, %c0_i32_0, %c0_i32_1 : i32, i32, i32
  }
  func.func @transform_3(%arg0: i32) -> (i32, i32, i32) {
    %c0_i32 = arith.constant 0 : i32
    %c0_i32_0 = arith.constant 0 : i32
    %c0_i32_1 = arith.constant 0 : i32
    %c0_i32_2 = arith.constant 0 : i32
    return %c0_i32, %c0_i32_0, %c0_i32_1 : i32, i32, i32
  }
  func.func @transform_4(%arg0: i32) -> (i32, i32, i32) {
    %c0_i32 = arith.constant 0 : i32
    %c0_i32_0 = arith.constant 0 : i32
    %c0_i32_1 = arith.constant 0 : i32
    %c0_i32_2 = arith.constant 0 : i32
    return %c0_i32, %c0_i32_0, %c0_i32_1 : i32, i32, i32
  }
  func.func @transform_5(%arg0: i32) -> (i32, i32, i32) {
    %c0_i32 = arith.constant 0 : i32
    %c0_i32_0 = arith.constant 0 : i32
    %c0_i32_1 = arith.constant 0 : i32
    %c0_i32_2 = arith.constant 0 : i32
    return %c0_i32, %c0_i32_0, %c0_i32_1 : i32, i32, i32
  }
  func.func @transform_6(%arg0: i32) -> (i32, i32, i32) {
    %c0_i32 = arith.constant 0 : i32
    %c0_i32_0 = arith.constant 0 : i32
    %c0_i32_1 = arith.constant 0 : i32
    %c0_i32_2 = arith.constant 0 : i32
    return %c0_i32, %c0_i32_0, %c0_i32_1 : i32, i32, i32
  }
  func.func @transform_7(%arg0: i32) -> (i32, i32, i32) {
    %c0_i32 = arith.constant 0 : i32
    %c0_i32_0 = arith.constant 0 : i32
    %c0_i32_1 = arith.constant 0 : i32
    %c0_i32_2 = arith.constant 0 : i32
    return %c0_i32, %c0_i32_0, %c0_i32_1 : i32, i32, i32
  }
  func.func @transform_8(%arg0: i32) -> (i32, i32, i32) {
    %c0_i32 = arith.constant 0 : i32
    %c0_i32_0 = arith.constant 0 : i32
    %c0_i32_1 = arith.constant 0 : i32
    %c0_i32_2 = arith.constant 0 : i32
    return %c0_i32, %c0_i32_0, %c0_i32_1 : i32, i32, i32
  }
  func.func @transform_9(%arg0: i32) -> (i32, i32, i32) {
    %c0_i32 = arith.constant 0 : i32
    %c0_i32_0 = arith.constant 0 : i32
    %c0_i32_1 = arith.constant 0 : i32
    %c0_i32_2 = arith.constant 0 : i32
    return %c0_i32, %c0_i32_0, %c0_i32_1 : i32, i32, i32
  }
  func.func @transform_10(%arg0: i32) -> (i32, i32, i32) {
    %c0_i32 = arith.constant 0 : i32
    %c0_i32_0 = arith.constant 0 : i32
    %c0_i32_1 = arith.constant 0 : i32
    %c0_i32_2 = arith.constant 0 : i32
    return %c0_i32, %c0_i32_0, %c0_i32_1 : i32, i32, i32
  }
  func.func @transform_11(%arg0: i32) -> (i32, i32, i32) {
    %c0_i32 = arith.constant 0 : i32
    %c0_i32_0 = arith.constant 0 : i32
    %c0_i32_1 = arith.constant 0 : i32
    %c0_i32_2 = arith.constant 0 : i32
    return %c0_i32, %c0_i32_0, %c0_i32_1 : i32, i32, i32
  }
  func.func @transform_12(%arg0: i32) -> (i32, i32) {
    %c0_i32 = arith.constant 0 : i32
    %c0_i32_0 = arith.constant 0 : i32
    %c0_i32_1 = arith.constant 0 : i32
    return %c0_i32, %c0_i32_0 : i32, i32
  }
  func.func @transform_13(%arg0: i32) -> (i32, i32) {
    %c0_i32 = arith.constant 0 : i32
    %c0_i32_0 = arith.constant 0 : i32
    %c0_i32_1 = arith.constant 0 : i32
    return %c0_i32, %c0_i32_0 : i32, i32
  }
  func.func @transform_14(%arg0: i32) -> (i32, i32) {
    %c0_i32 = arith.constant 0 : i32
    %c0_i32_0 = arith.constant 0 : i32
    %c0_i32_1 = arith.constant 0 : i32
    return %c0_i32, %c0_i32_0 : i32, i32
  }
  func.func @transform_15(%arg0: i32) -> (i32, i32) {
    %c0_i32 = arith.constant 0 : i32
    %c0_i32_0 = arith.constant 0 : i32
    %c0_i32_1 = arith.constant 0 : i32
    return %c0_i32, %c0_i32_0 : i32, i32
  }
  func.func @transform_16(%arg0: i32) -> (i32, i32) {
    %c0_i32 = arith.constant 0 : i32
    %c0_i32_0 = arith.constant 0 : i32
    %c0_i32_1 = arith.constant 0 : i32
    return %c0_i32, %c0_i32_0 : i32, i32
  }
  func.func @transform_17(%arg0: i32) -> (i32, i32) {
    %c0_i32 = arith.constant 0 : i32
    %c0_i32_0 = arith.constant 0 : i32
    %c0_i32_1 = arith.constant 0 : i32
    return %c0_i32, %c0_i32_0 : i32, i32
  }
  func.func @transform_18(%arg0: i32) -> (i32, i32) {
    %c0_i32 = arith.constant 0 : i32
    %c0_i32_0 = arith.constant 0 : i32
    %c0_i32_1 = arith.constant 0 : i32
    return %c0_i32, %c0_i32_0 : i32, i32
  }
  func.func @transform_19(%arg0: i32) -> (i32, i32) {
    %c0_i32 = arith.constant 0 : i32
    %c0_i32_0 = arith.constant 0 : i32
    %c0_i32_1 = arith.constant 0 : i32
    return %c0_i32, %c0_i32_0 : i32, i32
  }
  func.func @transform_20(%arg0: i32) -> (i32, i32) {
    %c0_i32 = arith.constant 0 : i32
    %c0_i32_0 = arith.constant 0 : i32
    %c0_i32_1 = arith.constant 0 : i32
    return %c0_i32, %c0_i32_0 : i32, i32
  }
  func.func @transform_21(%arg0: i32) -> (i32, i32) {
    %c0_i32 = arith.constant 0 : i32
    %c0_i32_0 = arith.constant 0 : i32
    %c0_i32_1 = arith.constant 0 : i32
    return %c0_i32, %c0_i32_0 : i32, i32
  }
  func.func @transform_22(%arg0: i32) -> (i32, i32) {
    %c0_i32 = arith.constant 0 : i32
    %c0_i32_0 = arith.constant 0 : i32
    %c0_i32_1 = arith.constant 0 : i32
    return %c0_i32, %c0_i32_0 : i32, i32
  }
  func.func @transform_23(%arg0: i32) -> (i32, i32) {
    %c0_i32 = arith.constant 0 : i32
    %c0_i32_0 = arith.constant 0 : i32
    %c0_i32_1 = arith.constant 0 : i32
    return %c0_i32, %c0_i32_0 : i32, i32
  }
  func.func @transform_24(%arg0: i32) -> (i32, i32) {
    %c0_i32 = arith.constant 0 : i32
    %c0_i32_0 = arith.constant 0 : i32
    %c0_i32_1 = arith.constant 0 : i32
    return %c0_i32, %c0_i32_0 : i32, i32
  }
  func.func @transform_25(%arg0: i32) -> (i32, i32) {
    %c0_i32 = arith.constant 0 : i32
    %c0_i32_0 = arith.constant 0 : i32
    %c0_i32_1 = arith.constant 0 : i32
    return %c0_i32, %c0_i32_0 : i32, i32
  }
  func.func @transform_26(%arg0: i32) -> (i32, i32) {
    %c0_i32 = arith.constant 0 : i32
    %c0_i32_0 = arith.constant 0 : i32
    %c0_i32_1 = arith.constant 0 : i32
    return %c0_i32, %c0_i32_0 : i32, i32
  }
  func.func @transform_27(%arg0: i32) -> (i32, i32, i32) {
    %c0_i32 = arith.constant 0 : i32
    %c0_i32_0 = arith.constant 0 : i32
    %c0_i32_1 = arith.constant 0 : i32
    return %arg0, %c0_i32, %c0_i32_0 : i32, i32, i32
  }
  func.func @transform_28(%arg0: i32) -> (i32, i32, i32) {
    %c0_i32 = arith.constant 0 : i32
    %c0_i32_0 = arith.constant 0 : i32
    %c0_i32_1 = arith.constant 0 : i32
    return %arg0, %c0_i32, %c0_i32_0 : i32, i32, i32
  }
}

</mosaic_0001>

<bundles_post_ra>
// kernel: resnet_forward_pallas.1
= control target key start
LH: loop header
LB: loop body
LE: loop exit
PB: predicated region body
PF: predicated region fallthrough
CT: control target
= control target key end

     0   :  { %s13490_s0 = inlined_call_operand.vmem [shape: f32[2,128,4], index: 0, kind: input, shape index: {}]   ;;  %s13491_s1 = inlined_call_operand.vmem [shape: f32[8,4,32], index: 1, kind: input, shape index: {}]   ;;  %s13492_s2 = inlined_call_operand.vmem [shape: f32[5,32,32], index: 2, kind: input, shape index: {}]   ;;  %s13493_s3 = inlined_call_operand.vmem [shape: f32[3,32,32], index: 3, kind: input, shape index: {}]   ;;  %s13494_s4 = inlined_call_operand.vmem [shape: f32[1,4,32], index: 4, kind: input, shape index: {}]   ;;  %s13495_s5 = inlined_call_operand.vmem [shape: f32[8,32,64], index: 5, kind: input, shape index: {}]   ;;  %s13496_s6 = inlined_call_operand.vmem [shape: f32[5,64,64], index: 6, kind: input, shape index: {}]   ;;  %s13497_s7 = inlined_call_operand.vmem [shape: f32[3,64,64], index: 7, kind: input, shape index: {}]   ;;  %s13498_s8 = inlined_call_operand.vmem [shape: f32[1,32,64], index: 8, kind: input, shape index: {}]   ;;  %s13499_s9 = inlined_call_operand.vmem [shape: f32[8,64,64], index: 9, kind: input, shape index: {}]   ;;  %s13500_s10 = inlined_call_operand.vmem [shape: f32[5,64,64], index: 10, kind: input, shape index: {}]   ;;  %s13501_s11 = inlined_call_operand.vmem [shape: f32[3,64,64], index: 11, kind: input, shape index: {}]   ;;  %s13502_s12 = inlined_call_operand.vmem [shape: f32[1,32], index: 12, kind: input, shape index: {}]   ;;  %s13503_s13 = inlined_call_operand.vmem [shape: f32[1,32], index: 13, kind: input, shape index: {}]   ;;  %s13504_s14 = inlined_call_operand.vmem [shape: f32[1,32], index: 14, kind: input, shape index: {}]   ;;  %s13505_s15 = inlined_call_operand.vmem [shape: f32[1,32], index: 15, kind: input, shape index: {}]   ;;  %s13506_s16 = inlined_call_operand.vmem [shape: f32[1,64], index: 16, kind: input, shape index: {}]   ;;  %s13507_s17 = inlined_call_operand.vmem [shape: f32[1,64], index: 17, kind: input, shape index: {}]   ;;  %s13508_s18 = inlined_call_operand.vmem [shape: f32[1,64], index: 18, kind: input, shape index: {}]   ;;  %s13509_s19 = inlined_call_operand.vmem [shape: f32[1,64], index: 19, kind: input, shape index: {}]   ;;  %s13510_s20 = inlined_call_operand.vmem [shape: f32[1,64], index: 20, kind: input, shape index: {}]   ;;  %s13511_s21 = inlined_call_operand.vmem [shape: f32[1,64], index: 21, kind: input, shape index: {}]   ;;  %s13512_s22 = inlined_call_operand.vmem [shape: f32[1,64], index: 22, kind: input, shape index: {}]   ;;  %s13513_s23 = inlined_call_operand.vmem [shape: f32[1,64], index: 23, kind: input, shape index: {}]   ;;  %s13514_s24 = inlined_call_operand.vmem [shape: f32[1,64], index: 24, kind: input, shape index: {}]   ;;  %s13515_s25 = inlined_call_operand.vmem [shape: f32[128,10], index: 25, kind: input, shape index: {}]   ;;  %s13516_s26 = inlined_call_operand.vmem [shape: f32[1,10], index: 26, kind: input, shape index: {}]   ;;  %s13517_s27 = inlined_call_operand.hbm [shape: f32[2,1,10], index: 27, kind: output, shape index: {0}]   ;;  %s13518_s28 = inlined_call_operand.hbm [shape: f32[2,1,128], index: 28, kind: output, shape index: {1}]  }
   0x1   :  { %13542 = sst [smem:[#allocation16_spill]] %s13490_s0 }
   0x2   :  { %13543 = sst [smem:[#allocation17_spill]] %s13491_s1 }
   0x3   :  { %13544 = sst [smem:[#allocation18_spill]] %s13492_s2 }
   0x4   :  { %13545 = sst [smem:[#allocation19_spill]] %s13493_s3 }
   0x5   :  { %13546 = sst [smem:[#allocation20_spill]] %s13494_s4 }
   0x6   :  { %13547 = sst [smem:[#allocation21_spill]] %s13495_s5 }
   0x7   :  { %13548 = sst [smem:[#allocation22_spill]] %s13496_s6 }
   0x8   :  { %13549 = sst [smem:[#allocation23_spill]] %s13497_s7 }
   0x9   :  { %13550 = sst [smem:[#allocation24_spill]] %s13498_s8 }
   0xa   :  { %13551 = sst [smem:[#allocation25_spill]] %s13499_s9 }
   0xb   :  { %13552 = sst [smem:[#allocation26_spill]] %s13500_s10 }
   0xc   :  { %13553 = sst [smem:[#allocation27_spill]] %s13501_s11 }
   0xd   :  { %13554 = sst [smem:[#allocation28_spill]] %s13502_s12 }
   0xe   :  { %13555 = sst [smem:[#allocation29_spill]] %s13503_s13 }
   0xf   :  { %13556 = sst [smem:[#allocation30_spill]] %s13504_s14 }
  0x10   :  { %13557 = sst [smem:[#allocation31_spill]] %s13505_s15 }
  0x11   :  { %13558 = sst [smem:[#allocation32_spill]] %s13506_s16 }
  0x12   :  { %13559 = sst [smem:[#allocation33_spill]] %s13507_s17 }
  0x13   :  { %13560 = sst [smem:[#allocation34_spill]] %s13508_s18 }
  0x14   :  { %34 = vsyncpa [#allocation8], 0 }
  0x15   :  { %36 = vsyncpa [#allocation8 + $0x1], 0 }
  0x16   :  { %37 = vsyncpa [#allocation10], 0 }
  0x17   :  { %39 = vsyncpa [#allocation10 + $0x1], 0  ;;  %s10523_s8 = smov 0   ;;  %s10525_s5 = smov 0  }
  0x18   :  { %s10527_s9 = smov 0   ;;  %s10529_s30 = smov 0  }
  0x19 LB: > { %13561 = sst [smem:[#allocation13_spill]] %s10370_s9  ;;  %s10544_s3 = sadd.s32 4294967295, %s10374_s30   ;;  %s10374_s30 = sphi %s10529_s30, %s13589_s30   ;;  %s10370_s9 = sphi %s10527_s9, %s13591_s9   ;;  %s10366_s5 = sphi %s10525_s5, %s13593_s5   ;;  %s10362_s8 = sphi %s10523_s8, %s13592_s8  }
  0x1a   : > { %s9184_s6 = sadd.s32 4294967294, %s10374_s30   ;;  %s10548_s10 = sadd.s32 1, %s10374_s30  }
  0x1b   : > { %13562 = sst [smem:[#allocation14_spill]] %s10548_s10  ;;  %s624_s0 = sadd.s32 1, %s10370_s9 }
  0x1c   : > { %s621_s11 = ssub.s32 %s10374_s30, %s10548_s10  ;;  %p634_p0 = scmp.ne.s32.totalorder %s10370_s9, %s10366_s5 }
  0x1d   : > { %p622_p1 = scmp.eq.s32.totalorder %s621_s11, 0  ;;  %p635_p2 = scmp.eq.s32.totalorder %s10544_s3, 1 }
  0x1e   : > { %p640_p3 = scmp.ne.s32.totalorder %s10366_s5, %s10362_s8  ;;  %p641_p4 = scmp.eq.s32.totalorder %s9184_s6, 1 }
  0x1f   : > { %s10559_s29 = scalar_select %p622_p1, %s10370_s9, %s624_s0  }
  0x20   : > { %p10561_p5 = por %p635_p2, %p634_p0  ;;  %p10565_p6 = por %p641_p4, %p640_p3 }
  0x21   : > { %13563 = sst [smem:[#allocation15_spill]] %s10559_s29  ;;  %p9187_p7 = scmp.ge.s32.totalorder %s10374_s30, 1 }
  0x22   : > { %p771_p8 = scmp.lt.s32.totalorder %s10374_s30, 3 }
  0x24   : > { %p772_p9 = pnand %p9187_p7, %p771_p8 }
  0x25   : > { %s13566_s4 = sld [smem:[#allocation17_spill]] (!%p772_p9)  ;;  %p848_p10 = scmp.lt.s32.totalorder (!%p772_p9), %s10544_s3, 1 }
  0x26   : > { %775 = sbr.rel (%p772_p9) target bundleno = 2878 (0xb3e), region = 128  ;;  %s13567_s0 = sld [smem:[#allocation16_spill]] (!%p772_p9) }
  0x27   : > { %s13568_s9 = sld [smem:[#allocation18_spill]] (!%p772_p9) }
  0x28   : > { %s13574_s13 = sld [smem:[#allocation29_spill]] (!%p772_p9) }
  0x29   : > { %s13575_s12 = sld [smem:[#allocation21_spill]] (!%p772_p9) }
  0x2a   : > { %s13576_s14 = sld [smem:[#allocation30_spill]] (!%p772_p9) }
  0x2b   : > { %v9190_v0 = vld [vmem:[%s13566_s4 + $0x4] sm:$0xf]  ;;  %vm1061_vm0 = vcmask 1043456   ;;  %v994_v1 = vld [vmem:[%s13566_s4] sm:$0xf]  ;;  %vm853_vm1 = vcmask 31744  }
  0x2c   : > { %9191 = vmatpush.msk.msra.mxu0 %vm1061_vm0, %v9190_v0  ;;  %10213 = vmatpush.msk.msra.mxu3 %vm1061_vm0, %v9190_v0  ;;  %v9225_v2 = vld [vmem:[%s13566_s4 + $0x8] sm:$0xf]  ;;  %v9243_v3 = vld [vmem:[%s13566_s4 + $0xc] sm:$0xf]  ;;  %s849_s1 = scalar_select %p848_p10, %s10544_s3, 1  ;;  %v10376_v4 = vmov 0.0  }
  0x2d   : > { %10214 = vmatpush.msk.msra.mxu2 %vm1061_vm0, %v994_v1  ;;  %854 = vst.msk [vmem:[#allocation2] sm:$0xff] %vm853_vm1, %v10376_v4  ;;  %9208 = vmatpush.msk.msra.mxu1 %vm1061_vm0, %v994_v1  ;;  %v9297_v39 = vld [vmem:[%s13566_s4 + $0x18] sm:$0xf]  ;;  %v9315_v40 = vld [vmem:[%s13566_s4 + $0x1c] sm:$0xf]  ;;  %s13569_s6 = smov %s13568_s9  ;;  %vm872_vm2 = vcmask 261120  }
  0x2e   : > { %855 = vst.msk [vmem:[#allocation2 + $0x8] sm:$0xff] %vm853_vm1, %v10376_v4  ;;  %9244 = vmatpush.msk.msrb.mxu3 %vm1061_vm0, %v9243_v3  ;;  %s10212_s29 = sshll.u32 %s849_s1, 7  ;;  %v9261_v45 = vld [vmem:[%s13566_s4 + $0x10] sm:$0xf]  ;;  %v9279_v50 = vld [vmem:[%s13566_s4 + $0x14] sm:$0xf] }
  0x2f   : > { %9226 = vmatpush.msk.msrb.mxu2 %vm1061_vm0, %v9225_v2  ;;  %856 = vst.msk [vmem:[#allocation2 + $0x10] sm:$0xff] %vm853_vm1, %v10376_v4  ;;  %s10600_s11 = scalar_lea.vmem %s13567_s0, %s10212_s29  ;;  %9262 = vmatpush.msk.msrb.mxu0 %vm1061_vm0, %v9261_v45  ;;  %s13570_s29 = sld [smem:[#allocation28_spill]]  ;;  %vm909_vm3 = vcmask 523264   ;;  %vm8965_vm5 = vcmask 130112   ;;  %vm8969_vm6 = vcmask 195712   ;;  %vm8973_vm7 = vcmask 261312  }
  0x30   : > { %857 = vst.msk [vmem:[#allocation2 + $0x18] sm:$0xff] %vm853_vm1, %v10376_v4  ;;  %v946_v5 = vld [vmem:[%s10600_s11] sm:$0xff]  ;;  %v955_v9 = vld [vmem:[%s10600_s11 + $0x48] sm:$0xff]  ;;  %v956_v11 = vld [vmem:[%s10600_s11 + $0x50] sm:$0xff]  ;;  %9280 = vmatpush.msk.msrb.mxu1 %vm1061_vm0, %v9279_v50  ;;  %s13577_s15 = sld [smem:[#allocation31_spill]]  ;;  %vm8977_vm8 = vcmask 326912  }
  0x31   : > { %858 = vst.msk [vmem:[#allocation2 + $0x20] sm:$0xff] %vm853_vm1, %v10376_v4  ;;  %v954_v8 = vld [vmem:[%s10600_s11 + $0x40] sm:$0xff]  ;;  %v947_v10 = vld [vmem:[%s10600_s11 + $0x8] sm:$0xff]  ;;  %v948_v12 = vld [vmem:[%s10600_s11 + $0x10] sm:$0xff]  ;;  %s13580_s16 = sld [smem:[#allocation32_spill]]  ;;  %vm8981_vm9 = vcmask 392512  }
  0x32   : > { %962 = vst.msk [vmem:[#allocation2 + $0x8] sm:$0xff] %vm853_vm1, %v946_v5  ;;  %v957_v13 = vld [vmem:[%s10600_s11 + $0x58] sm:$0xff]  ;;  %v958_v15 = vld [vmem:[%s10600_s11 + $0x60] sm:$0xff]  ;;  %v959_v17 = vld [vmem:[%s10600_s11 + $0x68] sm:$0xff]  ;;  %s13584_s17 = sld [smem:[#allocation33_spill]]  ;;  %vm8985_vm10 = vcmask 458112  }
  0x33   : > { %859 = vst.msk [vmem:[#allocation2 + $0x28] sm:$0xff] %vm853_vm1, %v10376_v4  ;;  %v949_v14 = vld [vmem:[%s10600_s11 + $0x18] sm:$0xff]  ;;  %v950_v16 = vld [vmem:[%s10600_s11 + $0x20] sm:$0xff]  ;;  %v951_v20 = vld [vmem:[%s10600_s11 + $0x28] sm:$0xff]  ;;  %s13586_s18 = sld [smem:[#allocation34_spill]]  ;;  %vm8989_vm11 = vcmask 523712  }
  0x34   : > { %860 = vst.msk [vmem:[#allocation2 + $0x30] sm:$0xff] %vm853_vm1, %v10376_v4  ;;  %v960_v23 = vld [vmem:[%s10600_s11 + $0x70] sm:$0xff]  ;;  %v961_v29 = vld [vmem:[%s10600_s11 + $0x78] sm:$0xff]  ;;  %s13587_s10 = sld [smem:[#allocation26_spill]]  ;;  %vm8993_vm12 = vcmask 589312   ;;  %vm8997_vm13 = vcmask 654912  }
  0x35   : > { %861 = vst.msk [vmem:[#allocation2 + $0x38] sm:$0xff] %vm853_vm1, %v10376_v4  ;;  %v952_v28 = vld [vmem:[%s10600_s11 + $0x30] sm:$0xff]  ;;  %v953_v34 = vld [vmem:[%s10600_s11 + $0x38] sm:$0xff]  ;;  %vm9001_vm14 = vcmask 720512   ;;  %vm9005_vm15 = vcmask 786112   ;;  %s13432_s4 = sand.u32 1, %s10366_s5  }
  0x36   : > { %862 = vst.msk [vmem:[#allocation2 + $0x40] sm:$0xff] %vm853_vm1, %v10376_v4 }
  0x37   : > { %863 = vst.msk [vmem:[#allocation2 + $0x48] sm:$0xff] %vm853_vm1, %v10376_v4 }
  0x38   : > { %864 = vst.msk [vmem:[#allocation2 + $0x50] sm:$0xff] %vm853_vm1, %v10376_v4 }
  0x39   : > { %v995_v6 = vld [vmem:[#allocation2 + $0x6] sm:$0xff]  ;;  %865 = vst.msk [vmem:[#allocation2 + $0x58] sm:$0xff] %vm853_vm1, %v10376_v4 }
  0x3a   : > { %v978_v7 = vld [vmem:[#allocation2 + $0x5] sm:$0xff]  ;;  %9192 = vmatmul.msk.f32.vlgmr.msra.gmra.mxu0 %vm853_vm1, %v995_v6  ;;  %866 = vst.msk [vmem:[#allocation2 + $0x60] sm:$0xff] %vm853_vm1, %v10376_v4 }
  0x3b   : > { %9209 = vmatmul.msk.f32.vlgmr.msra.gmra.mxu1 %vm853_vm1, %v978_v7  ;;  %867 = vst.msk [vmem:[#allocation2 + $0x68] sm:$0xff] %vm853_vm1, %v10376_v4  ;;  %v1246_v55 = vld [vmem:[#allocation2 + $0x7] sm:$0xff] }
  0x3c   : > { %868 = vst.msk [vmem:[#allocation2 + $0x70] sm:$0xff] %vm853_vm1, %v10376_v4  ;;  %v1396_v56 = vld [vmem:[#allocation2 + $0x8] sm:$0xff] }
  0x3d   : > { %869 = vst.msk [vmem:[#allocation2 + $0x78] sm:$0xff] %vm853_vm1, %v10376_v4 }
  0x3e   : > { %870 = vst.msk [vmem:[#allocation2 + $0x80] sm:$0xff] %vm853_vm1, %v10376_v4 }
  0x3f   : > { %871 = vst.msk [vmem:[#allocation2 + $0x88] sm:$0xff] %vm853_vm1, %v10376_v4 }
  0x40   : > { %970 = vst.msk [vmem:[#allocation2 + $0x48] sm:$0xff] %vm853_vm1, %v954_v8 }
  0x41   : > { %971 = vst.msk [vmem:[#allocation2 + $0x50] sm:$0xff] %vm853_vm1, %v955_v9 }
  0x42   : > { %963 = vst.msk [vmem:[#allocation2 + $0x10] sm:$0xff] %vm853_vm1, %v947_v10 }
  0x43   : > { %972 = vst.msk [vmem:[#allocation2 + $0x58] sm:$0xff] %vm853_vm1, %v956_v11 }
  0x44   : > { %964 = vst.msk [vmem:[#allocation2 + $0x18] sm:$0xff] %vm853_vm1, %v948_v12 }
  0x45   : > { %973 = vst.msk [vmem:[#allocation2 + $0x60] sm:$0xff] %vm853_vm1, %v957_v13 }
  0x46   : > { %965 = vst.msk [vmem:[#allocation2 + $0x20] sm:$0xff] %vm853_vm1, %v949_v14 }
  0x47   : > { %974 = vst.msk [vmem:[#allocation2 + $0x68] sm:$0xff] %vm853_vm1, %v958_v15 }
  0x48   : > { %v1004_v18 = vld [vmem:[#allocation2 + $0x4e] sm:$0xff]  ;;  %966 = vst.msk [vmem:[#allocation2 + $0x28] sm:$0xff] %vm853_vm1, %v950_v16 }
  0x49   : > { %v987_v19 = vld [vmem:[#allocation2 + $0x4d] sm:$0xff]  ;;  %9201 = vmatmul.msk.f32.vlgmr.msra.gmra.mxu3 %vm853_vm1, %v1004_v18  ;;  %975 = vst.msk [vmem:[#allocation2 + $0x70] sm:$0xff] %vm853_vm1, %v959_v17 }
  0x4a   : > { %9218 = vmatmul.msk.f32.vlgmr.msra.gmra.mxu2 %vm853_vm1, %v987_v19  ;;  %v996_v21 = vld [vmem:[#allocation2 + $0xe] sm:$0xff]  ;;  %967 = vst.msk [vmem:[#allocation2 + $0x30] sm:$0xff] %vm853_vm1, %v951_v20  ;;  %v1005_v24 = vld [vmem:[#allocation2 + $0x56] sm:$0xff]  ;;  %9316 = vmatpush.msk.msra.mxu3 %vm1061_vm0, %v9315_v40 }
  0x4b   : > { %v979_v22 = vld [vmem:[#allocation2 + $0xd] sm:$0xff]  ;;  %9193 = vmatmul.msk.f32.gmra.mxu0 %vm853_vm1, %v996_v21  ;;  %976 = vst.msk [vmem:[#allocation2 + $0x78] sm:$0xff] %vm853_vm1, %v960_v23  ;;  %v988_v25 = vld [vmem:[#allocation2 + $0x55] sm:$0xff]  ;;  %9298 = vmatpush.msk.msra.mxu2 %vm1061_vm0, %v9297_v39 }
  0x4c   : > { %9210 = vmatmul.msk.f32.gmra.mxu1 %vm853_vm1, %v979_v22  ;;  %v997_v26 = vld [vmem:[#allocation2 + $0x16] sm:$0xff]  ;;  %968 = vst.msk [vmem:[#allocation2 + $0x38] sm:$0xff] %vm853_vm1, %v952_v28  ;;  %v1006_v30 = vld [vmem:[#allocation2 + $0x5e] sm:$0xff]  ;;  %v1546_v61 = vld [vmem:[#allocation2 + $0x9] sm:$0xff] }
  0x4d   : > { %v980_v27 = vld [vmem:[#allocation2 + $0x15] sm:$0xff]  ;;  %977 = vst.msk [vmem:[#allocation2 + $0x80] sm:$0xff] %vm853_vm1, %v961_v29  ;;  %v989_v31 = vld [vmem:[#allocation2 + $0x5d] sm:$0xff]  ;;  %v1696_v62 = vld [vmem:[#allocation2 + $0xa] sm:$0xff] }
  0x4e   : > { %v998_v32 = vld [vmem:[#allocation2 + $0x1e] sm:$0xff]  ;;  %969 = vst.msk [vmem:[#allocation2 + $0x40] sm:$0xff] %vm853_vm1, %v953_v34  ;;  %v1007_v35 = vld [vmem:[#allocation2 + $0x66] sm:$0xff]  ;;  %v1247_v59 = vld [vmem:[#allocation2 + $0xf] sm:$0xff] }
  0x4f   : > { %v981_v33 = vld [vmem:[#allocation2 + $0x1d] sm:$0xff]  ;;  %v990_v36 = vld [vmem:[#allocation2 + $0x65] sm:$0xff]  ;;  %v1397_v60 = vld [vmem:[#allocation2 + $0x10] sm:$0xff]  ;;  %874 = vst.msk [vmem:[#allocation3 + $0x8] sm:$0xff] %vm872_vm2, %v10376_v4 }
  0x50   : > { %v999_v37 = vld [vmem:[#allocation2 + $0x26] sm:$0xff]  ;;  %v1008_v41 = vld [vmem:[#allocation2 + $0x6e] sm:$0xff]  ;;  %v1248_v63 = vld [vmem:[#allocation2 + $0x17] sm:$0xff]  ;;  %873 = vst.msk [vmem:[#allocation3] sm:$0xff] %vm872_vm2, %v10376_v4 }
  0x51   : > { %9202 = vmatmul.msk.f32.gmra.mxu3 %vm853_vm1, %v1005_v24  ;;  %v982_v38 = vld [vmem:[#allocation2 + $0x25] sm:$0xff]  ;;  %v991_v42 = vld [vmem:[#allocation2 + $0x6d] sm:$0xff]  ;;  %v1398_v0 = vld [vmem:[#allocation2 + $0x18] sm:$0xff]  ;;  %875 = vst.msk [vmem:[#allocation3 + $0x10] sm:$0xff] %vm872_vm2, %v10376_v4 }
  0x52   : > { %9219 = vmatmul.msk.f32.gmra.mxu2 %vm853_vm1, %v988_v25  ;;  %v1000_v43 = vld [vmem:[#allocation2 + $0x2e] sm:$0xff]  ;;  %v1009_v46 = vld [vmem:[#allocation2 + $0x76] sm:$0xff]  ;;  %v1249_v3 = vld [vmem:[#allocation2 + $0x1f] sm:$0xff]  ;;  %876 = vst.msk [vmem:[#allocation3 + $0x18] sm:$0xff] %vm872_vm2, %v10376_v4 }
  0x53   : > { %9194 = vmatmul.msk.f32.gmra.mxu0 %vm853_vm1, %v997_v26  ;;  %v983_v44 = vld [vmem:[#allocation2 + $0x2d] sm:$0xff]  ;;  %v992_v47 = vld [vmem:[#allocation2 + $0x75] sm:$0xff]  ;;  %v1399_v5 = vld [vmem:[#allocation2 + $0x20] sm:$0xff]  ;;  %877 = vst.msk [vmem:[#allocation3 + $0x20] sm:$0xff] %vm872_vm2, %v10376_v4 }
  0x54   : > { %9211 = vmatmul.msk.f32.gmra.mxu1 %vm853_vm1, %v980_v27  ;;  %v1001_v48 = vld [vmem:[#allocation2 + $0x36] sm:$0xff]  ;;  %v1010_v51 = vld [vmem:[#allocation2 + $0x7e] sm:$0xff]  ;;  %v1250_v8 = vld [vmem:[#allocation2 + $0x27] sm:$0xff]  ;;  %878 = vst.msk [vmem:[#allocation3 + $0x28] sm:$0xff] %vm872_vm2, %v10376_v4 }
  0x55   : > { %v984_v49 = vld [vmem:[#allocation2 + $0x35] sm:$0xff]  ;;  %v993_v52 = vld [vmem:[#allocation2 + $0x7d] sm:$0xff]  ;;  %v1003_v57 = vld [vmem:[#allocation2 + $0x46] sm:$0xff]  ;;  %879 = vst.msk [vmem:[#allocation3 + $0x30] sm:$0xff] %vm872_vm2, %v10376_v4 }
  0x56   : > { %v1002_v53 = vld [vmem:[#allocation2 + $0x3e] sm:$0xff]  ;;  %v1547_v1 = vld [vmem:[#allocation2 + $0x11] sm:$0xff]  ;;  %v1400_v9 = vld [vmem:[#allocation2 + $0x28] sm:$0xff]  ;;  %880 = vst.msk [vmem:[#allocation3 + $0x38] sm:$0xff] %vm872_vm2, %v10376_v4 }
  0x57   : > { %v985_v54 = vld [vmem:[#allocation2 + $0x3d] sm:$0xff]  ;;  %v986_v58 = vld [vmem:[#allocation2 + $0x45] sm:$0xff]  ;;  %v1697_v2 = vld [vmem:[#allocation2 + $0x12] sm:$0xff]  ;;  %881 = vst.msk [vmem:[#allocation3 + $0x40] sm:$0xff] %vm872_vm2, %v10376_v4 }
  0x58   : > { %v1548_v6 = vld [vmem:[#allocation2 + $0x19] sm:$0xff]  ;;  %v1549_v10 = vld [vmem:[#allocation2 + $0x21] sm:$0xff]  ;;  %v1251_v12 = vld [vmem:[#allocation2 + $0x2f] sm:$0xff]  ;;  %882 = vst.msk [vmem:[#allocation3 + $0x48] sm:$0xff] %vm872_vm2, %v10376_v4 }
  0x59   : > { %9203 = vmatmul.msk.f32.gmra.mxu3 %vm853_vm1, %v1006_v30  ;;  %v1698_v7 = vld [vmem:[#allocation2 + $0x1a] sm:$0xff]  ;;  %v1699_v11 = vld [vmem:[#allocation2 + $0x22] sm:$0xff]  ;;  %v1401_v13 = vld [vmem:[#allocation2 + $0x30] sm:$0xff]  ;;  %883 = vst.msk [vmem:[#allocation3 + $0x50] sm:$0xff] %vm872_vm2, %v10376_v4 }
  0x5a   : > { %9220 = vmatmul.msk.f32.gmra.mxu2 %vm853_vm1, %v989_v31  ;;  %v1550_v14 = vld [vmem:[#allocation2 + $0x29] sm:$0xff]  ;;  %v1252_v16 = vld [vmem:[#allocation2 + $0x37] sm:$0xff]  ;;  %v1253_v20 = vld [vmem:[#allocation2 + $0x3f] sm:$0xff]  ;;  %884 = vst.msk [vmem:[#allocation3 + $0x58] sm:$0xff] %vm872_vm2, %v10376_v4 }
  0x5b   : > { %9195 = vmatmul.msk.f32.gmra.mxu0 %vm853_vm1, %v998_v32  ;;  %v1700_v15 = vld [vmem:[#allocation2 + $0x2a] sm:$0xff]  ;;  %v1402_v17 = vld [vmem:[#allocation2 + $0x38] sm:$0xff]  ;;  %v1403_v21 = vld [vmem:[#allocation2 + $0x40] sm:$0xff]  ;;  %885 = vst.msk [vmem:[#allocation3 + $0x60] sm:$0xff] %vm872_vm2, %v10376_v4 }
  0x5c   : > { %9212 = vmatmul.msk.f32.gmra.mxu1 %vm853_vm1, %v981_v33  ;;  %v1551_v18 = vld [vmem:[#allocation2 + $0x31] sm:$0xff]  ;;  %v1552_v22 = vld [vmem:[#allocation2 + $0x39] sm:$0xff]  ;;  %v1254_v24 = vld [vmem:[#allocation2 + $0x47] sm:$0xff]  ;;  %886 = vst.msk [vmem:[#allocation3 + $0x68] sm:$0xff] %vm872_vm2, %v10376_v4 }
  0x5d   : > { %v1701_v19 = vld [vmem:[#allocation2 + $0x32] sm:$0xff]  ;;  %v1702_v23 = vld [vmem:[#allocation2 + $0x3a] sm:$0xff]  ;;  %v1404_v25 = vld [vmem:[#allocation2 + $0x48] sm:$0xff]  ;;  %887 = vst.msk [vmem:[#allocation3 + $0x70] sm:$0xff] %vm872_vm2, %v10376_v4 }
  0x5e   : > { %v1553_v26 = vld [vmem:[#allocation2 + $0x41] sm:$0xff]  ;;  %v1255_v28 = vld [vmem:[#allocation2 + $0x4f] sm:$0xff]  ;;  %888 = vst.msk [vmem:[#allocation3 + $0x78] sm:$0xff] %vm872_vm2, %v10376_v4 }
  0x5f   : > { %v1703_v27 = vld [vmem:[#allocation2 + $0x42] sm:$0xff]  ;;  %v1405_v29 = vld [vmem:[#allocation2 + $0x50] sm:$0xff]  ;;  %v1706_v45 = vld [vmem:[#allocation2 + $0x5a] sm:$0xff]  ;;  %889 = vst.msk [vmem:[#allocation3 + $0x80] sm:$0xff] %vm872_vm2, %v10376_v4 }
  0x60   : > { %v1554_v30 = vld [vmem:[#allocation2 + $0x49] sm:$0xff]  ;;  %890 = vst.msk [vmem:[#allocation3 + $0x88] sm:$0xff] %vm872_vm2, %v10376_v4 }
  0x61   : > { %9204 = vmatmul.msk.f32.gmra.mxu3 %vm853_vm1, %v1007_v35  ;;  %v1704_v31 = vld [vmem:[#allocation2 + $0x4a] sm:$0xff]  ;;  %v1256_v35 = vld [vmem:[#allocation2 + $0x57] sm:$0xff]  ;;  %891 = vst.msk [vmem:[#allocation4] sm:$0xff] %vm872_vm2, %v10376_v4 }
  0x62   : > { %9221 = vmatmul.msk.f32.gmra.mxu2 %vm853_vm1, %v990_v36  ;;  %v1406_v36 = vld [vmem:[#allocation2 + $0x58] sm:$0xff]  ;;  %v1408_v50 = vld [vmem:[#allocation2 + $0x68] sm:$0xff]  ;;  %892 = vst.msk [vmem:[#allocation4 + $0x8] sm:$0xff] %vm872_vm2, %v10376_v4 }
  0x63   : > { %9196 = vmatmul.msk.f32.gmra.mxu0 %vm853_vm1, %v999_v37  ;;  %v1555_v37 = vld [vmem:[#allocation2 + $0x51] sm:$0xff]  ;;  %893 = vst.msk [vmem:[#allocation4 + $0x10] sm:$0xff] %vm872_vm2, %v10376_v4 }
  0x64   : > { %9213 = vmatmul.msk.f32.gmra.mxu1 %vm853_vm1, %v982_v38  ;;  %v1705_v38 = vld [vmem:[#allocation2 + $0x52] sm:$0xff]  ;;  %894 = vst.msk [vmem:[#allocation4 + $0x18] sm:$0xff] %vm872_vm2, %v10376_v4 }
  0x65   : > { %895 = vst.msk [vmem:[#allocation4 + $0x20] sm:$0xff] %vm872_vm2, %v10376_v4 }
  0x66   : > { %896 = vst.msk [vmem:[#allocation4 + $0x28] sm:$0xff] %vm872_vm2, %v10376_v4 }
  0x67   : > { %897 = vst.msk [vmem:[#allocation4 + $0x30] sm:$0xff] %vm872_vm2, %v10376_v4 }
  0x68   : > { %898 = vst.msk [vmem:[#allocation4 + $0x38] sm:$0xff] %vm872_vm2, %v10376_v4 }
  0x69   : > { %9205 = vmatmul.msk.f32.gmra.mxu3 %vm853_vm1, %v1008_v41  ;;  %899 = vst.msk [vmem:[#allocation4 + $0x40] sm:$0xff] %vm872_vm2, %v10376_v4 }
  0x6a   : > { %9222 = vmatmul.msk.f32.gmra.mxu2 %vm853_vm1, %v991_v42  ;;  %v1257_v42 = vld [vmem:[#allocation2 + $0x5f] sm:$0xff]  ;;  %900 = vst.msk [vmem:[#allocation4 + $0x48] sm:$0xff] %vm872_vm2, %v10376_v4 }
  0x6b   : > { %9197 = vmatmul.msk.f32.gmra.mxu0 %vm853_vm1, %v1000_v43  ;;  %v1407_v43 = vld [vmem:[#allocation2 + $0x60] sm:$0xff]  ;;  %901 = vst.msk [vmem:[#allocation4 + $0x50] sm:$0xff] %vm872_vm2, %v10376_v4 }
  0x6c   : > { %9214 = vmatmul.msk.f32.gmra.mxu1 %vm853_vm1, %v983_v44  ;;  %v1556_v44 = vld [vmem:[#allocation2 + $0x59] sm:$0xff]  ;;  %902 = vst.msk [vmem:[#allocation4 + $0x58] sm:$0xff] %vm872_vm2, %v10376_v4 }
  0x6d   : > { %903 = vst.msk [vmem:[#allocation4 + $0x60] sm:$0xff] %vm872_vm2, %v10376_v4 }
  0x6e   : > { %904 = vst.msk [vmem:[#allocation4 + $0x68] sm:$0xff] %vm872_vm2, %v10376_v4 }
  0x6f   : > { %905 = vst.msk [vmem:[#allocation4 + $0x70] sm:$0xff] %vm872_vm2, %v10376_v4 }
  0x70   : > { %906 = vst.msk [vmem:[#allocation4 + $0x78] sm:$0xff] %vm872_vm2, %v10376_v4 }
  0x71   : > { %9206 = vmatmul.msk.f32.gmra.mxu3 %vm853_vm1, %v1009_v46  ;;  %907 = vst.msk [vmem:[#allocation4 + $0x80] sm:$0xff] %vm872_vm2, %v10376_v4 }
  0x72   : > { %9223 = vmatmul.msk.f32.gmra.mxu2 %vm853_vm1, %v992_v47  ;;  %908 = vst.msk [vmem:[#allocation4 + $0x88] sm:$0xff] %vm872_vm2, %v10376_v4 }
  0x73   : > { %9198 = vmatmul.msk.f32.gmra.mxu0 %vm853_vm1, %v1001_v48  ;;  %911 = vst.msk [vmem:[#allocation5 + $0x8] sm:$0xff] %vm909_vm3, %v10376_v4 }
  0x74   : > { %9215 = vmatmul.msk.f32.gmra.mxu1 %vm853_vm1, %v984_v49  ;;  %v1258_v49 = vld [vmem:[#allocation2 + $0x67] sm:$0xff]  ;;  %910 = vst.msk [vmem:[#allocation5] sm:$0xff] %vm909_vm3, %v10376_v4 }
  0x75   : > { %912 = vst.msk [vmem:[#allocation5 + $0x10] sm:$0xff] %vm909_vm3, %v10376_v4 }
  0x76   : > { %913 = vst.msk [vmem:[#allocation5 + $0x18] sm:$0xff] %vm909_vm3, %v10376_v4 }
  0x77   : > { %914 = vst.msk [vmem:[#allocation5 + $0x20] sm:$0xff] %vm909_vm3, %v10376_v4 }
  0x78   : > { %915 = vst.msk [vmem:[#allocation5 + $0x28] sm:$0xff] %vm909_vm3, %v10376_v4 }
  0x79   : > { %9207 = vmatmul.msk.f32.gmra.mxu3 %vm853_vm1, %v1010_v51  ;;  %v1557_v51 = vld [vmem:[#allocation2 + $0x61] sm:$0xff]  ;;  %916 = vst.msk [vmem:[#allocation5 + $0x30] sm:$0xff] %vm909_vm3, %v10376_v4 }
  0x7a   : > { %9224 = vmatmul.msk.f32.gmra.mxu2 %vm853_vm1, %v993_v52  ;;  %v1707_v52 = vld [vmem:[#allocation2 + $0x62] sm:$0xff]  ;;  %917 = vst.msk [vmem:[#allocation5 + $0x38] sm:$0xff] %vm909_vm3, %v10376_v4 }
  0x7b   : > { %9199 = vmatmul.msk.f32.gmra.mxu0 %vm853_vm1, %v1002_v53  ;;  %918 = vst.msk [vmem:[#allocation5 + $0x40] sm:$0xff] %vm909_vm3, %v10376_v4 }
  0x7c   : > { %9216 = vmatmul.msk.f32.gmra.mxu1 %vm853_vm1, %v985_v54  ;;  %919 = vst.msk [vmem:[#allocation5 + $0x48] sm:$0xff] %vm909_vm3, %v10376_v4 }
  0x7d   : > { %920 = vst.msk [vmem:[#allocation5 + $0x50] sm:$0xff] %vm909_vm3, %v10376_v4 }
  0x7e   : > { %921 = vst.msk [vmem:[#allocation5 + $0x58] sm:$0xff] %vm909_vm3, %v10376_v4 }
  0x7f   : > { %922 = vst.msk [vmem:[#allocation5 + $0x60] sm:$0xff] %vm909_vm3, %v10376_v4 }
  0x80   : > { %923 = vst.msk [vmem:[#allocation5 + $0x68] sm:$0xff] %vm909_vm3, %v10376_v4 }
  0x81   : > { %9245 = vmatmul.msk.f32.vlgmr.msrb.gmra.mxu3 %vm853_vm1, %v1396_v56  ;;  %v1259_v56 = vld [vmem:[#allocation2 + $0x6f] sm:$0xff]  ;;  %924 = vst.msk [vmem:[#allocation5 + $0x70] sm:$0xff] %vm909_vm3, %v10376_v4 }
  0x82   : > { %9227 = vmatmul.msk.f32.vlgmr.msrb.gmra.mxu2 %vm853_vm1, %v1246_v55  ;;  %925 = vst.msk [vmem:[#allocation5 + $0x78] sm:$0xff] %vm909_vm3, %v10376_v4 }
  0x83   : > { %9200 = vmatmul.msk.f32.gmra.mxu0 %vm853_vm1, %v1003_v57  ;;  %v1409_v57 = vld [vmem:[#allocation2 + $0x70] sm:$0xff]  ;;  %926 = vst.msk [vmem:[#allocation5 + $0x80] sm:$0xff] %vm909_vm3, %v10376_v4 }
  0x84   : > { %9217 = vmatmul.msk.f32.gmra.mxu1 %vm853_vm1, %v986_v58  ;;  %v1558_v58 = vld [vmem:[#allocation2 + $0x69] sm:$0xff]  ;;  %927 = vst.msk [vmem:[#allocation5 + $0x88] sm:$0xff] %vm909_vm3, %v10376_v4 }
  0x85   : > { %928 = vst.msk [vmem:[#allocation6] sm:$0xff] %vm909_vm3, %v10376_v4 }
  0x86   : > { %929 = vst.msk [vmem:[#allocation6 + $0x8] sm:$0xff] %vm909_vm3, %v10376_v4 }
  0x87   : > { %930 = vst.msk [vmem:[#allocation6 + $0x10] sm:$0xff] %vm909_vm3, %v10376_v4 }
  0x88   : > { %931 = vst.msk [vmem:[#allocation6 + $0x18] sm:$0xff] %vm909_vm3, %v10376_v4 }
  0x89   : > { %9246 = vmatmul.msk.f32.gmra.mxu3 %vm853_vm1, %v1397_v60  ;;  %932 = vst.msk [vmem:[#allocation6 + $0x20] sm:$0xff] %vm909_vm3, %v10376_v4 }
  0x8a   : > { %9228 = vmatmul.msk.f32.gmra.mxu2 %vm853_vm1, %v1247_v59  ;;  %v1708_v59 = vld [vmem:[#allocation2 + $0x6a] sm:$0xff]  ;;  %933 = vst.msk [vmem:[#allocation6 + $0x28] sm:$0xff] %vm909_vm3, %v10376_v4 }
  0x8b   : > { %9263 = vmatmul.msk.f32.vlgmr.msrb.gmra.mxu0 %vm853_vm1, %v1546_v61  ;;  %934 = vst.msk [vmem:[#allocation6 + $0x30] sm:$0xff] %vm909_vm3, %v10376_v4 }
  0x8c   : > { %9281 = vmatmul.msk.f32.vlgmr.msrb.gmra.mxu1 %vm853_vm1, %v1696_v62  ;;  %935 = vst.msk [vmem:[#allocation6 + $0x38] sm:$0xff] %vm909_vm3, %v10376_v4 }
  0x8d   : > { %936 = vst.msk [vmem:[#allocation6 + $0x40] sm:$0xff] %vm909_vm3, %v10376_v4 }
  0x8e   : > { %937 = vst.msk [vmem:[#allocation6 + $0x48] sm:$0xff] %vm909_vm3, %v10376_v4 }
  0x8f   : > { %938 = vst.msk [vmem:[#allocation6 + $0x50] sm:$0xff] %vm909_vm3, %v10376_v4 }
  0x90   : > { %939 = vst.msk [vmem:[#allocation6 + $0x58] sm:$0xff] %vm909_vm3, %v10376_v4 }
  0x91   : > { %9247 = vmatmul.msk.f32.gmra.mxu3 %vm853_vm1, %v1398_v0  ;;  %v1410_v0 = vld [vmem:[#allocation2 + $0x78] sm:$0xff]  ;;  %940 = vst.msk [vmem:[#allocation6 + $0x60] sm:$0xff] %vm909_vm3, %v10376_v4 }
  0x92   : > { %9229 = vmatmul.msk.f32.gmra.mxu2 %vm853_vm1, %v1248_v63  ;;  %v1260_v63 = vld [vmem:[#allocation2 + $0x77] sm:$0xff]  ;;  %941 = vst.msk [vmem:[#allocation6 + $0x68] sm:$0xff] %vm909_vm3, %v10376_v4 }
  0x93   : > { %9264 = vmatmul.msk.f32.gmra.mxu0 %vm853_vm1, %v1547_v1  ;;  %v1559_v1 = vld [vmem:[#allocation2 + $0x71] sm:$0xff]  ;;  %942 = vst.msk [vmem:[#allocation6 + $0x70] sm:$0xff] %vm909_vm3, %v10376_v4 }
  0x94   : > { %9282 = vmatmul.msk.f32.gmra.mxu1 %vm853_vm1, %v1697_v2  ;;  %v1709_v2 = vld [vmem:[#allocation2 + $0x72] sm:$0xff]  ;;  %943 = vst.msk [vmem:[#allocation6 + $0x78] sm:$0xff] %vm909_vm3, %v10376_v4 }
  0x95   : > { %944 = vst.msk [vmem:[#allocation6 + $0x80] sm:$0xff] %vm909_vm3, %v10376_v4 }
  0x96   : > { %945 = vst.msk [vmem:[#allocation6 + $0x88] sm:$0xff] %vm909_vm3, %v10376_v4 }
  0x99   : > { %9248 = vmatmul.msk.f32.gmra.mxu3 %vm853_vm1, %v1399_v5 }
  0x9a   : > { %9230 = vmatmul.msk.f32.gmra.mxu2 %vm853_vm1, %v1249_v3 }
  0x9b   : > { %9265 = vmatmul.msk.f32.gmra.mxu0 %vm853_vm1, %v1548_v6 }
  0x9c   : > { %9283 = vmatmul.msk.f32.gmra.mxu1 %vm853_vm1, %v1698_v7 }
  0xa1   : > { %9249 = vmatmul.msk.f32.gmra.mxu3 %vm853_vm1, %v1400_v9  ;;  %v9336_v9 = vld [vmem:[%s13568_s9 + $0x38] sm:$0xff]  ;;  %s13571_s9 = sld [smem:[#allocation19_spill]] }
  0xa2   : > { %9231 = vmatmul.msk.f32.gmra.mxu2 %vm853_vm1, %v1250_v8  ;;  %2299 = vmatpush.msra.mxu0 %v9336_v9 }
  0xa3   : > { %9266 = vmatmul.msk.f32.gmra.mxu0 %vm853_vm1, %v1549_v10  ;;  %v1261_v10 = vld [vmem:[#allocation2 + $0x7f] sm:$0xff] }
  0xa4   : > { %9284 = vmatmul.msk.f32.gmra.mxu1 %vm853_vm1, %v1699_v11  ;;  %v1411_v11 = vld [vmem:[#allocation2 + $0x80] sm:$0xff] }
  0xa7   : > { %s13572_s0 = smov %s13571_s9 }
  0xa9   : > { %9250 = vmatmul.msk.f32.gmra.mxu3 %vm853_vm1, %v1401_v13  ;;  %v1710_v13 = vld [vmem:[#allocation2 + $0x7a] sm:$0xff] }
  0xaa   : > { %9232 = vmatmul.msk.f32.gmra.mxu2 %vm853_vm1, %v1251_v12  ;;  %v1560_v12 = vld [vmem:[#allocation2 + $0x79] sm:$0xff] }
  0xab   : > { %9267 = vmatmul.msk.f32.gmra.mxu0 %vm853_vm1, %v1550_v14 }
  0xac   : > { %9285 = vmatmul.msk.f32.gmra.mxu1 %vm853_vm1, %v1700_v15 }
  0xb1   : > { %9251 = vmatmul.msk.f32.gmra.mxu3 %vm853_vm1, %v1402_v17 }
  0xb2   : > { %9233 = vmatmul.msk.f32.gmra.mxu2 %vm853_vm1, %v1252_v16 }
  0xb3   : > { %9268 = vmatmul.msk.f32.gmra.mxu0 %vm853_vm1, %v1551_v18 }
  0xb4   : > { %9286 = vmatmul.msk.f32.gmra.mxu1 %vm853_vm1, %v1701_v19  ;;  %v1846_v19 = vld [vmem:[#allocation2 + $0xb] sm:$0xff] }
  0xb7   : > { %v1082_v3 = vpop.f32.mrf.mxu0 }
  0xb8   : > { %v1198_v5 = vpop.f32.mrf.mxu1 }
  0xb9   : > { %9252 = vmatmul.msk.f32.gmra.mxu3 %vm853_vm1, %v1403_v21  ;;  %v1561_v21 = vld [vmem:[#allocation2 + $0x81] sm:$0xff] }
  0xba   : > { %9234 = vmatmul.msk.f32.gmra.mxu2 %vm853_vm1, %v1253_v20  ;;  %v1996_v20 = vld [vmem:[#allocation2 + $0xc] sm:$0xff] }
  0xbb   : > { %9269 = vmatmul.msk.f32.gmra.mxu0 %vm853_vm1, %v1552_v22  ;;  %v1711_v22 = vld [vmem:[#allocation2 + $0x82] sm:$0xff] }
  0xbc   : > { %9287 = vmatmul.msk.f32.gmra.mxu1 %vm853_vm1, %v1702_v23  ;;  %v1199_v23 = vadd.f32 %v1198_v5, %v1082_v3 }
  0xc1   : > { %9253 = vmatmul.msk.f32.gmra.mxu3 %vm853_vm1, %v1404_v25 }
  0xc2   : > { %9235 = vmatmul.msk.f32.gmra.mxu2 %vm853_vm1, %v1254_v24 }
  0xc3   : > { %9270 = vmatmul.msk.f32.gmra.mxu0 %vm853_vm1, %v1553_v26 }
  0xc4   : > { %9288 = vmatmul.msk.f32.gmra.mxu1 %vm853_vm1, %v1703_v27 }
  0xc8   : > { %v1085_v14 = vpop.f32.mrf.mxu0 }
  0xc9   : > { %9254 = vmatmul.msk.f32.gmra.mxu3 %vm853_vm1, %v1405_v29  ;;  %v1201_v15 = vpop.f32.mrf.mxu1  ;;  %v1847_v29 = vld [vmem:[#allocation2 + $0x13] sm:$0xff] }
  0xca   : > { %9236 = vmatmul.msk.f32.gmra.mxu2 %vm853_vm1, %v1255_v28 }
  0xcb   : > { %9271 = vmatmul.msk.f32.gmra.mxu0 %vm853_vm1, %v1554_v30  ;;  %v1997_v30 = vld [vmem:[#allocation2 + $0x14] sm:$0xff] }
  0xcc   : > { %9289 = vmatmul.msk.f32.gmra.mxu1 %vm853_vm1, %v1704_v31  ;;  %v1109_v32 = vpop.f32.mrf.mxu3 }
  0xcd   : > { %v1225_v33 = vpop.f32.mrf.mxu2 }
  0xce   : > { %v10750_v34 = vadd.f32 %v1225_v33, %v1109_v32  ;;  %v1202_v32 = vadd.f32 %v1201_v15, %v1085_v14 }
  0xd0   : > { %v1088_v26 = vpop.f32.mrf.mxu0 }
  0xd1   : > { %9255 = vmatmul.msk.f32.gmra.mxu3 %vm853_vm1, %v1406_v36  ;;  %v1204_v27 = vpop.f32.mrf.mxu1 }
  0xd2   : > { %9237 = vmatmul.msk.f32.gmra.mxu2 %vm853_vm1, %v1256_v35 }
  0xd3   : > { %9272 = vmatmul.msk.f32.gmra.mxu0 %vm853_vm1, %v1555_v37  ;;  %v1848_v37 = vld [vmem:[#allocation2 + $0x1b] sm:$0xff] }
  0xd4   : > { %9290 = vmatmul.msk.f32.gmra.mxu1 %vm853_vm1, %v1705_v38  ;;  %v1112_v39 = vpop.f32.mrf.mxu3  ;;  %v1998_v38 = vld [vmem:[#allocation2 + $0x1c] sm:$0xff] }
  0xd5   : > { %v1228_v40 = vpop.f32.mrf.mxu2 }
  0xd6   : > { %v10756_v41 = vadd.f32 %v1228_v40, %v1112_v39 }
  0xd8   : > { %v1091_v39 = vpop.f32.mrf.mxu0 }
  0xd9   : > { %9256 = vmatmul.msk.f32.gmra.mxu3 %vm853_vm1, %v1407_v43  ;;  %v1207_v40 = vpop.f32.mrf.mxu1  ;;  %v1205_v43 = vadd.f32 %v1204_v27, %v1088_v26  ;;  %v2003_v26 = vld [vmem:[#allocation2 + $0x44] sm:$0xff] }
  0xda   : > { %9238 = vmatmul.msk.f32.gmra.mxu2 %vm853_vm1, %v1257_v42 }
  0xdb   : > { %9273 = vmatmul.msk.f32.gmra.mxu0 %vm853_vm1, %v1556_v44 }
  0xdc   : > { %9291 = vmatmul.msk.f32.gmra.mxu1 %vm853_vm1, %v1706_v45  ;;  %v1115_v46 = vpop.f32.mrf.mxu3 }
  0xdd   : > { %v1231_v47 = vpop.f32.mrf.mxu2 }
  0xde   : > { %v10762_v48 = vadd.f32 %v1231_v47, %v1115_v46  ;;  %v9335_v47 = vld [vmem:[%s13569_s6 + $0x30] sm:$0xff] }
  0xdf   : > { %2300 = vmatpush.msra.mxu0 %v9335_v47  ;;  %v1856_v47 = vld [vmem:[#allocation2 + $0x5b] sm:$0xff] }
  0xe1   : > { %9257 = vmatmul.msk.f32.gmra.mxu3 %vm853_vm1, %v1408_v50  ;;  %v1999_v50 = vld [vmem:[#allocation2 + $0x24] sm:$0xff] }
  0xe2   : > { %9239 = vmatmul.msk.f32.gmra.mxu2 %vm853_vm1, %v1258_v49  ;;  %v1849_v49 = vld [vmem:[#allocation2 + $0x23] sm:$0xff] }
  0xe3   : > { %9274 = vmatmul.msk.f32.gmra.mxu0 %vm853_vm1, %v1557_v51 }
  0xe4   : > { %9292 = vmatmul.msk.f32.gmra.mxu1 %vm853_vm1, %v1707_v52  ;;  %v1118_v53 = vpop.f32.mrf.mxu3  ;;  %v1208_v52 = vadd.f32 %v1207_v40, %v1091_v39 }
  0xe5   : > { %v1234_v54 = vpop.f32.mrf.mxu2 }
  0xe6   : > { %v10768_v55 = vadd.f32 %v1234_v54, %v1118_v53  ;;  %v1094_v53 = vpop.f32.mrf.mxu0  ;;  %v1210_v54 = vpop.f32.mrf.mxu1 }
  0xe9   : > { %9258 = vmatmul.msk.f32.gmra.mxu3 %vm853_vm1, %v1409_v57 }
  0xea   : > { %9240 = vmatmul.msk.f32.gmra.mxu2 %vm853_vm1, %v1259_v56 }
  0xeb   : > { %9275 = vmatmul.msk.f32.gmra.mxu0 %vm853_vm1, %v1558_v58 }
  0xec   : > { %9293 = vmatmul.msk.f32.gmra.mxu1 %vm853_vm1, %v1708_v59  ;;  %v1121_v60 = vpop.f32.mrf.mxu3  ;;  %v1850_v59 = vld [vmem:[#allocation2 + $0x2b] sm:$0xff] }
  0xed   : > { %v1237_v61 = vpop.f32.mrf.mxu2 }
  0xee   : > { %v10774_v62 = vadd.f32 %v1237_v61, %v1121_v60  ;;  %v2000_v60 = vld [vmem:[#allocation2 + $0x2c] sm:$0xff] }
  0xf1   : > { %9259 = vmatmul.msk.f32.gmra.mxu3 %vm853_vm1, %v1410_v0  ;;  %v1097_v0 = vpop.f32.mrf.mxu0 }
  0xf2   : > { %9241 = vmatmul.msk.f32.gmra.mxu2 %vm853_vm1, %v1260_v63  ;;  %v1211_v63 = vadd.f32 %v1210_v54, %v1094_v53  ;;  %v9333_v54 = vld [vmem:[%s13569_s6 + $0x20] sm:$0xff] }
  0xf3   : > { %9276 = vmatmul.msk.f32.gmra.mxu0 %vm853_vm1, %v1559_v1  ;;  %v1213_v1 = vpop.f32.mrf.mxu1 }
  0xf4   : > { %9294 = vmatmul.msk.f32.gmra.mxu1 %vm853_vm1, %v1709_v2  ;;  %v1124_v6 = vpop.f32.mrf.mxu3 }
  0xf5   : > { %v1240_v7 = vpop.f32.mrf.mxu2 }
  0xf6   : > { %v10780_v8 = vadd.f32 %v1240_v7, %v1124_v6  ;;  %v1851_v6 = vld [vmem:[#allocation2 + $0x33] sm:$0xff] }
  0xf7   : > { %v2001_v7 = vld [vmem:[#allocation2 + $0x34] sm:$0xff] }
  0xf9   : > { %9260 = vmatmul.msk.f32.gmra.mxu3 %vm853_vm1, %v1411_v11  ;;  %v1100_v14 = vpop.f32.mrf.mxu0 }
  0xfa   : > { %9242 = vmatmul.msk.f32.gmra.mxu2 %vm853_vm1, %v1261_v10  ;;  %v1214_v10 = vadd.f32 %v1213_v1, %v1097_v0  ;;  %v1858_v0 = vld [vmem:[#allocation2 + $0x6b] sm:$0xff] }
  0xfb   : > { %9277 = vmatmul.msk.f32.gmra.mxu0 %vm853_vm1, %v1560_v12  ;;  %v1216_v15 = vpop.f32.mrf.mxu1  ;;  %v2008_v1 = vld [vmem:[#allocation2 + $0x6c] sm:$0xff] }
  0xfc   : > { %9295 = vmatmul.msk.f32.gmra.mxu1 %vm853_vm1, %v1710_v13  ;;  %v1127_v16 = vpop.f32.mrf.mxu3 }
  0xfd   : > { %v1243_v17 = vpop.f32.mrf.mxu2 }
  0xfe   : > { %v10789_v18 = vadd.f32 %v1243_v17, %v1127_v16  ;;  %v1852_v16 = vld [vmem:[#allocation2 + $0x3b] sm:$0xff] }
  0xff   : > { %v2002_v17 = vld [vmem:[#allocation2 + $0x3c] sm:$0xff] }
 0x101   : > { %9317 = vmatmul.msk.f32.vlgmr.msra.gmra.mxu3 %vm853_vm1, %v1996_v20  ;;  %v1217_v20 = vadd.f32 %v1216_v15, %v1100_v14  ;;  %v9372_v14 = vld [vmem:[%s13569_s6 + $0x58] sm:$0xff] }
 0x102   : > { %9299 = vmatmul.msk.f32.vlgmr.msra.gmra.mxu2 %vm853_vm1, %v1846_v19  ;;  %v9392_v15 = vld [vmem:[%s13569_s6 + $0x78] sm:$0xff] }
 0x103   : > { %9278 = vmatmul.msk.f32.gmra.mxu0 %vm853_vm1, %v1561_v21  ;;  %2546 = vmatpush.msrb.mxu2 %v9372_v14 }
 0x104   : > { %9296 = vmatmul.msk.f32.gmra.mxu1 %vm853_vm1, %v1711_v22  ;;  %v1482_v25 = vpop.f32.mrf.mxu3  ;;  %2696 = vmatpush.msrb.mxu3 %v9392_v15 }
 0x105   : > { %v1332_v24 = vpop.f32.mrf.mxu2 }
 0x106   : > { %v1380_v28 = vadd.f32 %v1332_v24, %v1199_v23  ;;  %v9334_v24 = vld [vmem:[%s13569_s6 + $0x28] sm:$0xff] }
 0x107   : > { %2301 = vmatpush.msra.mxu0 %v9334_v24  ;;  %v2215_v24 = vld [vmem:[%s13569_s6 + $0x8] sm:$0xff] }
 0x108   : > { %v10795_v31 = vadd.f32 %v1482_v25, %v1380_v28  ;;  %v1853_v25 = vld [vmem:[#allocation2 + $0x43] sm:$0xff]  ;;  %v1103_v28 = vpop.f32.mrf.mxu0 }
 0x109   : > { %9318 = vmatmul.msk.f32.gmra.mxu3 %vm853_vm1, %v1997_v30  ;;  %2302 = vmatpush.msra.mxu0 %v9333_v54  ;;  %v9389_v54 = vld [vmem:[%s13569_s6 + $0x60] sm:$0xff] }
 0x10a   : > { %9300 = vmatmul.msk.f32.gmra.mxu2 %vm853_vm1, %v1847_v29  ;;  %v1219_v29 = vpop.f32.mrf.mxu1 }
 0x10b   : > { %v1220_v30 = vadd.f32 %v1219_v29, %v1103_v28  ;;  %v9369_v28 = vld [vmem:[%s13569_s6 + $0x40] sm:$0xff] }
 0x10c   : > { %v1485_v35 = vpop.f32.mrf.mxu3 }
 0x10d   : > { %v1335_v33 = vpop.f32.mrf.mxu2 }
 0x10e   : > { %v1381_v36 = vadd.f32 %v1335_v33, %v1202_v32 }
 0x110   : > { %v10799_v42 = vadd.f32 %v1485_v35, %v1381_v36  ;;  %v1854_v36 = vld [vmem:[#allocation2 + $0x4b] sm:$0xff] }
 0x111   : > { %9319 = vmatmul.msk.f32.gmra.mxu3 %vm853_vm1, %v1998_v38 }
 0x112   : > { %9301 = vmatmul.msk.f32.gmra.mxu2 %vm853_vm1, %v1848_v37  ;;  %v2004_v37 = vld [vmem:[#allocation2 + $0x4c] sm:$0xff] }
 0x114   : > { %v1488_v45 = vpop.f32.mrf.mxu3 }
 0x115   : > { %v1338_v44 = vpop.f32.mrf.mxu2 }
 0x116   : > { %v1382_v46 = vadd.f32 %v1338_v44, %v1205_v43  ;;  %v1855_v43 = vld [vmem:[#allocation2 + $0x53] sm:$0xff] }
 0x117   : > { %v2005_v44 = vld [vmem:[#allocation2 + $0x54] sm:$0xff] }
 0x118   : > { %v10806_v51 = vadd.f32 %v1488_v45, %v1382_v46 }
 0x119   : > { %9320 = vmatmul.msk.f32.gmra.mxu3 %vm853_vm1, %v1999_v50  ;;  %v10845_v50 = vpop.f32.mrf.mxu0 }
 0x11a   : > { %9302 = vmatmul.msk.f32.gmra.mxu2 %vm853_vm1, %v1849_v49  ;;  %v2006_v49 = vld [vmem:[#allocation2 + $0x5c] sm:$0xff] }
 0x11c   : > { %v1491_v57 = vpop.f32.mrf.mxu3 }
 0x11d   : > { %v1341_v56 = vpop.f32.mrf.mxu2 }
 0x11e   : > { %v1383_v58 = vadd.f32 %v1341_v56, %v1208_v52  ;;  %v1857_v56 = vld [vmem:[#allocation2 + $0x63] sm:$0xff] }
 0x120   : > { %v10810_v61 = vadd.f32 %v1491_v57, %v1383_v58  ;;  %v2007_v57 = vld [vmem:[#allocation2 + $0x64] sm:$0xff]  ;;  %v10854_v58 = vpop.f32.mrf.mxu1 }
 0x121   : > { %9321 = vmatmul.msk.f32.gmra.mxu3 %vm853_vm1, %v2000_v60 }
 0x122   : > { %9303 = vmatmul.msk.f32.gmra.mxu2 %vm853_vm1, %v1850_v59 }
 0x124   : > { %v1494_v3 = vpop.f32.mrf.mxu3 }
 0x125   : > { %v1344_v2 = vpop.f32.mrf.mxu2 }
 0x126   : > { %v1384_v5 = vadd.f32 %v1344_v2, %v1211_v63  ;;  %v10862_v63 = vpop.f32.mrf.mxu0 }
 0x128   : > { %v10814_v9 = vadd.f32 %v1494_v3, %v1384_v5  ;;  %v10864_v2 = vpop.f32.mrf.mxu1 }
 0x129   : > { %9322 = vmatmul.msk.f32.gmra.mxu3 %vm853_vm1, %v2001_v7  ;;  %v2009_v7 = vld [vmem:[#allocation2 + $0x74] sm:$0xff] }
 0x12a   : > { %9304 = vmatmul.msk.f32.gmra.mxu2 %vm853_vm1, %v1851_v6  ;;  %v1859_v6 = vld [vmem:[#allocation2 + $0x73] sm:$0xff] }
 0x12c   : > { %v1497_v12 = vpop.f32.mrf.mxu3 }
 0x12d   : > { %v1347_v11 = vpop.f32.mrf.mxu2 }
 0x12e   : > { %v1385_v13 = vadd.f32 %v1347_v11, %v1214_v10  ;;  %v10874_v10 = vpop.f32.mrf.mxu0 }
 0x130   : > { %v10818_v19 = vadd.f32 %v1497_v12, %v1385_v13  ;;  %v10886_v11 = vpop.f32.mrf.mxu1 }
 0x131   : > { %9323 = vmatmul.msk.f32.gmra.mxu3 %vm853_vm1, %v2002_v17  ;;  %v1860_v17 = vld [vmem:[#allocation2 + $0x7b] sm:$0xff] }
 0x132   : > { %9305 = vmatmul.msk.f32.gmra.mxu2 %vm853_vm1, %v1852_v16  ;;  %v2217_v16 = vld [vmem:[%s13569_s6 + $0x18] sm:$0xff] }
 0x133   : > { %2412 = vmatpush.msra.mxu1 %v2217_v16 }
 0x134   : > { %v1500_v22 = vpop.f32.mrf.mxu3 }
 0x135   : > { %v1350_v21 = vpop.f32.mrf.mxu2 }
 0x136   : > { %v1386_v23 = vadd.f32 %v1350_v21, %v1217_v20  ;;  %v2010_v20 = vld [vmem:[#allocation2 + $0x7c] sm:$0xff]  ;;  %v2216_v21 = vld [vmem:[%s13569_s6 + $0x10] sm:$0xff] }
 0x137   : > { %2413 = vmatpush.msra.mxu1 %v2216_v21 }
 0x138   : > { %v10825_v27 = vadd.f32 %v1500_v22, %v1386_v23  ;;  %v9371_v22 = vld [vmem:[%s13569_s6 + $0x50] sm:$0xff]  ;;  %v10919_v23 = vpop.f32.mrf.mxu0 }
 0x139   : > { %9324 = vmatmul.msk.f32.gmra.mxu3 %vm853_vm1, %v2003_v26  ;;  %2547 = vmatpush.msrb.mxu2 %v9371_v22  ;;  %v2214_v26 = vld [vmem:[%s13569_s6] sm:$0xff] }
 0x13a   : > { %9306 = vmatmul.msk.f32.gmra.mxu2 %vm853_vm1, %v1853_v25  ;;  %v9370_v25 = vld [vmem:[%s13569_s6 + $0x48] sm:$0xff]  ;;  %2414 = vmatpush.msra.mxu1 %v2215_v24 }
 0x13b   : > { %2548 = vmatpush.msrb.mxu2 %v9370_v25 }
 0x13c   : > { %v1503_v33 = vpop.f32.mrf.mxu3  ;;  %2415 = vmatpush.msra.mxu1 %v2214_v26 }
 0x13d   : > { %v1353_v32 = vpop.f32.mrf.mxu2  ;;  %2549 = vmatpush.msrb.mxu2 %v9369_v28 }
 0x13e   : > { %v1387_v35 = vadd.f32 %v1353_v32, %v1220_v30  ;;  %v1788_v32 = vpop.f32.mrf.mxu1 }
 0x140   : > { %v10829_v38 = vadd.f32 %v1503_v33, %v1387_v35  ;;  %v1861_v33 = vld [vmem:[#allocation2 + $0x83] sm:$0xff] }
 0x141   : > { %9325 = vmatmul.msk.f32.gmra.mxu3 %vm853_vm1, %v2004_v37  ;;  %v2011_v35 = vld [vmem:[#allocation2 + $0x84] sm:$0xff]  ;;  %v9391_v37 = vld [vmem:[%s13569_s6 + $0x70] sm:$0xff] }
 0x142   : > { %9307 = vmatmul.msk.f32.gmra.mxu2 %vm853_vm1, %v1854_v36  ;;  %v9412_v36 = vld [vmem:[%s13569_s6 + $0x98] sm:$0xff]  ;;  %2697 = vmatpush.msrb.mxu3 %v9391_v37 }
 0x143   : > { %2846 = vmatpush.msrb.mxu0 %v9412_v36 }
 0x144   : > { %v10835_v40 = vpop.f32.mrf.mxu3 }
 0x145   : > { %v10833_v39 = vpop.f32.mrf.mxu2 }
 0x149   : > { %9326 = vmatmul.msk.f32.gmra.mxu3 %vm853_vm1, %v2005_v44  ;;  %v1641_v44 = vpop.f32.mrf.mxu0 }
 0x14a   : > { %9308 = vmatmul.msk.f32.gmra.mxu2 %vm853_vm1, %v1855_v43  ;;  %v9390_v43 = vld [vmem:[%s13569_s6 + $0x68] sm:$0xff] }
 0x14b   : > { %2698 = vmatpush.msrb.mxu3 %v9390_v43 }
 0x14c   : > { %v10841_v46 = vpop.f32.mrf.mxu3 }
 0x14d   : > { %v10839_v45 = vpop.f32.mrf.mxu2  ;;  %2699 = vmatpush.msrb.mxu3 %v9389_v54 }
 0x151   : > { %9327 = vmatmul.msk.f32.gmra.mxu3 %vm853_vm1, %v2006_v49 }
 0x152   : > { %9309 = vmatmul.msk.f32.gmra.mxu2 %vm853_vm1, %v1856_v47 }
 0x154   : > { %v10849_v53 = vpop.f32.mrf.mxu3 }
 0x155   : > { %v10847_v52 = vpop.f32.mrf.mxu2 }
 0x159   : > { %9328 = vmatmul.msk.f32.gmra.mxu3 %vm853_vm1, %v2007_v57  ;;  %v1791_v57 = vpop.f32.mrf.mxu1 }
 0x15a   : > { %9310 = vmatmul.msk.f32.gmra.mxu2 %vm853_vm1, %v1857_v56  ;;  %v1680_v56 = vadd.f32 %v10862_v63, %v10795_v31  ;;  %v1644_v63 = vpop.f32.mrf.mxu0 }
 0x15c   : > { %v10860_v60 = vpop.f32.mrf.mxu3 }
 0x15d   : > { %v10858_v59 = vpop.f32.mrf.mxu2 }
 0x161   : > { %9329 = vmatmul.msk.f32.gmra.mxu3 %vm853_vm1, %v2008_v1  ;;  %v1794_v15 = vpop.f32.mrf.mxu1 }
 0x162   : > { %9311 = vmatmul.msk.f32.gmra.mxu2 %vm853_vm1, %v1858_v0  ;;  %v1830_v0 = vadd.f32 %v10864_v2, %v1680_v56  ;;  %v1681_v2 = vadd.f32 %v10874_v10, %v10799_v42  ;;  %v1682_v10 = vadd.f32 %v10919_v23, %v10806_v51  ;;  %v1647_v24 = vpop.f32.mrf.mxu0  ;;  %v9411_v51 = vld [vmem:[%s13569_s6 + $0x90] sm:$0xff]  ;;  %v1683_v23 = vadd.f32 %v1641_v44, %v10810_v61 }
 0x163   : > { %2847 = vmatpush.msrb.mxu0 %v9411_v51  ;;  %v1684_v44 = vadd.f32 %v1644_v63, %v10814_v9  ;;  %v1685_v9 = vadd.f32 %v1647_v24, %v10818_v19 }
 0x164   : > { %v10870_v5 = vpop.f32.mrf.mxu3  ;;  %v1832_v28 = vadd.f32 %v1788_v32, %v1682_v10 }
 0x165   : > { %v10868_v3 = vpop.f32.mrf.mxu2  ;;  %v1834_v10 = vadd.f32 %v1794_v15, %v1684_v44 }
 0x169   : > { %9330 = vmatmul.msk.f32.gmra.mxu3 %vm853_vm1, %v2009_v7  ;;  %v11003_v7 = vld [vmem:[%s13570_s29] ss:$0 sm:$0xff] }
 0x16a   : > { %9312 = vmatmul.msk.f32.gmra.mxu2 %vm853_vm1, %v1859_v6 }
 0x16c   : > { %v10892_v13 = vpop.f32.mrf.mxu3 }
 0x16d   : > { %v10890_v12 = vpop.f32.mrf.mxu2 }
 0x171   : > { %9331 = vmatmul.msk.f32.gmra.mxu3 %vm853_vm1, %v2010_v20 }
 0x172   : > { %9313 = vmatmul.msk.f32.gmra.mxu2 %vm853_vm1, %v1860_v17  ;;  %v1831_v17 = vadd.f32 %v10886_v11, %v1681_v2 }
 0x174   : > { %v10943_v30 = vpop.f32.mrf.mxu3 }
 0x175   : > { %v10941_v29 = vpop.f32.mrf.mxu2 }
 0x179   : > { %9332 = vmatmul.msk.f32.gmra.mxu3 %vm853_vm1, %v2011_v35 }
 0x17a   : > { %9314 = vmatmul.msk.f32.gmra.mxu2 %vm853_vm1, %v1861_v33  ;;  %v1797_v33 = vpop.f32.mrf.mxu1 }
 0x17b   : > { %v1835_v51 = vadd.f32 %v1797_v33, %v1685_v9 }
 0x17c   : > { %v10974_v49 = vpop.f32.mrf.mxu3 }
 0x17d   : > { %v10972_v47 = vpop.f32.mrf.mxu2 }
 0x184   : > { %v2082_v31 = vpop.f32.mrf.mxu3 }
 0x185   : > { %v1932_v1 = vpop.f32.mrf.mxu2 }
 0x186   : > { %v1980_v6 = vadd.f32 %v1932_v1, %v1830_v0  ;;  %v1650_v0 = vpop.f32.mrf.mxu0 }
 0x187   : > { %v1686_v24 = vadd.f32 %v1650_v0, %v10825_v27  ;;  %v9410_v0 = vld [vmem:[%s13569_s6 + $0x88] sm:$0xff] }
 0x188   : > { %v2130_v14 = vadd.f32 %v2082_v31, %v1980_v6  ;;  %v1833_v31 = vadd.f32 %v1791_v57, %v1683_v23  ;;  %2848 = vmatpush.msrb.mxu0 %v9410_v0 }
 0x18a   : > { %v2150_v16 = vadd.f32 %v11003_v7, %v2130_v14 }
 0x18c   : > { %v2166_v20 = vmax.f32 %v2150_v16, 0.0  ;;  %v2085_v22 = vpop.f32.mrf.mxu3 }
 0x18d   : > { %v1935_v21 = vpop.f32.mrf.mxu2 }
 0x18e   : > { %2182 = vst.msk [vmem:[#allocation3 + $0x8] sm:$0xff] %vm872_vm2, %v2166_v20  ;;  %v1981_v42 = vadd.f32 %v1935_v21, %v1831_v17  ;;  %v1800_v21 = vpop.f32.mrf.mxu1 }
 0x190   : > { %v2131_v25 = vadd.f32 %v2085_v22, %v1981_v42 }
 0x192   : > { %v2151_v26 = vadd.f32 %v11003_v7, %v2131_v25  ;;  %v1653_v25 = vpop.f32.mrf.mxu0 }
 0x194   : > { %v2167_v35 = vmax.f32 %v2151_v26, 0.0  ;;  %v2088_v54 = vpop.f32.mrf.mxu3 }
 0x195   : > { %v1938_v36 = vpop.f32.mrf.mxu2  ;;  %v2218_v37 = vld [vmem:[#allocation3 + $0x7] sm:$0xff] }
 0x196   : > { %v2198_v43 = vld [vmem:[#allocation3 + $0x6] sm:$0xff]  ;;  %2183 = vst.msk [vmem:[#allocation3 + $0x10] sm:$0xff] %vm872_vm2, %v2167_v35  ;;  %v1982_v56 = vadd.f32 %v1938_v36, %v1832_v28  ;;  %9337 = vmatmul.msk.f32.vlgmr.msra.gmra.mxu0 %vm872_vm2, %v2218_v37  ;;  %v1803_v63 = vpop.f32.mrf.mxu1 }
 0x197   : > { %v2465_v11 = vld [vmem:[#allocation3 + $0x8] sm:$0xff]  ;;  %9353 = vmatmul.msk.f32.vlgmr.msra.gmra.mxu1 %vm872_vm2, %v2198_v43 }
 0x198   : > { %9373 = vmatmul.msk.f32.vlgmr.msrb.gmra.mxu2 %vm872_vm2, %v2465_v11  ;;  %v2132_v32 = vadd.f32 %v2088_v54, %v1982_v56 }
 0x19a   : > { %v2152_v1 = vadd.f32 %v11003_v7, %v2132_v32 }
 0x19c   : > { %v2168_v6 = vmax.f32 %v2152_v1, 0.0  ;;  %v2091_v20 = vpop.f32.mrf.mxu3 }
 0x19d   : > { %v1941_v2 = vpop.f32.mrf.mxu2  ;;  %v2219_v14 = vld [vmem:[#allocation3 + $0xf] sm:$0xff] }
 0x19e   : > { %v2199_v16 = vld [vmem:[#allocation3 + $0xe] sm:$0xff]  ;;  %2184 = vst.msk [vmem:[#allocation3 + $0x18] sm:$0xff] %vm872_vm2, %v2168_v6  ;;  %v1983_v22 = vadd.f32 %v1941_v2, %v1833_v31  ;;  %9338 = vmatmul.msk.f32.gmra.mxu0 %vm872_vm2, %v2219_v14  ;;  %v1656_v14 = vpop.f32.mrf.mxu0 }
 0x19f   : > { %v2466_v17 = vld [vmem:[#allocation3 + $0x10] sm:$0xff]  ;;  %9354 = vmatmul.msk.f32.gmra.mxu1 %vm872_vm2, %v2199_v16 }
 0x1a0   : > { %v2615_v61 = vld [vmem:[#allocation3 + $0x9] sm:$0xff]  ;;  %9374 = vmatmul.msk.f32.gmra.mxu2 %vm872_vm2, %v2466_v17  ;;  %v2133_v57 = vadd.f32 %v2091_v20, %v1983_v22  ;;  %v1806_v17 = vpop.f32.mrf.mxu1  ;;  %v1836_v22 = vadd.f32 %v1800_v21, %v1686_v24  ;;  %v1687_v21 = vadd.f32 %v1653_v25, %v10829_v38 }
 0x1a1   : > { %9393 = vmatmul.msk.f32.vlgmr.msrb.gmra.mxu3 %vm872_vm2, %v2615_v61 }
 0x1a2   : > { %v2153_v42 = vadd.f32 %v11003_v7, %v2133_v57 }
 0x1a4   : > { %v2169_v26 = vmax.f32 %v2153_v42, 0.0  ;;  %v2094_v43 = vpop.f32.mrf.mxu3 }
 0x1a5   : > { %v1944_v28 = vpop.f32.mrf.mxu2  ;;  %v2220_v35 = vld [vmem:[#allocation3 + $0x17] sm:$0xff] }
 0x1a6   : > { %v2200_v36 = vld [vmem:[#allocation3 + $0x16] sm:$0xff]  ;;  %2185 = vst.msk [vmem:[#allocation3 + $0x20] sm:$0xff] %vm872_vm2, %v2169_v26  ;;  %v1984_v11 = vadd.f32 %v1944_v28, %v1834_v10  ;;  %9339 = vmatmul.msk.f32.gmra.mxu0 %vm872_vm2, %v2220_v35  ;;  %v1223_v28 = vadd.f32 %v10854_v58, %v10845_v50 }
 0x1a7   : > { %v2467_v37 = vld [vmem:[#allocation3 + $0x18] sm:$0xff]  ;;  %9355 = vmatmul.msk.f32.gmra.mxu1 %vm872_vm2, %v2200_v36  ;;  %v1659_v36 = vpop.f32.mrf.mxu0 }
 0x1a8   : > { %v2616_v54 = vld [vmem:[#allocation3 + $0x11] sm:$0xff]  ;;  %9375 = vmatmul.msk.f32.gmra.mxu2 %vm872_vm2, %v2467_v37  ;;  %v2134_v15 = vadd.f32 %v2094_v43, %v1984_v11  ;;  %v1388_v58 = vadd.f32 %v10833_v39, %v1223_v28  ;;  %v1837_v43 = vadd.f32 %v1803_v63, %v1687_v21  ;;  %v1809_v11 = vpop.f32.mrf.mxu1 }
 0x1a9   : > { %9394 = vmatmul.msk.f32.gmra.mxu3 %vm872_vm2, %v2616_v54 }
 0x1aa   : > { %v2154_v56 = vadd.f32 %v11003_v7, %v2134_v15 }
 0x1ac   : > { %v2170_v23 = vmax.f32 %v2154_v56, 0.0  ;;  %v2097_v2 = vpop.f32.mrf.mxu3 }
 0x1ad   : > { %v1947_v32 = vpop.f32.mrf.mxu2  ;;  %v2221_v1 = vld [vmem:[#allocation3 + $0x1f] sm:$0xff] }
 0x1ae   : > { %v2201_v31 = vld [vmem:[#allocation3 + $0x1e] sm:$0xff]  ;;  %2186 = vst.msk [vmem:[#allocation3 + $0x28] sm:$0xff] %vm872_vm2, %v2170_v23  ;;  %v1985_v16 = vadd.f32 %v1947_v32, %v1835_v51  ;;  %9340 = vmatmul.msk.f32.gmra.mxu0 %vm872_vm2, %v2221_v1  ;;  %v1538_v32 = vadd.f32 %v10835_v40, %v1388_v58  ;;  %v1389_v1 = vadd.f32 %v10839_v45, %v10750_v34 }
 0x1af   : > { %v2468_v6 = vld [vmem:[#allocation3 + $0x20] sm:$0xff]  ;;  %9356 = vmatmul.msk.f32.gmra.mxu1 %vm872_vm2, %v2201_v31  ;;  %v1662_v31 = vpop.f32.mrf.mxu0 }
 0x1b0   : > { %v2617_v19 = vld [vmem:[#allocation3 + $0x19] sm:$0xff]  ;;  %9376 = vmatmul.msk.f32.gmra.mxu2 %vm872_vm2, %v2468_v6  ;;  %v2135_v33 = vadd.f32 %v2097_v2, %v1985_v16  ;;  %v1688_v25 = vadd.f32 %v1656_v14, %v1538_v32 }
 0x1b1   : > { %9395 = vmatmul.msk.f32.gmra.mxu3 %vm872_vm2, %v2617_v19 }
 0x1b2   : > { %v2155_v20 = vadd.f32 %v11003_v7, %v2135_v33  ;;  %v1838_v6 = vadd.f32 %v1806_v17, %v1688_v25 }
 0x1b4   : > { %v2171_v61 = vmax.f32 %v2155_v20, 0.0  ;;  %v2100_v26 = vpop.f32.mrf.mxu3 }
 0x1b5   : > { %v1950_v44 = vpop.f32.mrf.mxu2  ;;  %v2222_v57 = vld [vmem:[#allocation3 + $0x27] sm:$0xff] }
 0x1b6   : > { %v2202_v42 = vld [vmem:[#allocation3 + $0x26] sm:$0xff]  ;;  %2187 = vst.msk [vmem:[#allocation3 + $0x30] sm:$0xff] %vm872_vm2, %v2171_v61  ;;  %v1986_v35 = vadd.f32 %v1950_v44, %v1836_v22  ;;  %9341 = vmatmul.msk.f32.gmra.mxu0 %vm872_vm2, %v2222_v57  ;;  %v1539_v22 = vadd.f32 %v10841_v46, %v1389_v1  ;;  %v1812_v61 = vpop.f32.mrf.mxu1  ;;  %v1390_v44 = vadd.f32 %v10847_v52, %v10756_v41 }
 0x1b7   : > { %v2469_v10 = vld [vmem:[#allocation3 + $0x28] sm:$0xff]  ;;  %9357 = vmatmul.msk.f32.gmra.mxu1 %vm872_vm2, %v2202_v42  ;;  %v1665_v42 = vpop.f32.mrf.mxu0 }
 0x1b8   : > { %v2618_v27 = vld [vmem:[#allocation3 + $0x21] sm:$0xff]  ;;  %9377 = vmatmul.msk.f32.gmra.mxu2 %vm872_vm2, %v2469_v10  ;;  %v2136_v50 = vadd.f32 %v2100_v26, %v1986_v35  ;;  %v1689_v45 = vadd.f32 %v1659_v36, %v1539_v22  ;;  %v1540_v21 = vadd.f32 %v10849_v53, %v1390_v44 }
 0x1b9   : > { %9396 = vmatmul.msk.f32.gmra.mxu3 %vm872_vm2, %v2618_v27 }
 0x1ba   : > { %v2156_v37 = vadd.f32 %v11003_v7, %v2136_v50  ;;  %v1839_v57 = vadd.f32 %v1809_v11, %v1689_v45  ;;  %v1690_v52 = vadd.f32 %v1662_v31, %v1540_v21 }
 0x1bc   : > { %v2172_v54 = vmax.f32 %v2156_v37, 0.0  ;;  %v2103_v23 = vpop.f32.mrf.mxu3  ;;  %v1391_v37 = vadd.f32 %v10858_v59, %v10762_v48  ;;  %v9409_v59 = vld [vmem:[%s13569_s6 + $0x80] sm:$0xff]  ;;  %s13585_s6 = sld [smem:[#allocation25_spill]] }
 0x1bd   : > { %v1953_v9 = vpop.f32.mrf.mxu2  ;;  %v2223_v15 = vld [vmem:[#allocation3 + $0x2f] sm:$0xff]  ;;  %2849 = vmatpush.msrb.mxu0 %v9409_v59 }
 0x1be   : > { %v2203_v56 = vld [vmem:[#allocation3 + $0x2e] sm:$0xff]  ;;  %2188 = vst.msk [vmem:[#allocation3 + $0x38] sm:$0xff] %vm872_vm2, %v2172_v54  ;;  %v1987_v38 = vadd.f32 %v1953_v9, %v1837_v43  ;;  %9342 = vmatmul.msk.f32.gmra.mxu0 %vm872_vm2, %v2223_v15  ;;  %v1815_v36 = vpop.f32.mrf.mxu1  ;;  %v1840_v43 = vadd.f32 %v1812_v61, %v1690_v52 }
 0x1bf   : > { %v2470_v51 = vld [vmem:[#allocation3 + $0x30] sm:$0xff]  ;;  %9358 = vmatmul.msk.f32.gmra.mxu1 %vm872_vm2, %v2203_v56  ;;  %v1668_v32 = vpop.f32.mrf.mxu0 }
 0x1c0   : > { %v2619_v39 = vld [vmem:[#allocation3 + $0x29] sm:$0xff]  ;;  %9378 = vmatmul.msk.f32.gmra.mxu2 %vm872_vm2, %v2470_v51  ;;  %v2137_v63 = vadd.f32 %v2103_v23, %v1987_v38  ;;  %v1541_v23 = vadd.f32 %v10860_v60, %v1391_v37  ;;  %v1392_v60 = vadd.f32 %v10868_v3, %v10768_v55 }
 0x1c1   : > { %9397 = vmatmul.msk.f32.gmra.mxu3 %vm872_vm2, %v2619_v39 }
 0x1c2   : > { %v2157_v40 = vadd.f32 %v11003_v7, %v2137_v63  ;;  %v1691_v39 = vadd.f32 %v1665_v42, %v1541_v23 }
 0x1c4   : > { %v2173_v2 = vmax.f32 %v2157_v40, 0.0  ;;  %v2106_v20 = vpop.f32.mrf.mxu3  ;;  %v1841_v31 = vadd.f32 %v1815_v36, %v1691_v39 }
 0x1c5   : > { %v1956_v16 = vpop.f32.mrf.mxu2  ;;  %v2224_v19 = vld [vmem:[#allocation3 + $0x37] sm:$0xff] }
 0x1c6   : > { %v2204_v24 = vld [vmem:[#allocation3 + $0x36] sm:$0xff]  ;;  %2189 = vst.msk [vmem:[#allocation3 + $0x40] sm:$0xff] %vm872_vm2, %v2173_v2  ;;  %v1988_v14 = vadd.f32 %v1956_v16, %v1838_v6  ;;  %9343 = vmatmul.msk.f32.gmra.mxu0 %vm872_vm2, %v2224_v19  ;;  %v1818_v63 = vpop.f32.mrf.mxu1 }
 0x1c7   : > { %v2471_v33 = vld [vmem:[#allocation3 + $0x38] sm:$0xff]  ;;  %9359 = vmatmul.msk.f32.gmra.mxu1 %vm872_vm2, %v2204_v24  ;;  %v1671_v22 = vpop.f32.mrf.mxu0 }
 0x1c8   : > { %v2620_v34 = vld [vmem:[#allocation3 + $0x31] sm:$0xff]  ;;  %9379 = vmatmul.msk.f32.gmra.mxu2 %vm872_vm2, %v2471_v33  ;;  %v2138_v17 = vadd.f32 %v2106_v20, %v1988_v14  ;;  %v1542_v33 = vadd.f32 %v10870_v5, %v1392_v60  ;;  %v1393_v14 = vadd.f32 %v10890_v12, %v10774_v62 }
 0x1c9   : > { %9398 = vmatmul.msk.f32.gmra.mxu3 %vm872_vm2, %v2620_v34 }
 0x1ca   : > { %v2158_v46 = vadd.f32 %v11003_v7, %v2138_v17  ;;  %v1692_v3 = vadd.f32 %v1668_v32, %v1542_v33 }
 0x1cc   : > { %v2174_v10 = vmax.f32 %v2158_v46, 0.0  ;;  %v2109_v0 = vpop.f32.mrf.mxu3  ;;  %v1842_v34 = vadd.f32 %v1818_v63, %v1692_v3 }
 0x1cd   : > { %v1959_v26 = vpop.f32.mrf.mxu2  ;;  %v2225_v28 = vld [vmem:[#allocation3 + $0x3f] sm:$0xff] }
 0x1ce   : > { %v2205_v35 = vld [vmem:[#allocation3 + $0x3e] sm:$0xff]  ;;  %2190 = vst.msk [vmem:[#allocation3 + $0x48] sm:$0xff] %vm872_vm2, %v2174_v10  ;;  %v1989_v50 = vadd.f32 %v1959_v26, %v1839_v57  ;;  %9344 = vmatmul.msk.f32.gmra.mxu0 %vm872_vm2, %v2225_v28  ;;  %v1821_v45 = vpop.f32.mrf.mxu1  ;;  %v1543_v26 = vadd.f32 %v10892_v13, %v1393_v14 }
 0x1cf   : > { %v2472_v27 = vld [vmem:[#allocation3 + $0x40] sm:$0xff]  ;;  %9360 = vmatmul.msk.f32.gmra.mxu1 %vm872_vm2, %v2205_v35 }
 0x1d0   : > { %v2621_v41 = vld [vmem:[#allocation3 + $0x39] sm:$0xff]  ;;  %9380 = vmatmul.msk.f32.gmra.mxu2 %vm872_vm2, %v2472_v27  ;;  %v2139_v58 = vadd.f32 %v2109_v0, %v1989_v50  ;;  %v1693_v12 = vadd.f32 %v1671_v22, %v1543_v26  ;;  %v1394_v27 = vadd.f32 %v10941_v29, %v10780_v8  ;;  %v1674_v0 = vpop.f32.mrf.mxu0  ;;  %v2765_v26 = vld [vmem:[#allocation3 + $0xa] sm:$0xff] }
 0x1d1   : > { %9399 = vmatmul.msk.f32.gmra.mxu3 %vm872_vm2, %v2621_v41 }
 0x1d2   : > { %v2159_v53 = vadd.f32 %v11003_v7, %v2139_v58  ;;  %v1843_v21 = vadd.f32 %v1821_v45, %v1693_v12  ;;  %v2766_v12 = vld [vmem:[#allocation3 + $0x12] sm:$0xff] }
 0x1d4   : > { %v2175_v11 = vmax.f32 %v2159_v53, 0.0  ;;  %v2112_v51 = vpop.f32.mrf.mxu3  ;;  %v1544_v53 = vadd.f32 %v10943_v30, %v1394_v27  ;;  %v2767_v27 = vld [vmem:[#allocation3 + $0x1a] sm:$0xff] }
 0x1d5   : > { %v1962_v54 = vpop.f32.mrf.mxu2  ;;  %v2226_v9 = vld [vmem:[#allocation3 + $0x47] sm:$0xff] }
 0x1d6   : > { %v2206_v15 = vld [vmem:[#allocation3 + $0x46] sm:$0xff]  ;;  %2191 = vst.msk [vmem:[#allocation3 + $0x50] sm:$0xff] %vm872_vm2, %v2175_v11  ;;  %v1990_v38 = vadd.f32 %v1962_v54, %v1840_v43  ;;  %9345 = vmatmul.msk.f32.gmra.mxu0 %vm872_vm2, %v2226_v9  ;;  %v1824_v29 = vpop.f32.mrf.mxu1  ;;  %v1694_v11 = vadd.f32 %v1674_v0, %v1544_v53  ;;  %v1395_v9 = vadd.f32 %v10972_v47, %v10789_v18 }
 0x1d7   : > { %v2473_v56 = vld [vmem:[#allocation3 + $0x48] sm:$0xff]  ;;  %9361 = vmatmul.msk.f32.gmra.mxu1 %vm872_vm2, %v2206_v15  ;;  %v2985_v0 = vld [vmem:[%s13572_s0 + $0x10] sm:$0xff] }
 0x1d8   : > { %v2622_v48 = vld [vmem:[#allocation3 + $0x41] sm:$0xff]  ;;  %9381 = vmatmul.msk.f32.gmra.mxu2 %vm872_vm2, %v2473_v56  ;;  %v2140_v25 = vadd.f32 %v2112_v51, %v1990_v38  ;;  %v1844_v15 = vadd.f32 %v1824_v29, %v1694_v11  ;;  %v1677_v56 = vpop.f32.mrf.mxu0  ;;  %v1545_v39 = vadd.f32 %v10974_v49, %v1395_v9  ;;  %v9466_v11 = vld [vmem:[%s13572_s0 + $0x48] sm:$0xff] }
 0x1d9   : > { %9400 = vmatmul.msk.f32.gmra.mxu3 %vm872_vm2, %v2622_v48  ;;  %v9430_v9 = vld [vmem:[%s13572_s0 + $0x28] sm:$0xff] }
 0x1da   : > { %v2160_v1 = vadd.f32 %v11003_v7, %v2140_v25  ;;  %v1695_v47 = vadd.f32 %v1677_v56, %v1545_v39 }
 0x1dc   : > { %v2176_v40 = vmax.f32 %v2160_v1, 0.0  ;;  %v2115_v24 = vpop.f32.mrf.mxu3 }
 0x1dd   : > { %v1965_v6 = vpop.f32.mrf.mxu2  ;;  %v2227_v2 = vld [vmem:[#allocation3 + $0x4f] sm:$0xff] }
 0x1de   : > { %v2207_v16 = vld [vmem:[#allocation3 + $0x4e] sm:$0xff]  ;;  %2192 = vst.msk [vmem:[#allocation3 + $0x58] sm:$0xff] %vm872_vm2, %v2176_v40  ;;  %v1991_v20 = vadd.f32 %v1965_v6, %v1841_v31  ;;  %9346 = vmatmul.msk.f32.gmra.mxu0 %vm872_vm2, %v2227_v2  ;;  %v1827_v63 = vpop.f32.mrf.mxu1 }
 0x1df   : > { %v2474_v19 = vld [vmem:[#allocation3 + $0x50] sm:$0xff]  ;;  %9362 = vmatmul.msk.f32.gmra.mxu1 %vm872_vm2, %v2207_v16  ;;  %v1845_v31 = vadd.f32 %v1827_v63, %v1695_v47 }
 0x1e0   : > { %v2623_v55 = vld [vmem:[#allocation3 + $0x49] sm:$0xff]  ;;  %9382 = vmatmul.msk.f32.gmra.mxu2 %vm872_vm2, %v2474_v19  ;;  %v2141_v61 = vadd.f32 %v2115_v24, %v1991_v20 }
 0x1e1   : > { %9401 = vmatmul.msk.f32.gmra.mxu3 %vm872_vm2, %v2623_v55 }
 0x1e2   : > { %v2161_v5 = vadd.f32 %v11003_v7, %v2141_v61 }
 0x1e4   : > { %v2177_v17 = vmax.f32 %v2161_v5, 0.0  ;;  %v2118_v10 = vpop.f32.mrf.mxu3 }
 0x1e5   : > { %v1968_v44 = vpop.f32.mrf.mxu2  ;;  %v2228_v46 = vld [vmem:[#allocation3 + $0x57] sm:$0xff] }
 0x1e6   : > { %v2208_v57 = vld [vmem:[#allocation3 + $0x56] sm:$0xff]  ;;  %2193 = vst.msk [vmem:[#allocation3 + $0x60] sm:$0xff] %vm872_vm2, %v2177_v17  ;;  %v1992_v28 = vadd.f32 %v1968_v44, %v1842_v34  ;;  %9347 = vmatmul.msk.f32.gmra.mxu0 %vm872_vm2, %v2228_v46  ;;  %v2986_v34 = vld [vmem:[%s13571_s9 + $0x18] sm:$0xff]  ;;  %s13573_s9 = sld [smem:[#allocation20_spill]] }
 0x1e7   : > { %v2475_v42 = vld [vmem:[#allocation3 + $0x58] sm:$0xff]  ;;  %9363 = vmatmul.msk.f32.gmra.mxu1 %vm872_vm2, %v2208_v57  ;;  %3181 = vmatpush.msra.mxu2 %v2986_v34  ;;  %v9432_v57 = vld [vmem:[%s13572_s0 + $0x38] sm:$0xff] }
 0x1e8   : > { %v2624_v62 = vld [vmem:[#allocation3 + $0x51] sm:$0xff]  ;;  %9383 = vmatmul.msk.f32.gmra.mxu2 %vm872_vm2, %v2475_v42  ;;  %v2142_v35 = vadd.f32 %v2118_v10, %v1992_v28  ;;  %3068 = vmatpush.msrb.mxu1 %v9432_v57 }
 0x1e9   : > { %9402 = vmatmul.msk.f32.gmra.mxu3 %vm872_vm2, %v2624_v62  ;;  %3182 = vmatpush.msra.mxu2 %v2985_v0  ;;  %v3420_v57 = vld [vmem:[#allocation2 + $0x8] sm:$0xff] }
 0x1ea   : > { %v2162_v13 = vadd.f32 %v11003_v7, %v2142_v35 }
 0x1ec   : > { %v2178_v50 = vmax.f32 %v2162_v13, 0.0  ;;  %v2121_v37 = vpop.f32.mrf.mxu3  ;;  %v3436_v10 = vld [vmem:[%s13573_s9] sm:$0xf]  ;;  %s13578_s9 = sld [smem:[#allocation22_spill]] }
 0x1ed   : > { %v1971_v41 = vpop.f32.mrf.mxu2  ;;  %v2229_v52 = vld [vmem:[#allocation3 + $0x5f] sm:$0xff]  ;;  %9485 = vmatpush.msk.msra.mxu0 %vm1061_vm0, %v3436_v10  ;;  %vm9009_vm0 = vcmask 851712  }
 0x1ee   : > { %v2209_v36 = vld [vmem:[#allocation3 + $0x5e] sm:$0xff]  ;;  %2194 = vst.msk [vmem:[#allocation3 + $0x68] sm:$0xff] %vm872_vm2, %v2178_v50  ;;  %v1993_v43 = vadd.f32 %v1971_v41, %v1843_v21  ;;  %9348 = vmatmul.msk.f32.gmra.mxu0 %vm872_vm2, %v2229_v52 }
 0x1ef   : > { %v2476_v58 = vld [vmem:[#allocation3 + $0x60] sm:$0xff]  ;;  %9364 = vmatmul.msk.f32.gmra.mxu1 %vm872_vm2, %v2209_v36  ;;  %v2769_v36 = vld [vmem:[#allocation3 + $0x2a] sm:$0xff] }
 0x1f0   : > { %v2625_v8 = vld [vmem:[#allocation3 + $0x59] sm:$0xff]  ;;  %9384 = vmatmul.msk.f32.gmra.mxu2 %vm872_vm2, %v2476_v58  ;;  %v2143_v54 = vadd.f32 %v2121_v37, %v1993_v43  ;;  %v2768_v50 = vld [vmem:[#allocation3 + $0x22] sm:$0xff] }
 0x1f1   : > { %9403 = vmatmul.msk.f32.gmra.mxu3 %vm872_vm2, %v2625_v8  ;;  %v9467_v21 = vld [vmem:[%s13572_s0 + $0x50] sm:$0xff]  ;;  %v2770_v37 = vld [vmem:[#allocation3 + $0x32] sm:$0xff] }
 0x1f2   : > { %v2163_v30 = vadd.f32 %v11003_v7, %v2143_v54  ;;  %v9431_v41 = vld [vmem:[%s13572_s0 + $0x30] sm:$0xff]  ;;  %v2984_v8 = vld [vmem:[%s13572_s0 + $0x8] sm:$0xff]  ;;  %s13579_s11 = smov %s13578_s9 }
 0x1f3   : > { %3069 = vmatpush.msrb.mxu1 %v9431_v41  ;;  %v2771_v43 = vld [vmem:[#allocation3 + $0x3a] sm:$0xff]  ;;  %3183 = vmatpush.msra.mxu2 %v2984_v8  ;;  %v2772_v54 = vld [vmem:[#allocation3 + $0x42] sm:$0xff] }
 0x1f4   : > { %v2179_v51 = vmax.f32 %v2163_v30, 0.0  ;;  %v2124_v59 = vpop.f32.mrf.mxu3  ;;  %v3421_v41 = vld [vmem:[#allocation2 + $0x10] sm:$0xff] }
 0x1f5   : > { %v1974_v23 = vpop.f32.mrf.mxu2  ;;  %v2230_v32 = vld [vmem:[#allocation3 + $0x67] sm:$0xff]  ;;  %3070 = vmatpush.msrb.mxu1 %v9430_v9 }
 0x1f6   : > { %v2210_v38 = vld [vmem:[#allocation3 + $0x66] sm:$0xff]  ;;  %2195 = vst.msk [vmem:[#allocation3 + $0x70] sm:$0xff] %vm872_vm2, %v2179_v51  ;;  %v1994_v25 = vadd.f32 %v1974_v23, %v1844_v15  ;;  %9349 = vmatmul.msk.f32.gmra.mxu0 %vm872_vm2, %v2230_v32  ;;  %v2774_v51 = vld [vmem:[#allocation3 + $0x52] sm:$0xff]  ;;  %v2775_v32 = vld [vmem:[#allocation3 + $0x5a] sm:$0xff] }
 0x1f7   : > { %v2477_v48 = vld [vmem:[#allocation3 + $0x68] sm:$0xff]  ;;  %9365 = vmatmul.msk.f32.gmra.mxu1 %vm872_vm2, %v2210_v38  ;;  %v2983_v38 = vld [vmem:[%s13572_s0] sm:$0xff] }
 0x1f8   : > { %v2626_v18 = vld [vmem:[#allocation3 + $0x61] sm:$0xff]  ;;  %9385 = vmatmul.msk.f32.gmra.mxu2 %vm872_vm2, %v2477_v48  ;;  %v2144_v60 = vadd.f32 %v2124_v59, %v1994_v25  ;;  %v2773_v15 = vld [vmem:[#allocation3 + $0x4a] sm:$0xff] }
 0x1f9   : > { %9404 = vmatmul.msk.f32.gmra.mxu3 %vm872_vm2, %v2626_v18  ;;  %3184 = vmatpush.msra.mxu2 %v2983_v38  ;;  %v9465_v59 = vld [vmem:[%s13572_s0 + $0x40] sm:$0xff]  ;;  %v2776_v25 = vld [vmem:[#allocation3 + $0x62] sm:$0xff] }
 0x1fa   : > { %v2164_v1 = vadd.f32 %v11003_v7, %v2144_v60  ;;  %v9429_v18 = vld [vmem:[%s13572_s0 + $0x20] sm:$0xff]  ;;  %v9541_v38 = vld [vmem:[%s13575_s12 + $0x58] sm:$0xff] }
 0x1fb   : > { %3071 = vmatpush.msrb.mxu1 %v9429_v18 }
 0x1fc   : > { %v2180_v40 = vmax.f32 %v2164_v1, 0.0  ;;  %v2127_v19 = vpop.f32.mrf.mxu3 }
 0x1fd   : > { %v1977_v49 = vpop.f32.mrf.mxu2  ;;  %v2231_v6 = vld [vmem:[#allocation3 + $0x6f] sm:$0xff] }
 0x1fe   : > { %v2211_v2 = vld [vmem:[#allocation3 + $0x6e] sm:$0xff]  ;;  %2196 = vst.msk [vmem:[#allocation3 + $0x78] sm:$0xff] %vm872_vm2, %v2180_v40  ;;  %v1995_v24 = vadd.f32 %v1977_v49, %v1845_v31  ;;  %9350 = vmatmul.msk.f32.gmra.mxu0 %vm872_vm2, %v2231_v6 }
 0x1ff   : > { %v2478_v16 = vld [vmem:[#allocation3 + $0x70] sm:$0xff]  ;;  %9366 = vmatmul.msk.f32.gmra.mxu1 %vm872_vm2, %v2211_v2 }
 0x200   : > { %v2627_v33 = vld [vmem:[#allocation3 + $0x69] sm:$0xff]  ;;  %9386 = vmatmul.msk.f32.gmra.mxu2 %vm872_vm2, %v2478_v16  ;;  %v2145_v20 = vadd.f32 %v2127_v19, %v1995_v24 }
 0x201   : > { %9405 = vmatmul.msk.f32.gmra.mxu3 %vm872_vm2, %v2627_v33  ;;  %v2777_v1 = vld [vmem:[#allocation3 + $0x6a] sm:$0xff] }
 0x202   : > { %v2165_v55 = vadd.f32 %v11003_v7, %v2145_v20  ;;  %v9468_v7 = vld [vmem:[%s13572_s0 + $0x58] sm:$0xff]  ;;  %s13581_s0 = sld [smem:[#allocation23_spill]] }
 0x203   : > { %3315 = vmatpush.msra.mxu3 %v9468_v7 }
 0x204   : > { %v2181_v3 = vmax.f32 %v2165_v55, 0.0 }
 0x205   : > { %v2232_v22 = vld [vmem:[#allocation3 + $0x77] sm:$0xff]  ;;  %3316 = vmatpush.msra.mxu3 %v9467_v21 }
 0x206   : > { %v2212_v61 = vld [vmem:[#allocation3 + $0x76] sm:$0xff]  ;;  %2197 = vst.msk [vmem:[#allocation3 + $0x80] sm:$0xff] %vm872_vm2, %v2181_v3  ;;  %9351 = vmatmul.msk.f32.gmra.mxu0 %vm872_vm2, %v2232_v22 }
 0x207   : > { %v2479_v14 = vld [vmem:[#allocation3 + $0x78] sm:$0xff]  ;;  %9367 = vmatmul.msk.f32.gmra.mxu1 %vm872_vm2, %v2212_v61  ;;  %3317 = vmatpush.msra.mxu3 %v9466_v11 }
 0x208   : > { %v2628_v5 = vld [vmem:[#allocation3 + $0x71] sm:$0xff]  ;;  %9387 = vmatmul.msk.f32.gmra.mxu2 %vm872_vm2, %v2479_v14 }
 0x209   : > { %9406 = vmatmul.msk.f32.gmra.mxu3 %vm872_vm2, %v2628_v5  ;;  %v2778_v2 = vld [vmem:[#allocation3 + $0x72] sm:$0xff] }
 0x20a   : > { %3318 = vmatpush.msra.mxu3 %v9465_v59 }
 0x20c   : > { %3953 = vmatpush.msrb.mxu3 %v9541_v38 }
 0x20d   : > { %v2233_v45 = vld [vmem:[#allocation3 + $0x7f] sm:$0xff] }
 0x20e   : > { %v2213_v17 = vld [vmem:[#allocation3 + $0x7e] sm:$0xff]  ;;  %9352 = vmatmul.msk.f32.gmra.mxu0 %vm872_vm2, %v2233_v45  ;;  %v11247_v45 = vld [vmem:[%s13574_s13] ss:$0 sm:$0xff]  ;;  %s13588_s13 = sld [smem:[#allocation27_spill]] }
 0x20f   : > { %v2480_v44 = vld [vmem:[#allocation3 + $0x80] sm:$0xff]  ;;  %9368 = vmatmul.msk.f32.gmra.mxu1 %vm872_vm2, %v2213_v17 }
 0x210   : > { %v2629_v46 = vld [vmem:[#allocation3 + $0x79] sm:$0xff]  ;;  %9388 = vmatmul.msk.f32.gmra.mxu2 %vm872_vm2, %v2480_v44  ;;  %v2630_v28 = vld [vmem:[#allocation3 + $0x81] sm:$0xff] }
 0x211   : > { %9407 = vmatmul.msk.f32.gmra.mxu3 %vm872_vm2, %v2629_v46  ;;  %v2779_v20 = vld [vmem:[#allocation3 + $0x7a] sm:$0xff]  ;;  %v2780_v61 = vld [vmem:[#allocation3 + $0x82] sm:$0xff] }
 0x213   : > { %v11163_v42 = vpop.f32.mrf.mxu0 }
 0x214   : > { %v2417_v39 = vpop.f32.mrf.mxu1 }
 0x215   : > { %v2418_v14 = vadd.f32 %v2417_v39, %v11163_v42  ;;  %v3422_v39 = vld [vmem:[#allocation2 + $0x18] sm:$0xff] }
 0x216   : > { %9413 = vmatmul.msk.f32.vlgmr.msrb.gmra.mxu0 %vm872_vm2, %v2765_v26 }
 0x219   : > { %9408 = vmatmul.msk.f32.gmra.mxu3 %vm872_vm2, %v2630_v28 }
 0x21b   : > { %v11171_v62 = vpop.f32.mrf.mxu0  ;;  %v2551_v47 = vpop.f32.mrf.mxu2 }
 0x21c   : > { %v2420_v31 = vpop.f32.mrf.mxu1  ;;  %v2599_v34 = vadd.f32 %v2551_v47, %v2418_v14 }
 0x21d   : > { %v2421_v10 = vadd.f32 %v2420_v31, %v11171_v62 }
 0x21e   : > { %9414 = vmatmul.msk.f32.gmra.mxu0 %vm872_vm2, %v2766_v12 }
 0x223   : > { %v11174_v35 = vpop.f32.mrf.mxu0  ;;  %v2554_v40 = vpop.f32.mrf.mxu2 }
 0x224   : > { %v2701_v60 = vpop.f32.mrf.mxu3  ;;  %v2423_v16 = vpop.f32.mrf.mxu1  ;;  %v2600_v28 = vadd.f32 %v2554_v40, %v2421_v10 }
 0x225   : > { %v2749_v7 = vadd.f32 %v2701_v60, %v2599_v34 }
 0x226   : > { %9415 = vmatmul.msk.f32.gmra.mxu0 %vm872_vm2, %v2767_v27 }
 0x22b   : > { %v11180_v13 = vpop.f32.mrf.mxu0  ;;  %v2557_v19 = vpop.f32.mrf.mxu2 }
 0x22c   : > { %v2704_v49 = vpop.f32.mrf.mxu3  ;;  %v2426_v55 = vpop.f32.mrf.mxu1 }
 0x22d   : > { %v2750_v0 = vadd.f32 %v2704_v49, %v2600_v28  ;;  %v3424_v28 = vld [vmem:[#allocation2 + $0x28] sm:$0xff] }
 0x22e   : > { %9416 = vmatmul.msk.f32.gmra.mxu0 %vm872_vm2, %v2768_v50 }
 0x233   : > { %v11189_v52 = vpop.f32.mrf.mxu0  ;;  %v2560_v22 = vpop.f32.mrf.mxu2 }
 0x234   : > { %v2707_v33 = vpop.f32.mrf.mxu3  ;;  %v2429_v46 = vpop.f32.mrf.mxu1 }
 0x236   : > { %9417 = vmatmul.msk.f32.gmra.mxu0 %vm872_vm2, %v2769_v36  ;;  %v2424_v36 = vadd.f32 %v2423_v16, %v11174_v35  ;;  %v3624_v35 = vld [vmem:[%s13575_s12 + $0x18] sm:$0xff] }
 0x237   : > { %3819 = vmatpush.msrb.mxu2 %v3624_v35 }
 0x23b   : > { %v11192_v58 = vpop.f32.mrf.mxu0  ;;  %v2563_v42 = vpop.f32.mrf.mxu2 }
 0x23c   : > { %v2710_v5 = vpop.f32.mrf.mxu3  ;;  %v2432_v62 = vpop.f32.mrf.mxu1 }
 0x23e   : > { %9418 = vmatmul.msk.f32.gmra.mxu0 %vm872_vm2, %v2770_v37 }
 0x243   : > { %v11195_v53 = vpop.f32.mrf.mxu0  ;;  %v2566_v11 = vpop.f32.mrf.mxu2 }
 0x244   : > { %v2713_v27 = vpop.f32.mrf.mxu3 }
 0x246   : > { %9419 = vmatmul.msk.f32.gmra.mxu0 %vm872_vm2, %v2771_v43  ;;  %v2601_v43 = vadd.f32 %v2557_v19, %v2424_v36 }
 0x24b   : > { %v11201_v29 = vpop.f32.mrf.mxu0  ;;  %v2569_v16 = vpop.f32.mrf.mxu2 }
 0x24e   : > { %9420 = vmatmul.msk.f32.gmra.mxu0 %vm872_vm2, %v2772_v54 }
 0x253   : > { %v11210_v30 = vpop.f32.mrf.mxu0 }
 0x256   : > { %9421 = vmatmul.msk.f32.gmra.mxu0 %vm872_vm2, %v2773_v15  ;;  %v2751_v15 = vadd.f32 %v2707_v33, %v2601_v43  ;;  %v9561_v33 = vld [vmem:[%s13575_s12 + $0x78] sm:$0xff] }
 0x257   : > { %4103 = vmatpush.msrb.mxu0 %v9561_v33 }
 0x25b   : > { %v11213_v56 = vpop.f32.mrf.mxu0 }
 0x25e   : > { %9422 = vmatmul.msk.f32.gmra.mxu0 %vm872_vm2, %v2774_v51  ;;  %v2716_v51 = vpop.f32.mrf.mxu3 }
 0x263   : > { %v11216_v23 = vpop.f32.mrf.mxu0 }
 0x266   : > { %9423 = vmatmul.msk.f32.gmra.mxu0 %vm872_vm2, %v2775_v32 }
 0x26b   : > { %v11222_v48 = vpop.f32.mrf.mxu0 }
 0x26e   : > { %9424 = vmatmul.msk.f32.gmra.mxu0 %vm872_vm2, %v2776_v25  ;;  %v2427_v25 = vadd.f32 %v2426_v55, %v11180_v13  ;;  %v9505_v13 = vld [vmem:[%s13575_s12 + $0x38] sm:$0xff]  ;;  %v2719_v55 = vpop.f32.mrf.mxu3 }
 0x26f   : > { %3706 = vmatpush.msra.mxu1 %v9505_v13 }
 0x270   : > { %v2602_v47 = vadd.f32 %v2560_v22, %v2427_v25  ;;  %v3423_v22 = vld [vmem:[#allocation2 + $0x20] sm:$0xff] }
 0x273   : > { %v11231_v63 = vpop.f32.mrf.mxu0 }
 0x276   : > { %9425 = vmatmul.msk.f32.gmra.mxu0 %vm872_vm2, %v2777_v1  ;;  %v2435_v1 = vpop.f32.mrf.mxu1 }
 0x27b   : > { %v11234_v6 = vpop.f32.mrf.mxu0 }
 0x27e   : > { %9426 = vmatmul.msk.f32.gmra.mxu0 %vm872_vm2, %v2778_v2  ;;  %v2752_v2 = vadd.f32 %v2710_v5, %v2602_v47  ;;  %v2438_v10 = vpop.f32.mrf.mxu1 }
 0x283   : > { %v11237_v24 = vpop.f32.mrf.mxu0 }
 0x286   : > { %9427 = vmatmul.msk.f32.gmra.mxu0 %vm872_vm2, %v2779_v20  ;;  %v2441_v43 = vpop.f32.mrf.mxu1 }
 0x28b   : > { %v11240_v3 = vpop.f32.mrf.mxu0 }
 0x28e   : > { %9428 = vmatmul.msk.f32.gmra.mxu0 %vm872_vm2, %v2780_v61  ;;  %v2430_v61 = vadd.f32 %v2429_v46, %v11189_v52 }
 0x290   : > { %v2603_v5 = vadd.f32 %v2563_v42, %v2430_v61  ;;  %v2433_v42 = vadd.f32 %v2432_v62, %v11192_v58  ;;  %v9560_v61 = vld [vmem:[%s13575_s12 + $0x70] sm:$0xff] }
 0x291   : > { %4104 = vmatpush.msrb.mxu0 %v9560_v61 }
 0x293   : > { %v2851_v17 = vpop.f32.mrf.mxu0 }
 0x294   : > { %v2899_v44 = vadd.f32 %v2851_v17, %v2749_v7 }
 0x296   : > { %v2919_v26 = vadd.f32 %v11247_v45, %v2899_v44  ;;  %9486 = vmatmul.msk.f32.vlgmr.msra.gmra.mxu0 %vm853_vm1, %v3420_v57  ;;  %v2753_v57 = vadd.f32 %v2713_v27, %v2603_v5  ;;  %v2722_v27 = vpop.f32.mrf.mxu3  ;;  %v3427_v5 = vld [vmem:[#allocation2 + $0x40] sm:$0xff] }
 0x298   : > { %v2935_v12 = vmax.f32 %v2919_v26, 0.0  ;;  %v2572_v26 = vpop.f32.mrf.mxu2 }
 0x29a   : > { %2951 = vst.msk [vmem:[#allocation4 + $0x8] sm:$0xff] %vm872_vm2, %v2935_v12 }
 0x29b   : > { %v2854_v21 = vpop.f32.mrf.mxu0 }
 0x29c   : > { %v2900_v50 = vadd.f32 %v2854_v21, %v2750_v0  ;;  %v2604_v0 = vadd.f32 %v2566_v11, %v2433_v42 }
 0x29e   : > { %v2920_v37 = vadd.f32 %v11247_v45, %v2900_v50  ;;  %9487 = vmatmul.msk.f32.gmra.mxu0 %vm853_vm1, %v3421_v41 }
 0x2a0   : > { %v2936_v8 = vmax.f32 %v2920_v37, 0.0  ;;  %v2754_v37 = vadd.f32 %v2716_v51, %v2604_v0  ;;  %v2725_v51 = vpop.f32.mrf.mxu3 }
 0x2a1   : > { %v2987_v54 = vld [vmem:[#allocation4 + $0x8] sm:$0xff] }
 0x2a2   : > { %v2967_v9 = vld [vmem:[#allocation4 + $0x7] sm:$0xff]  ;;  %2952 = vst.msk [vmem:[#allocation4 + $0x10] sm:$0xff] %vm872_vm2, %v2936_v8  ;;  %9433 = vmatmul.msk.f32.vlgmr.msrb.gmra.mxu1 %vm872_vm2, %v2987_v54  ;;  %v3425_v8 = vld [vmem:[#allocation2 + $0x30] sm:$0xff]  ;;  %v2436_v54 = vadd.f32 %v2435_v1, %v11195_v53  ;;  %v2439_v1 = vadd.f32 %v2438_v10, %v11201_v29 }
 0x2a3   : > { %9449 = vmatmul.msk.f32.vlgmr.msra.gmra.mxu2 %vm872_vm2, %v2967_v9  ;;  %v2857_v32 = vpop.f32.mrf.mxu0  ;;  %v2575_v9 = vpop.f32.mrf.mxu2  ;;  %v3623_v53 = vld [vmem:[%s13575_s12 + $0x10] sm:$0xff] }
 0x2a4   : > { %v2901_v59 = vadd.f32 %v2857_v32, %v2751_v15  ;;  %v2605_v15 = vadd.f32 %v2569_v16, %v2436_v54  ;;  %3820 = vmatpush.msrb.mxu2 %v3623_v53  ;;  %v9504_v29 = vld [vmem:[%s13575_s12 + $0x30] sm:$0xff] }
 0x2a5   : > { %3707 = vmatpush.msra.mxu1 %v9504_v29 }
 0x2a6   : > { %v2921_v18 = vadd.f32 %v11247_v45, %v2901_v59  ;;  %9488 = vmatmul.msk.f32.gmra.mxu0 %vm853_vm1, %v3422_v39  ;;  %v2755_v39 = vadd.f32 %v2719_v55, %v2605_v15 }
 0x2a8   : > { %v2937_v60 = vmax.f32 %v2921_v18, 0.0  ;;  %v9540_v18 = vld [vmem:[%s13575_s12 + $0x50] sm:$0xff]  ;;  %v2728_v55 = vpop.f32.mrf.mxu3 }
 0x2a9   : > { %v2988_v31 = vld [vmem:[#allocation4 + $0x10] sm:$0xff]  ;;  %3954 = vmatpush.msrb.mxu3 %v9540_v18  ;;  %v9539_v18 = vld [vmem:[%s13575_s12 + $0x48] sm:$0xff] }
 0x2aa   : > { %v2968_v40 = vld [vmem:[#allocation4 + $0xf] sm:$0xff]  ;;  %2953 = vst.msk [vmem:[#allocation4 + $0x18] sm:$0xff] %vm872_vm2, %v2937_v60  ;;  %9434 = vmatmul.msk.f32.gmra.mxu1 %vm872_vm2, %v2988_v31  ;;  %v3426_v60 = vld [vmem:[#allocation2 + $0x38] sm:$0xff] }
 0x2ab   : > { %v3234_v49 = vld [vmem:[#allocation4 + $0x9] sm:$0xff]  ;;  %9450 = vmatmul.msk.f32.gmra.mxu2 %vm872_vm2, %v2968_v40  ;;  %v2860_v19 = vpop.f32.mrf.mxu0  ;;  %v2444_v40 = vpop.f32.mrf.mxu1  ;;  %3955 = vmatpush.msrb.mxu3 %v9539_v18 }
 0x2ac   : > { %9469 = vmatmul.msk.f32.vlgmr.msra.gmra.mxu3 %vm872_vm2, %v3234_v49  ;;  %v2902_v20 = vadd.f32 %v2860_v19, %v2752_v2  ;;  %v2606_v49 = vadd.f32 %v2572_v26, %v2439_v1  ;;  %v2578_v13 = vpop.f32.mrf.mxu2  ;;  %v2445_v0 = vadd.f32 %v2444_v40, %v11213_v56  ;;  %v3430_v1 = vld [vmem:[#allocation2 + $0x58] sm:$0xff] }
 0x2ae   : > { %v2922_v14 = vadd.f32 %v11247_v45, %v2902_v20  ;;  %9489 = vmatmul.msk.f32.gmra.mxu0 %vm853_vm1, %v3423_v22  ;;  %v2756_v20 = vadd.f32 %v2722_v27, %v2606_v49  ;;  %v3428_v27 = vld [vmem:[#allocation2 + $0x48] sm:$0xff] }
 0x2b0   : > { %v2938_v34 = vmax.f32 %v2922_v14, 0.0 }
 0x2b1   : > { %v2989_v7 = vld [vmem:[#allocation4 + $0x18] sm:$0xff] }
 0x2b2   : > { %v2969_v17 = vld [vmem:[#allocation4 + $0x17] sm:$0xff]  ;;  %2954 = vst.msk [vmem:[#allocation4 + $0x20] sm:$0xff] %vm872_vm2, %v2938_v34  ;;  %9435 = vmatmul.msk.f32.gmra.mxu1 %vm872_vm2, %v2989_v7  ;;  %v2442_v34 = vadd.f32 %v2441_v43, %v11210_v30 }
 0x2b3   : > { %v3235_v44 = vld [vmem:[#allocation4 + $0x11] sm:$0xff]  ;;  %9451 = vmatmul.msk.f32.gmra.mxu2 %vm872_vm2, %v2969_v17  ;;  %v2863_v52 = vpop.f32.mrf.mxu0 }
 0x2b4   : > { %9470 = vmatmul.msk.f32.gmra.mxu3 %vm872_vm2, %v3235_v44  ;;  %v2903_v46 = vadd.f32 %v2863_v52, %v2753_v57  ;;  %v2607_v17 = vadd.f32 %v2575_v9, %v2442_v34  ;;  %v2447_v57 = vpop.f32.mrf.mxu1 }
 0x2b5   : > { %v2448_v9 = vadd.f32 %v2447_v57, %v11216_v23  ;;  %v3622_v23 = vld [vmem:[%s13575_s12 + $0x8] sm:$0xff] }
 0x2b6   : > { %v2923_v12 = vadd.f32 %v11247_v45, %v2903_v46  ;;  %9490 = vmatmul.msk.f32.gmra.mxu0 %vm853_vm1, %v3424_v28  ;;  %v2757_v26 = vadd.f32 %v2725_v51, %v2607_v17  ;;  %v2581_v28 = vpop.f32.mrf.mxu2  ;;  %3821 = vmatpush.msrb.mxu2 %v3622_v23  ;;  %v3434_v23 = vld [vmem:[#allocation2 + $0x78] sm:$0xff] }
 0x2b7   : > { %v2609_v51 = vadd.f32 %v2581_v28, %v2448_v9  ;;  %v3621_v9 = vld [vmem:[%s13575_s12] sm:$0xff] }
 0x2b8   : > { %v2939_v21 = vmax.f32 %v2923_v12, 0.0  ;;  %v2731_v12 = vpop.f32.mrf.mxu3  ;;  %3822 = vmatpush.msrb.mxu2 %v3621_v9 }
 0x2b9   : > { %v2990_v50 = vld [vmem:[#allocation4 + $0x20] sm:$0xff]  ;;  %v2759_v53 = vadd.f32 %v2731_v12, %v2609_v51 }
 0x2ba   : > { %v2970_v41 = vld [vmem:[#allocation4 + $0x1f] sm:$0xff]  ;;  %2955 = vst.msk [vmem:[#allocation4 + $0x28] sm:$0xff] %vm872_vm2, %v2939_v21  ;;  %9436 = vmatmul.msk.f32.gmra.mxu1 %vm872_vm2, %v2990_v50  ;;  %v2608_v50 = vadd.f32 %v2578_v13, %v2445_v0 }
 0x2bb   : > { %v3236_v36 = vld [vmem:[#allocation4 + $0x19] sm:$0xff]  ;;  %9452 = vmatmul.msk.f32.gmra.mxu2 %vm872_vm2, %v2970_v41  ;;  %v2866_v58 = vpop.f32.mrf.mxu0 }
 0x2bc   : > { %9471 = vmatmul.msk.f32.gmra.mxu3 %vm872_vm2, %v3236_v36  ;;  %v2904_v62 = vadd.f32 %v2866_v58, %v2754_v37  ;;  %v2450_v43 = vpop.f32.mrf.mxu1 }
 0x2be   : > { %v2924_v11 = vadd.f32 %v11247_v45, %v2904_v62  ;;  %9491 = vmatmul.msk.f32.gmra.mxu0 %vm853_vm1, %v3425_v8  ;;  %v2758_v62 = vadd.f32 %v2728_v55, %v2608_v50  ;;  %v2584_v54 = vpop.f32.mrf.mxu2 }
 0x2c0   : > { %v2940_v35 = vmax.f32 %v2924_v11, 0.0  ;;  %v3429_v11 = vld [vmem:[#allocation2 + $0x50] sm:$0xff] }
 0x2c1   : > { %v2991_v32 = vld [vmem:[#allocation4 + $0x28] sm:$0xff] }
 0x2c2   : > { %v2971_v38 = vld [vmem:[#allocation4 + $0x27] sm:$0xff]  ;;  %2956 = vst.msk [vmem:[#allocation4 + $0x30] sm:$0xff] %vm872_vm2, %v2940_v35  ;;  %9437 = vmatmul.msk.f32.gmra.mxu1 %vm872_vm2, %v2991_v32  ;;  %v2734_v35 = vpop.f32.mrf.mxu3 }
 0x2c3   : > { %v3237_v59 = vld [vmem:[#allocation4 + $0x21] sm:$0xff]  ;;  %9453 = vmatmul.msk.f32.gmra.mxu2 %vm872_vm2, %v2971_v38  ;;  %v2869_v25 = vpop.f32.mrf.mxu0 }
 0x2c4   : > { %9472 = vmatmul.msk.f32.gmra.mxu3 %vm872_vm2, %v3237_v59  ;;  %v2905_v47 = vadd.f32 %v2869_v25, %v2755_v39 }
 0x2c6   : > { %v2925_v31 = vadd.f32 %v11247_v45, %v2905_v47  ;;  %9492 = vmatmul.msk.f32.gmra.mxu0 %vm853_vm1, %v3426_v60  ;;  %v2453_v60 = vpop.f32.mrf.mxu1  ;;  %v2587_v49 = vpop.f32.mrf.mxu2 }
 0x2c8   : > { %v2941_v2 = vmax.f32 %v2925_v31, 0.0  ;;  %v2451_v31 = vadd.f32 %v2450_v43, %v11222_v48  ;;  %v9503_v48 = vld [vmem:[%s13575_s12 + $0x28] sm:$0xff]  ;;  %v3433_v43 = vld [vmem:[#allocation2 + $0x70] sm:$0xff] }
 0x2c9   : > { %v2992_v16 = vld [vmem:[#allocation4 + $0x30] sm:$0xff]  ;;  %3708 = vmatpush.msra.mxu1 %v9503_v48 }
 0x2ca   : > { %v2972_v19 = vld [vmem:[#allocation4 + $0x2f] sm:$0xff]  ;;  %2957 = vst.msk [vmem:[#allocation4 + $0x38] sm:$0xff] %vm872_vm2, %v2941_v2  ;;  %9438 = vmatmul.msk.f32.gmra.mxu1 %vm872_vm2, %v2992_v16  ;;  %v2610_v2 = vadd.f32 %v2584_v54, %v2451_v31  ;;  %v2737_v16 = vpop.f32.mrf.mxu3 }
 0x2cb   : > { %v3238_v33 = vld [vmem:[#allocation4 + $0x29] sm:$0xff]  ;;  %9454 = vmatmul.msk.f32.gmra.mxu2 %vm872_vm2, %v2972_v19  ;;  %v2872_v22 = vpop.f32.mrf.mxu0 }
 0x2cc   : > { %9473 = vmatmul.msk.f32.gmra.mxu3 %vm872_vm2, %v3238_v33  ;;  %v2906_v14 = vadd.f32 %v2872_v22, %v2756_v20  ;;  %v2760_v29 = vadd.f32 %v2734_v35, %v2610_v2  ;;  %v9559_v22 = vld [vmem:[%s13575_s12 + $0x68] sm:$0xff] }
 0x2cd   : > { %4105 = vmatpush.msrb.mxu0 %v9559_v22 }
 0x2ce   : > { %v2926_v7 = vadd.f32 %v11247_v45, %v2906_v14  ;;  %9493 = vmatmul.msk.f32.gmra.mxu0 %vm853_vm1, %v3427_v5  ;;  %v3431_v14 = vld [vmem:[#allocation2 + $0x60] sm:$0xff]  ;;  %v2454_v5 = vadd.f32 %v2453_v60, %v11231_v63  ;;  %v2590_v57 = vpop.f32.mrf.mxu2 }
 0x2d0   : > { %v2942_v44 = vmax.f32 %v2926_v7, 0.0  ;;  %v2456_v7 = vpop.f32.mrf.mxu1  ;;  %v2611_v17 = vadd.f32 %v2587_v49, %v2454_v5 }
 0x2d1   : > { %v2993_v10 = vld [vmem:[#allocation4 + $0x38] sm:$0xff]  ;;  %v2457_v12 = vadd.f32 %v2456_v7, %v11234_v6 }
 0x2d2   : > { %v2973_v52 = vld [vmem:[#allocation4 + $0x37] sm:$0xff]  ;;  %2958 = vst.msk [vmem:[#allocation4 + $0x40] sm:$0xff] %vm872_vm2, %v2942_v44  ;;  %9439 = vmatmul.msk.f32.gmra.mxu1 %vm872_vm2, %v2993_v10  ;;  %v2740_v28 = vpop.f32.mrf.mxu3 }
 0x2d3   : > { %v3239_v46 = vld [vmem:[#allocation4 + $0x31] sm:$0xff]  ;;  %9455 = vmatmul.msk.f32.gmra.mxu2 %vm872_vm2, %v2973_v52  ;;  %v2875_v30 = vpop.f32.mrf.mxu0  ;;  %v2612_v0 = vadd.f32 %v2590_v57, %v2457_v12  ;;  %v11420_v12 = vld [vmem:[%s13576_s14] ss:$0 sm:$0xff] }
 0x2d4   : > { %9474 = vmatmul.msk.f32.gmra.mxu3 %vm872_vm2, %v3239_v46  ;;  %v2907_v42 = vadd.f32 %v2875_v30, %v2757_v26  ;;  %v2761_v26 = vadd.f32 %v2737_v16, %v2611_v17  ;;  %v3432_v30 = vld [vmem:[#allocation2 + $0x68] sm:$0xff] }
 0x2d6   : > { %v2927_v21 = vadd.f32 %v11247_v45, %v2907_v42  ;;  %9494 = vmatmul.msk.f32.gmra.mxu0 %vm853_vm1, %v3428_v27 }
 0x2d8   : > { %v2943_v41 = vmax.f32 %v2927_v21, 0.0  ;;  %v2459_v50 = vpop.f32.mrf.mxu1 }
 0x2d9   : > { %v2994_v36 = vld [vmem:[#allocation4 + $0x40] sm:$0xff]  ;;  %v2460_v54 = vadd.f32 %v2459_v50, %v11237_v24 }
 0x2da   : > { %v2974_v37 = vld [vmem:[#allocation4 + $0x3f] sm:$0xff]  ;;  %2959 = vst.msk [vmem:[#allocation4 + $0x48] sm:$0xff] %vm872_vm2, %v2943_v41  ;;  %9440 = vmatmul.msk.f32.gmra.mxu1 %vm872_vm2, %v2994_v36 }
 0x2db   : > { %v3240_v58 = vld [vmem:[#allocation4 + $0x39] sm:$0xff]  ;;  %9456 = vmatmul.msk.f32.gmra.mxu2 %vm872_vm2, %v2974_v37  ;;  %v2878_v56 = vpop.f32.mrf.mxu0 }
 0x2dc   : > { %9475 = vmatmul.msk.f32.gmra.mxu3 %vm872_vm2, %v3240_v58  ;;  %v2908_v8 = vadd.f32 %v2878_v56, %v2758_v62  ;;  %v2762_v58 = vadd.f32 %v2740_v28, %v2612_v0  ;;  %v2593_v62 = vpop.f32.mrf.mxu2  ;;  %v9621_v28 = vld [vmem:[%s13575_s12 + $0xd8] sm:$0xff] }
 0x2de   : > { %v2928_v15 = vadd.f32 %v11247_v45, %v2908_v8  ;;  %9495 = vmatmul.msk.f32.gmra.mxu0 %vm853_vm1, %v3429_v11  ;;  %v2743_v8 = vpop.f32.mrf.mxu3 }
 0x2e0   : > { %v2944_v32 = vmax.f32 %v2928_v15, 0.0  ;;  %v2613_v15 = vadd.f32 %v2593_v62, %v2460_v54  ;;  %v2462_v24 = vpop.f32.mrf.mxu1 }
 0x2e1   : > { %v2995_v38 = vld [vmem:[#allocation4 + $0x48] sm:$0xff]  ;;  %v2463_v60 = vadd.f32 %v2462_v24, %v11240_v3 }
 0x2e2   : > { %v2975_v59 = vld [vmem:[#allocation4 + $0x47] sm:$0xff]  ;;  %2960 = vst.msk [vmem:[#allocation4 + $0x50] sm:$0xff] %vm872_vm2, %v2944_v32  ;;  %9441 = vmatmul.msk.f32.gmra.mxu1 %vm872_vm2, %v2995_v38 }
 0x2e3   : > { %v3241_v39 = vld [vmem:[#allocation4 + $0x41] sm:$0xff]  ;;  %9457 = vmatmul.msk.f32.gmra.mxu2 %vm872_vm2, %v2975_v59  ;;  %v2881_v25 = vpop.f32.mrf.mxu0  ;;  %v2763_v59 = vadd.f32 %v2743_v8, %v2613_v15 }
 0x2e4   : > { %9476 = vmatmul.msk.f32.gmra.mxu3 %vm872_vm2, %v3241_v39  ;;  %v2909_v47 = vadd.f32 %v2881_v25, %v2759_v53  ;;  %v9538_v53 = vld [vmem:[%s13575_s12 + $0x40] sm:$0xff] }
 0x2e5   : > { %v9502_v25 = vld [vmem:[%s13575_s12 + $0x20] sm:$0xff]  ;;  %3956 = vmatpush.msrb.mxu3 %v9538_v53 }
 0x2e6   : > { %v2929_v40 = vadd.f32 %v11247_v45, %v2909_v47  ;;  %9496 = vmatmul.msk.f32.gmra.mxu0 %vm853_vm1, %v3430_v1  ;;  %3709 = vmatpush.msra.mxu1 %v9502_v25  ;;  %v2596_v47 = vpop.f32.mrf.mxu2  ;;  %v2746_v31 = vpop.f32.mrf.mxu3 }
 0x2e7   : > { %v2614_v49 = vadd.f32 %v2596_v47, %v2463_v60  ;;  %4553 = vmatpush.msra.mxu3 %v9621_v28 }
 0x2e8   : > { %v2945_v13 = vmax.f32 %v2929_v40, 0.0  ;;  %v9558_v40 = vld [vmem:[%s13575_s12 + $0x60] sm:$0xff] }
 0x2e9   : > { %v2996_v19 = vld [vmem:[#allocation4 + $0x50] sm:$0xff]  ;;  %4106 = vmatpush.msrb.mxu0 %v9558_v40 }
 0x2ea   : > { %v2976_v33 = vld [vmem:[#allocation4 + $0x4f] sm:$0xff]  ;;  %2961 = vst.msk [vmem:[#allocation4 + $0x58] sm:$0xff] %vm872_vm2, %v2945_v13  ;;  %9442 = vmatmul.msk.f32.gmra.mxu1 %vm872_vm2, %v2996_v19 }
 0x2eb   : > { %v3242_v20 = vld [vmem:[#allocation4 + $0x49] sm:$0xff]  ;;  %9458 = vmatmul.msk.f32.gmra.mxu2 %vm872_vm2, %v2976_v33  ;;  %v2884_v55 = vpop.f32.mrf.mxu0  ;;  %v2764_v33 = vadd.f32 %v2746_v31, %v2614_v49 }
 0x2ec   : > { %9477 = vmatmul.msk.f32.gmra.mxu3 %vm872_vm2, %v3242_v20  ;;  %v2910_v61 = vadd.f32 %v2884_v55, %v2760_v29  ;;  %v3435_v20 = vld [vmem:[#allocation2 + $0x80] sm:$0xff] }
 0x2ee   : > { %v2930_v34 = vadd.f32 %v11247_v45, %v2910_v61  ;;  %9497 = vmatmul.msk.f32.gmra.mxu0 %vm853_vm1, %v3431_v14 }
 0x2f0   : > { %v2946_v44 = vmax.f32 %v2930_v34, 0.0 }
 0x2f1   : > { %v2997_v10 = vld [vmem:[#allocation4 + $0x58] sm:$0xff] }
 0x2f2   : > { %v2977_v52 = vld [vmem:[#allocation4 + $0x57] sm:$0xff]  ;;  %2962 = vst.msk [vmem:[#allocation4 + $0x60] sm:$0xff] %vm872_vm2, %v2946_v44  ;;  %9443 = vmatmul.msk.f32.gmra.mxu1 %vm872_vm2, %v2997_v10 }
 0x2f3   : > { %v3243_v46 = vld [vmem:[#allocation4 + $0x51] sm:$0xff]  ;;  %9459 = vmatmul.msk.f32.gmra.mxu2 %vm872_vm2, %v2977_v52  ;;  %v2887_v63 = vpop.f32.mrf.mxu0 }
 0x2f4   : > { %9478 = vmatmul.msk.f32.gmra.mxu3 %vm872_vm2, %v3243_v46  ;;  %v2911_v42 = vadd.f32 %v2887_v63, %v2761_v26  ;;  %v9601_v10 = vld [vmem:[%s13575_s12 + $0xb8] sm:$0xff] }
 0x2f5   : > { %4403 = vmatpush.msra.mxu2 %v9601_v10  ;;  %v9581_v63 = vld [vmem:[%s13575_s12 + $0x98] sm:$0xff] }
 0x2f6   : > { %v2931_v27 = vadd.f32 %v11247_v45, %v2911_v42  ;;  %9498 = vmatmul.msk.f32.gmra.mxu0 %vm853_vm1, %v3432_v30  ;;  %4253 = vmatpush.msrb.mxu1 %v9581_v63 }
 0x2f8   : > { %v2947_v21 = vmax.f32 %v2931_v27, 0.0  ;;  %v11425_v27 = vld [vmem:[%s13577_s15] ss:$0 sm:$0xff] }
 0x2f9   : > { %v2998_v41 = vld [vmem:[#allocation4 + $0x60] sm:$0xff] }
 0x2fa   : > { %v2978_v36 = vld [vmem:[#allocation4 + $0x5f] sm:$0xff]  ;;  %2963 = vst.msk [vmem:[#allocation4 + $0x68] sm:$0xff] %vm872_vm2, %v2947_v21  ;;  %9444 = vmatmul.msk.f32.gmra.mxu1 %vm872_vm2, %v2998_v41 }
 0x2fb   : > { %v3244_v37 = vld [vmem:[#allocation4 + $0x59] sm:$0xff]  ;;  %9460 = vmatmul.msk.f32.gmra.mxu2 %vm872_vm2, %v2978_v36  ;;  %v2890_v6 = vpop.f32.mrf.mxu0 }
 0x2fc   : > { %9479 = vmatmul.msk.f32.gmra.mxu3 %vm872_vm2, %v3244_v37  ;;  %v2912_v56 = vadd.f32 %v2890_v6, %v2762_v58  ;;  %v9641_v58 = vld [vmem:[%s13575_s12 + $0xf8] sm:$0xff] }
 0x2fd   : > { %4703 = vmatpush.msra.mxu0 %v9641_v58 }
 0x2fe   : > { %v2932_v11 = vadd.f32 %v11247_v45, %v2912_v56  ;;  %9499 = vmatmul.msk.f32.gmra.mxu0 %vm853_vm1, %v3433_v43 }
 0x300   : > { %v2948_v35 = vmax.f32 %v2932_v11, 0.0 }
 0x301   : > { %v2999_v51 = vld [vmem:[#allocation4 + $0x68] sm:$0xff] }
 0x302   : > { %v2979_v32 = vld [vmem:[#allocation4 + $0x67] sm:$0xff]  ;;  %2964 = vst.msk [vmem:[#allocation4 + $0x70] sm:$0xff] %vm872_vm2, %v2948_v35  ;;  %9445 = vmatmul.msk.f32.gmra.mxu1 %vm872_vm2, %v2999_v51 }
 0x303   : > { %v3245_v38 = vld [vmem:[#allocation4 + $0x61] sm:$0xff]  ;;  %9461 = vmatmul.msk.f32.gmra.mxu2 %vm872_vm2, %v2979_v32  ;;  %v2893_v39 = vpop.f32.mrf.mxu0 }
 0x304   : > { %9480 = vmatmul.msk.f32.gmra.mxu3 %vm872_vm2, %v3245_v38  ;;  %v2913_v18 = vadd.f32 %v2893_v39, %v2763_v59 }
 0x306   : > { %v2933_v1 = vadd.f32 %v11247_v45, %v2913_v18  ;;  %9500 = vmatmul.msk.f32.gmra.mxu0 %vm853_vm1, %v3434_v23 }
 0x308   : > { %v2949_v2 = vmax.f32 %v2933_v1, 0.0 }
 0x309   : > { %v3000_v13 = vld [vmem:[#allocation4 + $0x70] sm:$0xff] }
 0x30a   : > { %v2980_v16 = vld [vmem:[#allocation4 + $0x6f] sm:$0xff]  ;;  %2965 = vst.msk [vmem:[#allocation4 + $0x78] sm:$0xff] %vm872_vm2, %v2949_v2  ;;  %9446 = vmatmul.msk.f32.gmra.mxu1 %vm872_vm2, %v3000_v13 }
 0x30b   : > { %v3246_v19 = vld [vmem:[#allocation4 + $0x69] sm:$0xff]  ;;  %9462 = vmatmul.msk.f32.gmra.mxu2 %vm872_vm2, %v2980_v16  ;;  %v2896_v3 = vpop.f32.mrf.mxu0 }
 0x30c   : > { %9481 = vmatmul.msk.f32.gmra.mxu3 %vm872_vm2, %v3246_v19  ;;  %v2914_v29 = vadd.f32 %v2896_v3, %v2764_v33  ;;  %v9600_v13 = vld [vmem:[%s13575_s12 + $0xb0] sm:$0xff] }
 0x30d   : > { %4404 = vmatpush.msra.mxu2 %v9600_v13 }
 0x30e   : > { %v2934_v48 = vadd.f32 %v11247_v45, %v2914_v29  ;;  %9501 = vmatmul.msk.f32.gmra.mxu0 %vm853_vm1, %v3435_v20  ;;  %vm9013_vm1 = vcmask 917312  }
 0x310   : > { %v2950_v55 = vmax.f32 %v2934_v48, 0.0 }
 0x311   : > { %v3001_v22 = vld [vmem:[#allocation4 + $0x78] sm:$0xff] }
 0x312   : > { %v2981_v61 = vld [vmem:[#allocation4 + $0x77] sm:$0xff]  ;;  %2966 = vst.msk [vmem:[#allocation4 + $0x80] sm:$0xff] %vm872_vm2, %v2950_v55  ;;  %9447 = vmatmul.msk.f32.gmra.mxu1 %vm872_vm2, %v3001_v22 }
 0x313   : > { %v3247_v14 = vld [vmem:[#allocation4 + $0x71] sm:$0xff]  ;;  %9463 = vmatmul.msk.f32.gmra.mxu2 %vm872_vm2, %v2981_v61  ;;  %v3509_v5 = vpop.f32.mrf.mxu0 }
 0x314   : > { %9482 = vmatmul.msk.f32.gmra.mxu3 %vm872_vm2, %v3247_v14  ;;  %v3510_v37 = vadd.f32 %v11425_v27, %v3509_v5 }
 0x319   : > { %v3002_v34 = vld [vmem:[#allocation4 + $0x80] sm:$0xff] }
 0x31a   : > { %v2982_v7 = vld [vmem:[#allocation4 + $0x7f] sm:$0xff]  ;;  %9448 = vmatmul.msk.f32.gmra.mxu1 %vm872_vm2, %v3002_v34 }
 0x31b   : > { %v3248_v17 = vld [vmem:[#allocation4 + $0x79] sm:$0xff]  ;;  %9464 = vmatmul.msk.f32.gmra.mxu2 %vm872_vm2, %v2982_v7  ;;  %v3512_v45 = vpop.f32.mrf.mxu0  ;;  %v3249_v57 = vld [vmem:[#allocation4 + $0x81] sm:$0xff]  ;;  %v9620_v7 = vld [vmem:[%s13575_s12 + $0xd0] sm:$0xff] }
 0x31c   : > { %9483 = vmatmul.msk.f32.gmra.mxu3 %vm872_vm2, %v3248_v17  ;;  %v3513_v51 = vadd.f32 %v11425_v27, %v3512_v45  ;;  %v9580_v17 = vld [vmem:[%s13575_s12 + $0x90] sm:$0xff] }
 0x31d   : > { %4554 = vmatpush.msra.mxu3 %v9620_v7  ;;  %4254 = vmatpush.msrb.mxu1 %v9580_v17 }
 0x31f   : > { %v3073_v44 = vpop.f32.mrf.mxu1 }
 0x323   : > { %v3515_v52 = vpop.f32.mrf.mxu0 }
 0x324   : > { %9484 = vmatmul.msk.f32.gmra.mxu3 %vm872_vm2, %v3249_v57  ;;  %v3516_v40 = vadd.f32 %v11425_v27, %v3515_v52 }
 0x326   : > { %v3186_v46 = vpop.f32.mrf.mxu2 }
 0x327   : > { %v3076_v26 = vpop.f32.mrf.mxu1  ;;  %v3187_v30 = vadd.f32 %v3186_v46, %v3073_v44 }
 0x32b   : > { %v3518_v21 = vpop.f32.mrf.mxu0 }
 0x32c   : > { %v3519_v34 = vadd.f32 %v11425_v27, %v3518_v21 }
 0x32e   : > { %v3189_v42 = vpop.f32.mrf.mxu2 }
 0x32f   : > { %v3320_v0 = vpop.f32.mrf.mxu3  ;;  %v3079_v41 = vpop.f32.mrf.mxu1  ;;  %v3190_v6 = vadd.f32 %v3189_v42, %v3076_v26 }
 0x330   : > { %v3368_v50 = vadd.f32 %v3320_v0, %v3187_v30 }
 0x332   : > { %v3388_v36 = vadd.f32 %v11420_v12, %v3368_v50 }
 0x333   : > { %v11432_v15 = vpop.f32.mrf.mxu0 }
 0x334   : > { %v3404_v62 = vmax.f32 %v3388_v36, 0.0  ;;  %v9640_v36 = vld [vmem:[%s13575_s12 + $0xf0] sm:$0xff] }
 0x335   : > { %4704 = vmatpush.msra.mxu0 %v9640_v36 }
 0x336   : > { %v3557_v43 = vadd.f32 %v3510_v37, %v3404_v62  ;;  %v3192_v56 = vpop.f32.mrf.mxu2 }
 0x337   : > { %v3323_v8 = vpop.f32.mrf.mxu3  ;;  %v3082_v9 = vpop.f32.mrf.mxu1  ;;  %v3193_v38 = vadd.f32 %v3192_v56, %v3079_v41  ;;  %v3522_v41 = vadd.f32 %v11425_v27, %v11432_v15 }
 0x338   : > { %v3573_v54 = vmax.f32 %v3557_v43, 0.0  ;;  %v3369_v11 = vadd.f32 %v3323_v8, %v3190_v6 }
 0x33a   : > { %3589 = vst.msk [vmem:[#allocation3 + $0x8] sm:$0xff] %vm872_vm2, %v3573_v54  ;;  %v3389_v35 = vadd.f32 %v11420_v12, %v3369_v11 }
 0x33b   : > { %v11444_v49 = vpop.f32.mrf.mxu0 }
 0x33c   : > { %v3405_v32 = vmax.f32 %v3389_v35, 0.0 }
 0x33e   : > { %v3558_v59 = vadd.f32 %v3513_v51, %v3405_v32  ;;  %v3195_v24 = vpop.f32.mrf.mxu2 }
 0x33f   : > { %v3326_v39 = vpop.f32.mrf.mxu3  ;;  %v3085_v25 = vpop.f32.mrf.mxu1  ;;  %v3196_v16 = vadd.f32 %v3195_v24, %v3082_v9 }
 0x340   : > { %v3574_v53 = vmax.f32 %v3558_v59, 0.0  ;;  %v3370_v23 = vadd.f32 %v3326_v39, %v3193_v38  ;;  %v3525_v38 = vadd.f32 %v11425_v27, %v11444_v49 }
 0x341   : > { %v3625_v18 = vld [vmem:[#allocation3 + $0x6] sm:$0xff] }
 0x342   : > { %v3605_v47 = vld [vmem:[#allocation3 + $0x5] sm:$0xff]  ;;  %3590 = vst.msk [vmem:[#allocation3 + $0x10] sm:$0xff] %vm872_vm2, %v3574_v53  ;;  %v3390_v1 = vadd.f32 %v11420_v12, %v3370_v23  ;;  %9506 = vmatmul.msk.f32.vlgmr.msra.gmra.mxu1 %vm872_vm2, %v3625_v18 }
 0x343   : > { %v3872_v60 = vld [vmem:[#allocation3 + $0x7] sm:$0xff]  ;;  %9522 = vmatmul.msk.f32.vlgmr.msrb.gmra.mxu2 %vm872_vm2, %v3605_v47  ;;  %v3527_v44 = vpop.f32.mrf.mxu0 }
 0x344   : > { %v4022_v31 = vld [vmem:[#allocation3 + $0x8] sm:$0xff]  ;;  %9542 = vmatmul.msk.f32.vlgmr.msrb.gmra.mxu3 %vm872_vm2, %v3872_v60  ;;  %v3406_v2 = vmax.f32 %v3390_v1, 0.0  ;;  %v3528_v13 = vadd.f32 %v11425_v27, %v3527_v44  ;;  %v9579_v44 = vld [vmem:[%s13575_s12 + $0x88] sm:$0xff] }
 0x345   : > { %9562 = vmatmul.msk.f32.vlgmr.msrb.gmra.mxu0 %vm872_vm2, %v4022_v31  ;;  %4255 = vmatpush.msrb.mxu1 %v9579_v44 }
 0x346   : > { %v3559_v19 = vadd.f32 %v3516_v40, %v3406_v2  ;;  %v3198_v33 = vpop.f32.mrf.mxu2 }
 0x347   : > { %v3329_v3 = vpop.f32.mrf.mxu3  ;;  %v3088_v48 = vpop.f32.mrf.mxu1  ;;  %v3199_v57 = vadd.f32 %v3198_v33, %v3085_v25 }
 0x348   : > { %v3575_v20 = vmax.f32 %v3559_v19, 0.0  ;;  %v3371_v29 = vadd.f32 %v3329_v3, %v3196_v16  ;;  %v9599_v19 = vld [vmem:[%s13575_s12 + $0xa8] sm:$0xff] }
 0x349   : > { %v3626_v55 = vld [vmem:[#allocation3 + $0xe] sm:$0xff]  ;;  %4405 = vmatpush.msra.mxu2 %v9599_v19 }
 0x34a   : > { %v3606_v22 = vld [vmem:[#allocation3 + $0xd] sm:$0xff]  ;;  %3591 = vst.msk [vmem:[#allocation3 + $0x18] sm:$0xff] %vm872_vm2, %v3575_v20  ;;  %v3391_v14 = vadd.f32 %v11420_v12, %v3371_v29  ;;  %9507 = vmatmul.msk.f32.gmra.mxu1 %vm872_vm2, %v3626_v55 }
 0x34b   : > { %v3873_v61 = vld [vmem:[#allocation3 + $0xf] sm:$0xff]  ;;  %9523 = vmatmul.msk.f32.gmra.mxu2 %vm872_vm2, %v3606_v22  ;;  %v3530_v56 = vpop.f32.mrf.mxu0 }
 0x34c   : > { %v4023_v5 = vld [vmem:[#allocation3 + $0x10] sm:$0xff]  ;;  %9543 = vmatmul.msk.f32.gmra.mxu3 %vm872_vm2, %v3873_v61  ;;  %v3407_v45 = vmax.f32 %v3391_v14, 0.0  ;;  %v3531_v17 = vadd.f32 %v11425_v27, %v3530_v56 }
 0x34d   : > { %9563 = vmatmul.msk.f32.gmra.mxu0 %vm872_vm2, %v4023_v5 }
 0x34e   : > { %v3560_v10 = vadd.f32 %v3519_v34, %v3407_v45  ;;  %v3201_v52 = vpop.f32.mrf.mxu2  ;;  %v9619_v45 = vld [vmem:[%s13575_s12 + $0xc8] sm:$0xff] }
 0x34f   : > { %v3332_v46 = vpop.f32.mrf.mxu3  ;;  %v3091_v63 = vpop.f32.mrf.mxu1  ;;  %v3202_v58 = vadd.f32 %v3201_v52, %v3088_v48  ;;  %4555 = vmatpush.msra.mxu3 %v9619_v45 }
 0x350   : > { %v3576_v26 = vmax.f32 %v3560_v10, 0.0  ;;  %v3372_v28 = vadd.f32 %v3332_v46, %v3199_v57 }
 0x351   : > { %v3627_v30 = vld [vmem:[#allocation3 + $0x16] sm:$0xff] }
 0x352   : > { %v3607_v42 = vld [vmem:[#allocation3 + $0x15] sm:$0xff]  ;;  %3592 = vst.msk [vmem:[#allocation3 + $0x20] sm:$0xff] %vm872_vm2, %v3576_v26  ;;  %v3392_v21 = vadd.f32 %v11420_v12, %v3372_v28  ;;  %9508 = vmatmul.msk.f32.gmra.mxu1 %vm872_vm2, %v3627_v30 }
 0x353   : > { %v3874_v0 = vld [vmem:[#allocation3 + $0x17] sm:$0xff]  ;;  %9524 = vmatmul.msk.f32.gmra.mxu2 %vm872_vm2, %v3607_v42  ;;  %v3533_v40 = vpop.f32.mrf.mxu0 }
 0x354   : > { %v4024_v50 = vld [vmem:[#allocation3 + $0x18] sm:$0xff]  ;;  %9544 = vmatmul.msk.f32.gmra.mxu3 %vm872_vm2, %v3874_v0  ;;  %v3408_v37 = vmax.f32 %v3392_v21, 0.0  ;;  %v3534_v36 = vadd.f32 %v11425_v27, %v3533_v40 }
 0x355   : > { %9564 = vmatmul.msk.f32.gmra.mxu0 %vm872_vm2, %v4024_v50 }
 0x356   : > { %v3561_v62 = vadd.f32 %v3522_v41, %v3408_v37  ;;  %v3204_v6 = vpop.f32.mrf.mxu2  ;;  %v9639_v37 = vld [vmem:[%s13575_s12 + $0xe8] sm:$0xff] }
 0x357   : > { %v3335_v43 = vpop.f32.mrf.mxu3  ;;  %v3094_v11 = vpop.f32.mrf.mxu1  ;;  %v3205_v24 = vadd.f32 %v3204_v6, %v3091_v63  ;;  %4705 = vmatpush.msra.mxu0 %v9639_v37 }
 0x358   : > { %v3577_v8 = vmax.f32 %v3561_v62, 0.0  ;;  %v3373_v54 = vadd.f32 %v3335_v43, %v3202_v58 }
 0x359   : > { %v3628_v9 = vld [vmem:[#allocation3 + $0x1e] sm:$0xff] }
 0x35a   : > { %v3608_v15 = vld [vmem:[#allocation3 + $0x1d] sm:$0xff]  ;;  %3593 = vst.msk [vmem:[#allocation3 + $0x28] sm:$0xff] %vm872_vm2, %v3577_v8  ;;  %v3393_v51 = vadd.f32 %v11420_v12, %v3373_v54  ;;  %9509 = vmatmul.msk.f32.gmra.mxu1 %vm872_vm2, %v3628_v9 }
 0x35b   : > { %v3875_v35 = vld [vmem:[#allocation3 + $0x1f] sm:$0xff]  ;;  %9525 = vmatmul.msk.f32.gmra.mxu2 %vm872_vm2, %v3608_v15  ;;  %v3536_v57 = vpop.f32.mrf.mxu0 }
 0x35c   : > { %v4025_v32 = vld [vmem:[#allocation3 + $0x20] sm:$0xff]  ;;  %9545 = vmatmul.msk.f32.gmra.mxu3 %vm872_vm2, %v3875_v35  ;;  %v3409_v59 = vmax.f32 %v3393_v51, 0.0 }
 0x35d   : > { %9565 = vmatmul.msk.f32.gmra.mxu0 %vm872_vm2, %v4025_v32 }
 0x35e   : > { %v3562_v39 = vadd.f32 %v3525_v38, %v3409_v59  ;;  %v3207_v53 = vpop.f32.mrf.mxu2  ;;  %v3537_v59 = vadd.f32 %v11425_v27, %v3536_v57  ;;  %v9618_v57 = vld [vmem:[%s13575_s12 + $0xc0] sm:$0xff] }
 0x35f   : > { %v3338_v23 = vpop.f32.mrf.mxu3  ;;  %v3097_v47 = vpop.f32.mrf.mxu1  ;;  %v3208_v33 = vadd.f32 %v3207_v53, %v3094_v11  ;;  %4556 = vmatpush.msra.mxu3 %v9618_v57 }
 0x360   : > { %v3578_v25 = vmax.f32 %v3562_v39, 0.0  ;;  %v3374_v18 = vadd.f32 %v3338_v23, %v3205_v24 }
 0x361   : > { %v3629_v60 = vld [vmem:[#allocation3 + $0x26] sm:$0xff] }
 0x362   : > { %v3609_v1 = vld [vmem:[#allocation3 + $0x25] sm:$0xff]  ;;  %3594 = vst.msk [vmem:[#allocation3 + $0x30] sm:$0xff] %vm872_vm2, %v3578_v25  ;;  %v3394_v49 = vadd.f32 %v11420_v12, %v3374_v18  ;;  %9510 = vmatmul.msk.f32.gmra.mxu1 %vm872_vm2, %v3629_v60 }
 0x363   : > { %v3876_v31 = vld [vmem:[#allocation3 + $0x27] sm:$0xff]  ;;  %9526 = vmatmul.msk.f32.gmra.mxu2 %vm872_vm2, %v3609_v1  ;;  %v3539_v6 = vpop.f32.mrf.mxu0 }
 0x364   : > { %v4026_v2 = vld [vmem:[#allocation3 + $0x28] sm:$0xff]  ;;  %9546 = vmatmul.msk.f32.gmra.mxu3 %vm872_vm2, %v3876_v31  ;;  %v3410_v16 = vmax.f32 %v3394_v49, 0.0 }
 0x365   : > { %9566 = vmatmul.msk.f32.gmra.mxu0 %vm872_vm2, %v4026_v2 }
 0x366   : > { %v3563_v3 = vadd.f32 %v3528_v13, %v3410_v16  ;;  %v3210_v20 = vpop.f32.mrf.mxu2  ;;  %v3540_v16 = vadd.f32 %v11425_v27, %v3539_v6 }
 0x367   : > { %v3341_v29 = vpop.f32.mrf.mxu3  ;;  %v3100_v22 = vpop.f32.mrf.mxu1  ;;  %v3211_v52 = vadd.f32 %v3210_v20, %v3097_v47 }
 0x368   : > { %v3579_v48 = vmax.f32 %v3563_v3, 0.0  ;;  %v3375_v55 = vadd.f32 %v3341_v29, %v3208_v33  ;;  %v9598_v33 = vld [vmem:[%s13575_s12 + $0xa0] sm:$0xff] }
 0x369   : > { %v3630_v61 = vld [vmem:[#allocation3 + $0x2e] sm:$0xff]  ;;  %4406 = vmatpush.msra.mxu2 %v9598_v33 }
 0x36a   : > { %v3610_v14 = vld [vmem:[#allocation3 + $0x2d] sm:$0xff]  ;;  %3595 = vst.msk [vmem:[#allocation3 + $0x38] sm:$0xff] %vm872_vm2, %v3579_v48  ;;  %v3395_v34 = vadd.f32 %v11420_v12, %v3375_v55  ;;  %9511 = vmatmul.msk.f32.gmra.mxu1 %vm872_vm2, %v3630_v61 }
 0x36b   : > { %v3877_v5 = vld [vmem:[#allocation3 + $0x2f] sm:$0xff]  ;;  %9527 = vmatmul.msk.f32.gmra.mxu2 %vm872_vm2, %v3610_v14  ;;  %v3542_v47 = vpop.f32.mrf.mxu0 }
 0x36c   : > { %v4027_v7 = vld [vmem:[#allocation3 + $0x30] sm:$0xff]  ;;  %9547 = vmatmul.msk.f32.gmra.mxu3 %vm872_vm2, %v3877_v5  ;;  %v3411_v10 = vmax.f32 %v3395_v34, 0.0  ;;  %v3543_v44 = vadd.f32 %v11425_v27, %v3542_v47 }
 0x36d   : > { %9567 = vmatmul.msk.f32.gmra.mxu0 %vm872_vm2, %v4027_v7 }
 0x36e   : > { %v3564_v46 = vadd.f32 %v3531_v17, %v3411_v10  ;;  %v3213_v26 = vpop.f32.mrf.mxu2  ;;  %v9578_v10 = vld [vmem:[%s13575_s12 + $0x80] sm:$0xff] }
 0x36f   : > { %v3344_v28 = vpop.f32.mrf.mxu3  ;;  %v3103_v58 = vpop.f32.mrf.mxu1  ;;  %v3214_v43 = vadd.f32 %v3213_v26, %v3100_v22  ;;  %4256 = vmatpush.msrb.mxu1 %v9578_v10 }
 0x370   : > { %v3580_v63 = vmax.f32 %v3564_v46, 0.0  ;;  %v3376_v30 = vadd.f32 %v3344_v28, %v3211_v52 }
 0x371   : > { %v3631_v42 = vld [vmem:[#allocation3 + $0x36] sm:$0xff] }
 0x372   : > { %v3611_v0 = vld [vmem:[#allocation3 + $0x35] sm:$0xff]  ;;  %3596 = vst.msk [vmem:[#allocation3 + $0x40] sm:$0xff] %vm872_vm2, %v3580_v63  ;;  %v3396_v50 = vadd.f32 %v11420_v12, %v3376_v30  ;;  %9512 = vmatmul.msk.f32.gmra.mxu1 %vm872_vm2, %v3631_v42 }
 0x373   : > { %v3878_v21 = vld [vmem:[#allocation3 + $0x37] sm:$0xff]  ;;  %9528 = vmatmul.msk.f32.gmra.mxu2 %vm872_vm2, %v3611_v0  ;;  %v3545_v7 = vpop.f32.mrf.mxu0 }
 0x374   : > { %v4028_v41 = vld [vmem:[#allocation3 + $0x38] sm:$0xff]  ;;  %9548 = vmatmul.msk.f32.gmra.mxu3 %vm872_vm2, %v3878_v21  ;;  %v3412_v62 = vmax.f32 %v3396_v50, 0.0 }
 0x375   : > { %9568 = vmatmul.msk.f32.gmra.mxu0 %vm872_vm2, %v4028_v41 }
 0x376   : > { %v3565_v56 = vadd.f32 %v3534_v36, %v3412_v62  ;;  %v3216_v8 = vpop.f32.mrf.mxu2  ;;  %v9638_v62 = vld [vmem:[%s13575_s12 + $0xe0] sm:$0xff] }
 0x377   : > { %v3347_v54 = vpop.f32.mrf.mxu3  ;;  %v3106_v39 = vpop.f32.mrf.mxu1  ;;  %v3217_v53 = vadd.f32 %v3216_v8, %v3103_v58  ;;  %v3546_v58 = vadd.f32 %v11425_v27, %v3545_v7  ;;  %4706 = vmatpush.msra.mxu0 %v9638_v62 }
 0x378   : > { %v3581_v11 = vmax.f32 %v3565_v56, 0.0  ;;  %v3377_v9 = vadd.f32 %v3347_v54, %v3214_v43 }
 0x379   : > { %v3632_v15 = vld [vmem:[#allocation3 + $0x3e] sm:$0xff] }
 0x37a   : > { %v3612_v35 = vld [vmem:[#allocation3 + $0x3d] sm:$0xff]  ;;  %3597 = vst.msk [vmem:[#allocation3 + $0x48] sm:$0xff] %vm872_vm2, %v3581_v11  ;;  %v3397_v32 = vadd.f32 %v11420_v12, %v3377_v9  ;;  %9513 = vmatmul.msk.f32.gmra.mxu1 %vm872_vm2, %v3632_v15 }
 0x37b   : > { %v3879_v51 = vld [vmem:[#allocation3 + $0x3f] sm:$0xff]  ;;  %9529 = vmatmul.msk.f32.gmra.mxu2 %vm872_vm2, %v3612_v35  ;;  %v3548_v6 = vpop.f32.mrf.mxu0 }
 0x37c   : > { %v4029_v38 = vld [vmem:[#allocation3 + $0x40] sm:$0xff]  ;;  %9549 = vmatmul.msk.f32.gmra.mxu3 %vm872_vm2, %v3879_v51  ;;  %v3413_v24 = vmax.f32 %v3397_v32, 0.0 }
 0x37d   : > { %9569 = vmatmul.msk.f32.gmra.mxu0 %vm872_vm2, %v4029_v38 }
 0x37e   : > { %v3566_v23 = vadd.f32 %v3537_v59, %v3413_v24  ;;  %v3219_v25 = vpop.f32.mrf.mxu2  ;;  %v3549_v24 = vadd.f32 %v11425_v27, %v3548_v6 }
 0x37f   : > { %v3350_v18 = vpop.f32.mrf.mxu3  ;;  %v3220_v3 = vadd.f32 %v3219_v25, %v3106_v39  ;;  %v3109_v48 = vpop.f32.mrf.mxu1 }
 0x380   : > { %v3582_v60 = vmax.f32 %v3566_v23, 0.0  ;;  %v3378_v1 = vadd.f32 %v3350_v18, %v3217_v53 }
 0x381   : > { %v3633_v31 = vld [vmem:[#allocation3 + $0x46] sm:$0xff] }
 0x382   : > { %v3613_v40 = vld [vmem:[#allocation3 + $0x45] sm:$0xff]  ;;  %3598 = vst.msk [vmem:[#allocation3 + $0x50] sm:$0xff] %vm872_vm2, %v3582_v60  ;;  %v3398_v2 = vadd.f32 %v11420_v12, %v3378_v1  ;;  %9514 = vmatmul.msk.f32.gmra.mxu1 %vm872_vm2, %v3633_v31 }
 0x383   : > { %v3880_v49 = vld [vmem:[#allocation3 + $0x47] sm:$0xff]  ;;  %9530 = vmatmul.msk.f32.gmra.mxu2 %vm872_vm2, %v3613_v40  ;;  %v3551_v23 = vpop.f32.mrf.mxu0 }
 0x384   : > { %v4030_v13 = vld [vmem:[#allocation3 + $0x48] sm:$0xff]  ;;  %9550 = vmatmul.msk.f32.gmra.mxu3 %vm872_vm2, %v3880_v49  ;;  %v3414_v19 = vmax.f32 %v3398_v2, 0.0 }
 0x385   : > { %9570 = vmatmul.msk.f32.gmra.mxu0 %vm872_vm2, %v4030_v13 }
 0x386   : > { %v3567_v20 = vadd.f32 %v3540_v16, %v3414_v19  ;;  %v3222_v29 = vpop.f32.mrf.mxu2  ;;  %v3552_v16 = vadd.f32 %v11425_v27, %v3551_v23  ;;  %v4174_v23 = vld [vmem:[#allocation3 + $0x19] sm:$0xff] }
 0x387   : > { %v3353_v55 = vpop.f32.mrf.mxu3  ;;  %v3223_v46 = vadd.f32 %v3222_v29, %v3109_v48  ;;  %v3112_v0 = vpop.f32.mrf.mxu1 }
 0x388   : > { %v3583_v22 = vmax.f32 %v3567_v20, 0.0  ;;  %v3379_v61 = vadd.f32 %v3353_v55, %v3220_v3 }
 0x389   : > { %v3634_v14 = vld [vmem:[#allocation3 + $0x4e] sm:$0xff] }
 0x38a   : > { %v3614_v5 = vld [vmem:[#allocation3 + $0x4d] sm:$0xff]  ;;  %3599 = vst.msk [vmem:[#allocation3 + $0x58] sm:$0xff] %vm872_vm2, %v3583_v22  ;;  %v3399_v17 = vadd.f32 %v11420_v12, %v3379_v61  ;;  %9515 = vmatmul.msk.f32.gmra.mxu1 %vm872_vm2, %v3634_v14 }
 0x38b   : > { %v3881_v34 = vld [vmem:[#allocation3 + $0x4f] sm:$0xff]  ;;  %9531 = vmatmul.msk.f32.gmra.mxu2 %vm872_vm2, %v3614_v5  ;;  %v3554_v55 = vpop.f32.mrf.mxu0 }
 0x38c   : > { %v4031_v45 = vld [vmem:[#allocation3 + $0x50] sm:$0xff]  ;;  %9551 = vmatmul.msk.f32.gmra.mxu3 %vm872_vm2, %v3881_v34  ;;  %v3415_v52 = vmax.f32 %v3399_v17, 0.0 }
 0x38d   : > { %9571 = vmatmul.msk.f32.gmra.mxu0 %vm872_vm2, %v4031_v45  ;;  %v3555_v45 = vadd.f32 %v11425_v27, %v3554_v55  ;;  %v9665_v27 = vld [vmem:[%s13578_s9 + $0x78] sm:$0xff]  ;;  %s13582_s9 = sld [smem:[#allocation24_spill]] }
 0x38e   : > { %v3568_v26 = vadd.f32 %v3543_v44, %v3415_v52  ;;  %v3225_v28 = vpop.f32.mrf.mxu2  ;;  %4929 = vmatpush.msra.mxu1 %v9665_v27  ;;  %v9662_v27 = vld [vmem:[%s13579_s11 + $0x60] sm:$0xff] }
 0x38f   : > { %v3356_v63 = vpop.f32.mrf.mxu3  ;;  %v3226_v56 = vadd.f32 %v3225_v28, %v3112_v0  ;;  %v3115_v39 = vpop.f32.mrf.mxu1 }
 0x390   : > { %v3584_v30 = vmax.f32 %v3568_v26, 0.0  ;;  %v3380_v42 = vadd.f32 %v3356_v63, %v3223_v46 }
 0x391   : > { %v3635_v21 = vld [vmem:[#allocation3 + $0x56] sm:$0xff] }
 0x392   : > { %v3615_v50 = vld [vmem:[#allocation3 + $0x55] sm:$0xff]  ;;  %3600 = vst.msk [vmem:[#allocation3 + $0x60] sm:$0xff] %vm872_vm2, %v3584_v30  ;;  %v3400_v36 = vadd.f32 %v11420_v12, %v3380_v42  ;;  %9516 = vmatmul.msk.f32.gmra.mxu1 %vm872_vm2, %v3635_v21 }
 0x393   : > { %v3882_v41 = vld [vmem:[#allocation3 + $0x57] sm:$0xff]  ;;  %9532 = vmatmul.msk.f32.gmra.mxu2 %vm872_vm2, %v3615_v50  ;;  %v4172_v50 = vld [vmem:[#allocation3 + $0x9] sm:$0xff]  ;;  %s13583_s1 = smov %s13582_s9 }
 0x394   : > { %v4032_v37 = vld [vmem:[#allocation3 + $0x58] sm:$0xff]  ;;  %9552 = vmatmul.msk.f32.gmra.mxu3 %vm872_vm2, %v3882_v41  ;;  %v3416_v43 = vmax.f32 %v3400_v36, 0.0  ;;  %v4322_v41 = vld [vmem:[#allocation3 + $0xa] sm:$0xff] }
 0x395   : > { %9572 = vmatmul.msk.f32.gmra.mxu0 %vm872_vm2, %v4032_v37  ;;  %v4472_v36 = vld [vmem:[#allocation3 + $0xb] sm:$0xff] }
 0x396   : > { %v3569_v8 = vadd.f32 %v3546_v58, %v3416_v43  ;;  %v3228_v15 = vpop.f32.mrf.mxu2  ;;  %v4622_v37 = vld [vmem:[#allocation3 + $0xc] sm:$0xff] }
 0x397   : > { %v3359_v54 = vpop.f32.mrf.mxu3  ;;  %v3229_v25 = vadd.f32 %v3228_v15, %v3115_v39  ;;  %v3118_v3 = vpop.f32.mrf.mxu1  ;;  %v4473_v15 = vld [vmem:[#allocation3 + $0x13] sm:$0xff] }
 0x398   : > { %v3585_v11 = vmax.f32 %v3569_v8, 0.0  ;;  %v3381_v9 = vadd.f32 %v3359_v54, %v3226_v56  ;;  %v9664_v54 = vld [vmem:[%s13579_s11 + $0x70] sm:$0xff] }
 0x399   : > { %v3636_v35 = vld [vmem:[#allocation3 + $0x5e] sm:$0xff]  ;;  %4930 = vmatpush.msra.mxu1 %v9664_v54 }
 0x39a   : > { %v3616_v51 = vld [vmem:[#allocation3 + $0x5d] sm:$0xff]  ;;  %3601 = vst.msk [vmem:[#allocation3 + $0x68] sm:$0xff] %vm872_vm2, %v3585_v11  ;;  %v3401_v38 = vadd.f32 %v11420_v12, %v3381_v9  ;;  %9517 = vmatmul.msk.f32.gmra.mxu1 %vm872_vm2, %v3636_v35  ;;  %v4173_v11 = vld [vmem:[#allocation3 + $0x11] sm:$0xff] }
 0x39b   : > { %v3883_v32 = vld [vmem:[#allocation3 + $0x5f] sm:$0xff]  ;;  %9533 = vmatmul.msk.f32.gmra.mxu2 %vm872_vm2, %v3616_v51  ;;  %v4323_v9 = vld [vmem:[#allocation3 + $0x12] sm:$0xff] }
 0x39c   : > { %v4033_v59 = vld [vmem:[#allocation3 + $0x60] sm:$0xff]  ;;  %9553 = vmatmul.msk.f32.gmra.mxu3 %vm872_vm2, %v3883_v32  ;;  %v3417_v53 = vmax.f32 %v3401_v38, 0.0  ;;  %v4623_v35 = vld [vmem:[#allocation3 + $0x14] sm:$0xff] }
 0x39d   : > { %9573 = vmatmul.msk.f32.gmra.mxu0 %vm872_vm2, %v4033_v59 }
 0x39e   : > { %v3570_v18 = vadd.f32 %v3549_v24, %v3417_v53  ;;  %v3231_v19 = vpop.f32.mrf.mxu2 }
 0x39f   : > { %v3362_v47 = vpop.f32.mrf.mxu3  ;;  %v3232_v20 = vadd.f32 %v3231_v19, %v3118_v3  ;;  %v4175_v19 = vld [vmem:[#allocation3 + $0x21] sm:$0xff] }
 0x3a0   : > { %v3586_v60 = vmax.f32 %v3570_v18, 0.0  ;;  %v3382_v1 = vadd.f32 %v3362_v47, %v3229_v25  ;;  %v4324_v25 = vld [vmem:[#allocation3 + $0x1a] sm:$0xff]  ;;  %v4475_v3 = vld [vmem:[#allocation3 + $0x23] sm:$0xff] }
 0x3a1   : > { %v3637_v31 = vld [vmem:[#allocation3 + $0x66] sm:$0xff]  ;;  %v4474_v18 = vld [vmem:[#allocation3 + $0x1b] sm:$0xff] }
 0x3a2   : > { %v3617_v40 = vld [vmem:[#allocation3 + $0x65] sm:$0xff]  ;;  %3602 = vst.msk [vmem:[#allocation3 + $0x70] sm:$0xff] %vm872_vm2, %v3586_v60  ;;  %v3402_v2 = vadd.f32 %v11420_v12, %v3382_v1  ;;  %9518 = vmatmul.msk.f32.gmra.mxu1 %vm872_vm2, %v3637_v31  ;;  %v4624_v47 = vld [vmem:[#allocation3 + $0x1c] sm:$0xff] }
 0x3a3   : > { %v3884_v49 = vld [vmem:[#allocation3 + $0x67] sm:$0xff]  ;;  %9534 = vmatmul.msk.f32.gmra.mxu2 %vm872_vm2, %v3617_v40 }
 0x3a4   : > { %v4034_v13 = vld [vmem:[#allocation3 + $0x68] sm:$0xff]  ;;  %9554 = vmatmul.msk.f32.gmra.mxu3 %vm872_vm2, %v3884_v49  ;;  %v3418_v33 = vmax.f32 %v3402_v2, 0.0 }
 0x3a5   : > { %9574 = vmatmul.msk.f32.gmra.mxu0 %vm872_vm2, %v4034_v13 }
 0x3a6   : > { %v3571_v29 = vadd.f32 %v3552_v16, %v3418_v33  ;;  %v9663_v16 = vld [vmem:[%s13579_s11 + $0x68] sm:$0xff]  ;;  %v4325_v33 = vld [vmem:[#allocation3 + $0x22] sm:$0xff] }
 0x3a7   : > { %v3365_v48 = vpop.f32.mrf.mxu3  ;;  %4931 = vmatpush.msra.mxu1 %v9663_v16  ;;  %v4630_v16 = vld [vmem:[#allocation3 + $0x4c] sm:$0xff] }
 0x3a8   : > { %v3587_v22 = vmax.f32 %v3571_v29, 0.0  ;;  %v3383_v61 = vadd.f32 %v3365_v48, %v3232_v20  ;;  %v4625_v20 = vld [vmem:[#allocation3 + $0x24] sm:$0xff] }
 0x3a9   : > { %v3638_v14 = vld [vmem:[#allocation3 + $0x6e] sm:$0xff]  ;;  %4932 = vmatpush.msra.mxu1 %v9662_v27 }
 0x3aa   : > { %v3618_v5 = vld [vmem:[#allocation3 + $0x6d] sm:$0xff]  ;;  %3603 = vst.msk [vmem:[#allocation3 + $0x78] sm:$0xff] %vm872_vm2, %v3587_v22  ;;  %v3403_v7 = vadd.f32 %v11420_v12, %v3383_v61  ;;  %9519 = vmatmul.msk.f32.gmra.mxu1 %vm872_vm2, %v3638_v14 }
 0x3ab   : > { %v3885_v34 = vld [vmem:[#allocation3 + $0x6f] sm:$0xff]  ;;  %9535 = vmatmul.msk.f32.gmra.mxu2 %vm872_vm2, %v3618_v5 }
 0x3ac   : > { %v4035_v17 = vld [vmem:[#allocation3 + $0x70] sm:$0xff]  ;;  %9555 = vmatmul.msk.f32.gmra.mxu3 %vm872_vm2, %v3885_v34  ;;  %v3419_v44 = vmax.f32 %v3403_v7, 0.0 }
 0x3ad   : > { %9575 = vmatmul.msk.f32.gmra.mxu0 %vm872_vm2, %v4035_v17  ;;  %v4176_v34 = vld [vmem:[#allocation3 + $0x29] sm:$0xff] }
 0x3ae   : > { %v3572_v57 = vadd.f32 %v3555_v45, %v3419_v44  ;;  %v4326_v7 = vld [vmem:[#allocation3 + $0x2a] sm:$0xff] }
 0x3af   : > { %v4476_v17 = vld [vmem:[#allocation3 + $0x2b] sm:$0xff] }
 0x3b0   : > { %v3588_v10 = vmax.f32 %v3572_v57, 0.0  ;;  %v4626_v45 = vld [vmem:[#allocation3 + $0x2c] sm:$0xff] }
 0x3b1   : > { %v3639_v52 = vld [vmem:[#allocation3 + $0x76] sm:$0xff] }
 0x3b2   : > { %v3619_v46 = vld [vmem:[#allocation3 + $0x75] sm:$0xff]  ;;  %3604 = vst.msk [vmem:[#allocation3 + $0x80] sm:$0xff] %vm872_vm2, %v3588_v10  ;;  %9520 = vmatmul.msk.f32.gmra.mxu1 %vm872_vm2, %v3639_v52 }
 0x3b3   : > { %v3886_v26 = vld [vmem:[#allocation3 + $0x77] sm:$0xff]  ;;  %9536 = vmatmul.msk.f32.gmra.mxu2 %vm872_vm2, %v3619_v46 }
 0x3b4   : > { %v4036_v12 = vld [vmem:[#allocation3 + $0x78] sm:$0xff]  ;;  %9556 = vmatmul.msk.f32.gmra.mxu3 %vm872_vm2, %v3886_v26 }
 0x3b5   : > { %9576 = vmatmul.msk.f32.gmra.mxu0 %vm872_vm2, %v4036_v12 }
 0x3b9   : > { %v3640_v28 = vld [vmem:[#allocation3 + $0x7e] sm:$0xff] }
 0x3ba   : > { %v3620_v63 = vld [vmem:[#allocation3 + $0x7d] sm:$0xff]  ;;  %9521 = vmatmul.msk.f32.gmra.mxu1 %vm872_vm2, %v3640_v28  ;;  %v4177_v28 = vld [vmem:[#allocation3 + $0x31] sm:$0xff] }
 0x3bb   : > { %v3887_v30 = vld [vmem:[#allocation3 + $0x7f] sm:$0xff]  ;;  %9537 = vmatmul.msk.f32.gmra.mxu2 %vm872_vm2, %v3620_v63  ;;  %v4327_v63 = vld [vmem:[#allocation3 + $0x32] sm:$0xff] }
 0x3bc   : > { %v4037_v42 = vld [vmem:[#allocation3 + $0x80] sm:$0xff]  ;;  %9557 = vmatmul.msk.f32.gmra.mxu3 %vm872_vm2, %v3887_v30  ;;  %v4477_v30 = vld [vmem:[#allocation3 + $0x33] sm:$0xff] }
 0x3bd   : > { %9577 = vmatmul.msk.f32.gmra.mxu0 %vm872_vm2, %v4037_v42  ;;  %v4627_v42 = vld [vmem:[#allocation3 + $0x34] sm:$0xff] }
 0x3bf   : > { %v3711_v0 = vpop.f32.mrf.mxu1 }
 0x3c2   : > { %v4108_v21 = vpop.f32.mrf.mxu0  ;;  %9582 = vmatmul.msk.f32.vlgmr.msrb.gmra.mxu1 %vm872_vm2, %v4172_v50 }
 0x3c3   : > { %9602 = vmatmul.msk.f32.vlgmr.msra.gmra.mxu2 %vm872_vm2, %v4322_v41 }
 0x3c4   : > { %9622 = vmatmul.msk.f32.vlgmr.msra.gmra.mxu3 %vm872_vm2, %v4472_v36 }
 0x3c5   : > { %9642 = vmatmul.msk.f32.vlgmr.msra.gmra.mxu0 %vm872_vm2, %v4622_v37 }
 0x3c6   : > { %v3824_v58 = vpop.f32.mrf.mxu2 }
 0x3c7   : > { %v3825_v62 = vadd.f32 %v3824_v58, %v3711_v0  ;;  %v3958_v6 = vpop.f32.mrf.mxu3  ;;  %v3714_v43 = vpop.f32.mrf.mxu1 }
 0x3c9   : > { %v4006_v56 = vadd.f32 %v3958_v6, %v3825_v62  ;;  %v4178_v62 = vld [vmem:[#allocation3 + $0x39] sm:$0xff] }
 0x3ca   : > { %v4111_v8 = vpop.f32.mrf.mxu0  ;;  %9583 = vmatmul.msk.f32.gmra.mxu1 %vm872_vm2, %v4173_v11  ;;  %v4328_v6 = vld [vmem:[#allocation3 + $0x3a] sm:$0xff] }
 0x3cb   : > { %9603 = vmatmul.msk.f32.gmra.mxu2 %vm872_vm2, %v4323_v9  ;;  %v11596_v51 = vadd.f32 %v4108_v21, %v4006_v56  ;;  %v4628_v56 = vld [vmem:[#allocation3 + $0x3c] sm:$0xff] }
 0x3cc   : > { %9623 = vmatmul.msk.f32.gmra.mxu3 %vm872_vm2, %v4473_v15 }
 0x3cd   : > { %9643 = vmatmul.msk.f32.gmra.mxu0 %vm872_vm2, %v4623_v35 }
 0x3ce   : > { %v3827_v32 = vpop.f32.mrf.mxu2 }
 0x3cf   : > { %v3828_v38 = vadd.f32 %v3827_v32, %v3714_v43  ;;  %v3961_v59 = vpop.f32.mrf.mxu3  ;;  %v3717_v24 = vpop.f32.mrf.mxu1  ;;  %v4478_v43 = vld [vmem:[#allocation3 + $0x3b] sm:$0xff] }
 0x3d1   : > { %v4007_v39 = vadd.f32 %v3961_v59, %v3828_v38  ;;  %v9661_v38 = vld [vmem:[%s13579_s11 + $0x58] sm:$0xff] }
 0x3d2   : > { %v4114_v53 = vpop.f32.mrf.mxu0  ;;  %9584 = vmatmul.msk.f32.gmra.mxu1 %vm872_vm2, %v4174_v23  ;;  %v4179_v59 = vld [vmem:[#allocation3 + $0x41] sm:$0xff] }
 0x3d3   : > { %9604 = vmatmul.msk.f32.gmra.mxu2 %vm872_vm2, %v4324_v25  ;;  %v11602_v60 = vadd.f32 %v4111_v8, %v4007_v39  ;;  %4933 = vmatpush.msra.mxu1 %v9661_v38  ;;  %v4479_v39 = vld [vmem:[#allocation3 + $0x43] sm:$0xff]  ;;  %v4485_v38 = vld [vmem:[#allocation3 + $0x73] sm:$0xff] }
 0x3d4   : > { %9624 = vmatmul.msk.f32.gmra.mxu3 %vm872_vm2, %v4474_v18 }
 0x3d5   : > { %9644 = vmatmul.msk.f32.gmra.mxu0 %vm872_vm2, %v4624_v47 }
 0x3d6   : > { %v3830_v1 = vpop.f32.mrf.mxu2 }
 0x3d7   : > { %v3831_v31 = vadd.f32 %v3830_v1, %v3717_v24  ;;  %v3964_v40 = vpop.f32.mrf.mxu3  ;;  %v3720_v49 = vpop.f32.mrf.mxu1  ;;  %v4329_v24 = vld [vmem:[#allocation3 + $0x42] sm:$0xff] }
 0x3d9   : > { %v4008_v2 = vadd.f32 %v3964_v40, %v3831_v31 }
 0x3da   : > { %v4117_v13 = vpop.f32.mrf.mxu0  ;;  %9585 = vmatmul.msk.f32.gmra.mxu1 %vm872_vm2, %v4175_v19 }
 0x3db   : > { %9605 = vmatmul.msk.f32.gmra.mxu2 %vm872_vm2, %v4325_v33  ;;  %v11611_v29 = vadd.f32 %v4114_v53, %v4008_v2  ;;  %v4629_v53 = vld [vmem:[#allocation3 + $0x44] sm:$0xff] }
 0x3dc   : > { %9625 = vmatmul.msk.f32.gmra.mxu3 %vm872_vm2, %v4475_v3  ;;  %v4330_v2 = vld [vmem:[#allocation3 + $0x4a] sm:$0xff] }
 0x3dd   : > { %9645 = vmatmul.msk.f32.gmra.mxu0 %vm872_vm2, %v4625_v20 }
 0x3de   : > { %v3833_v48 = vpop.f32.mrf.mxu2 }
 0x3df   : > { %v3834_v55 = vadd.f32 %v3833_v48, %v3720_v49  ;;  %v3967_v22 = vpop.f32.mrf.mxu3  ;;  %v3723_v61 = vpop.f32.mrf.mxu1  ;;  %v4180_v49 = vld [vmem:[#allocation3 + $0x49] sm:$0xff] }
 0x3e1   : > { %v4009_v14 = vadd.f32 %v3967_v22, %v3834_v55  ;;  %v9660_v55 = vld [vmem:[%s13579_s11 + $0x50] sm:$0xff]  ;;  %v4181_v22 = vld [vmem:[#allocation3 + $0x51] sm:$0xff] }
 0x3e2   : > { %v4120_v5 = vpop.f32.mrf.mxu0  ;;  %9586 = vmatmul.msk.f32.gmra.mxu1 %vm872_vm2, %v4176_v34 }
 0x3e3   : > { %9606 = vmatmul.msk.f32.gmra.mxu2 %vm872_vm2, %v4326_v7  ;;  %v11617_v44 = vadd.f32 %v4117_v13, %v4009_v14  ;;  %v4480_v13 = vld [vmem:[#allocation3 + $0x4b] sm:$0xff]  ;;  %4934 = vmatpush.msra.mxu1 %v9660_v55  ;;  %v4481_v14 = vld [vmem:[#allocation3 + $0x53] sm:$0xff] }
 0x3e4   : > { %9626 = vmatmul.msk.f32.gmra.mxu3 %vm872_vm2, %v4476_v17  ;;  %v9658_v55 = vld [vmem:[%s13579_s11 + $0x40] sm:$0xff] }
 0x3e5   : > { %9646 = vmatmul.msk.f32.gmra.mxu0 %vm872_vm2, %v4626_v45 }
 0x3e6   : > { %v3836_v57 = vpop.f32.mrf.mxu2 }
 0x3e7   : > { %v3837_v10 = vadd.f32 %v3836_v57, %v3723_v61  ;;  %v3970_v52 = vpop.f32.mrf.mxu3  ;;  %v3726_v46 = vpop.f32.mrf.mxu1  ;;  %v4331_v61 = vld [vmem:[#allocation3 + $0x52] sm:$0xff] }
 0x3e8   : > { %v4182_v57 = vld [vmem:[#allocation3 + $0x59] sm:$0xff] }
 0x3e9   : > { %v4010_v26 = vadd.f32 %v3970_v52, %v3837_v10  ;;  %v4332_v10 = vld [vmem:[#allocation3 + $0x5a] sm:$0xff] }
 0x3ea   : > { %v4123_v12 = vpop.f32.mrf.mxu0  ;;  %9587 = vmatmul.msk.f32.gmra.mxu1 %vm872_vm2, %v4177_v28  ;;  %v4482_v52 = vld [vmem:[#allocation3 + $0x5b] sm:$0xff] }
 0x3eb   : > { %9607 = vmatmul.msk.f32.gmra.mxu2 %vm872_vm2, %v4327_v63  ;;  %v11626_v0 = vadd.f32 %v4120_v5, %v4010_v26  ;;  %v4631_v5 = vld [vmem:[#allocation3 + $0x54] sm:$0xff] }
 0x3ec   : > { %9627 = vmatmul.msk.f32.gmra.mxu3 %vm872_vm2, %v4477_v30  ;;  %v9659_v63 = vld [vmem:[%s13579_s11 + $0x48] sm:$0xff]  ;;  %v4183_v30 = vld [vmem:[#allocation3 + $0x61] sm:$0xff] }
 0x3ed   : > { %9647 = vmatmul.msk.f32.gmra.mxu0 %vm872_vm2, %v4627_v42  ;;  %v4333_v42 = vld [vmem:[#allocation3 + $0x62] sm:$0xff]  ;;  %4935 = vmatpush.msra.mxu1 %v9659_v63 }
 0x3ee   : > { %v3839_v21 = vpop.f32.mrf.mxu2 }
 0x3ef   : > { %v3840_v50 = vadd.f32 %v3839_v21, %v3726_v46  ;;  %v3973_v41 = vpop.f32.mrf.mxu3  ;;  %v3729_v36 = vpop.f32.mrf.mxu1  ;;  %v4632_v46 = vld [vmem:[#allocation3 + $0x5c] sm:$0xff]  ;;  %4936 = vmatpush.msra.mxu1 %v9658_v55 }
 0x3f0   : > { %v4483_v21 = vld [vmem:[#allocation3 + $0x63] sm:$0xff] }
 0x3f1   : > { %v4011_v37 = vadd.f32 %v3973_v41, %v3840_v50  ;;  %v4633_v50 = vld [vmem:[#allocation3 + $0x64] sm:$0xff] }
 0x3f2   : > { %v4126_v58 = vpop.f32.mrf.mxu0  ;;  %9588 = vmatmul.msk.f32.gmra.mxu1 %vm872_vm2, %v4178_v62  ;;  %v4184_v62 = vld [vmem:[#allocation3 + $0x69] sm:$0xff]  ;;  %v9724_v55 = vld [vmem:[%s13579_s11 + $0xd0] sm:$0xff] }
 0x3f3   : > { %9608 = vmatmul.msk.f32.gmra.mxu2 %vm872_vm2, %v4328_v6  ;;  %v11632_v8 = vadd.f32 %v4123_v12, %v4011_v37  ;;  %v4334_v6 = vld [vmem:[#allocation3 + $0x6a] sm:$0xff] }
 0x3f4   : > { %9628 = vmatmul.msk.f32.gmra.mxu3 %vm872_vm2, %v4478_v43  ;;  %v4484_v43 = vld [vmem:[#allocation3 + $0x6b] sm:$0xff] }
 0x3f5   : > { %9648 = vmatmul.msk.f32.gmra.mxu0 %vm872_vm2, %v4628_v56  ;;  %v4634_v56 = vld [vmem:[#allocation3 + $0x6c] sm:$0xff] }
 0x3f6   : > { %v3842_v54 = vpop.f32.mrf.mxu2 }
 0x3f7   : > { %v3843_v11 = vadd.f32 %v3842_v54, %v3729_v36  ;;  %v3976_v9 = vpop.f32.mrf.mxu3  ;;  %v3732_v15 = vpop.f32.mrf.mxu1 }
 0x3f9   : > { %v4012_v35 = vadd.f32 %v3976_v9, %v3843_v11 }
 0x3fa   : > { %v4129_v32 = vpop.f32.mrf.mxu0  ;;  %9589 = vmatmul.msk.f32.gmra.mxu1 %vm872_vm2, %v4179_v59  ;;  %v4635_v59 = vld [vmem:[#allocation3 + $0x74] sm:$0xff] }
 0x3fb   : > { %9609 = vmatmul.msk.f32.gmra.mxu2 %vm872_vm2, %v4329_v24  ;;  %v11641_v23 = vadd.f32 %v4126_v58, %v4012_v35  ;;  %v4185_v35 = vld [vmem:[#allocation3 + $0x71] sm:$0xff]  ;;  %v4847_v24 = vld [vmem:[%s13579_s11 + $0x38] sm:$0xff] }
 0x3fc   : > { %9629 = vmatmul.msk.f32.gmra.mxu3 %vm872_vm2, %v4479_v39  ;;  %v9705_v39 = vld [vmem:[%s13579_s11 + $0xb8] sm:$0xff]  ;;  %5042 = vmatpush.msrb.mxu2 %v4847_v24 }
 0x3fd   : > { %9649 = vmatmul.msk.f32.gmra.mxu0 %vm872_vm2, %v4629_v53  ;;  %5180 = vmatpush.msrb.mxu3 %v9705_v39  ;;  %v4637_v24 = vld [vmem:[#allocation3 + $0x84] sm:$0xff]  ;;  %v9726_v39 = vld [vmem:[%s13579_s11 + $0xe0] sm:$0xff] }
 0x3fe   : > { %v3845_v25 = vpop.f32.mrf.mxu2 }
 0x3ff   : > { %v3846_v18 = vadd.f32 %v3845_v25, %v3732_v15  ;;  %v3979_v47 = vpop.f32.mrf.mxu3  ;;  %v11645_v1 = vpop.f32.mrf.mxu1  ;;  %v4846_v25 = vld [vmem:[%s13579_s11 + $0x30] sm:$0xff] }
 0x400   : > { %5043 = vmatpush.msrb.mxu2 %v4846_v25  ;;  %v4840_v25 = vld [vmem:[%s13579_s11] sm:$0xff] }
 0x401   : > { %v4013_v31 = vadd.f32 %v3979_v47, %v3846_v18  ;;  %v9704_v18 = vld [vmem:[%s13579_s11 + $0xb0] sm:$0xff] }
 0x402   : > { %v11647_v40 = vpop.f32.mrf.mxu0  ;;  %9590 = vmatmul.msk.f32.gmra.mxu1 %vm872_vm2, %v4180_v49  ;;  %5181 = vmatpush.msrb.mxu3 %v9704_v18  ;;  %v4845_v49 = vld [vmem:[%s13579_s11 + $0x28] sm:$0xff]  ;;  %v9698_v18 = vld [vmem:[%s13579_s11 + $0x80] sm:$0xff] }
 0x403   : > { %9610 = vmatmul.msk.f32.gmra.mxu2 %vm872_vm2, %v4330_v2  ;;  %v11651_v19 = vadd.f32 %v4129_v32, %v4013_v31  ;;  %v4335_v32 = vld [vmem:[#allocation3 + $0x72] sm:$0xff] }
 0x404   : > { %9630 = vmatmul.msk.f32.gmra.mxu3 %vm872_vm2, %v4480_v13  ;;  %v9703_v2 = vld [vmem:[%s13579_s11 + $0xa8] sm:$0xff]  ;;  %5044 = vmatpush.msrb.mxu2 %v4845_v49  ;;  %v9725_v49 = vld [vmem:[%s13579_s11 + $0xd8] sm:$0xff] }
 0x405   : > { %9650 = vmatmul.msk.f32.gmra.mxu0 %vm872_vm2, %v4630_v16  ;;  %v4186_v16 = vld [vmem:[#allocation3 + $0x79] sm:$0xff]  ;;  %5182 = vmatpush.msrb.mxu3 %v9703_v2 }
 0x406   : > { %v11655_v33 = vpop.f32.mrf.mxu2 }
 0x407   : > { %v11657_v3 = vpop.f32.mrf.mxu3  ;;  %v11659_v20 = vpop.f32.mrf.mxu1 }
 0x40a   : > { %v11661_v48 = vpop.f32.mrf.mxu0  ;;  %9591 = vmatmul.msk.f32.gmra.mxu1 %vm872_vm2, %v4181_v22  ;;  %v4336_v22 = vld [vmem:[#allocation3 + $0x7a] sm:$0xff] }
 0x40b   : > { %9611 = vmatmul.msk.f32.gmra.mxu2 %vm872_vm2, %v4331_v61  ;;  %v4844_v61 = vld [vmem:[%s13579_s11 + $0x20] sm:$0xff] }
 0x40c   : > { %9631 = vmatmul.msk.f32.gmra.mxu3 %vm872_vm2, %v4481_v14  ;;  %v9702_v14 = vld [vmem:[%s13579_s11 + $0xa0] sm:$0xff]  ;;  %5045 = vmatpush.msrb.mxu2 %v4844_v61 }
 0x40d   : > { %9651 = vmatmul.msk.f32.gmra.mxu0 %vm872_vm2, %v4631_v5  ;;  %v4486_v5 = vld [vmem:[#allocation3 + $0x7b] sm:$0xff]  ;;  %5183 = vmatpush.msrb.mxu3 %v9702_v14  ;;  %v9753_v14 = vld [vmem:[%s13579_s11 + $0x138] sm:$0xff] }
 0x40e   : > { %v11670_v34 = vpop.f32.mrf.mxu2  ;;  %5488 = vmatpush.msrb.mxu1 %v9753_v14 }
 0x40f   : > { %v11672_v7 = vpop.f32.mrf.mxu3  ;;  %v11674_v17 = vpop.f32.mrf.mxu1 }
 0x412   : > { %v11676_v45 = vpop.f32.mrf.mxu0  ;;  %9592 = vmatmul.msk.f32.gmra.mxu1 %vm872_vm2, %v4182_v57  ;;  %v4636_v57 = vld [vmem:[#allocation3 + $0x7c] sm:$0xff] }
 0x413   : > { %9612 = vmatmul.msk.f32.gmra.mxu2 %vm872_vm2, %v4332_v10  ;;  %v4843_v10 = vld [vmem:[%s13579_s11 + $0x18] sm:$0xff] }
 0x414   : > { %9632 = vmatmul.msk.f32.gmra.mxu3 %vm872_vm2, %v4482_v52  ;;  %v9701_v52 = vld [vmem:[%s13579_s11 + $0x98] sm:$0xff]  ;;  %5046 = vmatpush.msrb.mxu2 %v4843_v10 }
 0x415   : > { %9652 = vmatmul.msk.f32.gmra.mxu0 %vm872_vm2, %v4632_v46  ;;  %v9729_v46 = vld [vmem:[%s13579_s11 + $0xf8] sm:$0xff]  ;;  %5184 = vmatpush.msrb.mxu3 %v9701_v52 }
 0x416   : > { %v11682_v26 = vpop.f32.mrf.mxu2  ;;  %5334 = vmatpush.msrb.mxu0 %v9729_v46 }
 0x417   : > { %v11684_v12 = vpop.f32.mrf.mxu3  ;;  %v11686_v27 = vpop.f32.mrf.mxu1 }
 0x41a   : > { %v11688_v28 = vpop.f32.mrf.mxu0  ;;  %9593 = vmatmul.msk.f32.gmra.mxu1 %vm872_vm2, %v4183_v30  ;;  %v4842_v30 = vld [vmem:[%s13579_s11 + $0x10] sm:$0xff] }
 0x41b   : > { %9613 = vmatmul.msk.f32.gmra.mxu2 %vm872_vm2, %v4333_v42  ;;  %v9700_v42 = vld [vmem:[%s13579_s11 + $0x90] sm:$0xff] }
 0x41c   : > { %9633 = vmatmul.msk.f32.gmra.mxu3 %vm872_vm2, %v4483_v21  ;;  %v9728_v21 = vld [vmem:[%s13579_s11 + $0xf0] sm:$0xff]  ;;  %5047 = vmatpush.msrb.mxu2 %v4842_v30 }
 0x41d   : > { %9653 = vmatmul.msk.f32.gmra.mxu0 %vm872_vm2, %v4633_v50  ;;  %5185 = vmatpush.msrb.mxu3 %v9700_v42 }
 0x41e   : > { %v11697_v41 = vpop.f32.mrf.mxu2  ;;  %5335 = vmatpush.msrb.mxu0 %v9728_v21 }
 0x41f   : > { %v11699_v36 = vpop.f32.mrf.mxu3  ;;  %v11701_v37 = vpop.f32.mrf.mxu1 }
 0x422   : > { %v11703_v58 = vpop.f32.mrf.mxu0  ;;  %9594 = vmatmul.msk.f32.gmra.mxu1 %vm872_vm2, %v4184_v62 }
 0x423   : > { %9614 = vmatmul.msk.f32.gmra.mxu2 %vm872_vm2, %v4334_v6  ;;  %v9727_v6 = vld [vmem:[%s13579_s11 + $0xe8] sm:$0xff] }
 0x424   : > { %9634 = vmatmul.msk.f32.gmra.mxu3 %vm872_vm2, %v4484_v43  ;;  %5336 = vmatpush.msrb.mxu0 %v9727_v6 }
 0x425   : > { %9654 = vmatmul.msk.f32.gmra.mxu0 %vm872_vm2, %v4634_v56  ;;  %v4187_v56 = vld [vmem:[#allocation3 + $0x81] sm:$0xff] }
 0x426   : > { %v11709_v54 = vpop.f32.mrf.mxu2  ;;  %5337 = vmatpush.msrb.mxu0 %v9726_v39 }
 0x427   : > { %v11711_v11 = vpop.f32.mrf.mxu3  ;;  %v11713_v9 = vpop.f32.mrf.mxu1 }
 0x428   : > { %5338 = vmatpush.msrb.mxu0 %v9725_v49 }
 0x42a   : > { %v11717_v15 = vpop.f32.mrf.mxu0  ;;  %9595 = vmatmul.msk.f32.gmra.mxu1 %vm872_vm2, %v4185_v35  ;;  %v4337_v35 = vld [vmem:[#allocation3 + $0x82] sm:$0xff]  ;;  %5339 = vmatpush.msrb.mxu0 %v9724_v55 }
 0x42b   : > { %9615 = vmatmul.msk.f32.gmra.mxu2 %vm872_vm2, %v4335_v32  ;;  %v4841_v32 = vld [vmem:[%s13579_s11 + $0x8] sm:$0xff]  ;;  %v9752_v55 = vld [vmem:[%s13579_s11 + $0x130] sm:$0xff] }
 0x42c   : > { %9635 = vmatmul.msk.f32.gmra.mxu3 %vm872_vm2, %v4485_v38  ;;  %v9699_v38 = vld [vmem:[%s13579_s11 + $0x88] sm:$0xff]  ;;  %5048 = vmatpush.msrb.mxu2 %v4841_v32 }
 0x42d   : > { %9655 = vmatmul.msk.f32.gmra.mxu0 %vm872_vm2, %v4635_v59  ;;  %v4487_v59 = vld [vmem:[#allocation3 + $0x83] sm:$0xff]  ;;  %5186 = vmatpush.msrb.mxu3 %v9699_v38 }
 0x42e   : > { %v11739_v53 = vpop.f32.mrf.mxu2  ;;  %5049 = vmatpush.msrb.mxu2 %v4840_v25  ;;  %5489 = vmatpush.msrb.mxu1 %v9752_v55 }
 0x42f   : > { %v11749_v47 = vpop.f32.mrf.mxu3  ;;  %v11753_v31 = vpop.f32.mrf.mxu1  ;;  %5187 = vmatpush.msrb.mxu3 %v9698_v18 }
 0x432   : > { %v11763_v13 = vpop.f32.mrf.mxu0  ;;  %9596 = vmatmul.msk.f32.gmra.mxu1 %vm872_vm2, %v4186_v16 }
 0x433   : > { %9616 = vmatmul.msk.f32.gmra.mxu2 %vm872_vm2, %v4336_v22 }
 0x434   : > { %9636 = vmatmul.msk.f32.gmra.mxu3 %vm872_vm2, %v4486_v5  ;;  %v9723_v5 = vld [vmem:[%s13579_s11 + $0xc8] sm:$0xff] }
 0x435   : > { %9656 = vmatmul.msk.f32.gmra.mxu0 %vm872_vm2, %v4636_v57  ;;  %v9722_v57 = vld [vmem:[%s13579_s11 + $0xc0] sm:$0xff] }
 0x436   : > { %v11797_v63 = vpop.f32.mrf.mxu2  ;;  %5340 = vmatpush.msrb.mxu0 %v9723_v5 }
 0x437   : > { %v11810_v50 = vpop.f32.mrf.mxu3  ;;  %v11814_v62 = vpop.f32.mrf.mxu1 }
 0x438   : > { %5341 = vmatpush.msrb.mxu0 %v9722_v57 }
 0x43a   : > { %v11821_v43 = vpop.f32.mrf.mxu0  ;;  %9597 = vmatmul.msk.f32.gmra.mxu1 %vm872_vm2, %v4187_v56 }
 0x43b   : > { %9617 = vmatmul.msk.f32.gmra.mxu2 %vm872_vm2, %v4337_v35 }
 0x43c   : > { %9637 = vmatmul.msk.f32.gmra.mxu3 %vm872_vm2, %v4487_v59 }
 0x43d   : > { %9657 = vmatmul.msk.f32.gmra.mxu0 %vm872_vm2, %v4637_v24 }
 0x43e   : > { %v11855_v2 = vpop.f32.mrf.mxu2 }
 0x43f   : > { %v11859_v16 = vpop.f32.mrf.mxu3  ;;  %v4258_v22 = vpop.f32.mrf.mxu1 }
 0x440   : > { %v4306_v10 = vadd.f32 %v4258_v22, %v11596_v51  ;;  %v11897_v51 = vld [vmem:[%s13580_s16] ss:$0 sm:$0xff]  ;;  %s10300_s16 = scalar_lea.hbm %s13518_s28, 2 }
 0x442   : > { %v4708_v61 = vpop.f32.mrf.mxu0 }
 0x446   : > { %v4408_v52 = vpop.f32.mrf.mxu2 }
 0x447   : > { %v4456_v46 = vadd.f32 %v4408_v52, %v4306_v10  ;;  %v4558_v30 = vpop.f32.mrf.mxu3  ;;  %v4261_v42 = vpop.f32.mrf.mxu1 }
 0x448   : > { %v4307_v32 = vadd.f32 %v4261_v42, %v11602_v60 }
 0x449   : > { %v4606_v21 = vadd.f32 %v4558_v30, %v4456_v46 }
 0x44a   : > { %v4711_v6 = vpop.f32.mrf.mxu0 }
 0x44b   : > { %v4756_v56 = vadd.f32 %v4708_v61, %v4606_v21 }
 0x44d   : > { %v4776_v35 = vadd.f32 %v11897_v51, %v4756_v56 }
 0x44e   : > { %v4411_v38 = vpop.f32.mrf.mxu2 }
 0x44f   : > { %v4792_v59 = vmax.f32 %v4776_v35, 0.0  ;;  %v4457_v24 = vadd.f32 %v4411_v38, %v4307_v32  ;;  %v4561_v39 = vpop.f32.mrf.mxu3  ;;  %v4264_v25 = vpop.f32.mrf.mxu1 }
 0x450   : > { %v4308_v61 = vadd.f32 %v4264_v25, %v11611_v29 }
 0x451   : > { %4808 = vst.msk [vmem:[#allocation5 + $0x8] sm:$0xff] %vm909_vm3, %v4792_v59  ;;  %v4607_v18 = vadd.f32 %v4561_v39, %v4457_v24 }
 0x452   : > { %v4714_v49 = vpop.f32.mrf.mxu0 }
 0x453   : > { %v4757_v22 = vadd.f32 %v4711_v6, %v4607_v18 }
 0x455   : > { %v4777_v4 = vadd.f32 %v11897_v51, %v4757_v22 }
 0x456   : > { %v4414_v60 = vpop.f32.mrf.mxu2 }
 0x457   : > { %v4793_v14 = vmax.f32 %v4777_v4, 0.0  ;;  %v4458_v5 = vadd.f32 %v4414_v60, %v4308_v61  ;;  %v4564_v57 = vpop.f32.mrf.mxu3  ;;  %v4267_v10 = vpop.f32.mrf.mxu1 }
 0x458   : > { %v4848_v52 = vld [vmem:[#allocation5 + $0x7] sm:$0xff]  ;;  %v4309_v56 = vadd.f32 %v4267_v10, %v11617_v44  ;;  %v9751_v44 = vld [vmem:[%s13579_s11 + $0x128] sm:$0xff] }
 0x459   : > { %v4824_v46 = vld [vmem:[#allocation5 + $0x6] sm:$0xff]  ;;  %4809 = vst.msk [vmem:[#allocation5 + $0x10] sm:$0xff] %vm909_vm3, %v4793_v14  ;;  %v4608_v42 = vadd.f32 %v4564_v57, %v4458_v5  ;;  %9666 = vmatmul.msk.f32.vlgmr.msra.gmra.mxu1 %vm909_vm3, %v4848_v52 }
 0x45a   : > { %v5099_v30 = vld [vmem:[#allocation5 + $0x8] sm:$0xff]  ;;  %v4717_v21 = vpop.f32.mrf.mxu0  ;;  %9682 = vmatmul.msk.f32.vlgmr.msrb.gmra.mxu2 %vm909_vm3, %v4824_v46  ;;  %5490 = vmatpush.msrb.mxu1 %v9751_v44 }
 0x45b   : > { %9706 = vmatmul.msk.f32.vlgmr.msrb.gmra.mxu3 %vm909_vm3, %v5099_v30  ;;  %v4758_v6 = vadd.f32 %v4714_v49, %v4608_v42 }
 0x45d   : > { %v4778_v29 = vadd.f32 %v11897_v51, %v4758_v6 }
 0x45e   : > { %v4417_v35 = vpop.f32.mrf.mxu2 }
 0x45f   : > { %v4794_v32 = vmax.f32 %v4778_v29, 0.0  ;;  %v4459_v38 = vadd.f32 %v4417_v35, %v4309_v56  ;;  %v4567_v59 = vpop.f32.mrf.mxu3  ;;  %v4270_v24 = vpop.f32.mrf.mxu1 }
 0x460   : > { %v4849_v39 = vld [vmem:[#allocation5 + $0xf] sm:$0xff]  ;;  %v4310_v60 = vadd.f32 %v4270_v24, %v11626_v0 }
 0x461   : > { %v4825_v25 = vld [vmem:[#allocation5 + $0xe] sm:$0xff]  ;;  %4810 = vst.msk [vmem:[#allocation5 + $0x18] sm:$0xff] %vm909_vm3, %v4794_v32  ;;  %v4609_v55 = vadd.f32 %v4567_v59, %v4459_v38  ;;  %9667 = vmatmul.msk.f32.gmra.mxu1 %vm909_vm3, %v4849_v39 }
 0x462   : > { %v5100_v18 = vld [vmem:[#allocation5 + $0x10] sm:$0xff]  ;;  %v4720_v22 = vpop.f32.mrf.mxu0  ;;  %9683 = vmatmul.msk.f32.gmra.mxu2 %vm909_vm3, %v4825_v25 }
 0x463   : > { %v5253_v49 = vld [vmem:[#allocation5 + $0x9] sm:$0xff]  ;;  %9707 = vmatmul.msk.f32.gmra.mxu3 %vm909_vm3, %v5100_v18  ;;  %v4759_v4 = vadd.f32 %v4717_v21, %v4609_v55 }
 0x464   : > { %9730 = vmatmul.msk.f32.vlgmr.msrb.gmra.mxu0 %vm909_vm3, %v5253_v49 }
 0x465   : > { %v4779_v61 = vadd.f32 %v11897_v51, %v4759_v4 }
 0x466   : > { %v4420_v14 = vpop.f32.mrf.mxu2 }
 0x467   : > { %v4795_v5 = vmax.f32 %v4779_v61, 0.0  ;;  %v4460_v57 = vadd.f32 %v4420_v14, %v4310_v60  ;;  %v4570_v10 = vpop.f32.mrf.mxu3  ;;  %v4273_v52 = vpop.f32.mrf.mxu1 }
 0x468   : > { %v4850_v46 = vld [vmem:[#allocation5 + $0x17] sm:$0xff]  ;;  %v4311_v35 = vadd.f32 %v4273_v52, %v11632_v8 }
 0x469   : > { %v4826_v30 = vld [vmem:[#allocation5 + $0x16] sm:$0xff]  ;;  %4811 = vst.msk [vmem:[#allocation5 + $0x20] sm:$0xff] %vm909_vm3, %v4795_v5  ;;  %v4610_v6 = vadd.f32 %v4570_v10, %v4460_v57  ;;  %9668 = vmatmul.msk.f32.gmra.mxu1 %vm909_vm3, %v4850_v46 }
 0x46a   : > { %v5101_v42 = vld [vmem:[#allocation5 + $0x18] sm:$0xff]  ;;  %v4723_v29 = vpop.f32.mrf.mxu0  ;;  %9684 = vmatmul.msk.f32.gmra.mxu2 %vm909_vm3, %v4826_v30  ;;  %v9750_v8 = vld [vmem:[%s13579_s11 + $0x120] sm:$0xff] }
 0x46b   : > { %v5254_v21 = vld [vmem:[#allocation5 + $0x11] sm:$0xff]  ;;  %9708 = vmatmul.msk.f32.gmra.mxu3 %vm909_vm3, %v5101_v42  ;;  %v4760_v0 = vadd.f32 %v4720_v22, %v4610_v6  ;;  %5491 = vmatpush.msrb.mxu1 %v9750_v8 }
 0x46c   : > { %9731 = vmatmul.msk.f32.gmra.mxu0 %vm909_vm3, %v5254_v21 }
 0x46d   : > { %v4780_v56 = vadd.f32 %v11897_v51, %v4760_v0 }
 0x46e   : > { %v4423_v32 = vpop.f32.mrf.mxu2 }
 0x46f   : > { %v4796_v38 = vmax.f32 %v4780_v56, 0.0  ;;  %v4461_v59 = vadd.f32 %v4423_v32, %v4311_v35  ;;  %v4573_v24 = vpop.f32.mrf.mxu3  ;;  %v4276_v39 = vpop.f32.mrf.mxu1 }
 0x470   : > { %v4851_v25 = vld [vmem:[#allocation5 + $0x1f] sm:$0xff]  ;;  %v4312_v60 = vadd.f32 %v4276_v39, %v11641_v23  ;;  %v3849_v23 = vadd.f32 %v11655_v33, %v11645_v1  ;;  %v3852_v33 = vadd.f32 %v11670_v34, %v11659_v20 }
 0x471   : > { %v4827_v18 = vld [vmem:[#allocation5 + $0x1e] sm:$0xff]  ;;  %4812 = vst.msk [vmem:[#allocation5 + $0x28] sm:$0xff] %vm909_vm3, %v4796_v38  ;;  %v4611_v49 = vadd.f32 %v4573_v24, %v4461_v59  ;;  %9669 = vmatmul.msk.f32.gmra.mxu1 %vm909_vm3, %v4851_v25 }
 0x472   : > { %v5102_v55 = vld [vmem:[#allocation5 + $0x20] sm:$0xff]  ;;  %v4726_v44 = vpop.f32.mrf.mxu0  ;;  %9685 = vmatmul.msk.f32.gmra.mxu2 %vm909_vm3, %v4827_v18  ;;  %v4014_v38 = vadd.f32 %v11657_v3, %v3849_v23 }
 0x473   : > { %v5255_v22 = vld [vmem:[#allocation5 + $0x19] sm:$0xff]  ;;  %9709 = vmatmul.msk.f32.gmra.mxu3 %vm909_vm3, %v5102_v55  ;;  %v4761_v4 = vadd.f32 %v4723_v29, %v4611_v49 }
 0x474   : > { %9732 = vmatmul.msk.f32.gmra.mxu0 %vm909_vm3, %v5255_v22 }
 0x475   : > { %v4781_v61 = vadd.f32 %v11897_v51, %v4761_v4 }
 0x476   : > { %v4426_v14 = vpop.f32.mrf.mxu2 }
 0x477   : > { %v4797_v5 = vmax.f32 %v4781_v61, 0.0  ;;  %v4462_v57 = vadd.f32 %v4426_v14, %v4312_v60  ;;  %v4576_v10 = vpop.f32.mrf.mxu3  ;;  %v4279_v52 = vpop.f32.mrf.mxu1  ;;  %v4015_v14 = vadd.f32 %v11672_v7, %v3852_v33  ;;  %v3855_v7 = vadd.f32 %v11682_v26, %v11674_v17  ;;  %v9748_v26 = vld [vmem:[%s13579_s11 + $0x110] sm:$0xff] }
 0x478   : > { %v4852_v46 = vld [vmem:[#allocation5 + $0x27] sm:$0xff]  ;;  %v4313_v35 = vadd.f32 %v4279_v52, %v11651_v19 }
 0x479   : > { %v4828_v30 = vld [vmem:[#allocation5 + $0x26] sm:$0xff]  ;;  %4813 = vst.msk [vmem:[#allocation5 + $0x30] sm:$0xff] %vm909_vm3, %v4797_v5  ;;  %v4612_v6 = vadd.f32 %v4576_v10, %v4462_v57  ;;  %9670 = vmatmul.msk.f32.gmra.mxu1 %vm909_vm3, %v4852_v46 }
 0x47a   : > { %v5103_v42 = vld [vmem:[#allocation5 + $0x28] sm:$0xff]  ;;  %v4729_v21 = vpop.f32.mrf.mxu0  ;;  %9686 = vmatmul.msk.f32.gmra.mxu2 %vm909_vm3, %v4828_v30 }
 0x47b   : > { %v5256_v29 = vld [vmem:[#allocation5 + $0x21] sm:$0xff]  ;;  %9710 = vmatmul.msk.f32.gmra.mxu3 %vm909_vm3, %v5103_v42  ;;  %v4762_v0 = vadd.f32 %v4726_v44, %v4612_v6  ;;  %v4164_v44 = vadd.f32 %v11647_v40, %v4014_v38 }
 0x47c   : > { %9733 = vmatmul.msk.f32.gmra.mxu0 %vm909_vm3, %v5256_v29  ;;  %v9749_v19 = vld [vmem:[%s13579_s11 + $0x118] sm:$0xff] }
 0x47d   : > { %v4782_v56 = vadd.f32 %v11897_v51, %v4762_v0  ;;  %5492 = vmatpush.msrb.mxu1 %v9749_v19 }
 0x47e   : > { %v4429_v32 = vpop.f32.mrf.mxu2 }
 0x47f   : > { %v4798_v59 = vmax.f32 %v4782_v56, 0.0  ;;  %v4463_v24 = vadd.f32 %v4429_v32, %v4313_v35  ;;  %v4579_v39 = vpop.f32.mrf.mxu3  ;;  %v4282_v25 = vpop.f32.mrf.mxu1  ;;  %v4016_v56 = vadd.f32 %v11684_v12, %v3855_v7  ;;  %v3858_v12 = vadd.f32 %v11697_v41, %v11686_v27  ;;  %5493 = vmatpush.msrb.mxu1 %v9748_v26 }
 0x480   : > { %v4853_v18 = vld [vmem:[#allocation5 + $0x2f] sm:$0xff]  ;;  %v4314_v61 = vadd.f32 %v4282_v25, %v4164_v44 }
 0x481   : > { %v4829_v55 = vld [vmem:[#allocation5 + $0x2e] sm:$0xff]  ;;  %4814 = vst.msk [vmem:[#allocation5 + $0x38] sm:$0xff] %vm909_vm3, %v4798_v59  ;;  %v4613_v22 = vadd.f32 %v4579_v39, %v4463_v24  ;;  %9671 = vmatmul.msk.f32.gmra.mxu1 %vm909_vm3, %v4853_v18  ;;  %v4017_v19 = vadd.f32 %v11699_v36, %v3858_v12  ;;  %v3861_v36 = vadd.f32 %v11709_v54, %v11701_v37  ;;  %v9747_v37 = vld [vmem:[%s13579_s11 + $0x108] sm:$0xff] }
 0x482   : > { %v5104_v49 = vld [vmem:[#allocation5 + $0x30] sm:$0xff]  ;;  %v4732_v8 = vpop.f32.mrf.mxu0  ;;  %9687 = vmatmul.msk.f32.gmra.mxu2 %vm909_vm3, %v4829_v55  ;;  %v3864_v54 = vadd.f32 %v11739_v53, %v11713_v9  ;;  %5494 = vmatpush.msrb.mxu1 %v9747_v37 }
 0x483   : > { %v5257_v1 = vld [vmem:[#allocation5 + $0x29] sm:$0xff]  ;;  %9711 = vmatmul.msk.f32.gmra.mxu3 %vm909_vm3, %v5104_v49  ;;  %v4763_v3 = vadd.f32 %v4729_v21, %v4613_v22  ;;  %v4165_v21 = vadd.f32 %v11661_v48, %v4015_v14  ;;  %v4166_v49 = vadd.f32 %v11676_v45, %v4016_v56 }
 0x484   : > { %9734 = vmatmul.msk.f32.gmra.mxu0 %vm909_vm3, %v5257_v1  ;;  %v9746_v53 = vld [vmem:[%s13579_s11 + $0x100] sm:$0xff] }
 0x485   : > { %v4783_v4 = vadd.f32 %v11897_v51, %v4763_v3  ;;  %5495 = vmatpush.msrb.mxu1 %v9746_v53 }
 0x486   : > { %v4432_v60 = vpop.f32.mrf.mxu2 }
 0x487   : > { %v4799_v5 = vmax.f32 %v4783_v4, 0.0  ;;  %v4464_v57 = vadd.f32 %v4432_v60, %v4314_v61  ;;  %v4582_v10 = vpop.f32.mrf.mxu3  ;;  %v4285_v52 = vpop.f32.mrf.mxu1 }
 0x488   : > { %v4854_v46 = vld [vmem:[#allocation5 + $0x37] sm:$0xff]  ;;  %v4315_v23 = vadd.f32 %v4285_v52, %v4165_v21 }
 0x489   : > { %v4830_v30 = vld [vmem:[#allocation5 + $0x36] sm:$0xff]  ;;  %4815 = vst.msk [vmem:[#allocation5 + $0x40] sm:$0xff] %vm909_vm3, %v4799_v5  ;;  %v4614_v20 = vadd.f32 %v4582_v10, %v4464_v57  ;;  %9672 = vmatmul.msk.f32.gmra.mxu1 %vm909_vm3, %v4854_v46  ;;  %v4167_v57 = vadd.f32 %v11688_v28, %v4017_v19 }
 0x48a   : > { %v5105_v42 = vld [vmem:[#allocation5 + $0x38] sm:$0xff]  ;;  %v4735_v34 = vpop.f32.mrf.mxu0  ;;  %9688 = vmatmul.msk.f32.gmra.mxu2 %vm909_vm3, %v4830_v30  ;;  %v4018_v30 = vadd.f32 %v11711_v11, %v3861_v36 }
 0x48b   : > { %v5258_v40 = vld [vmem:[#allocation5 + $0x31] sm:$0xff]  ;;  %9712 = vmatmul.msk.f32.gmra.mxu3 %vm909_vm3, %v5105_v42  ;;  %v4764_v6 = vadd.f32 %v4732_v8, %v4614_v20 }
 0x48c   : > { %9735 = vmatmul.msk.f32.gmra.mxu0 %vm909_vm3, %v5258_v40 }
 0x48d   : > { %v4784_v29 = vadd.f32 %v11897_v51, %v4764_v6 }
 0x48e   : > { %v4435_v0 = vpop.f32.mrf.mxu2 }
 0x48f   : > { %v4800_v35 = vmax.f32 %v4784_v29, 0.0  ;;  %v4465_v32 = vadd.f32 %v4435_v0, %v4315_v23  ;;  %v4585_v38 = vpop.f32.mrf.mxu3  ;;  %v4288_v59 = vpop.f32.mrf.mxu1  ;;  %v4168_v23 = vadd.f32 %v11703_v58, %v4018_v30 }
 0x490   : > { %v4855_v24 = vld [vmem:[#allocation5 + $0x3f] sm:$0xff]  ;;  %v4316_v8 = vadd.f32 %v4288_v59, %v4166_v49 }
 0x491   : > { %v4831_v39 = vld [vmem:[#allocation5 + $0x3e] sm:$0xff]  ;;  %4816 = vst.msk [vmem:[#allocation5 + $0x48] sm:$0xff] %vm909_vm3, %v4800_v35  ;;  %v4615_v18 = vadd.f32 %v4585_v38, %v4465_v32  ;;  %9673 = vmatmul.msk.f32.gmra.mxu1 %vm909_vm3, %v4855_v24  ;;  %v4019_v38 = vadd.f32 %v11749_v47, %v3864_v54  ;;  %v3867_v47 = vadd.f32 %v11797_v63, %v11753_v31 }
 0x492   : > { %v5106_v25 = vld [vmem:[#allocation5 + $0x40] sm:$0xff]  ;;  %v4738_v17 = vpop.f32.mrf.mxu0  ;;  %9689 = vmatmul.msk.f32.gmra.mxu2 %vm909_vm3, %v4831_v39  ;;  %v3870_v63 = vadd.f32 %v11855_v2, %v11814_v62 }
 0x493   : > { %v5259_v48 = vld [vmem:[#allocation5 + $0x39] sm:$0xff]  ;;  %9713 = vmatmul.msk.f32.gmra.mxu3 %vm909_vm3, %v5106_v25  ;;  %v4765_v55 = vadd.f32 %v4735_v34, %v4615_v18  ;;  %v4169_v12 = vadd.f32 %v11717_v15, %v4019_v38  ;;  %v5636_v38 = vld [vmem:[%s13581_s0 + $0x38] sm:$0xff] }
 0x494   : > { %9736 = vmatmul.msk.f32.gmra.mxu0 %vm909_vm3, %v5259_v48  ;;  %v4021_v36 = vadd.f32 %v11859_v16, %v3870_v63  ;;  %5831 = vmatpush.msra.mxu3 %v5636_v38  ;;  %v5633_v63 = vld [vmem:[%s13581_s0 + $0x20] sm:$0xff] }
 0x495   : > { %v4785_v22 = vadd.f32 %v11897_v51, %v4765_v55 }
 0x496   : > { %v4438_v1 = vpop.f32.mrf.mxu2  ;;  %v4171_v16 = vadd.f32 %v11821_v43, %v4021_v36  ;;  %v9773_v36 = vld [vmem:[%s13581_s0 + $0x58] sm:$0xff] }
 0x497   : > { %v4801_v33 = vmax.f32 %v4785_v22, 0.0  ;;  %v4466_v3 = vadd.f32 %v4438_v1, %v4316_v8  ;;  %v4588_v44 = vpop.f32.mrf.mxu3  ;;  %v4291_v4 = vpop.f32.mrf.mxu1  ;;  %v4020_v1 = vadd.f32 %v11810_v50, %v3867_v47  ;;  %v9776_v47 = vld [vmem:[%s13581_s0 + $0x70] sm:$0xff] }
 0x498   : > { %v4856_v61 = vld [vmem:[#allocation5 + $0x47] sm:$0xff]  ;;  %v4317_v52 = vadd.f32 %v4291_v4, %v4167_v57 }
 0x499   : > { %v4832_v60 = vld [vmem:[#allocation5 + $0x46] sm:$0xff]  ;;  %4817 = vst.msk [vmem:[#allocation5 + $0x50] sm:$0xff] %vm909_vm3, %v4801_v33  ;;  %v4616_v27 = vadd.f32 %v4588_v44, %v4466_v3  ;;  %9674 = vmatmul.msk.f32.gmra.mxu1 %vm909_vm3, %v4856_v61 }
 0x49a   : > { %v5107_v14 = vld [vmem:[#allocation5 + $0x48] sm:$0xff]  ;;  %9690 = vmatmul.msk.f32.gmra.mxu2 %vm909_vm3, %v4832_v60  ;;  %v4741_v41 = vpop.f32.mrf.mxu0 }
 0x49b   : > { %v5260_v45 = vld [vmem:[#allocation5 + $0x41] sm:$0xff]  ;;  %9714 = vmatmul.msk.f32.gmra.mxu3 %vm909_vm3, %v5107_v14  ;;  %v4766_v5 = vadd.f32 %v4738_v17, %v4616_v27  ;;  %v4170_v14 = vadd.f32 %v11763_v13, %v4020_v1 }
 0x49c   : > { %9737 = vmatmul.msk.f32.gmra.mxu0 %vm909_vm3, %v5260_v45 }
 0x49d   : > { %v4786_v10 = vadd.f32 %v11897_v51, %v4766_v5 }
 0x49e   : > { %v4441_v46 = vpop.f32.mrf.mxu2 }
 0x49f   : > { %v4802_v42 = vmax.f32 %v4786_v10, 0.0  ;;  %v4467_v20 = vadd.f32 %v4441_v46, %v4317_v52  ;;  %v4591_v34 = vpop.f32.mrf.mxu3  ;;  %v4294_v40 = vpop.f32.mrf.mxu1 }
 0x4a0   : > { %v4857_v7 = vld [vmem:[#allocation5 + $0x4f] sm:$0xff]  ;;  %v4318_v35 = vadd.f32 %v4294_v40, %v4168_v23 }
 0x4a1   : > { %v4833_v6 = vld [vmem:[#allocation5 + $0x4e] sm:$0xff]  ;;  %4818 = vst.msk [vmem:[#allocation5 + $0x58] sm:$0xff] %vm909_vm3, %v4802_v42  ;;  %v4617_v29 = vadd.f32 %v4591_v34, %v4467_v20  ;;  %9675 = vmatmul.msk.f32.gmra.mxu1 %vm909_vm3, %v4857_v7 }
 0x4a2   : > { %v5108_v21 = vld [vmem:[#allocation5 + $0x50] sm:$0xff]  ;;  %9691 = vmatmul.msk.f32.gmra.mxu2 %vm909_vm3, %v4833_v6  ;;  %v4744_v0 = vpop.f32.mrf.mxu0 }
 0x4a3   : > { %v5261_v28 = vld [vmem:[#allocation5 + $0x49] sm:$0xff]  ;;  %9715 = vmatmul.msk.f32.gmra.mxu3 %vm909_vm3, %v5108_v21  ;;  %v4767_v11 = vadd.f32 %v4741_v41, %v4617_v29 }
 0x4a4   : > { %9738 = vmatmul.msk.f32.gmra.mxu0 %vm909_vm3, %v5261_v28 }
 0x4a5   : > { %v4787_v56 = vadd.f32 %v11897_v51, %v4767_v11 }
 0x4a6   : > { %v4444_v32 = vpop.f32.mrf.mxu2 }
 0x4a7   : > { %v4803_v59 = vmax.f32 %v4787_v56, 0.0  ;;  %v4468_v24 = vadd.f32 %v4444_v32, %v4318_v35  ;;  %v4594_v39 = vpop.f32.mrf.mxu3  ;;  %v4297_v25 = vpop.f32.mrf.mxu1  ;;  %v9777_v32 = vld [vmem:[%s13581_s0 + $0x78] sm:$0xff] }
 0x4a8   : > { %v4858_v18 = vld [vmem:[#allocation5 + $0x57] sm:$0xff]  ;;  %v4319_v49 = vadd.f32 %v4297_v25, %v4169_v12  ;;  %5718 = vmatpush.msra.mxu2 %v9777_v32  ;;  %v9817_v25 = vld [vmem:[%s13581_s0 + $0xb8] sm:$0xff] }
 0x4a9   : > { %v4834_v17 = vld [vmem:[#allocation5 + $0x56] sm:$0xff]  ;;  %4819 = vst.msk [vmem:[#allocation5 + $0x60] sm:$0xff] %vm909_vm3, %v4803_v59  ;;  %v4618_v9 = vadd.f32 %v4594_v39, %v4468_v24  ;;  %9676 = vmatmul.msk.f32.gmra.mxu1 %vm909_vm3, %v4858_v18  ;;  %5969 = vmatpush.msra.mxu0 %v9817_v25  ;;  %v5407_v12 = vld [vmem:[#allocation5 + $0xa] sm:$0xff] }
 0x4aa   : > { %v5109_v48 = vld [vmem:[#allocation5 + $0x58] sm:$0xff]  ;;  %9692 = vmatmul.msk.f32.gmra.mxu2 %vm909_vm3, %v4834_v17  ;;  %v4747_v22 = vpop.f32.mrf.mxu0  ;;  %v5629_v32 = vld [vmem:[%s13581_s0] sm:$0xff] }
 0x4ab   : > { %v5262_v58 = vld [vmem:[#allocation5 + $0x51] sm:$0xff]  ;;  %9716 = vmatmul.msk.f32.gmra.mxu3 %vm909_vm3, %v5109_v48  ;;  %v4768_v26 = vadd.f32 %v4744_v0, %v4618_v9  ;;  %5719 = vmatpush.msra.mxu2 %v9776_v47 }
 0x4ac   : > { %9739 = vmatmul.msk.f32.gmra.mxu0 %vm909_vm3, %v5262_v58  ;;  %v6097_v58 = vld [vmem:[%s13582_s9 + $0x18] sm:$0xff]  ;;  %s9076_s9 = scalar_lea.sflag [#allocation10], %s13432_s4 }
 0x4ad   : > { %v4788_v55 = vadd.f32 %v11897_v51, %v4768_v26  ;;  %6162 = vmatpush.msra.mxu1 %v6097_v58  ;;  %v5635_v26 = vld [vmem:[%s13581_s0 + $0x30] sm:$0xff] }
 0x4ae   : > { %v4447_v8 = vpop.f32.mrf.mxu2  ;;  %5832 = vmatpush.msra.mxu3 %v5635_v26 }
 0x4af   : > { %v4804_v19 = vmax.f32 %v4788_v55, 0.0  ;;  %v4469_v33 = vadd.f32 %v4447_v8, %v4319_v49  ;;  %v4597_v3 = vpop.f32.mrf.mxu3  ;;  %v4300_v44 = vpop.f32.mrf.mxu1  ;;  %v5408_v8 = vld [vmem:[#allocation5 + $0x12] sm:$0xff] }
 0x4b0   : > { %v4859_v4 = vld [vmem:[#allocation5 + $0x5f] sm:$0xff]  ;;  %v4320_v45 = vadd.f32 %v4300_v44, %v4170_v14 }
 0x4b1   : > { %v4835_v61 = vld [vmem:[#allocation5 + $0x5e] sm:$0xff]  ;;  %4820 = vst.msk [vmem:[#allocation5 + $0x68] sm:$0xff] %vm909_vm3, %v4804_v19  ;;  %v4619_v31 = vadd.f32 %v4597_v3, %v4469_v33  ;;  %9677 = vmatmul.msk.f32.gmra.mxu1 %vm909_vm3, %v4859_v4 }
 0x4b2   : > { %v5110_v60 = vld [vmem:[#allocation5 + $0x60] sm:$0xff]  ;;  %9693 = vmatmul.msk.f32.gmra.mxu2 %vm909_vm3, %v4835_v61  ;;  %v4750_v52 = vpop.f32.mrf.mxu0  ;;  %v9775_v19 = vld [vmem:[%s13581_s0 + $0x68] sm:$0xff] }
 0x4b3   : > { %v5263_v15 = vld [vmem:[#allocation5 + $0x59] sm:$0xff]  ;;  %9717 = vmatmul.msk.f32.gmra.mxu3 %vm909_vm3, %v5110_v60  ;;  %v4769_v50 = vadd.f32 %v4747_v22, %v4619_v31  ;;  %5720 = vmatpush.msra.mxu2 %v9775_v19  ;;  %v5410_v61 = vld [vmem:[#allocation5 + $0x22] sm:$0xff] }
 0x4b4   : > { %9740 = vmatmul.msk.f32.gmra.mxu0 %vm909_vm3, %v5263_v15  ;;  %v9816_v22 = vld [vmem:[%s13581_s0 + $0xb0] sm:$0xff]  ;;  %v5634_v33 = vld [vmem:[%s13581_s0 + $0x28] sm:$0xff]  ;;  %v9774_v15 = vld [vmem:[%s13581_s0 + $0x60] sm:$0xff] }
 0x4b5   : > { %v4789_v27 = vadd.f32 %v11897_v51, %v4769_v50  ;;  %5970 = vmatpush.msra.mxu0 %v9816_v22  ;;  %v5409_v3 = vld [vmem:[#allocation5 + $0x1a] sm:$0xff]  ;;  %5833 = vmatpush.msra.mxu3 %v5634_v33  ;;  %v5411_v50 = vld [vmem:[#allocation5 + $0x2a] sm:$0xff] }
 0x4b6   : > { %v4450_v41 = vpop.f32.mrf.mxu2  ;;  %v9815_v4 = vld [vmem:[%s13581_s0 + $0xa8] sm:$0xff]  ;;  %v6096_v60 = vld [vmem:[%s13583_s1 + $0x10] sm:$0xff]  ;;  %5721 = vmatpush.msra.mxu2 %v9774_v15 }
 0x4b7   : > { %v4805_v5 = vmax.f32 %v4789_v27, 0.0  ;;  %v4470_v57 = vadd.f32 %v4450_v41, %v4320_v45  ;;  %v4600_v10 = vpop.f32.mrf.mxu3  ;;  %v4303_v62 = vpop.f32.mrf.mxu1  ;;  %5971 = vmatpush.msra.mxu0 %v9815_v4  ;;  %6163 = vmatpush.msra.mxu1 %v6096_v60  ;;  %v9814_v27 = vld [vmem:[%s13581_s0 + $0xa0] sm:$0xff] }
 0x4b8   : > { %v4860_v46 = vld [vmem:[#allocation5 + $0x67] sm:$0xff]  ;;  %v4321_v40 = vadd.f32 %v4303_v62, %v4171_v16  ;;  %5834 = vmatpush.msra.mxu3 %v5633_v63  ;;  %v5412_v45 = vld [vmem:[#allocation5 + $0x32] sm:$0xff]  ;;  %5722 = vmatpush.msra.mxu2 %v9773_v36 }
 0x4b9   : > { %v4836_v30 = vld [vmem:[#allocation5 + $0x66] sm:$0xff]  ;;  %4821 = vst.msk [vmem:[#allocation5 + $0x70] sm:$0xff] %vm909_vm3, %v4805_v5  ;;  %v4620_v20 = vadd.f32 %v4600_v10, %v4470_v57  ;;  %9678 = vmatmul.msk.f32.gmra.mxu1 %vm909_vm3, %v4860_v46  ;;  %5972 = vmatpush.msra.mxu0 %v9814_v27  ;;  %v5413_v57 = vld [vmem:[#allocation5 + $0x3a] sm:$0xff] }
 0x4ba   : > { %v5111_v42 = vld [vmem:[#allocation5 + $0x68] sm:$0xff]  ;;  %9694 = vmatmul.msk.f32.gmra.mxu2 %vm909_vm3, %v4836_v30  ;;  %v4753_v0 = vpop.f32.mrf.mxu0  ;;  %v6095_v30 = vld [vmem:[%s13583_s1 + $0x8] sm:$0xff]  ;;  %v9812_v16 = vld [vmem:[%s13581_s0 + $0x90] sm:$0xff] }
 0x4bb   : > { %v5264_v13 = vld [vmem:[#allocation5 + $0x61] sm:$0xff]  ;;  %9718 = vmatmul.msk.f32.gmra.mxu3 %vm909_vm3, %v5111_v42  ;;  %v4770_v2 = vadd.f32 %v4750_v52, %v4620_v20  ;;  %6164 = vmatpush.msra.mxu1 %v6095_v30  ;;  %v5415_v62 = vld [vmem:[#allocation5 + $0x4a] sm:$0xff] }
 0x4bc   : > { %9741 = vmatmul.msk.f32.gmra.mxu0 %vm909_vm3, %v5264_v13  ;;  %v5632_v5 = vld [vmem:[%s13581_s0 + $0x18] sm:$0xff]  ;;  %v9772_v20 = vld [vmem:[%s13581_s0 + $0x50] sm:$0xff] }
 0x4bd   : > { %v4790_v34 = vadd.f32 %v11897_v51, %v4770_v2  ;;  %5835 = vmatpush.msra.mxu3 %v5632_v5  ;;  %v9813_v52 = vld [vmem:[%s13581_s0 + $0x98] sm:$0xff]  ;;  %v5631_v13 = vld [vmem:[%s13581_s0 + $0x10] sm:$0xff]  ;;  %5723 = vmatpush.msra.mxu2 %v9772_v20  ;;  %v6079_v20 = vld [vmem:[#allocation3 + $0x10] sm:$0xff] }
 0x4be   : > { %v4453_v7 = vpop.f32.mrf.mxu2  ;;  %v5414_v46 = vld [vmem:[#allocation5 + $0x42] sm:$0xff]  ;;  %5973 = vmatpush.msra.mxu0 %v9813_v52 }
 0x4bf   : > { %v4806_v6 = vmax.f32 %v4790_v34, 0.0  ;;  %v4471_v21 = vadd.f32 %v4453_v7, %v4321_v40  ;;  %v4603_v29 = vpop.f32.mrf.mxu3  ;;  %5836 = vmatpush.msra.mxu3 %v5631_v13  ;;  %v5416_v34 = vld [vmem:[#allocation5 + $0x52] sm:$0xff] }
 0x4c0   : > { %v4861_v28 = vld [vmem:[#allocation5 + $0x6f] sm:$0xff]  ;;  %5974 = vmatpush.msra.mxu0 %v9812_v16  ;;  %v9771_v7 = vld [vmem:[%s13581_s0 + $0x48] sm:$0xff] }
 0x4c1   : > { %v4837_v37 = vld [vmem:[#allocation5 + $0x6e] sm:$0xff]  ;;  %4822 = vst.msk [vmem:[#allocation5 + $0x78] sm:$0xff] %vm909_vm3, %v4806_v6  ;;  %v4621_v11 = vadd.f32 %v4603_v29, %v4471_v21  ;;  %9679 = vmatmul.msk.f32.gmra.mxu1 %vm909_vm3, %v4861_v28  ;;  %v5630_v6 = vld [vmem:[%s13581_s0 + $0x8] sm:$0xff]  ;;  %5724 = vmatpush.msra.mxu2 %v9771_v7 }
 0x4c2   : > { %v5112_v54 = vld [vmem:[#allocation5 + $0x70] sm:$0xff]  ;;  %9695 = vmatmul.msk.f32.gmra.mxu2 %vm909_vm3, %v4837_v37  ;;  %v5417_v21 = vld [vmem:[#allocation5 + $0x5a] sm:$0xff]  ;;  %5837 = vmatpush.msra.mxu3 %v5630_v6 }
 0x4c3   : > { %v5265_v23 = vld [vmem:[#allocation5 + $0x69] sm:$0xff]  ;;  %9719 = vmatmul.msk.f32.gmra.mxu3 %vm909_vm3, %v5112_v54  ;;  %v4771_v43 = vadd.f32 %v4753_v0, %v4621_v11  ;;  %v9811_v37 = vld [vmem:[%s13581_s0 + $0x88] sm:$0xff] }
 0x4c4   : > { %9742 = vmatmul.msk.f32.gmra.mxu0 %vm909_vm3, %v5265_v23  ;;  %v5418_v54 = vld [vmem:[#allocation5 + $0x62] sm:$0xff]  ;;  %v6094_v11 = vld [vmem:[%s13583_s1] sm:$0xff]  ;;  %5838 = vmatpush.msra.mxu3 %v5629_v32 }
 0x4c5   : > { %v4791_v56 = vadd.f32 %v11897_v51, %v4771_v43  ;;  %5975 = vmatpush.msra.mxu0 %v9811_v37  ;;  %6165 = vmatpush.msra.mxu1 %v6094_v11  ;;  %v5419_v38 = vld [vmem:[#allocation5 + $0x6a] sm:$0xff] }
 0x4c7   : > { %v4807_v35 = vmax.f32 %v4791_v56, 0.0 }
 0x4c8   : > { %v4862_v59 = vld [vmem:[#allocation5 + $0x77] sm:$0xff] }
 0x4c9   : > { %v4838_v24 = vld [vmem:[#allocation5 + $0x76] sm:$0xff]  ;;  %4823 = vst.msk [vmem:[#allocation5 + $0x80] sm:$0xff] %vm909_vm3, %v4807_v35  ;;  %9680 = vmatmul.msk.f32.gmra.mxu1 %vm909_vm3, %v4862_v59 }
 0x4ca   : > { %v5113_v39 = vld [vmem:[#allocation5 + $0x78] sm:$0xff]  ;;  %9696 = vmatmul.msk.f32.gmra.mxu2 %vm909_vm3, %v4838_v24  ;;  %v9770_v35 = vld [vmem:[%s13581_s0 + $0x40] sm:$0xff] }
 0x4cb   : > { %v5266_v51 = vld [vmem:[#allocation5 + $0x71] sm:$0xff]  ;;  %9720 = vmatmul.msk.f32.gmra.mxu3 %vm909_vm3, %v5113_v39  ;;  %5725 = vmatpush.msra.mxu2 %v9770_v35 }
 0x4cc   : > { %9743 = vmatmul.msk.f32.gmra.mxu0 %vm909_vm3, %v5266_v51  ;;  %v9810_v24 = vld [vmem:[%s13581_s0 + $0x80] sm:$0xff]  ;;  %s847_s0 = scalar_lea.vmem [#allocation9], %s13432_s4 }
 0x4cd   : > { %5976 = vmatpush.msra.mxu0 %v9810_v24 }
 0x4d0   : > { %v4863_v18 = vld [vmem:[#allocation5 + $0x7f] sm:$0xff] }
 0x4d1   : > { %v4839_v17 = vld [vmem:[#allocation5 + $0x7e] sm:$0xff]  ;;  %9681 = vmatmul.msk.f32.gmra.mxu1 %vm909_vm3, %v4863_v18  ;;  %v5420_v18 = vld [vmem:[#allocation5 + $0x72] sm:$0xff] }
 0x4d2   : > { %v5114_v48 = vld [vmem:[#allocation5 + $0x80] sm:$0xff]  ;;  %9697 = vmatmul.msk.f32.gmra.mxu2 %vm909_vm3, %v4839_v17 }
 0x4d3   : > { %v5267_v9 = vld [vmem:[#allocation5 + $0x79] sm:$0xff]  ;;  %9721 = vmatmul.msk.f32.gmra.mxu3 %vm909_vm3, %v5114_v48  ;;  %v5268_v55 = vld [vmem:[#allocation5 + $0x81] sm:$0xff] }
 0x4d4   : > { %9744 = vmatmul.msk.f32.gmra.mxu0 %vm909_vm3, %v5267_v9  ;;  %v5421_v9 = vld [vmem:[#allocation5 + $0x7a] sm:$0xff]  ;;  %v5422_v22 = vld [vmem:[#allocation5 + $0x82] sm:$0xff] }
 0x4d6   : > { %v12072_v53 = vpop.f32.mrf.mxu1 }
 0x4d9   : > { %9754 = vmatmul.msk.f32.vlgmr.msrb.gmra.mxu1 %vm909_vm3, %v5407_v12 }
 0x4dc   : > { %9745 = vmatmul.msk.f32.gmra.mxu0 %vm909_vm3, %v5268_v55 }
 0x4dd   : > { %v5051_v29 = vpop.f32.mrf.mxu2 }
 0x4de   : > { %v12082_v49 = vpop.f32.mrf.mxu1  ;;  %v5189_v23 = vpop.f32.mrf.mxu3  ;;  %v5052_v26 = vadd.f32 %v5051_v29, %v12072_v53  ;;  %v6078_v53 = vld [vmem:[#allocation3 + $0x8] sm:$0xff] }
 0x4df   : > { %v6286_v29 = vld [vmem:[%s13585_s6 + $0x38] sm:$0xff] }
 0x4e0   : > { %6481 = vmatpush.msrb.mxu3 %v6286_v29 }
 0x4e1   : > { %9755 = vmatmul.msk.f32.gmra.mxu1 %vm909_vm3, %v5408_v8  ;;  %v5343_v0 = vpop.f32.mrf.mxu0  ;;  %v5237_v8 = vadd.f32 %v5189_v23, %v5052_v26 }
 0x4e5   : > { %v5054_v43 = vpop.f32.mrf.mxu2 }
 0x4e6   : > { %v12088_v1 = vpop.f32.mrf.mxu1  ;;  %v5192_v59 = vpop.f32.mrf.mxu3  ;;  %v5055_v4 = vadd.f32 %v5054_v43, %v12082_v49 }
 0x4e8   : > { %v5238_v63 = vadd.f32 %v5192_v59, %v5055_v4 }
 0x4e9   : > { %9756 = vmatmul.msk.f32.gmra.mxu1 %vm909_vm3, %v5409_v3  ;;  %v5346_v51 = vpop.f32.mrf.mxu0  ;;  %v5391_v3 = vadd.f32 %v5343_v0, %v5237_v8  ;;  %v6080_v0 = vld [vmem:[#allocation3 + $0x18] sm:$0xff] }
 0x4ea   : > { %v5392_v36 = vadd.f32 %v5346_v51, %v5238_v63 }
 0x4ed   : > { %v5057_v25 = vpop.f32.mrf.mxu2 }
 0x4ee   : > { %v12097_v44 = vpop.f32.mrf.mxu1  ;;  %v5195_v17 = vpop.f32.mrf.mxu3  ;;  %v5058_v5 = vadd.f32 %v5057_v25, %v12088_v1  ;;  %v9897_v25 = vld [vmem:[%s13585_s6 + $0xb8] sm:$0xff] }
 0x4ef   : > { %6619 = vmatpush.msrb.mxu0 %v9897_v25 }
 0x4f0   : > { %v5239_v13 = vadd.f32 %v5195_v17, %v5058_v5 }
 0x4f1   : > { %9757 = vmatmul.msk.f32.gmra.mxu1 %vm909_vm3, %v5410_v61  ;;  %v5349_v58 = vpop.f32.mrf.mxu0  ;;  %v12198_v61 = vld [vmem:[%s13584_s17] ss:$0 sm:$0xff] }
 0x4f2   : > { %v5393_v6 = vadd.f32 %v5349_v58, %v5239_v13 }
 0x4f5   : > { %v5060_v47 = vpop.f32.mrf.mxu2 }
 0x4f6   : > { %v12106_v31 = vpop.f32.mrf.mxu1  ;;  %v5198_v55 = vpop.f32.mrf.mxu3 }
 0x4f9   : > { %9758 = vmatmul.msk.f32.gmra.mxu1 %vm909_vm3, %v5411_v50  ;;  %v5352_v19 = vpop.f32.mrf.mxu0 }
 0x4fd   : > { %v5063_v33 = vpop.f32.mrf.mxu2 }
 0x4fe   : > { %v12115_v14 = vpop.f32.mrf.mxu1  ;;  %v5201_v27 = vpop.f32.mrf.mxu3  ;;  %v5064_v51 = vadd.f32 %v5063_v33, %v12106_v31  ;;  %v9856_v31 = vld [vmem:[%s13585_s6 + $0x70] sm:$0xff] }
 0x500   : > { %v5241_v26 = vadd.f32 %v5201_v27, %v5064_v51 }
 0x501   : > { %9759 = vmatmul.msk.f32.gmra.mxu1 %vm909_vm3, %v5412_v45 }
 0x505   : > { %v5066_v49 = vpop.f32.mrf.mxu2 }
 0x506   : > { %v12121_v41 = vpop.f32.mrf.mxu1 }
 0x509   : > { %9760 = vmatmul.msk.f32.gmra.mxu1 %vm909_vm3, %v5413_v57  ;;  %v5355_v57 = vpop.f32.mrf.mxu0 }
 0x50d   : > { %v5069_v23 = vpop.f32.mrf.mxu2 }
 0x50e   : > { %v12130_v10 = vpop.f32.mrf.mxu1  ;;  %v5070_v13 = vadd.f32 %v5069_v23, %v12121_v41  ;;  %v9855_v41 = vld [vmem:[%s13585_s6 + $0x68] sm:$0xff] }
 0x511   : > { %9761 = vmatmul.msk.f32.gmra.mxu1 %vm909_vm3, %v5414_v46  ;;  %v9857_v46 = vld [vmem:[%s13585_s6 + $0x78] sm:$0xff] }
 0x512   : > { %6368 = vmatpush.msrb.mxu2 %v9857_v46 }
 0x514   : > { %6369 = vmatpush.msrb.mxu2 %v9856_v31 }
 0x515   : > { %v5072_v8 = vpop.f32.mrf.mxu2 }
 0x516   : > { %v12139_v42 = vpop.f32.mrf.mxu1  ;;  %6370 = vmatpush.msrb.mxu2 %v9855_v41 }
 0x519   : > { %9762 = vmatmul.msk.f32.gmra.mxu1 %vm909_vm3, %v5415_v62 }
 0x51e   : > { %v12148_v2 = vpop.f32.mrf.mxu1 }
 0x521   : > { %9763 = vmatmul.msk.f32.gmra.mxu1 %vm909_vm3, %v5416_v34  ;;  %v5204_v34 = vpop.f32.mrf.mxu3 }
 0x526   : > { %v12154_v40 = vpop.f32.mrf.mxu1 }
 0x529   : > { %9764 = vmatmul.msk.f32.gmra.mxu1 %vm909_vm3, %v5417_v21  ;;  %v5061_v21 = vadd.f32 %v5060_v47, %v12097_v44  ;;  %v5207_v17 = vpop.f32.mrf.mxu3  ;;  %v6081_v47 = vld [vmem:[#allocation3 + $0x20] sm:$0xff] }
 0x52b   : > { %v5240_v43 = vadd.f32 %v5198_v55, %v5061_v21 }
 0x52d   : > { %v5394_v24 = vadd.f32 %v5352_v19, %v5240_v43  ;;  %v5073_v43 = vadd.f32 %v5072_v8, %v12130_v10 }
 0x52e   : > { %v12163_v28 = vpop.f32.mrf.mxu1 }
 0x531   : > { %9765 = vmatmul.msk.f32.gmra.mxu1 %vm909_vm3, %v5418_v54  ;;  %v5358_v54 = vpop.f32.mrf.mxu0  ;;  %v5210_v27 = vpop.f32.mrf.mxu3 }
 0x532   : > { %v5244_v51 = vadd.f32 %v5210_v27, %v5073_v43 }
 0x536   : > { %v12172_v56 = vpop.f32.mrf.mxu1 }
 0x539   : > { %9766 = vmatmul.msk.f32.gmra.mxu1 %vm909_vm3, %v5419_v38  ;;  %v5361_v55 = vpop.f32.mrf.mxu0  ;;  %v5213_v29 = vpop.f32.mrf.mxu3 }
 0x53e   : > { %v12184_v39 = vpop.f32.mrf.mxu1 }
 0x541   : > { %9767 = vmatmul.msk.f32.gmra.mxu1 %vm909_vm3, %v5420_v18  ;;  %v9921_v18 = vld [vmem:[%s13585_s6 + $0xf8] sm:$0xff]  ;;  %v5364_v5 = vpop.f32.mrf.mxu0 }
 0x542   : > { %6773 = vmatpush.msrb.mxu1 %v9921_v18  ;;  %v5216_v18 = vpop.f32.mrf.mxu3 }
 0x546   : > { %v12187_v48 = vpop.f32.mrf.mxu1 }
 0x549   : > { %9768 = vmatmul.msk.f32.gmra.mxu1 %vm909_vm3, %v5421_v9 }
 0x54e   : > { %v12191_v12 = vpop.f32.mrf.mxu1 }
 0x551   : > { %9769 = vmatmul.msk.f32.gmra.mxu1 %vm909_vm3, %v5422_v22 }
 0x556   : > { %v5497_v60 = vpop.f32.mrf.mxu1 }
 0x557   : > { %v5545_v15 = vadd.f32 %v5497_v60, %v5391_v3  ;;  %v5395_v60 = vadd.f32 %v5355_v57, %v5241_v26  ;;  %v9895_v26 = vld [vmem:[%s13585_s6 + $0xa8] sm:$0xff] }
 0x559   : > { %v5565_v50 = vadd.f32 %v12198_v61, %v5545_v15  ;;  %9834 = vmatmul.msk.f32.vlgmr.msra.gmra.mxu1 %vm872_vm2, %v6078_v53  ;;  %v5067_v15 = vadd.f32 %v5066_v49, %v12115_v14  ;;  %v6285_v53 = vld [vmem:[%s13585_s6 + $0x30] sm:$0xff]  ;;  %v5075_v49 = vpop.f32.mrf.mxu2 }
 0x55a   : > { %6482 = vmatpush.msrb.mxu3 %v6285_v53 }
 0x55b   : > { %v5581_v45 = vmax.f32 %v5565_v50, 0.0 }
 0x55d   : > { %5597 = vst.msk [vmem:[#allocation6 + $0x8] sm:$0xff] %vm909_vm3, %v5581_v45  ;;  %v6082_v45 = vld [vmem:[#allocation3 + $0x28] sm:$0xff] }
 0x55e   : > { %v5500_v52 = vpop.f32.mrf.mxu1 }
 0x55f   : > { %v5546_v30 = vadd.f32 %v5500_v52, %v5392_v36  ;;  %v5242_v36 = vadd.f32 %v5204_v34, %v5067_v15 }
 0x561   : > { %v5566_v62 = vadd.f32 %v12198_v61, %v5546_v30  ;;  %9835 = vmatmul.msk.f32.gmra.mxu1 %vm872_vm2, %v6079_v20  ;;  %v5396_v20 = vadd.f32 %v5358_v54, %v5242_v36  ;;  %v6283_v36 = vld [vmem:[%s13585_s6 + $0x20] sm:$0xff] }
 0x563   : > { %v5582_v16 = vmax.f32 %v5566_v62, 0.0  ;;  %v9896_v62 = vld [vmem:[%s13585_s6 + $0xb0] sm:$0xff] }
 0x564   : > { %v5637_v1 = vld [vmem:[#allocation6 + $0x8] sm:$0xff]  ;;  %6620 = vmatpush.msrb.mxu0 %v9896_v62 }
 0x565   : > { %v5613_v7 = vld [vmem:[#allocation6 + $0x7] sm:$0xff]  ;;  %5598 = vst.msk [vmem:[#allocation6 + $0x10] sm:$0xff] %vm909_vm3, %v5582_v16  ;;  %9778 = vmatmul.msk.f32.vlgmr.msra.gmra.mxu2 %vm909_vm3, %v5637_v1  ;;  %v9920_v16 = vld [vmem:[%s13585_s6 + $0xf0] sm:$0xff] }
 0x566   : > { %9794 = vmatmul.msk.f32.vlgmr.msra.gmra.mxu3 %vm909_vm3, %v5613_v7  ;;  %v5503_v37 = vpop.f32.mrf.mxu1  ;;  %6774 = vmatpush.msrb.mxu1 %v9920_v16  ;;  %v6083_v7 = vld [vmem:[#allocation3 + $0x30] sm:$0xff] }
 0x567   : > { %v5547_v11 = vadd.f32 %v5503_v37, %v5393_v6  ;;  %v5243_v6 = vadd.f32 %v5207_v17, %v5070_v13  ;;  %6621 = vmatpush.msrb.mxu0 %v9895_v26 }
 0x569   : > { %v5567_v35 = vadd.f32 %v12198_v61, %v5547_v11  ;;  %9836 = vmatmul.msk.f32.gmra.mxu1 %vm872_vm2, %v6080_v0  ;;  %v5397_v0 = vadd.f32 %v5361_v55, %v5243_v6  ;;  %v9919_v55 = vld [vmem:[%s13585_s6 + $0xe8] sm:$0xff] }
 0x56a   : > { %6775 = vmatpush.msrb.mxu1 %v9919_v55 }
 0x56b   : > { %v5583_v44 = vmax.f32 %v5567_v35, 0.0  ;;  %v5367_v35 = vpop.f32.mrf.mxu0 }
 0x56c   : > { %v5638_v32 = vld [vmem:[#allocation6 + $0x10] sm:$0xff] }
 0x56d   : > { %v5614_v38 = vld [vmem:[#allocation6 + $0xf] sm:$0xff]  ;;  %5599 = vst.msk [vmem:[#allocation6 + $0x18] sm:$0xff] %vm909_vm3, %v5583_v44  ;;  %9779 = vmatmul.msk.f32.gmra.mxu2 %vm909_vm3, %v5638_v32  ;;  %v5078_v32 = vpop.f32.mrf.mxu2 }
 0x56e   : > { %v5888_v59 = vld [vmem:[#allocation6 + $0x9] sm:$0xff]  ;;  %9795 = vmatmul.msk.f32.gmra.mxu3 %vm909_vm3, %v5614_v38  ;;  %v5506_v9 = vpop.f32.mrf.mxu1 }
 0x56f   : > { %9818 = vmatmul.msk.f32.vlgmr.msra.gmra.mxu0 %vm909_vm3, %v5888_v59  ;;  %v5548_v58 = vadd.f32 %v5506_v9, %v5394_v24  ;;  %v6284_v44 = vld [vmem:[%s13585_s6 + $0x28] sm:$0xff] }
 0x570   : > { %6483 = vmatpush.msrb.mxu3 %v6284_v44  ;;  %v6084_v24 = vld [vmem:[#allocation3 + $0x38] sm:$0xff] }
 0x571   : > { %v5568_v22 = vadd.f32 %v12198_v61, %v5548_v58  ;;  %9837 = vmatmul.msk.f32.gmra.mxu1 %vm872_vm2, %v6081_v47  ;;  %v5398_v58 = vadd.f32 %v5364_v5, %v5244_v51  ;;  %v5076_v47 = vadd.f32 %v5075_v49, %v12139_v42  ;;  %v9854_v42 = vld [vmem:[%s13585_s6 + $0x60] sm:$0xff]  ;;  %v6086_v49 = vld [vmem:[#allocation3 + $0x48] sm:$0xff] }
 0x572   : > { %6371 = vmatpush.msrb.mxu2 %v9854_v42  ;;  %6484 = vmatpush.msrb.mxu3 %v6283_v36  ;;  %v9893_v42 = vld [vmem:[%s13585_s6 + $0x98] sm:$0xff] }
 0x573   : > { %v5584_v19 = vmax.f32 %v5568_v22, 0.0  ;;  %v5370_v8 = vpop.f32.mrf.mxu0 }
 0x574   : > { %v5639_v33 = vld [vmem:[#allocation6 + $0x18] sm:$0xff] }
 0x575   : > { %v5615_v3 = vld [vmem:[#allocation6 + $0x17] sm:$0xff]  ;;  %5600 = vst.msk [vmem:[#allocation6 + $0x20] sm:$0xff] %vm909_vm3, %v5584_v19  ;;  %9780 = vmatmul.msk.f32.gmra.mxu2 %vm909_vm3, %v5639_v33  ;;  %v5081_v33 = vpop.f32.mrf.mxu2 }
 0x576   : > { %v5889_v4 = vld [vmem:[#allocation6 + $0x11] sm:$0xff]  ;;  %9796 = vmatmul.msk.f32.gmra.mxu3 %vm909_vm3, %v5615_v3  ;;  %v5509_v63 = vpop.f32.mrf.mxu1  ;;  %v5082_v41 = vadd.f32 %v5081_v33, %v12154_v40 }
 0x577   : > { %9819 = vmatmul.msk.f32.gmra.mxu0 %vm909_vm3, %v5889_v4  ;;  %v5549_v50 = vadd.f32 %v5509_v63, %v5395_v60  ;;  %v6085_v3 = vld [vmem:[#allocation3 + $0x40] sm:$0xff]  ;;  %v5245_v4 = vadd.f32 %v5213_v29, %v5076_v47  ;;  %v9853_v40 = vld [vmem:[%s13585_s6 + $0x58] sm:$0xff] }
 0x578   : > { %6372 = vmatpush.msrb.mxu2 %v9853_v40 }
 0x579   : > { %v5569_v14 = vadd.f32 %v12198_v61, %v5549_v50  ;;  %9838 = vmatmul.msk.f32.gmra.mxu1 %vm872_vm2, %v6082_v45  ;;  %v5399_v27 = vadd.f32 %v5367_v35, %v5245_v4  ;;  %v5079_v45 = vadd.f32 %v5078_v32, %v12148_v2  ;;  %v6089_v4 = vld [vmem:[#allocation3 + $0x60] sm:$0xff] }
 0x57b   : > { %v5585_v57 = vmax.f32 %v5569_v14, 0.0  ;;  %v5219_v14 = vpop.f32.mrf.mxu3 }
 0x57c   : > { %v5640_v52 = vld [vmem:[#allocation6 + $0x20] sm:$0xff] }
 0x57d   : > { %v5616_v46 = vld [vmem:[#allocation6 + $0x1f] sm:$0xff]  ;;  %5601 = vst.msk [vmem:[#allocation6 + $0x28] sm:$0xff] %vm909_vm3, %v5585_v57  ;;  %9781 = vmatmul.msk.f32.gmra.mxu2 %vm909_vm3, %v5640_v52  ;;  %v5246_v52 = vadd.f32 %v5216_v18, %v5079_v45 }
 0x57e   : > { %v5890_v30 = vld [vmem:[#allocation6 + $0x19] sm:$0xff]  ;;  %9797 = vmatmul.msk.f32.gmra.mxu3 %vm909_vm3, %v5616_v46  ;;  %v5512_v34 = vpop.f32.mrf.mxu1  ;;  %v5373_v46 = vpop.f32.mrf.mxu0 }
 0x57f   : > { %9820 = vmatmul.msk.f32.gmra.mxu0 %vm909_vm3, %v5890_v30  ;;  %v5550_v1 = vadd.f32 %v5512_v34, %v5396_v20  ;;  %v5084_v30 = vpop.f32.mrf.mxu2  ;;  %v5400_v34 = vadd.f32 %v5370_v8, %v5246_v52  ;;  %v9917_v8 = vld [vmem:[%s13585_s6 + $0xd8] sm:$0xff]  ;;  %v9892_v52 = vld [vmem:[%s13585_s6 + $0x90] sm:$0xff] }
 0x581   : > { %v5570_v21 = vadd.f32 %v12198_v61, %v5550_v1  ;;  %9839 = vmatmul.msk.f32.gmra.mxu1 %vm872_vm2, %v6083_v7  ;;  %v9894_v1 = vld [vmem:[%s13585_s6 + $0xa0] sm:$0xff] }
 0x582   : > { %v9918_v7 = vld [vmem:[%s13585_s6 + $0xe0] sm:$0xff]  ;;  %6622 = vmatpush.msrb.mxu0 %v9894_v1 }
 0x583   : > { %v5586_v37 = vmax.f32 %v5570_v21, 0.0  ;;  %6776 = vmatpush.msrb.mxu1 %v9918_v7  ;;  %v5222_v29 = vpop.f32.mrf.mxu3 }
 0x584   : > { %v5641_v54 = vld [vmem:[#allocation6 + $0x28] sm:$0xff]  ;;  %6623 = vmatpush.msrb.mxu0 %v9893_v42 }
 0x585   : > { %v5617_v11 = vld [vmem:[#allocation6 + $0x27] sm:$0xff]  ;;  %5602 = vst.msk [vmem:[#allocation6 + $0x30] sm:$0xff] %vm909_vm3, %v5586_v37  ;;  %9782 = vmatmul.msk.f32.gmra.mxu2 %vm909_vm3, %v5641_v54  ;;  %v5247_v54 = vadd.f32 %v5219_v14, %v5082_v41  ;;  %6777 = vmatpush.msrb.mxu1 %v9917_v8  ;;  %v6093_v8 = vld [vmem:[#allocation3 + $0x80] sm:$0xff] }
 0x586   : > { %v5891_v23 = vld [vmem:[#allocation6 + $0x21] sm:$0xff]  ;;  %9798 = vmatmul.msk.f32.gmra.mxu3 %vm909_vm3, %v5617_v11  ;;  %v5515_v38 = vpop.f32.mrf.mxu1  ;;  %6624 = vmatpush.msrb.mxu0 %v9892_v52 }
 0x587   : > { %9821 = vmatmul.msk.f32.gmra.mxu0 %vm909_vm3, %v5891_v23  ;;  %v5551_v59 = vadd.f32 %v5515_v38, %v5397_v0  ;;  %v6087_v37 = vld [vmem:[#allocation3 + $0x50] sm:$0xff]  ;;  %v5376_v23 = vpop.f32.mrf.mxu0  ;;  %v5087_v43 = vpop.f32.mrf.mxu2  ;;  %v5401_v38 = vadd.f32 %v5373_v46, %v5247_v54 }
 0x588   : > { %v5088_v55 = vadd.f32 %v5087_v43, %v12172_v56  ;;  %v9852_v56 = vld [vmem:[%s13585_s6 + $0x50] sm:$0xff] }
 0x589   : > { %v5571_v10 = vadd.f32 %v12198_v61, %v5551_v59  ;;  %9840 = vmatmul.msk.f32.gmra.mxu1 %vm872_vm2, %v6084_v24  ;;  %v5085_v59 = vadd.f32 %v5084_v30, %v12163_v28  ;;  %v6282_v24 = vld [vmem:[%s13585_s6 + $0x18] sm:$0xff]  ;;  %6373 = vmatpush.msrb.mxu2 %v9852_v56 }
 0x58a   : > { %6485 = vmatpush.msrb.mxu3 %v6282_v24  ;;  %v6090_v30 = vld [vmem:[#allocation3 + $0x68] sm:$0xff] }
 0x58b   : > { %v5587_v25 = vmax.f32 %v5571_v10, 0.0  ;;  %v5248_v18 = vadd.f32 %v5222_v29, %v5085_v59  ;;  %v5225_v28 = vpop.f32.mrf.mxu3 }
 0x58c   : > { %v5642_v17 = vld [vmem:[#allocation6 + $0x30] sm:$0xff] }
 0x58d   : > { %v5618_v9 = vld [vmem:[#allocation6 + $0x2f] sm:$0xff]  ;;  %5603 = vst.msk [vmem:[#allocation6 + $0x38] sm:$0xff] %vm909_vm3, %v5587_v25  ;;  %9783 = vmatmul.msk.f32.gmra.mxu2 %vm909_vm3, %v5642_v17  ;;  %v5402_v26 = vadd.f32 %v5376_v23, %v5248_v18 }
 0x58e   : > { %v5892_v31 = vld [vmem:[#allocation6 + $0x29] sm:$0xff]  ;;  %9799 = vmatmul.msk.f32.gmra.mxu3 %vm909_vm3, %v5618_v9  ;;  %v5518_v22 = vpop.f32.mrf.mxu1 }
 0x58f   : > { %9822 = vmatmul.msk.f32.gmra.mxu0 %vm909_vm3, %v5892_v31  ;;  %v5552_v19 = vadd.f32 %v5518_v22, %v5398_v58  ;;  %v6088_v25 = vld [vmem:[#allocation3 + $0x58] sm:$0xff]  ;;  %v5379_v22 = vpop.f32.mrf.mxu0 }
 0x590   : > { %v6092_v18 = vld [vmem:[#allocation3 + $0x78] sm:$0xff] }
 0x591   : > { %v5572_v60 = vadd.f32 %v12198_v61, %v5552_v19  ;;  %9841 = vmatmul.msk.f32.gmra.mxu1 %vm872_vm2, %v6085_v3  ;;  %v5090_v19 = vpop.f32.mrf.mxu2 }
 0x592   : > { %v5091_v14 = vadd.f32 %v5090_v19, %v12184_v39  ;;  %v9916_v39 = vld [vmem:[%s13585_s6 + $0xd0] sm:$0xff] }
 0x593   : > { %v5588_v15 = vmax.f32 %v5572_v60, 0.0  ;;  %v5249_v60 = vadd.f32 %v5225_v28, %v5088_v55  ;;  %6778 = vmatpush.msrb.mxu1 %v9916_v39  ;;  %v9915_v28 = vld [vmem:[%s13585_s6 + $0xc8] sm:$0xff] }
 0x594   : > { %v5643_v53 = vld [vmem:[#allocation6 + $0x38] sm:$0xff] }
 0x595   : > { %v5619_v63 = vld [vmem:[#allocation6 + $0x37] sm:$0xff]  ;;  %5604 = vst.msk [vmem:[#allocation6 + $0x40] sm:$0xff] %vm909_vm3, %v5588_v15  ;;  %9784 = vmatmul.msk.f32.gmra.mxu2 %vm909_vm3, %v5643_v53  ;;  %v5403_v36 = vadd.f32 %v5379_v22, %v5249_v60  ;;  %6779 = vmatpush.msrb.mxu1 %v9915_v28 }
 0x596   : > { %v5893_v50 = vld [vmem:[#allocation6 + $0x31] sm:$0xff]  ;;  %9800 = vmatmul.msk.f32.gmra.mxu3 %vm909_vm3, %v5619_v63  ;;  %v5521_v5 = vpop.f32.mrf.mxu1  ;;  %v5228_v63 = vpop.f32.mrf.mxu3 }
 0x597   : > { %9823 = vmatmul.msk.f32.gmra.mxu0 %vm909_vm3, %v5893_v50  ;;  %v5553_v57 = vadd.f32 %v5521_v5, %v5399_v27  ;;  %v6281_v5 = vld [vmem:[%s13585_s6 + $0x10] sm:$0xff]  ;;  %v5382_v46 = vpop.f32.mrf.mxu0 }
 0x598   : > { %6486 = vmatpush.msrb.mxu3 %v6281_v5 }
 0x599   : > { %v5573_v2 = vadd.f32 %v12198_v61, %v5553_v57  ;;  %9842 = vmatmul.msk.f32.gmra.mxu1 %vm872_vm2, %v6086_v49 }
 0x59b   : > { %v5589_v20 = vmax.f32 %v5573_v2, 0.0  ;;  %v5093_v2 = vpop.f32.mrf.mxu2 }
 0x59c   : > { %v5644_v13 = vld [vmem:[#allocation6 + $0x40] sm:$0xff]  ;;  %v5094_v7 = vadd.f32 %v5093_v2, %v12187_v48  ;;  %v6280_v48 = vld [vmem:[%s13585_s6 + $0x8] sm:$0xff] }
 0x59d   : > { %v5620_v62 = vld [vmem:[#allocation6 + $0x3f] sm:$0xff]  ;;  %5605 = vst.msk [vmem:[#allocation6 + $0x48] sm:$0xff] %vm909_vm3, %v5589_v20  ;;  %9785 = vmatmul.msk.f32.gmra.mxu2 %vm909_vm3, %v5644_v13  ;;  %v5250_v20 = vadd.f32 %v5228_v63, %v5091_v14  ;;  %6487 = vmatpush.msrb.mxu3 %v6280_v48 }
 0x59e   : > { %v5894_v16 = vld [vmem:[#allocation6 + $0x39] sm:$0xff]  ;;  %9801 = vmatmul.msk.f32.gmra.mxu3 %vm909_vm3, %v5620_v62  ;;  %v5524_v6 = vpop.f32.mrf.mxu1 }
 0x59f   : > { %9824 = vmatmul.msk.f32.gmra.mxu0 %vm909_vm3, %v5894_v16  ;;  %v5554_v21 = vadd.f32 %v5524_v6, %v5400_v34  ;;  %v5404_v1 = vadd.f32 %v5382_v46, %v5250_v20  ;;  %v5231_v6 = vpop.f32.mrf.mxu3  ;;  %v5385_v23 = vpop.f32.mrf.mxu0  ;;  %v12415_v2 = vld [vmem:[%s13586_s18] ss:$0 sm:$0xff] }
 0x5a0   : > { %v5251_v54 = vadd.f32 %v5231_v6, %v5094_v7  ;;  %v12420_v20 = vld [vmem:[%s13509_s19] ss:$0 sm:$0xff] }
 0x5a1   : > { %v5574_v11 = vadd.f32 %v12198_v61, %v5554_v21  ;;  %9843 = vmatmul.msk.f32.gmra.mxu1 %vm872_vm2, %v6087_v37  ;;  %v9851_v21 = vld [vmem:[%s13585_s6 + $0x48] sm:$0xff]  ;;  %v6091_v37 = vld [vmem:[#allocation3 + $0x70] sm:$0xff] }
 0x5a2   : > { %6374 = vmatpush.msrb.mxu2 %v9851_v21 }
 0x5a3   : > { %v5590_v0 = vmax.f32 %v5574_v11, 0.0 }
 0x5a4   : > { %v5645_v35 = vld [vmem:[#allocation6 + $0x48] sm:$0xff] }
 0x5a5   : > { %v5621_v44 = vld [vmem:[#allocation6 + $0x47] sm:$0xff]  ;;  %5606 = vst.msk [vmem:[#allocation6 + $0x50] sm:$0xff] %vm909_vm3, %v5590_v0  ;;  %9786 = vmatmul.msk.f32.gmra.mxu2 %vm909_vm3, %v5645_v35  ;;  %v5096_v0 = vpop.f32.mrf.mxu2 }
 0x5a6   : > { %v5895_v32 = vld [vmem:[#allocation6 + $0x41] sm:$0xff]  ;;  %9802 = vmatmul.msk.f32.gmra.mxu3 %vm909_vm3, %v5621_v44  ;;  %v5527_v51 = vpop.f32.mrf.mxu1  ;;  %v5097_v59 = vadd.f32 %v5096_v0, %v12191_v12  ;;  %v9968_v0 = vld [vmem:[%s13585_s6 + $0x170] sm:$0xff] }
 0x5a7   : > { %9825 = vmatmul.msk.f32.gmra.mxu0 %vm909_vm3, %v5895_v32  ;;  %v5555_v10 = vadd.f32 %v5527_v51, %v5401_v38  ;;  %v5405_v38 = vadd.f32 %v5385_v23, %v5251_v54  ;;  %v9944_v23 = vld [vmem:[%s13585_s6 + $0x130] sm:$0xff] }
 0x5a9   : > { %v5575_v17 = vadd.f32 %v12198_v61, %v5555_v10  ;;  %9844 = vmatmul.msk.f32.gmra.mxu1 %vm872_vm2, %v6088_v25  ;;  %v9891_v10 = vld [vmem:[%s13585_s6 + $0x88] sm:$0xff]  ;;  %v5234_v25 = vpop.f32.mrf.mxu3 }
 0x5aa   : > { %6625 = vmatpush.msrb.mxu0 %v9891_v10 }
 0x5ab   : > { %v5591_v9 = vmax.f32 %v5575_v17, 0.0  ;;  %v5252_v17 = vadd.f32 %v5234_v25, %v5097_v59 }
 0x5ac   : > { %v5646_v31 = vld [vmem:[#allocation6 + $0x50] sm:$0xff] }
 0x5ad   : > { %v5622_v58 = vld [vmem:[#allocation6 + $0x4f] sm:$0xff]  ;;  %5607 = vst.msk [vmem:[#allocation6 + $0x58] sm:$0xff] %vm909_vm3, %v5591_v9  ;;  %9787 = vmatmul.msk.f32.gmra.mxu2 %vm909_vm3, %v5646_v31  ;;  %v5388_v31 = vpop.f32.mrf.mxu0 }
 0x5ae   : > { %v5896_v47 = vld [vmem:[#allocation6 + $0x49] sm:$0xff]  ;;  %9803 = vmatmul.msk.f32.gmra.mxu3 %vm909_vm3, %v5622_v58  ;;  %v5530_v33 = vpop.f32.mrf.mxu1  ;;  %v5406_v55 = vadd.f32 %v5388_v31, %v5252_v17 }
 0x5af   : > { %9826 = vmatmul.msk.f32.gmra.mxu0 %vm909_vm3, %v5896_v47  ;;  %v5556_v3 = vadd.f32 %v5530_v33, %v5402_v26  ;;  %v9992_v31 = vld [vmem:[%s13585_s6 + $0x1b0] sm:$0xff] }
 0x5b1   : > { %v5576_v15 = vadd.f32 %v12198_v61, %v5556_v3  ;;  %9845 = vmatmul.msk.f32.gmra.mxu1 %vm872_vm2, %v6089_v4 }
 0x5b3   : > { %v5592_v53 = vmax.f32 %v5576_v15, 0.0  ;;  %v9850_v15 = vld [vmem:[%s13585_s6 + $0x40] sm:$0xff] }
 0x5b4   : > { %v5647_v50 = vld [vmem:[#allocation6 + $0x58] sm:$0xff]  ;;  %6375 = vmatpush.msrb.mxu2 %v9850_v15 }
 0x5b5   : > { %v5623_v27 = vld [vmem:[#allocation6 + $0x57] sm:$0xff]  ;;  %5608 = vst.msk [vmem:[#allocation6 + $0x60] sm:$0xff] %vm909_vm3, %v5592_v53  ;;  %9788 = vmatmul.msk.f32.gmra.mxu2 %vm909_vm3, %v5647_v50 }
 0x5b6   : > { %v5897_v45 = vld [vmem:[#allocation6 + $0x51] sm:$0xff]  ;;  %9804 = vmatmul.msk.f32.gmra.mxu3 %vm909_vm3, %v5623_v27  ;;  %v5533_v57 = vpop.f32.mrf.mxu1 }
 0x5b7   : > { %9827 = vmatmul.msk.f32.gmra.mxu0 %vm909_vm3, %v5897_v45  ;;  %v5557_v49 = vadd.f32 %v5533_v57, %v5403_v36  ;;  %v9890_v45 = vld [vmem:[%s13585_s6 + $0x80] sm:$0xff]  ;;  %v9945_v57 = vld [vmem:[%s13585_s6 + $0x138] sm:$0xff] }
 0x5b8   : > { %v9914_v36 = vld [vmem:[%s13585_s6 + $0xc0] sm:$0xff]  ;;  %6626 = vmatpush.msrb.mxu0 %v9890_v45  ;;  %6927 = vmatpush.msra.mxu2 %v9945_v57 }
 0x5b9   : > { %v5577_v13 = vadd.f32 %v12198_v61, %v5557_v49  ;;  %9846 = vmatmul.msk.f32.gmra.mxu1 %vm872_vm2, %v6090_v30  ;;  %v9969_v49 = vld [vmem:[%s13585_s6 + $0x178] sm:$0xff] }
 0x5ba   : > { %6780 = vmatpush.msrb.mxu1 %v9914_v36  ;;  %6928 = vmatpush.msra.mxu2 %v9944_v23 }
 0x5bb   : > { %v5593_v62 = vmax.f32 %v5577_v13, 0.0 }
 0x5bc   : > { %v5648_v16 = vld [vmem:[#allocation6 + $0x60] sm:$0xff] }
 0x5bd   : > { %v5624_v34 = vld [vmem:[#allocation6 + $0x5f] sm:$0xff]  ;;  %5609 = vst.msk [vmem:[#allocation6 + $0x68] sm:$0xff] %vm909_vm3, %v5593_v62  ;;  %9789 = vmatmul.msk.f32.gmra.mxu2 %vm909_vm3, %v5648_v16 }
 0x5be   : > { %v5898_v41 = vld [vmem:[#allocation6 + $0x59] sm:$0xff]  ;;  %9805 = vmatmul.msk.f32.gmra.mxu3 %vm909_vm3, %v5624_v34  ;;  %v5536_v40 = vpop.f32.mrf.mxu1 }
 0x5bf   : > { %9828 = vmatmul.msk.f32.gmra.mxu0 %vm909_vm3, %v5898_v41  ;;  %v5558_v29 = vadd.f32 %v5536_v40, %v5404_v1  ;;  %v9993_v34 = vld [vmem:[%s13585_s6 + $0x1b8] sm:$0xff] }
 0x5c0   : > { %v10017_v41 = vld [vmem:[%s13585_s6 + $0x1f8] sm:$0xff]  ;;  %7235 = vmatpush.msra.mxu0 %v9993_v34 }
 0x5c1   : > { %v5578_v11 = vadd.f32 %v12198_v61, %v5558_v29  ;;  %9847 = vmatmul.msk.f32.gmra.mxu1 %vm872_vm2, %v6091_v37 }
 0x5c2   : > { %7389 = vmatpush.msra.mxu1 %v10017_v41  ;;  %7236 = vmatpush.msra.mxu0 %v9992_v31  ;;  %v9991_v41 = vld [vmem:[%s13585_s6 + $0x1a8] sm:$0xff] }
 0x5c3   : > { %v5594_v43 = vmax.f32 %v5578_v11, 0.0 }
 0x5c4   : > { %v5649_v35 = vld [vmem:[#allocation6 + $0x68] sm:$0xff]  ;;  %7237 = vmatpush.msra.mxu0 %v9991_v41 }
 0x5c5   : > { %v5625_v44 = vld [vmem:[#allocation6 + $0x67] sm:$0xff]  ;;  %5610 = vst.msk [vmem:[#allocation6 + $0x70] sm:$0xff] %vm909_vm3, %v5594_v43  ;;  %9790 = vmatmul.msk.f32.gmra.mxu2 %vm909_vm3, %v5649_v35 }
 0x5c6   : > { %v5899_v32 = vld [vmem:[#allocation6 + $0x61] sm:$0xff]  ;;  %9806 = vmatmul.msk.f32.gmra.mxu3 %vm909_vm3, %v5625_v44  ;;  %v5539_v24 = vpop.f32.mrf.mxu1 }
 0x5c7   : > { %9829 = vmatmul.msk.f32.gmra.mxu0 %vm909_vm3, %v5899_v32  ;;  %v5559_v51 = vadd.f32 %v5539_v24, %v5405_v38 }
 0x5c9   : > { %v5579_v12 = vadd.f32 %v12198_v61, %v5559_v51  ;;  %9848 = vmatmul.msk.f32.gmra.mxu1 %vm872_vm2, %v6092_v18 }
 0x5cb   : > { %v5595_v9 = vmax.f32 %v5579_v12, 0.0 }
 0x5cc   : > { %v5650_v58 = vld [vmem:[#allocation6 + $0x70] sm:$0xff] }
 0x5cd   : > { %v5626_v47 = vld [vmem:[#allocation6 + $0x6f] sm:$0xff]  ;;  %5611 = vst.msk [vmem:[#allocation6 + $0x78] sm:$0xff] %vm909_vm3, %v5595_v9  ;;  %9791 = vmatmul.msk.f32.gmra.mxu2 %vm909_vm3, %v5650_v58 }
 0x5ce   : > { %v5900_v26 = vld [vmem:[#allocation6 + $0x69] sm:$0xff]  ;;  %9807 = vmatmul.msk.f32.gmra.mxu3 %vm909_vm3, %v5626_v47  ;;  %v5542_v22 = vpop.f32.mrf.mxu1 }
 0x5cf   : > { %9830 = vmatmul.msk.f32.gmra.mxu0 %vm909_vm3, %v5900_v26  ;;  %v5560_v42 = vadd.f32 %v5542_v22, %v5406_v55  ;;  %v10016_v58 = vld [vmem:[%s13585_s6 + $0x1f0] sm:$0xff] }
 0x5d0   : > { %7390 = vmatpush.msra.mxu1 %v10016_v58 }
 0x5d1   : > { %v5580_v19 = vadd.f32 %v12198_v61, %v5560_v42  ;;  %9849 = vmatmul.msk.f32.gmra.mxu1 %vm872_vm2, %v6093_v8  ;;  %v6279_v61 = vld [vmem:[%s13585_s6] sm:$0xff]  ;;  %vm9017_vm2 = vcmask 982912  }
 0x5d2   : > { %6488 = vmatpush.msrb.mxu3 %v6279_v61 }
 0x5d3   : > { %v5596_v33 = vmax.f32 %v5580_v19, 0.0 }
 0x5d4   : > { %v5651_v56 = vld [vmem:[#allocation6 + $0x78] sm:$0xff]  ;;  %7081 = vmatpush.msra.mxu3 %v9969_v49 }
 0x5d5   : > { %v5627_v3 = vld [vmem:[#allocation6 + $0x77] sm:$0xff]  ;;  %5612 = vst.msk [vmem:[#allocation6 + $0x80] sm:$0xff] %vm909_vm3, %v5596_v33  ;;  %9792 = vmatmul.msk.f32.gmra.mxu2 %vm909_vm3, %v5651_v56 }
 0x5d6   : > { %v5901_v4 = vld [vmem:[#allocation6 + $0x71] sm:$0xff]  ;;  %9808 = vmatmul.msk.f32.gmra.mxu3 %vm909_vm3, %v5627_v3  ;;  %v6167_v60 = vpop.f32.mrf.mxu1 }
 0x5d7   : > { %9831 = vmatmul.msk.f32.gmra.mxu0 %vm909_vm3, %v5901_v4  ;;  %v6168_v1 = vadd.f32 %v12420_v20, %v6167_v60  ;;  %7082 = vmatpush.msra.mxu3 %v9968_v0 }
 0x5dc   : > { %v5652_v53 = vld [vmem:[#allocation6 + $0x80] sm:$0xff] }
 0x5dd   : > { %v5628_v63 = vld [vmem:[#allocation6 + $0x7f] sm:$0xff]  ;;  %9793 = vmatmul.msk.f32.gmra.mxu2 %vm909_vm3, %v5652_v53 }
 0x5de   : > { %v5902_v50 = vld [vmem:[#allocation6 + $0x79] sm:$0xff]  ;;  %9809 = vmatmul.msk.f32.gmra.mxu3 %vm909_vm3, %v5628_v63  ;;  %v6170_v27 = vpop.f32.mrf.mxu1  ;;  %v5903_v14 = vld [vmem:[#allocation6 + $0x81] sm:$0xff] }
 0x5df   : > { %9832 = vmatmul.msk.f32.gmra.mxu0 %vm909_vm3, %v5902_v50  ;;  %v6171_v35 = vadd.f32 %v12420_v20, %v6170_v27  ;;  %v9943_v63 = vld [vmem:[%s13585_s6 + $0x128] sm:$0xff] }
 0x5e0   : > { %v9967_v50 = vld [vmem:[%s13585_s6 + $0x168] sm:$0xff]  ;;  %6929 = vmatpush.msra.mxu2 %v9943_v63 }
 0x5e1   : > { %7083 = vmatpush.msra.mxu3 %v9967_v50 }
 0x5e6   : > { %v6173_v5 = vpop.f32.mrf.mxu1 }
 0x5e7   : > { %9833 = vmatmul.msk.f32.gmra.mxu0 %vm909_vm3, %v5903_v14  ;;  %v6174_v47 = vadd.f32 %v12420_v20, %v6173_v5 }
 0x5e8   : > { %v5727_v52 = vpop.f32.mrf.mxu2 }
 0x5e9   : > { %v5840_v39 = vpop.f32.mrf.mxu3 }
 0x5ea   : > { %v5841_v46 = vadd.f32 %v5840_v39, %v5727_v52 }
 0x5ec   : > { %v5978_v30 = vpop.f32.mrf.mxu0 }
 0x5ed   : > { %v6026_v13 = vadd.f32 %v5978_v30, %v5841_v46 }
 0x5ee   : > { %v12423_v16 = vpop.f32.mrf.mxu1 }
 0x5ef   : > { %v6046_v62 = vadd.f32 %v12415_v2, %v6026_v13  ;;  %v6177_v27 = vadd.f32 %v12420_v20, %v12423_v16 }
 0x5f0   : > { %v5730_v6 = vpop.f32.mrf.mxu2 }
 0x5f1   : > { %v6062_v7 = vmax.f32 %v6046_v62, 0.0  ;;  %v5843_v40 = vpop.f32.mrf.mxu3 }
 0x5f2   : > { %v5844_v21 = vadd.f32 %v5843_v40, %v5730_v6 }
 0x5f3   : > { %v6215_v29 = vadd.f32 %v6168_v1, %v6062_v7  ;;  %v10015_v1 = vld [vmem:[%s13585_s6 + $0x1e8] sm:$0xff] }
 0x5f4   : > { %v5981_v48 = vpop.f32.mrf.mxu0  ;;  %7391 = vmatpush.msra.mxu1 %v10015_v1 }
 0x5f5   : > { %v6231_v37 = vmax.f32 %v6215_v29, 0.0  ;;  %v6027_v54 = vadd.f32 %v5981_v48, %v5844_v21 }
 0x5f6   : > { %v12440_v43 = vpop.f32.mrf.mxu1 }
 0x5f7   : > { %6247 = vst.msk [vmem:[#allocation5 + $0x8] sm:$0xff] %vm909_vm3, %v6231_v37  ;;  %v6047_v11 = vadd.f32 %v12415_v2, %v6027_v54  ;;  %v6180_v7 = vadd.f32 %v12420_v20, %v12440_v43 }
 0x5f8   : > { %v5733_v32 = vpop.f32.mrf.mxu2 }
 0x5f9   : > { %v6063_v44 = vmax.f32 %v6047_v11, 0.0  ;;  %v5846_v38 = vpop.f32.mrf.mxu3 }
 0x5fa   : > { %v5847_v59 = vadd.f32 %v5846_v38, %v5733_v32  ;;  %v9942_v38 = vld [vmem:[%s13585_s6 + $0x120] sm:$0xff] }
 0x5fb   : > { %v6216_v24 = vadd.f32 %v6171_v35, %v6063_v44  ;;  %6930 = vmatpush.msra.mxu2 %v9942_v38 }
 0x5fc   : > { %v5984_v51 = vpop.f32.mrf.mxu0 }
 0x5fd   : > { %v6232_v10 = vmax.f32 %v6216_v24, 0.0  ;;  %v6028_v25 = vadd.f32 %v5984_v51, %v5847_v59  ;;  %v9966_v59 = vld [vmem:[%s13585_s6 + $0x160] sm:$0xff] }
 0x5fe   : > { %v6287_v18 = vld [vmem:[#allocation5 + $0x6] sm:$0xff]  ;;  %v12456_v42 = vpop.f32.mrf.mxu1  ;;  %7084 = vmatpush.msra.mxu3 %v9966_v59 }
 0x5ff   : > { %v6263_v17 = vld [vmem:[#allocation5 + $0x5] sm:$0xff]  ;;  %6248 = vst.msk [vmem:[#allocation5 + $0x10] sm:$0xff] %vm909_vm3, %v6232_v10  ;;  %v6048_v28 = vadd.f32 %v12415_v2, %v6028_v25  ;;  %9858 = vmatmul.msk.f32.vlgmr.msrb.gmra.mxu2 %vm909_vm3, %v6287_v18  ;;  %v6183_v24 = vadd.f32 %v12420_v20, %v12456_v42  ;;  %v10014_v42 = vld [vmem:[%s13585_s6 + $0x1e0] sm:$0xff] }
 0x600   : > { %v6538_v12 = vld [vmem:[#allocation5 + $0x7] sm:$0xff]  ;;  %9874 = vmatmul.msk.f32.vlgmr.msrb.gmra.mxu3 %vm909_vm3, %v6263_v17  ;;  %v5736_v55 = vpop.f32.mrf.mxu2  ;;  %7392 = vmatpush.msra.mxu1 %v10014_v42 }
 0x601   : > { %v6692_v9 = vld [vmem:[#allocation5 + $0x8] sm:$0xff]  ;;  %9898 = vmatmul.msk.f32.vlgmr.msrb.gmra.mxu0 %vm909_vm3, %v6538_v12  ;;  %v6064_v26 = vmax.f32 %v6048_v28, 0.0  ;;  %v5849_v22 = vpop.f32.mrf.mxu3 }
 0x602   : > { %9922 = vmatmul.msk.f32.vlgmr.msrb.gmra.mxu1 %vm909_vm3, %v6692_v9  ;;  %v5850_v8 = vadd.f32 %v5849_v22, %v5736_v55  ;;  %v9990_v22 = vld [vmem:[%s13585_s6 + $0x1a0] sm:$0xff] }
 0x603   : > { %v6217_v19 = vadd.f32 %v6174_v47, %v6064_v26  ;;  %7238 = vmatpush.msra.mxu0 %v9990_v22 }
 0x604   : > { %v5987_v33 = vpop.f32.mrf.mxu0 }
 0x605   : > { %v6233_v56 = vmax.f32 %v6217_v19, 0.0  ;;  %v6029_v3 = vadd.f32 %v5987_v33, %v5850_v8 }
 0x606   : > { %v6288_v4 = vld [vmem:[#allocation5 + $0xe] sm:$0xff]  ;;  %v12472_v49 = vpop.f32.mrf.mxu1 }
 0x607   : > { %v6264_v60 = vld [vmem:[#allocation5 + $0xd] sm:$0xff]  ;;  %6249 = vst.msk [vmem:[#allocation5 + $0x18] sm:$0xff] %vm909_vm3, %v6233_v56  ;;  %v6049_v61 = vadd.f32 %v12415_v2, %v6029_v3  ;;  %9859 = vmatmul.msk.f32.gmra.mxu2 %vm909_vm3, %v6288_v4  ;;  %v6186_v19 = vadd.f32 %v12420_v20, %v12472_v49 }
 0x608   : > { %v6539_v15 = vld [vmem:[#allocation5 + $0xf] sm:$0xff]  ;;  %9875 = vmatmul.msk.f32.gmra.mxu3 %vm909_vm3, %v6264_v60  ;;  %v5739_v36 = vpop.f32.mrf.mxu2 }
 0x609   : > { %v6693_v53 = vld [vmem:[#allocation5 + $0x10] sm:$0xff]  ;;  %9899 = vmatmul.msk.f32.gmra.mxu0 %vm909_vm3, %v6539_v15  ;;  %v6065_v45 = vmax.f32 %v6049_v61, 0.0  ;;  %v5852_v14 = vpop.f32.mrf.mxu3 }
 0x60a   : > { %9923 = vmatmul.msk.f32.gmra.mxu1 %vm909_vm3, %v6693_v53  ;;  %v5853_v5 = vadd.f32 %v5852_v14, %v5739_v36  ;;  %v9941_v14 = vld [vmem:[%s13585_s6 + $0x118] sm:$0xff] }
 0x60b   : > { %v6218_v57 = vadd.f32 %v6177_v27, %v6065_v45  ;;  %6931 = vmatpush.msra.mxu2 %v9941_v14 }
 0x60c   : > { %v5990_v52 = vpop.f32.mrf.mxu0 }
 0x60d   : > { %v6234_v39 = vmax.f32 %v6218_v57, 0.0  ;;  %v6030_v46 = vadd.f32 %v5990_v52, %v5853_v5  ;;  %v9965_v5 = vld [vmem:[%s13585_s6 + $0x158] sm:$0xff] }
 0x60e   : > { %v6289_v30 = vld [vmem:[#allocation5 + $0x16] sm:$0xff]  ;;  %v6188_v23 = vpop.f32.mrf.mxu1  ;;  %7085 = vmatpush.msra.mxu3 %v9965_v5 }
 0x60f   : > { %v6265_v13 = vld [vmem:[#allocation5 + $0x15] sm:$0xff]  ;;  %6250 = vst.msk [vmem:[#allocation5 + $0x20] sm:$0xff] %vm909_vm3, %v6234_v39  ;;  %v6050_v34 = vadd.f32 %v12415_v2, %v6030_v46  ;;  %9860 = vmatmul.msk.f32.gmra.mxu2 %vm909_vm3, %v6289_v30  ;;  %v6189_v57 = vadd.f32 %v12420_v20, %v6188_v23 }
 0x610   : > { %v6540_v62 = vld [vmem:[#allocation5 + $0x17] sm:$0xff]  ;;  %9876 = vmatmul.msk.f32.gmra.mxu3 %vm909_vm3, %v6265_v13  ;;  %v5742_v40 = vpop.f32.mrf.mxu2 }
 0x611   : > { %v6694_v16 = vld [vmem:[#allocation5 + $0x18] sm:$0xff]  ;;  %9900 = vmatmul.msk.f32.gmra.mxu0 %vm909_vm3, %v6540_v62  ;;  %v6066_v6 = vmax.f32 %v6050_v34, 0.0  ;;  %v5855_v21 = vpop.f32.mrf.mxu3 }
 0x612   : > { %9924 = vmatmul.msk.f32.gmra.mxu1 %vm909_vm3, %v6694_v16  ;;  %v5856_v29 = vadd.f32 %v5855_v21, %v5742_v40  ;;  %v9989_v21 = vld [vmem:[%s13585_s6 + $0x198] sm:$0xff] }
 0x613   : > { %v6219_v48 = vadd.f32 %v6180_v7, %v6066_v6  ;;  %7239 = vmatpush.msra.mxu0 %v9989_v21 }
 0x614   : > { %v5993_v37 = vpop.f32.mrf.mxu0 }
 0x615   : > { %v6235_v54 = vmax.f32 %v6219_v48, 0.0  ;;  %v6031_v11 = vadd.f32 %v5993_v37, %v5856_v29  ;;  %v10013_v29 = vld [vmem:[%s13585_s6 + $0x1d8] sm:$0xff] }
 0x616   : > { %v6290_v0 = vld [vmem:[#allocation5 + $0x1e] sm:$0xff]  ;;  %v6191_v8 = vpop.f32.mrf.mxu1  ;;  %7393 = vmatpush.msra.mxu1 %v10013_v29 }
 0x617   : > { %v6266_v35 = vld [vmem:[#allocation5 + $0x1d] sm:$0xff]  ;;  %6251 = vst.msk [vmem:[#allocation5 + $0x28] sm:$0xff] %vm909_vm3, %v6235_v54  ;;  %v6051_v32 = vadd.f32 %v12415_v2, %v6031_v11  ;;  %9861 = vmatmul.msk.f32.gmra.mxu2 %vm909_vm3, %v6290_v0  ;;  %v6192_v48 = vadd.f32 %v12420_v20, %v6191_v8 }
 0x618   : > { %v6541_v44 = vld [vmem:[#allocation5 + $0x1f] sm:$0xff]  ;;  %9877 = vmatmul.msk.f32.gmra.mxu3 %vm909_vm3, %v6266_v35  ;;  %v5745_v10 = vpop.f32.mrf.mxu2 }
 0x619   : > { %v6695_v43 = vld [vmem:[#allocation5 + $0x20] sm:$0xff]  ;;  %9901 = vmatmul.msk.f32.gmra.mxu0 %vm909_vm3, %v6541_v44  ;;  %v6067_v51 = vmax.f32 %v6051_v32, 0.0  ;;  %v5858_v25 = vpop.f32.mrf.mxu3 }
 0x61a   : > { %9925 = vmatmul.msk.f32.gmra.mxu1 %vm909_vm3, %v6695_v43  ;;  %v5859_v18 = vadd.f32 %v5858_v25, %v5745_v10  ;;  %v9940_v25 = vld [vmem:[%s13585_s6 + $0x110] sm:$0xff] }
 0x61b   : > { %v6220_v17 = vadd.f32 %v6183_v24, %v6067_v51  ;;  %6932 = vmatpush.msra.mxu2 %v9940_v25 }
 0x61c   : > { %v5996_v12 = vpop.f32.mrf.mxu0 }
 0x61d   : > { %v6236_v28 = vmax.f32 %v6220_v17, 0.0  ;;  %v6032_v9 = vadd.f32 %v5996_v12, %v5859_v18  ;;  %v9964_v18 = vld [vmem:[%s13585_s6 + $0x150] sm:$0xff] }
 0x61e   : > { %v6291_v31 = vld [vmem:[#allocation5 + $0x26] sm:$0xff]  ;;  %v6194_v46 = vpop.f32.mrf.mxu1  ;;  %7086 = vmatpush.msra.mxu3 %v9964_v18 }
 0x61f   : > { %v6267_v58 = vld [vmem:[#allocation5 + $0x25] sm:$0xff]  ;;  %6252 = vst.msk [vmem:[#allocation5 + $0x30] sm:$0xff] %vm909_vm3, %v6236_v28  ;;  %v6052_v26 = vadd.f32 %v12415_v2, %v6032_v9  ;;  %9862 = vmatmul.msk.f32.gmra.mxu2 %vm909_vm3, %v6291_v31  ;;  %v6195_v17 = vadd.f32 %v12420_v20, %v6194_v46  ;;  %v9963_v46 = vld [vmem:[%s13585_s6 + $0x148] sm:$0xff] }
 0x620   : > { %v6542_v47 = vld [vmem:[#allocation5 + $0x27] sm:$0xff]  ;;  %9878 = vmatmul.msk.f32.gmra.mxu3 %vm909_vm3, %v6267_v58  ;;  %v5748_v56 = vpop.f32.mrf.mxu2 }
 0x621   : > { %v6696_v55 = vld [vmem:[#allocation5 + $0x28] sm:$0xff]  ;;  %9902 = vmatmul.msk.f32.gmra.mxu0 %vm909_vm3, %v6542_v47  ;;  %v6068_v33 = vmax.f32 %v6052_v26, 0.0  ;;  %v5861_v3 = vpop.f32.mrf.mxu3  ;;  %7087 = vmatpush.msra.mxu3 %v9963_v46 }
 0x622   : > { %9926 = vmatmul.msk.f32.gmra.mxu1 %vm909_vm3, %v6696_v55  ;;  %v5862_v4 = vadd.f32 %v5861_v3, %v5748_v56  ;;  %v9988_v3 = vld [vmem:[%s13585_s6 + $0x190] sm:$0xff] }
 0x623   : > { %v6221_v60 = vadd.f32 %v6186_v19, %v6068_v33  ;;  %7240 = vmatpush.msra.mxu0 %v9988_v3 }
 0x624   : > { %v5999_v15 = vpop.f32.mrf.mxu0 }
 0x625   : > { %v6237_v61 = vmax.f32 %v6221_v60, 0.0  ;;  %v6033_v53 = vadd.f32 %v5999_v15, %v5862_v4  ;;  %v10012_v4 = vld [vmem:[%s13585_s6 + $0x1d0] sm:$0xff] }
 0x626   : > { %v6292_v63 = vld [vmem:[#allocation5 + $0x2e] sm:$0xff]  ;;  %v6197_v35 = vpop.f32.mrf.mxu1  ;;  %7394 = vmatpush.msra.mxu1 %v10012_v4 }
 0x627   : > { %v6268_v50 = vld [vmem:[#allocation5 + $0x2d] sm:$0xff]  ;;  %6253 = vst.msk [vmem:[#allocation5 + $0x38] sm:$0xff] %vm909_vm3, %v6237_v61  ;;  %v6053_v45 = vadd.f32 %v12415_v2, %v6033_v53  ;;  %9863 = vmatmul.msk.f32.gmra.mxu2 %vm909_vm3, %v6292_v63  ;;  %v6198_v60 = vadd.f32 %v12420_v20, %v6197_v35 }
 0x628   : > { %v6543_v27 = vld [vmem:[#allocation5 + $0x2f] sm:$0xff]  ;;  %9879 = vmatmul.msk.f32.gmra.mxu3 %vm909_vm3, %v6268_v50  ;;  %v5751_v52 = vpop.f32.mrf.mxu2 }
 0x629   : > { %v6697_v36 = vld [vmem:[#allocation5 + $0x30] sm:$0xff]  ;;  %9903 = vmatmul.msk.f32.gmra.mxu0 %vm909_vm3, %v6543_v27  ;;  %v6069_v49 = vmax.f32 %v6053_v45, 0.0  ;;  %v5864_v39 = vpop.f32.mrf.mxu3 }
 0x62a   : > { %9927 = vmatmul.msk.f32.gmra.mxu1 %vm909_vm3, %v6697_v36  ;;  %v5865_v30 = vadd.f32 %v5864_v39, %v5751_v52  ;;  %v9939_v39 = vld [vmem:[%s13585_s6 + $0x108] sm:$0xff]  ;;  %v9962_v35 = vld [vmem:[%s13585_s6 + $0x140] sm:$0xff] }
 0x62b   : > { %v6222_v13 = vadd.f32 %v6189_v57, %v6069_v49  ;;  %6933 = vmatpush.msra.mxu2 %v9939_v39  ;;  %7088 = vmatpush.msra.mxu3 %v9962_v35  ;;  %v7000_v35 = vld [vmem:[#allocation5 + $0xa] sm:$0xff] }
 0x62c   : > { %v6002_v62 = vpop.f32.mrf.mxu0 }
 0x62d   : > { %v6238_v34 = vmax.f32 %v6222_v13, 0.0  ;;  %v6034_v16 = vadd.f32 %v6002_v62, %v5865_v30 }
 0x62e   : > { %v6293_v41 = vld [vmem:[#allocation5 + $0x36] sm:$0xff]  ;;  %v6200_v22 = vpop.f32.mrf.mxu1 }
 0x62f   : > { %v6269_v1 = vld [vmem:[#allocation5 + $0x35] sm:$0xff]  ;;  %6254 = vst.msk [vmem:[#allocation5 + $0x40] sm:$0xff] %vm909_vm3, %v6238_v34  ;;  %v6054_v6 = vadd.f32 %v12415_v2, %v6034_v16  ;;  %9864 = vmatmul.msk.f32.gmra.mxu2 %vm909_vm3, %v6293_v41  ;;  %v6201_v13 = vadd.f32 %v12420_v20, %v6200_v22 }
 0x630   : > { %v6544_v7 = vld [vmem:[#allocation5 + $0x37] sm:$0xff]  ;;  %9880 = vmatmul.msk.f32.gmra.mxu3 %vm909_vm3, %v6269_v1  ;;  %v5754_v54 = vpop.f32.mrf.mxu2 }
 0x631   : > { %v6698_v40 = vld [vmem:[#allocation5 + $0x38] sm:$0xff]  ;;  %9904 = vmatmul.msk.f32.gmra.mxu0 %vm909_vm3, %v6544_v7  ;;  %v6070_v37 = vmax.f32 %v6054_v6, 0.0  ;;  %v5867_v11 = vpop.f32.mrf.mxu3 }
 0x632   : > { %9928 = vmatmul.msk.f32.gmra.mxu1 %vm909_vm3, %v6698_v40  ;;  %v5868_v23 = vadd.f32 %v5867_v11, %v5754_v54  ;;  %v9987_v11 = vld [vmem:[%s13585_s6 + $0x188] sm:$0xff] }
 0x633   : > { %v6223_v0 = vadd.f32 %v6192_v48, %v6070_v37  ;;  %7241 = vmatpush.msra.mxu0 %v9987_v11 }
 0x634   : > { %v6005_v44 = vpop.f32.mrf.mxu0 }
 0x635   : > { %v6239_v32 = vmax.f32 %v6223_v0, 0.0  ;;  %v6035_v43 = vadd.f32 %v6005_v44, %v5868_v23  ;;  %v10011_v23 = vld [vmem:[%s13585_s6 + $0x1c8] sm:$0xff]  ;;  %v9938_v0 = vld [vmem:[%s13585_s6 + $0x100] sm:$0xff] }
 0x636   : > { %v6294_v38 = vld [vmem:[#allocation5 + $0x3e] sm:$0xff]  ;;  %v6203_v30 = vpop.f32.mrf.mxu1  ;;  %7395 = vmatpush.msra.mxu1 %v10011_v23  ;;  %6934 = vmatpush.msra.mxu2 %v9938_v0  ;;  %v6846_v0 = vld [vmem:[#allocation5 + $0x9] sm:$0xff] }
 0x637   : > { %v6270_v59 = vld [vmem:[#allocation5 + $0x3d] sm:$0xff]  ;;  %6255 = vst.msk [vmem:[#allocation5 + $0x48] sm:$0xff] %vm909_vm3, %v6239_v32  ;;  %v6055_v51 = vadd.f32 %v12415_v2, %v6035_v43  ;;  %9865 = vmatmul.msk.f32.gmra.mxu2 %vm909_vm3, %v6294_v38  ;;  %v6204_v44 = vadd.f32 %v12420_v20, %v6203_v30 }
 0x638   : > { %v6545_v24 = vld [vmem:[#allocation5 + $0x3f] sm:$0xff]  ;;  %9881 = vmatmul.msk.f32.gmra.mxu3 %vm909_vm3, %v6270_v59  ;;  %v5757_v28 = vpop.f32.mrf.mxu2 }
 0x639   : > { %v6699_v10 = vld [vmem:[#allocation5 + $0x40] sm:$0xff]  ;;  %9905 = vmatmul.msk.f32.gmra.mxu0 %vm909_vm3, %v6545_v24  ;;  %v6071_v12 = vmax.f32 %v6055_v51, 0.0  ;;  %v5870_v9 = vpop.f32.mrf.mxu3 }
 0x63a   : > { %9929 = vmatmul.msk.f32.gmra.mxu1 %vm909_vm3, %v6699_v10  ;;  %v5871_v31 = vadd.f32 %v5870_v9, %v5757_v28 }
 0x63b   : > { %v6224_v58 = vadd.f32 %v6195_v17, %v6071_v12 }
 0x63c   : > { %v6008_v47 = vpop.f32.mrf.mxu0 }
 0x63d   : > { %v6240_v26 = vmax.f32 %v6224_v58, 0.0  ;;  %v6036_v55 = vadd.f32 %v6008_v47, %v5871_v31  ;;  %v9986_v58 = vld [vmem:[%s13585_s6 + $0x180] sm:$0xff] }
 0x63e   : > { %v6295_v42 = vld [vmem:[#allocation5 + $0x46] sm:$0xff]  ;;  %v6206_v59 = vpop.f32.mrf.mxu1  ;;  %v10010_v47 = vld [vmem:[%s13585_s6 + $0x1c0] sm:$0xff]  ;;  %7242 = vmatpush.msra.mxu0 %v9986_v58 }
 0x63f   : > { %v6271_v8 = vld [vmem:[#allocation5 + $0x45] sm:$0xff]  ;;  %6256 = vst.msk [vmem:[#allocation5 + $0x50] sm:$0xff] %vm909_vm3, %v6240_v26  ;;  %v6056_v33 = vadd.f32 %v12415_v2, %v6036_v55  ;;  %9866 = vmatmul.msk.f32.gmra.mxu2 %vm909_vm3, %v6295_v42  ;;  %v6207_v26 = vadd.f32 %v12420_v20, %v6206_v59  ;;  %7396 = vmatpush.msra.mxu1 %v10010_v47 }
 0x640   : > { %v6546_v19 = vld [vmem:[#allocation5 + $0x47] sm:$0xff]  ;;  %9882 = vmatmul.msk.f32.gmra.mxu3 %vm909_vm3, %v6271_v8  ;;  %v5760_v61 = vpop.f32.mrf.mxu2 }
 0x641   : > { %v6700_v56 = vld [vmem:[#allocation5 + $0x48] sm:$0xff]  ;;  %9906 = vmatmul.msk.f32.gmra.mxu0 %vm909_vm3, %v6546_v19  ;;  %v6072_v15 = vmax.f32 %v6056_v33, 0.0  ;;  %v5873_v53 = vpop.f32.mrf.mxu3 }
 0x642   : > { %9930 = vmatmul.msk.f32.gmra.mxu1 %vm909_vm3, %v6700_v56  ;;  %v5874_v63 = vadd.f32 %v5873_v53, %v5760_v61 }
 0x643   : > { %v6225_v50 = vadd.f32 %v6198_v60, %v6072_v15 }
 0x644   : > { %v6011_v27 = vpop.f32.mrf.mxu0 }
 0x645   : > { %v6241_v45 = vmax.f32 %v6225_v50, 0.0  ;;  %v6037_v36 = vadd.f32 %v6011_v27, %v5874_v63 }
 0x646   : > { %v6296_v14 = vld [vmem:[#allocation5 + $0x4e] sm:$0xff]  ;;  %v6209_v33 = vpop.f32.mrf.mxu1 }
 0x647   : > { %v6272_v5 = vld [vmem:[#allocation5 + $0x4d] sm:$0xff]  ;;  %6257 = vst.msk [vmem:[#allocation5 + $0x58] sm:$0xff] %vm909_vm3, %v6241_v45  ;;  %v6057_v49 = vadd.f32 %v12415_v2, %v6037_v36  ;;  %9867 = vmatmul.msk.f32.gmra.mxu2 %vm909_vm3, %v6296_v14  ;;  %v6210_v50 = vadd.f32 %v12420_v20, %v6209_v33  ;;  %v7310_v33 = vld [vmem:[#allocation5 + $0x1c] sm:$0xff] }
 0x648   : > { %v6547_v57 = vld [vmem:[#allocation5 + $0x4f] sm:$0xff]  ;;  %9883 = vmatmul.msk.f32.gmra.mxu3 %vm909_vm3, %v6272_v5  ;;  %v5763_v34 = vpop.f32.mrf.mxu2 }
 0x649   : > { %v6701_v52 = vld [vmem:[#allocation5 + $0x50] sm:$0xff]  ;;  %9907 = vmatmul.msk.f32.gmra.mxu0 %vm909_vm3, %v6547_v57  ;;  %v6073_v62 = vmax.f32 %v6057_v49, 0.0  ;;  %v5876_v16 = vpop.f32.mrf.mxu3 }
 0x64a   : > { %9931 = vmatmul.msk.f32.gmra.mxu1 %vm909_vm3, %v6701_v52  ;;  %v5877_v41 = vadd.f32 %v5876_v16, %v5763_v34 }
 0x64b   : > { %v6226_v1 = vadd.f32 %v6201_v13, %v6073_v62 }
 0x64c   : > { %v6014_v7 = vpop.f32.mrf.mxu0 }
 0x64d   : > { %v6242_v6 = vmax.f32 %v6226_v1, 0.0  ;;  %v6038_v40 = vadd.f32 %v6014_v7, %v5877_v41 }
 0x64e   : > { %v6297_v21 = vld [vmem:[#allocation5 + $0x56] sm:$0xff]  ;;  %v6212_v39 = vpop.f32.mrf.mxu1 }
 0x64f   : > { %v6273_v29 = vld [vmem:[#allocation5 + $0x55] sm:$0xff]  ;;  %6258 = vst.msk [vmem:[#allocation5 + $0x60] sm:$0xff] %vm909_vm3, %v6242_v6  ;;  %v6058_v37 = vadd.f32 %v12415_v2, %v6038_v40  ;;  %9868 = vmatmul.msk.f32.gmra.mxu2 %vm909_vm3, %v6297_v21  ;;  %v6213_v16 = vadd.f32 %v12420_v20, %v6212_v39 }
 0x650   : > { %v6548_v48 = vld [vmem:[#allocation5 + $0x57] sm:$0xff]  ;;  %9884 = vmatmul.msk.f32.gmra.mxu3 %vm909_vm3, %v6273_v29  ;;  %v5766_v43 = vpop.f32.mrf.mxu2 }
 0x651   : > { %v6702_v54 = vld [vmem:[#allocation5 + $0x58] sm:$0xff]  ;;  %9908 = vmatmul.msk.f32.gmra.mxu0 %vm909_vm3, %v6548_v48  ;;  %v6074_v32 = vmax.f32 %v6058_v37, 0.0  ;;  %v5879_v38 = vpop.f32.mrf.mxu3 }
 0x652   : > { %9932 = vmatmul.msk.f32.gmra.mxu1 %vm909_vm3, %v6702_v54  ;;  %v5880_v24 = vadd.f32 %v5879_v38, %v5766_v43  ;;  %v10041_v54 = vld [vmem:[%s13587_s10 + $0x78] sm:$0xff] }
 0x653   : > { %v6227_v51 = vadd.f32 %v6204_v44, %v6074_v32  ;;  %7619 = vmatpush.msrb.mxu2 %v10041_v54  ;;  %v7154_v44 = vld [vmem:[#allocation5 + $0xb] sm:$0xff] }
 0x654   : > { %v6017_v10 = vpop.f32.mrf.mxu0  ;;  %v7308_v32 = vld [vmem:[#allocation5 + $0xc] sm:$0xff] }
 0x655   : > { %v6243_v25 = vmax.f32 %v6227_v51, 0.0  ;;  %v6039_v18 = vadd.f32 %v6017_v10, %v5880_v24  ;;  %v10038_v54 = vld [vmem:[%s13587_s10 + $0x60] sm:$0xff] }
 0x656   : > { %v6298_v17 = vld [vmem:[#allocation5 + $0x5e] sm:$0xff] }
 0x657   : > { %v6274_v12 = vld [vmem:[#allocation5 + $0x5d] sm:$0xff]  ;;  %6259 = vst.msk [vmem:[#allocation5 + $0x68] sm:$0xff] %vm909_vm3, %v6243_v25  ;;  %v6059_v9 = vadd.f32 %v12415_v2, %v6039_v18  ;;  %9869 = vmatmul.msk.f32.gmra.mxu2 %vm909_vm3, %v6298_v17  ;;  %v6847_v25 = vld [vmem:[#allocation5 + $0x11] sm:$0xff] }
 0x658   : > { %v6549_v28 = vld [vmem:[#allocation5 + $0x5f] sm:$0xff]  ;;  %9885 = vmatmul.msk.f32.gmra.mxu3 %vm909_vm3, %v6274_v12  ;;  %v5769_v22 = vpop.f32.mrf.mxu2  ;;  %v7001_v18 = vld [vmem:[#allocation5 + $0x12] sm:$0xff] }
 0x659   : > { %v6703_v31 = vld [vmem:[#allocation5 + $0x60] sm:$0xff]  ;;  %9909 = vmatmul.msk.f32.gmra.mxu0 %vm909_vm3, %v6549_v28  ;;  %v6075_v55 = vmax.f32 %v6059_v9, 0.0  ;;  %v5882_v42 = vpop.f32.mrf.mxu3  ;;  %v7155_v17 = vld [vmem:[#allocation5 + $0x13] sm:$0xff] }
 0x65a   : > { %9933 = vmatmul.msk.f32.gmra.mxu1 %vm909_vm3, %v6703_v31  ;;  %v5883_v8 = vadd.f32 %v5882_v42, %v5769_v22  ;;  %v7309_v12 = vld [vmem:[#allocation5 + $0x14] sm:$0xff]  ;;  %v10040_v9 = vld [vmem:[%s13587_s10 + $0x70] sm:$0xff] }
 0x65b   : > { %v6228_v19 = vadd.f32 %v6207_v26, %v6075_v55  ;;  %7620 = vmatpush.msrb.mxu2 %v10040_v9  ;;  %v6848_v42 = vld [vmem:[#allocation5 + $0x19] sm:$0xff] }
 0x65c   : > { %v6020_v56 = vpop.f32.mrf.mxu0 }
 0x65d   : > { %v6244_v3 = vmax.f32 %v6228_v19, 0.0  ;;  %v6040_v4 = vadd.f32 %v6020_v56, %v5883_v8  ;;  %v7002_v8 = vld [vmem:[#allocation5 + $0x1a] sm:$0xff] }
 0x65e   : > { %v6299_v60 = vld [vmem:[#allocation5 + $0x66] sm:$0xff]  ;;  %v7156_v19 = vld [vmem:[#allocation5 + $0x1b] sm:$0xff] }
 0x65f   : > { %v6275_v15 = vld [vmem:[#allocation5 + $0x65] sm:$0xff]  ;;  %6260 = vst.msk [vmem:[#allocation5 + $0x70] sm:$0xff] %vm909_vm3, %v6244_v3  ;;  %v6060_v53 = vadd.f32 %v12415_v2, %v6040_v4  ;;  %9870 = vmatmul.msk.f32.gmra.mxu2 %vm909_vm3, %v6299_v60 }
 0x660   : > { %v6550_v61 = vld [vmem:[#allocation5 + $0x67] sm:$0xff]  ;;  %9886 = vmatmul.msk.f32.gmra.mxu3 %vm909_vm3, %v6275_v15  ;;  %v5772_v45 = vpop.f32.mrf.mxu2 }
 0x661   : > { %v6704_v63 = vld [vmem:[#allocation5 + $0x68] sm:$0xff]  ;;  %9910 = vmatmul.msk.f32.gmra.mxu0 %vm909_vm3, %v6550_v61  ;;  %v6076_v27 = vmax.f32 %v6060_v53, 0.0  ;;  %v5885_v36 = vpop.f32.mrf.mxu3 }
 0x662   : > { %9934 = vmatmul.msk.f32.gmra.mxu1 %vm909_vm3, %v6704_v63  ;;  %v5886_v14 = vadd.f32 %v5885_v36, %v5772_v45  ;;  %v6849_v63 = vld [vmem:[#allocation5 + $0x21] sm:$0xff] }
 0x663   : > { %v6229_v5 = vadd.f32 %v6210_v50, %v6076_v27  ;;  %v7003_v50 = vld [vmem:[#allocation5 + $0x22] sm:$0xff] }
 0x664   : > { %v6023_v57 = vpop.f32.mrf.mxu0  ;;  %v7157_v27 = vld [vmem:[#allocation5 + $0x23] sm:$0xff] }
 0x665   : > { %v6245_v49 = vmax.f32 %v6229_v5, 0.0  ;;  %v6041_v52 = vadd.f32 %v6023_v57, %v5886_v14  ;;  %v7311_v45 = vld [vmem:[#allocation5 + $0x24] sm:$0xff]  ;;  %v10039_v14 = vld [vmem:[%s13587_s10 + $0x68] sm:$0xff] }
 0x666   : > { %v6300_v46 = vld [vmem:[#allocation5 + $0x6e] sm:$0xff]  ;;  %7621 = vmatpush.msrb.mxu2 %v10039_v14 }
 0x667   : > { %v6276_v30 = vld [vmem:[#allocation5 + $0x6d] sm:$0xff]  ;;  %6261 = vst.msk [vmem:[#allocation5 + $0x78] sm:$0xff] %vm909_vm3, %v6245_v49  ;;  %v6061_v62 = vadd.f32 %v12415_v2, %v6041_v52  ;;  %9871 = vmatmul.msk.f32.gmra.mxu2 %vm909_vm3, %v6300_v46 }
 0x668   : > { %v6551_v13 = vld [vmem:[#allocation5 + $0x6f] sm:$0xff]  ;;  %9887 = vmatmul.msk.f32.gmra.mxu3 %vm909_vm3, %v6276_v30  ;;  %7622 = vmatpush.msrb.mxu2 %v10038_v54  ;;  %v7319_v54 = vld [vmem:[#allocation5 + $0x64] sm:$0xff] }
 0x669   : > { %v6705_v34 = vld [vmem:[#allocation5 + $0x70] sm:$0xff]  ;;  %9911 = vmatmul.msk.f32.gmra.mxu0 %vm909_vm3, %v6551_v13  ;;  %v6077_v41 = vmax.f32 %v6061_v62, 0.0 }
 0x66a   : > { %9935 = vmatmul.msk.f32.gmra.mxu1 %vm909_vm3, %v6705_v34  ;;  %v6850_v30 = vld [vmem:[#allocation5 + $0x29] sm:$0xff] }
 0x66b   : > { %v6230_v1 = vadd.f32 %v6213_v16, %v6077_v41  ;;  %v7004_v13 = vld [vmem:[#allocation5 + $0x2a] sm:$0xff] }
 0x66c   : > { %v7158_v62 = vld [vmem:[#allocation5 + $0x2b] sm:$0xff] }
 0x66d   : > { %v6246_v7 = vmax.f32 %v6230_v1, 0.0  ;;  %v7312_v34 = vld [vmem:[#allocation5 + $0x2c] sm:$0xff] }
 0x66e   : > { %v6301_v6 = vld [vmem:[#allocation5 + $0x76] sm:$0xff] }
 0x66f   : > { %v6277_v40 = vld [vmem:[#allocation5 + $0x75] sm:$0xff]  ;;  %6262 = vst.msk [vmem:[#allocation5 + $0x80] sm:$0xff] %vm909_vm3, %v6246_v7  ;;  %9872 = vmatmul.msk.f32.gmra.mxu2 %vm909_vm3, %v6301_v6 }
 0x670   : > { %v6552_v21 = vld [vmem:[#allocation5 + $0x77] sm:$0xff]  ;;  %9888 = vmatmul.msk.f32.gmra.mxu3 %vm909_vm3, %v6277_v40 }
 0x671   : > { %v6706_v2 = vld [vmem:[#allocation5 + $0x78] sm:$0xff]  ;;  %9912 = vmatmul.msk.f32.gmra.mxu0 %vm909_vm3, %v6552_v21 }
 0x672   : > { %9936 = vmatmul.msk.f32.gmra.mxu1 %vm909_vm3, %v6706_v2  ;;  %v6851_v2 = vld [vmem:[#allocation5 + $0x31] sm:$0xff] }
 0x676   : > { %v6302_v29 = vld [vmem:[#allocation5 + $0x7e] sm:$0xff] }
 0x677   : > { %v6278_v48 = vld [vmem:[#allocation5 + $0x7d] sm:$0xff]  ;;  %9873 = vmatmul.msk.f32.gmra.mxu2 %vm909_vm3, %v6302_v29  ;;  %v7005_v29 = vld [vmem:[#allocation5 + $0x32] sm:$0xff] }
 0x678   : > { %v6553_v20 = vld [vmem:[#allocation5 + $0x7f] sm:$0xff]  ;;  %9889 = vmatmul.msk.f32.gmra.mxu3 %vm909_vm3, %v6278_v48  ;;  %v7159_v48 = vld [vmem:[#allocation5 + $0x33] sm:$0xff] }
 0x679   : > { %v6707_v37 = vld [vmem:[#allocation5 + $0x80] sm:$0xff]  ;;  %9913 = vmatmul.msk.f32.gmra.mxu0 %vm909_vm3, %v6553_v20  ;;  %v7313_v20 = vld [vmem:[#allocation5 + $0x34] sm:$0xff] }
 0x67a   : > { %9937 = vmatmul.msk.f32.gmra.mxu1 %vm909_vm3, %v6707_v37 }
 0x67e   : > { %v6628_v11 = vpop.f32.mrf.mxu0 }
 0x67f   : > { %v6782_v23 = vpop.f32.mrf.mxu1  ;;  %9946 = vmatmul.msk.f32.vlgmr.msra.gmra.mxu2 %vm909_vm3, %v6846_v0 }
 0x680   : > { %9970 = vmatmul.msk.f32.vlgmr.msra.gmra.mxu3 %vm909_vm3, %v7000_v35 }
 0x681   : > { %9994 = vmatmul.msk.f32.vlgmr.msra.gmra.mxu0 %vm909_vm3, %v7154_v44 }
 0x682   : > { %10018 = vmatmul.msk.f32.vlgmr.msra.gmra.mxu1 %vm909_vm3, %v7308_v32  ;;  %v6377_v43 = vpop.f32.mrf.mxu2 }
 0x683   : > { %v6490_v38 = vpop.f32.mrf.mxu3 }
 0x684   : > { %v6491_v59 = vadd.f32 %v6490_v38, %v6377_v43  ;;  %v6852_v43 = vld [vmem:[#allocation5 + $0x39] sm:$0xff] }
 0x685   : > { %v7006_v38 = vld [vmem:[#allocation5 + $0x3a] sm:$0xff] }
 0x686   : > { %v6676_v24 = vadd.f32 %v6628_v11, %v6491_v59  ;;  %v6631_v51 = vpop.f32.mrf.mxu0  ;;  %v7160_v59 = vld [vmem:[#allocation5 + $0x3b] sm:$0xff] }
 0x687   : > { %v6785_v10 = vpop.f32.mrf.mxu1  ;;  %9947 = vmatmul.msk.f32.gmra.mxu2 %vm909_vm3, %v6847_v25 }
 0x688   : > { %9971 = vmatmul.msk.f32.gmra.mxu3 %vm909_vm3, %v7001_v18  ;;  %v12645_v28 = vadd.f32 %v6782_v23, %v6676_v24  ;;  %v7314_v24 = vld [vmem:[#allocation5 + $0x3c] sm:$0xff] }
 0x689   : > { %9995 = vmatmul.msk.f32.gmra.mxu0 %vm909_vm3, %v7155_v17 }
 0x68a   : > { %10019 = vmatmul.msk.f32.gmra.mxu1 %vm909_vm3, %v7309_v12  ;;  %v6380_v31 = vpop.f32.mrf.mxu2 }
 0x68b   : > { %v6493_v58 = vpop.f32.mrf.mxu3 }
 0x68c   : > { %v6494_v47 = vadd.f32 %v6493_v58, %v6380_v31  ;;  %v6853_v31 = vld [vmem:[#allocation5 + $0x41] sm:$0xff] }
 0x68d   : > { %v7007_v58 = vld [vmem:[#allocation5 + $0x42] sm:$0xff] }
 0x68e   : > { %v6677_v26 = vadd.f32 %v6631_v51, %v6494_v47  ;;  %v6634_v55 = vpop.f32.mrf.mxu0  ;;  %v7161_v47 = vld [vmem:[#allocation5 + $0x43] sm:$0xff] }
 0x68f   : > { %v6788_v22 = vpop.f32.mrf.mxu1  ;;  %9948 = vmatmul.msk.f32.gmra.mxu2 %vm909_vm3, %v6848_v42 }
 0x690   : > { %9972 = vmatmul.msk.f32.gmra.mxu3 %vm909_vm3, %v7002_v8  ;;  %v12654_v56 = vadd.f32 %v6785_v10, %v6677_v26  ;;  %v7315_v26 = vld [vmem:[#allocation5 + $0x44] sm:$0xff] }
 0x691   : > { %9996 = vmatmul.msk.f32.gmra.mxu0 %vm909_vm3, %v7156_v19 }
 0x692   : > { %10020 = vmatmul.msk.f32.gmra.mxu1 %vm909_vm3, %v7310_v33  ;;  %v6383_v3 = vpop.f32.mrf.mxu2 }
 0x693   : > { %v6496_v4 = vpop.f32.mrf.mxu3 }
 0x694   : > { %v6497_v60 = vadd.f32 %v6496_v4, %v6383_v3 }
 0x696   : > { %v6678_v15 = vadd.f32 %v6634_v55, %v6497_v60  ;;  %v6637_v61 = vpop.f32.mrf.mxu0  ;;  %v6854_v60 = vld [vmem:[#allocation5 + $0x49] sm:$0xff] }
 0x697   : > { %v6791_v53 = vpop.f32.mrf.mxu1  ;;  %9949 = vmatmul.msk.f32.gmra.mxu2 %vm909_vm3, %v6849_v63 }
 0x698   : > { %9973 = vmatmul.msk.f32.gmra.mxu3 %vm909_vm3, %v7003_v50  ;;  %v12660_v36 = vadd.f32 %v6788_v22, %v6678_v15  ;;  %v10037_v22 = vld [vmem:[%s13587_s10 + $0x58] sm:$0xff] }
 0x699   : > { %9997 = vmatmul.msk.f32.gmra.mxu0 %vm909_vm3, %v7157_v27  ;;  %7623 = vmatpush.msrb.mxu2 %v10037_v22  ;;  %v7008_v15 = vld [vmem:[#allocation5 + $0x4a] sm:$0xff] }
 0x69a   : > { %10021 = vmatmul.msk.f32.gmra.mxu1 %vm909_vm3, %v7311_v45  ;;  %v6386_v5 = vpop.f32.mrf.mxu2  ;;  %v10081_v22 = vld [vmem:[%s13587_s10 + $0xb8] sm:$0xff] }
 0x69b   : > { %v6499_v57 = vpop.f32.mrf.mxu3  ;;  %7870 = vmatpush.msrb.mxu0 %v10081_v22 }
 0x69c   : > { %v6500_v49 = vadd.f32 %v6499_v57, %v6386_v5  ;;  %v6855_v5 = vld [vmem:[#allocation5 + $0x51] sm:$0xff] }
 0x69d   : > { %v7009_v57 = vld [vmem:[#allocation5 + $0x52] sm:$0xff] }
 0x69e   : > { %v6679_v52 = vadd.f32 %v6637_v61, %v6500_v49  ;;  %v6640_v39 = vpop.f32.mrf.mxu0  ;;  %v7162_v61 = vld [vmem:[#allocation5 + $0x4b] sm:$0xff]  ;;  %v7163_v49 = vld [vmem:[#allocation5 + $0x53] sm:$0xff] }
 0x69f   : > { %v6794_v46 = vpop.f32.mrf.mxu1  ;;  %9950 = vmatmul.msk.f32.gmra.mxu2 %vm909_vm3, %v6850_v30 }
 0x6a0   : > { %9974 = vmatmul.msk.f32.gmra.mxu3 %vm909_vm3, %v7004_v13  ;;  %v12669_v16 = vadd.f32 %v6791_v53, %v6679_v52  ;;  %v7316_v53 = vld [vmem:[#allocation5 + $0x4c] sm:$0xff]  ;;  %v7317_v52 = vld [vmem:[#allocation5 + $0x54] sm:$0xff] }
 0x6a1   : > { %9998 = vmatmul.msk.f32.gmra.mxu0 %vm909_vm3, %v7158_v62 }
 0x6a2   : > { %10022 = vmatmul.msk.f32.gmra.mxu1 %vm909_vm3, %v7312_v34  ;;  %v6389_v41 = vpop.f32.mrf.mxu2  ;;  %v6856_v34 = vld [vmem:[#allocation5 + $0x59] sm:$0xff] }
 0x6a3   : > { %v6502_v1 = vpop.f32.mrf.mxu3 }
 0x6a4   : > { %v6503_v7 = vadd.f32 %v6502_v1, %v6389_v41  ;;  %v7010_v41 = vld [vmem:[#allocation5 + $0x5a] sm:$0xff] }
 0x6a5   : > { %v7164_v1 = vld [vmem:[#allocation5 + $0x5b] sm:$0xff] }
 0x6a6   : > { %v6680_v6 = vadd.f32 %v6640_v39, %v6503_v7  ;;  %v6643_v40 = vpop.f32.mrf.mxu0  ;;  %v10036_v39 = vld [vmem:[%s13587_s10 + $0x50] sm:$0xff] }
 0x6a7   : > { %v6797_v21 = vpop.f32.mrf.mxu1  ;;  %9951 = vmatmul.msk.f32.gmra.mxu2 %vm909_vm3, %v6851_v2  ;;  %v7318_v7 = vld [vmem:[#allocation5 + $0x5c] sm:$0xff] }
 0x6a8   : > { %9975 = vmatmul.msk.f32.gmra.mxu3 %vm909_vm3, %v7005_v29  ;;  %v12675_v37 = vadd.f32 %v6794_v46, %v6680_v6  ;;  %7624 = vmatpush.msrb.mxu2 %v10036_v39  ;;  %v6857_v29 = vld [vmem:[#allocation5 + $0x61] sm:$0xff]  ;;  %v10078_v39 = vld [vmem:[%s13587_s10 + $0xa0] sm:$0xff] }
 0x6a9   : > { %9999 = vmatmul.msk.f32.gmra.mxu0 %vm909_vm3, %v7159_v48  ;;  %v7011_v48 = vld [vmem:[#allocation5 + $0x62] sm:$0xff] }
 0x6aa   : > { %10023 = vmatmul.msk.f32.gmra.mxu1 %vm909_vm3, %v7313_v20  ;;  %v6392_v11 = vpop.f32.mrf.mxu2  ;;  %v7165_v20 = vld [vmem:[#allocation5 + $0x63] sm:$0xff] }
 0x6ab   : > { %v6505_v23 = vpop.f32.mrf.mxu3 }
 0x6ac   : > { %v6506_v0 = vadd.f32 %v6505_v23, %v6392_v11  ;;  %v10035_v11 = vld [vmem:[%s13587_s10 + $0x48] sm:$0xff] }
 0x6ad   : > { %7625 = vmatpush.msrb.mxu2 %v10035_v11  ;;  %v10104_v11 = vld [vmem:[%s13587_s10 + $0xf0] sm:$0xff] }
 0x6ae   : > { %v6681_v35 = vadd.f32 %v6643_v40, %v6506_v0  ;;  %v6646_v44 = vpop.f32.mrf.mxu0 }
 0x6af   : > { %v6800_v32 = vpop.f32.mrf.mxu1  ;;  %9952 = vmatmul.msk.f32.gmra.mxu2 %vm909_vm3, %v6852_v43  ;;  %v7012_v43 = vld [vmem:[#allocation5 + $0x6a] sm:$0xff] }
 0x6b0   : > { %9976 = vmatmul.msk.f32.gmra.mxu3 %vm909_vm3, %v7006_v38  ;;  %v12684_v51 = vadd.f32 %v6797_v21, %v6681_v35  ;;  %v7166_v38 = vld [vmem:[#allocation5 + $0x6b] sm:$0xff] }
 0x6b1   : > { %10000 = vmatmul.msk.f32.gmra.mxu0 %vm909_vm3, %v7160_v59  ;;  %v7320_v59 = vld [vmem:[#allocation5 + $0x6c] sm:$0xff] }
 0x6b2   : > { %10024 = vmatmul.msk.f32.gmra.mxu1 %vm909_vm3, %v7314_v24  ;;  %v6395_v10 = vpop.f32.mrf.mxu2 }
 0x6b3   : > { %v6508_v25 = vpop.f32.mrf.mxu3 }
 0x6b4   : > { %v6509_v18 = vadd.f32 %v6508_v25, %v6395_v10 }
 0x6b6   : > { %v6682_v17 = vadd.f32 %v6646_v44, %v6509_v18  ;;  %v6649_v12 = vpop.f32.mrf.mxu0 }
 0x6b7   : > { %v6803_v9 = vpop.f32.mrf.mxu1  ;;  %9953 = vmatmul.msk.f32.gmra.mxu2 %vm909_vm3, %v6853_v31  ;;  %v7321_v31 = vld [vmem:[#allocation5 + $0x74] sm:$0xff] }
 0x6b8   : > { %9977 = vmatmul.msk.f32.gmra.mxu3 %vm909_vm3, %v7007_v58  ;;  %v12690_v55 = vadd.f32 %v6800_v32, %v6682_v17  ;;  %v6858_v32 = vld [vmem:[#allocation5 + $0x69] sm:$0xff]  ;;  %v6859_v17 = vld [vmem:[#allocation5 + $0x71] sm:$0xff] }
 0x6b9   : > { %10001 = vmatmul.msk.f32.gmra.mxu0 %vm909_vm3, %v7161_v47 }
 0x6ba   : > { %10025 = vmatmul.msk.f32.gmra.mxu1 %vm909_vm3, %v7315_v26  ;;  %v6398_v42 = vpop.f32.mrf.mxu2  ;;  %v7537_v26 = vld [vmem:[%s13587_s10 + $0x38] sm:$0xff] }
 0x6bb   : > { %v6511_v8 = vpop.f32.mrf.mxu3  ;;  %7732 = vmatpush.msrb.mxu3 %v7537_v26  ;;  %v10102_v26 = vld [vmem:[%s13587_s10 + $0xe0] sm:$0xff] }
 0x6bc   : > { %v6512_v19 = vadd.f32 %v6511_v8, %v6398_v42 }
 0x6be   : > { %v6683_v33 = vadd.f32 %v6649_v12, %v6512_v19  ;;  %v12697_v3 = vpop.f32.mrf.mxu0  ;;  %v7013_v12 = vld [vmem:[#allocation5 + $0x72] sm:$0xff] }
 0x6bf   : > { %v12699_v4 = vpop.f32.mrf.mxu1  ;;  %9954 = vmatmul.msk.f32.gmra.mxu2 %vm909_vm3, %v6854_v60  ;;  %v6860_v19 = vld [vmem:[#allocation5 + $0x79] sm:$0xff] }
 0x6c0   : > { %9978 = vmatmul.msk.f32.gmra.mxu3 %vm909_vm3, %v7008_v15  ;;  %v12703_v63 = vadd.f32 %v6803_v9, %v6683_v33  ;;  %v7167_v9 = vld [vmem:[#allocation5 + $0x73] sm:$0xff]  ;;  %v7536_v33 = vld [vmem:[%s13587_s10 + $0x30] sm:$0xff] }
 0x6c1   : > { %10002 = vmatmul.msk.f32.gmra.mxu0 %vm909_vm3, %v7162_v61  ;;  %v10080_v60 = vld [vmem:[%s13587_s10 + $0xb0] sm:$0xff]  ;;  %7733 = vmatpush.msrb.mxu3 %v7536_v33  ;;  %v7530_v33 = vld [vmem:[%s13587_s10] sm:$0xff] }
 0x6c2   : > { %10026 = vmatmul.msk.f32.gmra.mxu1 %vm909_vm3, %v7316_v53  ;;  %v12707_v50 = vpop.f32.mrf.mxu2  ;;  %v7014_v15 = vld [vmem:[#allocation5 + $0x7a] sm:$0xff]  ;;  %7871 = vmatpush.msrb.mxu0 %v10080_v60  ;;  %v10074_v60 = vld [vmem:[%s13587_s10 + $0x80] sm:$0xff] }
 0x6c3   : > { %v12709_v27 = vpop.f32.mrf.mxu3  ;;  %v7168_v61 = vld [vmem:[#allocation5 + $0x7b] sm:$0xff] }
 0x6c4   : > { %v7322_v53 = vld [vmem:[#allocation5 + $0x7c] sm:$0xff] }
 0x6c6   : > { %v12711_v45 = vpop.f32.mrf.mxu0 }
 0x6c7   : > { %v12713_v14 = vpop.f32.mrf.mxu1  ;;  %9955 = vmatmul.msk.f32.gmra.mxu2 %vm909_vm3, %v6855_v5  ;;  %v10034_v5 = vld [vmem:[%s13587_s10 + $0x40] sm:$0xff] }
 0x6c8   : > { %9979 = vmatmul.msk.f32.gmra.mxu3 %vm909_vm3, %v7009_v57  ;;  %v7535_v57 = vld [vmem:[%s13587_s10 + $0x28] sm:$0xff]  ;;  %7626 = vmatpush.msrb.mxu2 %v10034_v5  ;;  %v10100_v5 = vld [vmem:[%s13587_s10 + $0xd0] sm:$0xff] }
 0x6c9   : > { %10003 = vmatmul.msk.f32.gmra.mxu0 %vm909_vm3, %v7163_v49  ;;  %v10079_v49 = vld [vmem:[%s13587_s10 + $0xa8] sm:$0xff]  ;;  %7734 = vmatpush.msrb.mxu3 %v7535_v57  ;;  %v10129_v57 = vld [vmem:[%s13587_s10 + $0x138] sm:$0xff] }
 0x6ca   : > { %10027 = vmatmul.msk.f32.gmra.mxu1 %vm909_vm3, %v7317_v52  ;;  %v12722_v46 = vpop.f32.mrf.mxu2  ;;  %v7534_v52 = vld [vmem:[%s13587_s10 + $0x20] sm:$0xff]  ;;  %7872 = vmatpush.msrb.mxu0 %v10079_v49  ;;  %v10099_v49 = vld [vmem:[%s13587_s10 + $0xc8] sm:$0xff] }
 0x6cb   : > { %v12724_v30 = vpop.f32.mrf.mxu3  ;;  %7735 = vmatpush.msrb.mxu3 %v7534_v52  ;;  %8178 = vmatpush.msra.mxu2 %v10129_v57  ;;  %v10098_v52 = vld [vmem:[%s13587_s10 + $0xc0] sm:$0xff] }
 0x6cc   : > { %7873 = vmatpush.msrb.mxu0 %v10078_v39 }
 0x6ce   : > { %v12726_v13 = vpop.f32.mrf.mxu0 }
 0x6cf   : > { %v12728_v62 = vpop.f32.mrf.mxu1  ;;  %9956 = vmatmul.msk.f32.gmra.mxu2 %vm909_vm3, %v6856_v34 }
 0x6d0   : > { %9980 = vmatmul.msk.f32.gmra.mxu3 %vm909_vm3, %v7010_v41 }
 0x6d1   : > { %10004 = vmatmul.msk.f32.gmra.mxu0 %vm909_vm3, %v7164_v1  ;;  %v7533_v1 = vld [vmem:[%s13587_s10 + $0x18] sm:$0xff] }
 0x6d2   : > { %10028 = vmatmul.msk.f32.gmra.mxu1 %vm909_vm3, %v7318_v7  ;;  %v12734_v6 = vpop.f32.mrf.mxu2  ;;  %v10077_v7 = vld [vmem:[%s13587_s10 + $0x98] sm:$0xff]  ;;  %7736 = vmatpush.msrb.mxu3 %v7533_v1 }
 0x6d3   : > { %v12736_v40 = vpop.f32.mrf.mxu3  ;;  %7874 = vmatpush.msrb.mxu0 %v10077_v7 }
 0x6d6   : > { %v12738_v21 = vpop.f32.mrf.mxu0 }
 0x6d7   : > { %v12740_v2 = vpop.f32.mrf.mxu1  ;;  %9957 = vmatmul.msk.f32.gmra.mxu2 %vm909_vm3, %v6857_v29  ;;  %v10105_v29 = vld [vmem:[%s13587_s10 + $0xf8] sm:$0xff] }
 0x6d8   : > { %9981 = vmatmul.msk.f32.gmra.mxu3 %vm909_vm3, %v7011_v48  ;;  %8024 = vmatpush.msrb.mxu1 %v10105_v29 }
 0x6d9   : > { %10005 = vmatmul.msk.f32.gmra.mxu0 %vm909_vm3, %v7165_v20 }
 0x6da   : > { %10029 = vmatmul.msk.f32.gmra.mxu1 %vm909_vm3, %v7319_v54  ;;  %v12749_v23 = vpop.f32.mrf.mxu2  ;;  %v6861_v54 = vld [vmem:[#allocation5 + $0x81] sm:$0xff] }
 0x6db   : > { %v12751_v0 = vpop.f32.mrf.mxu3  ;;  %8025 = vmatpush.msrb.mxu1 %v10104_v11 }
 0x6de   : > { %v12753_v35 = vpop.f32.mrf.mxu0 }
 0x6df   : > { %v12755_v44 = vpop.f32.mrf.mxu1  ;;  %9958 = vmatmul.msk.f32.gmra.mxu2 %vm909_vm3, %v6858_v32  ;;  %v7015_v32 = vld [vmem:[#allocation5 + $0x82] sm:$0xff] }
 0x6e0   : > { %9982 = vmatmul.msk.f32.gmra.mxu3 %vm909_vm3, %v7012_v43  ;;  %v7532_v43 = vld [vmem:[%s13587_s10 + $0x10] sm:$0xff] }
 0x6e1   : > { %10006 = vmatmul.msk.f32.gmra.mxu0 %vm909_vm3, %v7166_v38  ;;  %v10076_v38 = vld [vmem:[%s13587_s10 + $0x90] sm:$0xff]  ;;  %7737 = vmatpush.msrb.mxu3 %v7532_v43  ;;  %v12883_v43 = vld [vmem:[%s13510_s20] ss:$0 sm:$0xff] }
 0x6e2   : > { %10030 = vmatmul.msk.f32.gmra.mxu1 %vm909_vm3, %v7320_v59  ;;  %v12761_v24 = vpop.f32.mrf.mxu2  ;;  %v7169_v59 = vld [vmem:[#allocation5 + $0x83] sm:$0xff]  ;;  %7875 = vmatpush.msrb.mxu0 %v10076_v38 }
 0x6e3   : > { %v12763_v10 = vpop.f32.mrf.mxu3 }
 0x6e6   : > { %v12765_v25 = vpop.f32.mrf.mxu0 }
 0x6e7   : > { %v12767_v18 = vpop.f32.mrf.mxu1  ;;  %9959 = vmatmul.msk.f32.gmra.mxu2 %vm909_vm3, %v6859_v17  ;;  %v7323_v17 = vld [vmem:[#allocation5 + $0x84] sm:$0xff] }
 0x6e8   : > { %9983 = vmatmul.msk.f32.gmra.mxu3 %vm909_vm3, %v7013_v12  ;;  %v10103_v12 = vld [vmem:[%s13587_s10 + $0xe8] sm:$0xff] }
 0x6e9   : > { %10007 = vmatmul.msk.f32.gmra.mxu0 %vm909_vm3, %v7167_v9  ;;  %v7531_v9 = vld [vmem:[%s13587_s10 + $0x8] sm:$0xff]  ;;  %8026 = vmatpush.msrb.mxu1 %v10103_v12 }
 0x6ea   : > { %10031 = vmatmul.msk.f32.gmra.mxu1 %vm909_vm3, %v7321_v31  ;;  %v12773_v58 = vpop.f32.mrf.mxu2  ;;  %v10075_v31 = vld [vmem:[%s13587_s10 + $0x88] sm:$0xff]  ;;  %7738 = vmatpush.msrb.mxu3 %v7531_v9 }
 0x6eb   : > { %v12775_v47 = vpop.f32.mrf.mxu3  ;;  %7876 = vmatpush.msrb.mxu0 %v10075_v31  ;;  %8027 = vmatpush.msrb.mxu1 %v10102_v26 }
 0x6ec   : > { %7739 = vmatpush.msrb.mxu3 %v7530_v33 }
 0x6ed   : > { %7877 = vmatpush.msrb.mxu0 %v10074_v60 }
 0x6ee   : > { %v12783_v42 = vpop.f32.mrf.mxu0 }
 0x6ef   : > { %v12785_v8 = vpop.f32.mrf.mxu1  ;;  %9960 = vmatmul.msk.f32.gmra.mxu2 %vm909_vm3, %v6860_v19 }
 0x6f0   : > { %9984 = vmatmul.msk.f32.gmra.mxu3 %vm909_vm3, %v7014_v15  ;;  %v10101_v15 = vld [vmem:[%s13587_s10 + $0xd8] sm:$0xff] }
 0x6f1   : > { %10008 = vmatmul.msk.f32.gmra.mxu0 %vm909_vm3, %v7168_v61  ;;  %8028 = vmatpush.msrb.mxu1 %v10101_v15  ;;  %v10128_v15 = vld [vmem:[%s13587_s10 + $0x130] sm:$0xff] }
 0x6f2   : > { %10032 = vmatmul.msk.f32.gmra.mxu1 %vm909_vm3, %v7322_v53  ;;  %v12812_v34 = vpop.f32.mrf.mxu2  ;;  %8179 = vmatpush.msra.mxu2 %v10128_v15 }
 0x6f3   : > { %v12814_v41 = vpop.f32.mrf.mxu3  ;;  %8029 = vmatpush.msrb.mxu1 %v10100_v5 }
 0x6f5   : > { %8030 = vmatpush.msrb.mxu1 %v10099_v49 }
 0x6f6   : > { %v12825_v48 = vpop.f32.mrf.mxu0 }
 0x6f7   : > { %v12827_v20 = vpop.f32.mrf.mxu1  ;;  %9961 = vmatmul.msk.f32.gmra.mxu2 %vm909_vm3, %v6861_v54  ;;  %8031 = vmatpush.msrb.mxu1 %v10098_v52 }
 0x6f8   : > { %9985 = vmatmul.msk.f32.gmra.mxu3 %vm909_vm3, %v7015_v32 }
 0x6f9   : > { %10009 = vmatmul.msk.f32.gmra.mxu0 %vm909_vm3, %v7169_v59 }
 0x6fa   : > { %10033 = vmatmul.msk.f32.gmra.mxu1 %vm909_vm3, %v7323_v17  ;;  %v12854_v22 = vpop.f32.mrf.mxu2 }
 0x6fb   : > { %v12856_v19 = vpop.f32.mrf.mxu3 }
 0x6fe   : > { %v7244_v61 = vpop.f32.mrf.mxu0 }
 0x6ff   : > { %v7398_v53 = vpop.f32.mrf.mxu1 }
 0x702   : > { %v6936_v39 = vpop.f32.mrf.mxu2 }
 0x703   : > { %v7090_v1 = vpop.f32.mrf.mxu3  ;;  %v6984_v7 = vadd.f32 %v6936_v39, %v12645_v28 }
 0x705   : > { %v7138_v29 = vadd.f32 %v7090_v1, %v6984_v7 }
 0x706   : > { %v7247_v54 = vpop.f32.mrf.mxu0 }
 0x707   : > { %v7401_v11 = vpop.f32.mrf.mxu1  ;;  %v7292_v32 = vadd.f32 %v7244_v61, %v7138_v29 }
 0x709   : > { %v7446_v38 = vadd.f32 %v7398_v53, %v7292_v32 }
 0x70a   : > { %v6939_v59 = vpop.f32.mrf.mxu2 }
 0x70b   : > { %v7093_v17 = vpop.f32.mrf.mxu3  ;;  %v7466_v12 = vadd.f32 %v12883_v43, %v7446_v38  ;;  %v6985_v9 = vadd.f32 %v6939_v59, %v12654_v56 }
 0x70d   : > { %v7482_v31 = vmax.f32 %v7466_v12, 0.0  ;;  %v7139_v26 = vadd.f32 %v7093_v17, %v6985_v9 }
 0x70e   : > { %v7250_v28 = vpop.f32.mrf.mxu0 }
 0x70f   : > { %v7404_v33 = vpop.f32.mrf.mxu1  ;;  %7498 = vst.msk [vmem:[#allocation6 + $0x8] sm:$0xff] %vm909_vm3, %v7482_v31  ;;  %v7293_v60 = vadd.f32 %v7247_v54, %v7139_v26 }
 0x711   : > { %v7447_v61 = vadd.f32 %v7401_v11, %v7293_v60 }
 0x712   : > { %v6942_v53 = vpop.f32.mrf.mxu2 }
 0x713   : > { %v7096_v5 = vpop.f32.mrf.mxu3  ;;  %v7467_v57 = vadd.f32 %v12883_v43, %v7447_v61  ;;  %v6986_v49 = vadd.f32 %v6942_v53, %v12660_v36  ;;  %v10127_v53 = vld [vmem:[%s13587_s10 + $0x128] sm:$0xff] }
 0x714   : > { %8180 = vmatpush.msra.mxu2 %v10127_v53 }
 0x715   : > { %v7483_v56 = vmax.f32 %v7467_v57, 0.0  ;;  %v7140_v52 = vadd.f32 %v7096_v5, %v6986_v49 }
 0x716   : > { %v7253_v39 = vpop.f32.mrf.mxu0  ;;  %v7538_v7 = vld [vmem:[#allocation6 + $0x7] sm:$0xff] }
 0x717   : > { %v7407_v1 = vpop.f32.mrf.mxu1  ;;  %v7514_v29 = vld [vmem:[#allocation6 + $0x6] sm:$0xff]  ;;  %7499 = vst.msk [vmem:[#allocation6 + $0x10] sm:$0xff] %vm909_vm3, %v7483_v56  ;;  %v7294_v54 = vadd.f32 %v7250_v28, %v7140_v52  ;;  %10042 = vmatmul.msk.f32.vlgmr.msrb.gmra.mxu2 %vm909_vm3, %v7538_v7 }
 0x718   : > { %v7789_v32 = vld [vmem:[#allocation6 + $0x8] sm:$0xff]  ;;  %10058 = vmatmul.msk.f32.vlgmr.msrb.gmra.mxu3 %vm909_vm3, %v7514_v29 }
 0x719   : > { %10082 = vmatmul.msk.f32.vlgmr.msrb.gmra.mxu0 %vm909_vm3, %v7789_v32  ;;  %v7448_v11 = vadd.f32 %v7404_v33, %v7294_v54 }
 0x71a   : > { %v6945_v38 = vpop.f32.mrf.mxu2 }
 0x71b   : > { %v7099_v59 = vpop.f32.mrf.mxu3  ;;  %v7468_v36 = vadd.f32 %v12883_v43, %v7448_v11  ;;  %v6987_v17 = vadd.f32 %v6945_v38, %v12669_v16 }
 0x71d   : > { %v7484_v12 = vmax.f32 %v7468_v36, 0.0  ;;  %v7141_v9 = vadd.f32 %v7099_v59, %v6987_v17 }
 0x71e   : > { %v7256_v31 = vpop.f32.mrf.mxu0  ;;  %v7539_v60 = vld [vmem:[#allocation6 + $0xf] sm:$0xff] }
 0x71f   : > { %v7410_v26 = vpop.f32.mrf.mxu1  ;;  %v7515_v15 = vld [vmem:[#allocation6 + $0xe] sm:$0xff]  ;;  %7500 = vst.msk [vmem:[#allocation6 + $0x18] sm:$0xff] %vm909_vm3, %v7484_v12  ;;  %v7295_v61 = vadd.f32 %v7253_v39, %v7141_v9  ;;  %10043 = vmatmul.msk.f32.gmra.mxu2 %vm909_vm3, %v7539_v60 }
 0x720   : > { %v7790_v28 = vld [vmem:[#allocation6 + $0x10] sm:$0xff]  ;;  %10059 = vmatmul.msk.f32.gmra.mxu3 %vm909_vm3, %v7515_v15 }
 0x721   : > { %v7943_v33 = vld [vmem:[#allocation6 + $0x9] sm:$0xff]  ;;  %10083 = vmatmul.msk.f32.gmra.mxu0 %vm909_vm3, %v7790_v28  ;;  %v7449_v16 = vadd.f32 %v7407_v1, %v7295_v61 }
 0x722   : > { %10106 = vmatmul.msk.f32.vlgmr.msrb.gmra.mxu1 %vm909_vm3, %v7943_v33  ;;  %v6948_v5 = vpop.f32.mrf.mxu2 }
 0x723   : > { %v7102_v57 = vpop.f32.mrf.mxu3  ;;  %v7469_v49 = vadd.f32 %v12883_v43, %v7449_v16  ;;  %v6988_v56 = vadd.f32 %v6948_v5, %v12675_v37  ;;  %v10126_v16 = vld [vmem:[%s13587_s10 + $0x120] sm:$0xff] }
 0x724   : > { %8181 = vmatpush.msra.mxu2 %v10126_v16 }
 0x725   : > { %v7485_v52 = vmax.f32 %v7469_v49, 0.0  ;;  %v7142_v39 = vadd.f32 %v7102_v57, %v6988_v56 }
 0x726   : > { %v7259_v7 = vpop.f32.mrf.mxu0  ;;  %v7540_v32 = vld [vmem:[#allocation6 + $0x17] sm:$0xff] }
 0x727   : > { %v7413_v29 = vpop.f32.mrf.mxu1  ;;  %v7516_v54 = vld [vmem:[#allocation6 + $0x16] sm:$0xff]  ;;  %7501 = vst.msk [vmem:[#allocation6 + $0x20] sm:$0xff] %vm909_vm3, %v7485_v52  ;;  %v7296_v38 = vadd.f32 %v7256_v31, %v7142_v39  ;;  %10044 = vmatmul.msk.f32.gmra.mxu2 %vm909_vm3, %v7540_v32 }
 0x728   : > { %v7791_v11 = vld [vmem:[#allocation6 + $0x18] sm:$0xff]  ;;  %10060 = vmatmul.msk.f32.gmra.mxu3 %vm909_vm3, %v7516_v54 }
 0x729   : > { %v7944_v1 = vld [vmem:[#allocation6 + $0x11] sm:$0xff]  ;;  %10084 = vmatmul.msk.f32.gmra.mxu0 %vm909_vm3, %v7791_v11  ;;  %v7450_v37 = vadd.f32 %v7410_v26, %v7296_v38 }
 0x72a   : > { %10107 = vmatmul.msk.f32.gmra.mxu1 %vm909_vm3, %v7944_v1  ;;  %v6951_v59 = vpop.f32.mrf.mxu2 }
 0x72b   : > { %v7105_v36 = vpop.f32.mrf.mxu3  ;;  %v7470_v17 = vadd.f32 %v12883_v43, %v7450_v37  ;;  %v6989_v12 = vadd.f32 %v6951_v59, %v12684_v51 }
 0x72d   : > { %v7486_v9 = vmax.f32 %v7470_v17, 0.0  ;;  %v7143_v60 = vadd.f32 %v7105_v36, %v6989_v12 }
 0x72e   : > { %v7262_v15 = vpop.f32.mrf.mxu0  ;;  %v7541_v28 = vld [vmem:[#allocation6 + $0x1f] sm:$0xff] }
 0x72f   : > { %v7416_v31 = vpop.f32.mrf.mxu1  ;;  %v7517_v61 = vld [vmem:[#allocation6 + $0x1e] sm:$0xff]  ;;  %7502 = vst.msk [vmem:[#allocation6 + $0x28] sm:$0xff] %vm909_vm3, %v7486_v9  ;;  %v7297_v53 = vadd.f32 %v7259_v7, %v7143_v60  ;;  %10045 = vmatmul.msk.f32.gmra.mxu2 %vm909_vm3, %v7541_v28 }
 0x730   : > { %v7792_v33 = vld [vmem:[#allocation6 + $0x20] sm:$0xff]  ;;  %10061 = vmatmul.msk.f32.gmra.mxu3 %vm909_vm3, %v7517_v61 }
 0x731   : > { %v7945_v26 = vld [vmem:[#allocation6 + $0x19] sm:$0xff]  ;;  %10085 = vmatmul.msk.f32.gmra.mxu0 %vm909_vm3, %v7792_v33  ;;  %v7451_v51 = vadd.f32 %v7413_v29, %v7297_v53 }
 0x732   : > { %10108 = vmatmul.msk.f32.gmra.mxu1 %vm909_vm3, %v7945_v26  ;;  %v6954_v5 = vpop.f32.mrf.mxu2 }
 0x733   : > { %v7108_v57 = vpop.f32.mrf.mxu3  ;;  %v7471_v49 = vadd.f32 %v12883_v43, %v7451_v51  ;;  %v6990_v56 = vadd.f32 %v6954_v5, %v12690_v55  ;;  %v6515_v55 = vadd.f32 %v12709_v27, %v12707_v50 }
 0x735   : > { %v7487_v52 = vmax.f32 %v7471_v49, 0.0  ;;  %v7144_v39 = vadd.f32 %v7108_v57, %v6990_v56  ;;  %v6684_v9 = vadd.f32 %v12697_v3, %v6515_v55  ;;  %v6518_v3 = vadd.f32 %v12724_v30, %v12722_v46 }
 0x736   : > { %v7265_v7 = vpop.f32.mrf.mxu0  ;;  %v7542_v54 = vld [vmem:[#allocation6 + $0x27] sm:$0xff] }
 0x737   : > { %v7419_v32 = vpop.f32.mrf.mxu1  ;;  %v7518_v11 = vld [vmem:[#allocation6 + $0x26] sm:$0xff]  ;;  %7503 = vst.msk [vmem:[#allocation6 + $0x30] sm:$0xff] %vm909_vm3, %v7487_v52  ;;  %v7298_v1 = vadd.f32 %v7262_v15, %v7144_v39  ;;  %10046 = vmatmul.msk.f32.gmra.mxu2 %vm909_vm3, %v7542_v54  ;;  %v6685_v56 = vadd.f32 %v12711_v45, %v6518_v3  ;;  %v6521_v45 = vadd.f32 %v12736_v40, %v12734_v6  ;;  %v10124_v40 = vld [vmem:[%s13587_s10 + $0x110] sm:$0xff] }
 0x738   : > { %v7793_v38 = vld [vmem:[#allocation6 + $0x28] sm:$0xff]  ;;  %10062 = vmatmul.msk.f32.gmra.mxu3 %vm909_vm3, %v7518_v11 }
 0x739   : > { %v7946_v29 = vld [vmem:[#allocation6 + $0x21] sm:$0xff]  ;;  %10086 = vmatmul.msk.f32.gmra.mxu0 %vm909_vm3, %v7793_v38  ;;  %v7452_v37 = vadd.f32 %v7416_v31, %v7298_v1  ;;  %v6838_v31 = vadd.f32 %v12699_v4, %v6684_v9 }
 0x73a   : > { %10109 = vmatmul.msk.f32.gmra.mxu1 %vm909_vm3, %v7946_v29  ;;  %v6957_v59 = vpop.f32.mrf.mxu2 }
 0x73b   : > { %v7111_v36 = vpop.f32.mrf.mxu3  ;;  %v7472_v17 = vadd.f32 %v12883_v43, %v7452_v37  ;;  %v6991_v12 = vadd.f32 %v6957_v59, %v12703_v63  ;;  %v10125_v63 = vld [vmem:[%s13587_s10 + $0x118] sm:$0xff] }
 0x73c   : > { %8182 = vmatpush.msra.mxu2 %v10125_v63 }
 0x73d   : > { %v7488_v60 = vmax.f32 %v7472_v17, 0.0  ;;  %v7145_v15 = vadd.f32 %v7111_v36, %v6991_v12  ;;  %v6686_v36 = vadd.f32 %v12726_v13, %v6521_v45  ;;  %v6524_v13 = vadd.f32 %v12751_v0, %v12749_v23 }
 0x73e   : > { %v7268_v28 = vpop.f32.mrf.mxu0  ;;  %v7543_v33 = vld [vmem:[#allocation6 + $0x2f] sm:$0xff]  ;;  %8183 = vmatpush.msra.mxu2 %v10124_v40 }
 0x73f   : > { %v7422_v61 = vpop.f32.mrf.mxu1  ;;  %v7519_v53 = vld [vmem:[#allocation6 + $0x2e] sm:$0xff]  ;;  %7504 = vst.msk [vmem:[#allocation6 + $0x38] sm:$0xff] %vm909_vm3, %v7488_v60  ;;  %v7299_v16 = vadd.f32 %v7265_v7, %v7145_v15  ;;  %10047 = vmatmul.msk.f32.gmra.mxu2 %vm909_vm3, %v7543_v33  ;;  %v6687_v3 = vadd.f32 %v12738_v21, %v6524_v13  ;;  %v6527_v21 = vadd.f32 %v12763_v10, %v12761_v24 }
 0x740   : > { %v7794_v26 = vld [vmem:[#allocation6 + $0x30] sm:$0xff]  ;;  %10063 = vmatmul.msk.f32.gmra.mxu3 %vm909_vm3, %v7519_v53  ;;  %v6840_v53 = vadd.f32 %v12728_v62, %v6686_v36  ;;  %v10123_v24 = vld [vmem:[%s13587_s10 + $0x108] sm:$0xff] }
 0x741   : > { %v7947_v50 = vld [vmem:[#allocation6 + $0x29] sm:$0xff]  ;;  %10087 = vmatmul.msk.f32.gmra.mxu0 %vm909_vm3, %v7794_v26  ;;  %v7453_v27 = vadd.f32 %v7419_v32, %v7299_v16  ;;  %v6839_v32 = vadd.f32 %v12713_v14, %v6685_v56  ;;  %8184 = vmatpush.msra.mxu2 %v10123_v24 }
 0x742   : > { %10110 = vmatmul.msk.f32.gmra.mxu1 %vm909_vm3, %v7947_v50  ;;  %v6960_v51 = vpop.f32.mrf.mxu2 }
 0x743   : > { %v7114_v5 = vpop.f32.mrf.mxu3  ;;  %v7473_v57 = vadd.f32 %v12883_v43, %v7453_v27  ;;  %v6992_v49 = vadd.f32 %v6960_v51, %v6838_v31 }
 0x745   : > { %v7489_v52 = vmax.f32 %v7473_v57, 0.0  ;;  %v7146_v39 = vadd.f32 %v7114_v5, %v6992_v49 }
 0x746   : > { %v7271_v7 = vpop.f32.mrf.mxu0  ;;  %v7544_v11 = vld [vmem:[#allocation6 + $0x37] sm:$0xff] }
 0x747   : > { %v7425_v54 = vpop.f32.mrf.mxu1  ;;  %v7520_v38 = vld [vmem:[#allocation6 + $0x36] sm:$0xff]  ;;  %7505 = vst.msk [vmem:[#allocation6 + $0x40] sm:$0xff] %vm909_vm3, %v7489_v52  ;;  %v7300_v46 = vadd.f32 %v7268_v28, %v7146_v39  ;;  %10048 = vmatmul.msk.f32.gmra.mxu2 %vm909_vm3, %v7544_v11  ;;  %v6841_v52 = vadd.f32 %v12740_v2, %v6687_v3 }
 0x748   : > { %v7795_v1 = vld [vmem:[#allocation6 + $0x38] sm:$0xff]  ;;  %10064 = vmatmul.msk.f32.gmra.mxu3 %vm909_vm3, %v7520_v38  ;;  %v6688_v38 = vadd.f32 %v12753_v35, %v6527_v21  ;;  %v6530_v35 = vadd.f32 %v12775_v47, %v12773_v58  ;;  %v6533_v47 = vadd.f32 %v12814_v41, %v12812_v34 }
 0x749   : > { %v7948_v4 = vld [vmem:[#allocation6 + $0x31] sm:$0xff]  ;;  %10088 = vmatmul.msk.f32.gmra.mxu0 %vm909_vm3, %v7795_v1  ;;  %v7454_v30 = vadd.f32 %v7422_v61, %v7300_v46 }
 0x74a   : > { %10111 = vmatmul.msk.f32.gmra.mxu1 %vm909_vm3, %v7948_v4  ;;  %v6963_v29 = vpop.f32.mrf.mxu2 }
 0x74b   : > { %v7117_v55 = vpop.f32.mrf.mxu3  ;;  %v7474_v37 = vadd.f32 %v12883_v43, %v7454_v30  ;;  %v6993_v59 = vadd.f32 %v6963_v29, %v6839_v32 }
 0x74d   : > { %v7490_v17 = vmax.f32 %v7474_v37, 0.0  ;;  %v7147_v12 = vadd.f32 %v7117_v55, %v6993_v59  ;;  %v6842_v37 = vadd.f32 %v12755_v44, %v6688_v38 }
 0x74e   : > { %v7274_v9 = vpop.f32.mrf.mxu0  ;;  %v7545_v15 = vld [vmem:[#allocation6 + $0x3f] sm:$0xff] }
 0x74f   : > { %v7428_v60 = vpop.f32.mrf.mxu1  ;;  %v7521_v28 = vld [vmem:[#allocation6 + $0x3e] sm:$0xff]  ;;  %7506 = vst.msk [vmem:[#allocation6 + $0x48] sm:$0xff] %vm909_vm3, %v7490_v17  ;;  %v7301_v6 = vadd.f32 %v7271_v7, %v7147_v12  ;;  %10049 = vmatmul.msk.f32.gmra.mxu2 %vm909_vm3, %v7545_v15 }
 0x750   : > { %v7796_v33 = vld [vmem:[#allocation6 + $0x40] sm:$0xff]  ;;  %10065 = vmatmul.msk.f32.gmra.mxu3 %vm909_vm3, %v7521_v28 }
 0x751   : > { %v7949_v14 = vld [vmem:[#allocation6 + $0x39] sm:$0xff]  ;;  %10089 = vmatmul.msk.f32.gmra.mxu0 %vm909_vm3, %v7796_v33  ;;  %v7455_v61 = vadd.f32 %v7425_v54, %v7301_v6 }
 0x752   : > { %10112 = vmatmul.msk.f32.gmra.mxu1 %vm909_vm3, %v7949_v14  ;;  %v6966_v26 = vpop.f32.mrf.mxu2 }
 0x753   : > { %v7120_v16 = vpop.f32.mrf.mxu3  ;;  %v7475_v50 = vadd.f32 %v12883_v43, %v7455_v61  ;;  %v6994_v63 = vadd.f32 %v6966_v26, %v6840_v53 }
 0x755   : > { %v7491_v27 = vmax.f32 %v7475_v50, 0.0  ;;  %v7148_v31 = vadd.f32 %v7120_v16, %v6994_v63  ;;  %v6690_v63 = vadd.f32 %v12783_v42, %v6533_v47  ;;  %v6536_v42 = vadd.f32 %v12856_v19, %v12854_v22 }
 0x756   : > { %v7277_v51 = vpop.f32.mrf.mxu0  ;;  %v7546_v5 = vld [vmem:[#allocation6 + $0x47] sm:$0xff] }
 0x757   : > { %v7522_v57 = vld [vmem:[#allocation6 + $0x46] sm:$0xff]  ;;  %7507 = vst.msk [vmem:[#allocation6 + $0x50] sm:$0xff] %vm909_vm3, %v7491_v27  ;;  %v7302_v23 = vadd.f32 %v7274_v9, %v7148_v31  ;;  %v7431_v0 = vpop.f32.mrf.mxu1  ;;  %10050 = vmatmul.msk.f32.gmra.mxu2 %vm909_vm3, %v7546_v5  ;;  %v6689_v9 = vadd.f32 %v12765_v25, %v6530_v35 }
 0x758   : > { %v7797_v49 = vld [vmem:[#allocation6 + $0x48] sm:$0xff]  ;;  %10066 = vmatmul.msk.f32.gmra.mxu3 %vm909_vm3, %v7522_v57  ;;  %v10122_v25 = vld [vmem:[%s13587_s10 + $0x100] sm:$0xff]  ;;  %v6844_v57 = vadd.f32 %v12785_v8, %v6690_v63  ;;  %s9097_s10 = scalar_lea.hbm %s13518_s28, %s10544_s3 }
 0x759   : > { %v7950_v62 = vld [vmem:[#allocation6 + $0x41] sm:$0xff]  ;;  %10090 = vmatmul.msk.f32.gmra.mxu0 %vm909_vm3, %v7797_v49  ;;  %v7456_v56 = vadd.f32 %v7428_v60, %v7302_v23  ;;  %v6843_v13 = vadd.f32 %v12767_v18, %v6689_v9  ;;  %8185 = vmatpush.msra.mxu2 %v10122_v25  ;;  %v8097_v25 = vld [vmem:[#allocation6 + $0xa] sm:$0xff]  ;;  %s9101_s11 = sshll.u32 %s9097_s10, 4  ;;  %s9102_s11 = int_to_ptr.hbm [resolvable:$true] %s9101_s11 }
 0x75a   : > { %10113 = vmatmul.msk.f32.gmra.mxu1 %vm909_vm3, %v7950_v62  ;;  %v6969_v39 = vpop.f32.mrf.mxu2  ;;  %s10294_s29 = sshra.s32 %s9102_s11, 4  ;;  %s10295_s29 = int_to_ptr.hbm [resolvable:$true] %s10294_s29 }
 0x75b   : > { %v7123_v7 = vpop.f32.mrf.mxu3  ;;  %v7476_v54 = vadd.f32 %v12883_v43, %v7456_v56  ;;  %v6995_v11 = vadd.f32 %v6969_v39, %v6841_v52  ;;  %v6691_v56 = vadd.f32 %v12825_v48, %v6536_v42  ;;  %v8102_v42 = vld [vmem:[#allocation6 + $0x32] sm:$0xff]  ;;  %s10296_s1 = scalar_lea.hbm %s10295_s29, 1  ;;  %p10301_p0 = scmp.lt.s32.totalorder %s10295_s29, %s13518_s28 }
 0x75c   : > { %p10297_p11 = scmp.ne.s32.totalorder %s10295_s29, %s10296_s1  ;;  %p10302_p1 = scmp.lt.s32.totalorder %s10300_s16, %s10296_s1 }
 0x75d   : > { %v7492_v1 = vmax.f32 %v7476_v54, 0.0  ;;  %v7149_v46 = vadd.f32 %v7123_v7, %v6995_v11  ;;  %v6845_v48 = vadd.f32 %v12827_v20, %v6691_v56  ;;  %v8322_v56 = vld [vmem:[%s13588_s13 + $0x18] sm:$0xff] }
 0x75e   : > { %v7547_v4 = vld [vmem:[#allocation6 + $0x4f] sm:$0xff]  ;;  %v7280_v29 = vpop.f32.mrf.mxu0  ;;  %p10298_p12 = pnand %p10297_p11, %p10561_p5  ;;  %p10303_p2 = por %p10302_p1, %p10301_p0 }
 0x75f   : > { %v7523_v45 = vld [vmem:[#allocation6 + $0x4e] sm:$0xff]  ;;  %7508 = vst.msk [vmem:[#allocation6 + $0x58] sm:$0xff] %vm909_vm3, %v7492_v1  ;;  %v7303_v32 = vadd.f32 %v7277_v51, %v7149_v46  ;;  %10051 = vmatmul.msk.f32.gmra.mxu2 %vm909_vm3, %v7547_v4  ;;  %v7434_v55 = vpop.f32.mrf.mxu1 }
 0x760   : > { %v7798_v30 = vld [vmem:[#allocation6 + $0x50] sm:$0xff]  ;;  %10067 = vmatmul.msk.f32.gmra.mxu3 %vm909_vm3, %v7523_v45  ;;  %p10299_p13 = pneg %p10298_p12 }
 0x761   : > { %v7951_v2 = vld [vmem:[#allocation6 + $0x49] sm:$0xff]  ;;  %10091 = vmatmul.msk.f32.gmra.mxu0 %vm909_vm3, %v7798_v30  ;;  %v7457_v10 = vadd.f32 %v7431_v0, %v7303_v32 }
 0x762   : > { %10114 = vmatmul.msk.f32.gmra.mxu1 %vm909_vm3, %v7951_v2  ;;  %v6972_v59 = vpop.f32.mrf.mxu2  ;;  %p10304_p3 = pnand %p10303_p2, %p10299_p13 }
 0x763   : > { %v7126_v36 = vpop.f32.mrf.mxu3  ;;  %v7477_v17 = vadd.f32 %v12883_v43, %v7457_v10  ;;  %v6996_v12 = vadd.f32 %v6972_v59, %v6842_v37 }
 0x765   : > { %v7493_v60 = vmax.f32 %v7477_v17, 0.0  ;;  %v7150_v15 = vadd.f32 %v7126_v36, %v6996_v12 }
 0x766   : > { %v7548_v28 = vld [vmem:[#allocation6 + $0x57] sm:$0xff]  ;;  %v7283_v40 = vpop.f32.mrf.mxu0 }
 0x767   : > { %v7524_v33 = vld [vmem:[#allocation6 + $0x56] sm:$0xff]  ;;  %7509 = vst.msk [vmem:[#allocation6 + $0x60] sm:$0xff] %vm909_vm3, %v7493_v60  ;;  %v7304_v58 = vadd.f32 %v7280_v29, %v7150_v15  ;;  %10052 = vmatmul.msk.f32.gmra.mxu2 %vm909_vm3, %v7548_v28  ;;  %v7437_v50 = vpop.f32.mrf.mxu1 }
 0x768   : > { %v7799_v6 = vld [vmem:[#allocation6 + $0x58] sm:$0xff]  ;;  %10068 = vmatmul.msk.f32.gmra.mxu3 %vm909_vm3, %v7524_v33 }
 0x769   : > { %v7952_v44 = vld [vmem:[#allocation6 + $0x51] sm:$0xff]  ;;  %10092 = vmatmul.msk.f32.gmra.mxu0 %vm909_vm3, %v7799_v6  ;;  %v7458_v14 = vadd.f32 %v7434_v55, %v7304_v58 }
 0x76a   : > { %10115 = vmatmul.msk.f32.gmra.mxu1 %vm909_vm3, %v7952_v44  ;;  %v6975_v61 = vpop.f32.mrf.mxu2  ;;  %v10153_v15 = vld [vmem:[%s13588_s13 + $0x78] sm:$0xff] }
 0x76b   : > { %v7129_v53 = vpop.f32.mrf.mxu3  ;;  %v7478_v26 = vadd.f32 %v12883_v43, %v7458_v14  ;;  %v6997_v16 = vadd.f32 %v6975_v61, %v6843_v13  ;;  %8408 = vmatpush.msra.mxu3 %v10153_v15  ;;  %v8326_v58 = vld [vmem:[%s13588_s13 + $0x38] sm:$0xff]  ;;  %v10152_v14 = vld [vmem:[%s13588_s13 + $0x70] sm:$0xff] }
 0x76c   : > { %v10193_v44 = vld [vmem:[%s13588_s13 + $0xb8] sm:$0xff]  ;;  %8521 = vmatpush.msra.mxu0 %v8326_v58  ;;  %v8325_v61 = vld [vmem:[%s13588_s13 + $0x30] sm:$0xff] }
 0x76d   : > { %v7494_v3 = vmax.f32 %v7478_v26, 0.0  ;;  %v7151_v27 = vadd.f32 %v7129_v53, %v6997_v16  ;;  %8659 = vmatpush.msra.mxu1 %v10193_v44  ;;  %8409 = vmatpush.msra.mxu3 %v10152_v14  ;;  %v8098_v13 = vld [vmem:[#allocation6 + $0x12] sm:$0xff]  ;;  %v8099_v16 = vld [vmem:[#allocation6 + $0x1a] sm:$0xff] }
 0x76e   : > { %v7549_v31 = vld [vmem:[#allocation6 + $0x5f] sm:$0xff]  ;;  %v7286_v21 = vpop.f32.mrf.mxu0  ;;  %v10192_v53 = vld [vmem:[%s13588_s13 + $0xb0] sm:$0xff]  ;;  %8522 = vmatpush.msra.mxu0 %v8325_v61 }
 0x76f   : > { %v7525_v51 = vld [vmem:[#allocation6 + $0x5e] sm:$0xff]  ;;  %7510 = vst.msk [vmem:[#allocation6 + $0x68] sm:$0xff] %vm909_vm3, %v7494_v3  ;;  %v7305_v34 = vadd.f32 %v7283_v40, %v7151_v27  ;;  %10053 = vmatmul.msk.f32.gmra.mxu2 %vm909_vm3, %v7549_v31  ;;  %v7440_v7 = vpop.f32.mrf.mxu1  ;;  %8660 = vmatpush.msra.mxu1 %v10192_v53  ;;  %v8324_v27 = vld [vmem:[%s13588_s13 + $0x28] sm:$0xff] }
 0x770   : > { %v7800_v5 = vld [vmem:[#allocation6 + $0x60] sm:$0xff]  ;;  %10069 = vmatmul.msk.f32.gmra.mxu3 %vm909_vm3, %v7525_v51  ;;  %v10191_v31 = vld [vmem:[%s13588_s13 + $0xa8] sm:$0xff]  ;;  %8523 = vmatpush.msra.mxu0 %v8324_v27 }
 0x771   : > { %v7953_v18 = vld [vmem:[#allocation6 + $0x59] sm:$0xff]  ;;  %10093 = vmatmul.msk.f32.gmra.mxu0 %vm909_vm3, %v7800_v5  ;;  %v7459_v41 = vadd.f32 %v7437_v50, %v7305_v34  ;;  %v10151_v50 = vld [vmem:[%s13588_s13 + $0x68] sm:$0xff]  ;;  %8661 = vmatpush.msra.mxu1 %v10191_v31 }
 0x772   : > { %10116 = vmatmul.msk.f32.gmra.mxu1 %vm909_vm3, %v7953_v18  ;;  %v6978_v49 = vpop.f32.mrf.mxu2  ;;  %8410 = vmatpush.msra.mxu3 %v10151_v50  ;;  %v8100_v3 = vld [vmem:[#allocation6 + $0x22] sm:$0xff]  ;;  %v8101_v5 = vld [vmem:[#allocation6 + $0x2a] sm:$0xff]  ;;  %v13166_v50 = vld [vmem:[%s13511_s21] ss:$0 sm:$0xff] }
 0x773   : > { %v7132_v23 = vpop.f32.mrf.mxu3  ;;  %v7479_v0 = vadd.f32 %v12883_v43, %v7459_v41  ;;  %v6998_v62 = vadd.f32 %v6978_v49, %v6844_v57  ;;  %v10150_v34 = vld [vmem:[%s13588_s13 + $0x60] sm:$0xff] }
 0x774   : > { %8411 = vmatpush.msra.mxu3 %v10150_v34  ;;  %v8323_v41 = vld [vmem:[%s13588_s13 + $0x20] sm:$0xff] }
 0x775   : > { %v7495_v52 = vmax.f32 %v7479_v0, 0.0  ;;  %v7152_v39 = vadd.f32 %v7132_v23, %v6998_v62  ;;  %v10190_v57 = vld [vmem:[%s13588_s13 + $0xa0] sm:$0xff]  ;;  %8524 = vmatpush.msra.mxu0 %v8323_v41  ;;  %v10149_v0 = vld [vmem:[%s13588_s13 + $0x58] sm:$0xff] }
 0x776   : > { %v7550_v54 = vld [vmem:[#allocation6 + $0x67] sm:$0xff]  ;;  %v7289_v29 = vpop.f32.mrf.mxu0  ;;  %8662 = vmatpush.msra.mxu1 %v10190_v57  ;;  %v8103_v23 = vld [vmem:[#allocation6 + $0x3a] sm:$0xff]  ;;  %8412 = vmatpush.msra.mxu3 %v10149_v0 }
 0x777   : > { %v7526_v11 = vld [vmem:[#allocation6 + $0x66] sm:$0xff]  ;;  %7511 = vst.msk [vmem:[#allocation6 + $0x70] sm:$0xff] %vm909_vm3, %v7495_v52  ;;  %v7306_v22 = vadd.f32 %v7286_v21, %v7152_v39  ;;  %10054 = vmatmul.msk.f32.gmra.mxu2 %vm909_vm3, %v7550_v54  ;;  %v7443_v20 = vpop.f32.mrf.mxu1  ;;  %v10189_v52 = vld [vmem:[%s13588_s13 + $0x98] sm:$0xff]  ;;  %8525 = vmatpush.msra.mxu0 %v8322_v56  ;;  %v10148_v54 = vld [vmem:[%s13588_s13 + $0x50] sm:$0xff] }
 0x778   : > { %v7801_v38 = vld [vmem:[#allocation6 + $0x68] sm:$0xff]  ;;  %10070 = vmatmul.msk.f32.gmra.mxu3 %vm909_vm3, %v7526_v11  ;;  %8663 = vmatpush.msra.mxu1 %v10189_v52 }
 0x779   : > { %v7954_v8 = vld [vmem:[#allocation6 + $0x61] sm:$0xff]  ;;  %10094 = vmatmul.msk.f32.gmra.mxu0 %vm909_vm3, %v7801_v38  ;;  %v7460_v19 = vadd.f32 %v7440_v7, %v7306_v22  ;;  %v8105_v7 = vld [vmem:[#allocation6 + $0x4a] sm:$0xff]  ;;  %8413 = vmatpush.msra.mxu3 %v10148_v54  ;;  %v8106_v38 = vld [vmem:[#allocation6 + $0x52] sm:$0xff] }
 0x77a   : > { %10117 = vmatmul.msk.f32.gmra.mxu1 %vm909_vm3, %v7954_v8  ;;  %v6981_v1 = vpop.f32.mrf.mxu2  ;;  %v8104_v21 = vld [vmem:[#allocation6 + $0x42] sm:$0xff]  ;;  %v8321_v22 = vld [vmem:[%s13588_s13 + $0x10] sm:$0xff] }
 0x77b   : > { %v7480_v46 = vadd.f32 %v12883_v43, %v7460_v19  ;;  %v6999_v4 = vadd.f32 %v6981_v1, %v6845_v48  ;;  %v7135_v45 = vpop.f32.mrf.mxu3  ;;  %v10188_v8 = vld [vmem:[%s13588_s13 + $0x90] sm:$0xff]  ;;  %8526 = vmatpush.msra.mxu0 %v8321_v22  ;;  %v8107_v48 = vld [vmem:[#allocation6 + $0x5a] sm:$0xff]  ;;  %v10147_v1 = vld [vmem:[%s13588_s13 + $0x48] sm:$0xff] }
 0x77c   : > { %8664 = vmatpush.msra.mxu1 %v10188_v8  ;;  %8414 = vmatpush.msra.mxu3 %v10147_v1 }
 0x77d   : > { %v7496_v30 = vmax.f32 %v7480_v46, 0.0  ;;  %v7153_v32 = vadd.f32 %v7135_v45, %v6999_v4  ;;  %v8108_v4 = vld [vmem:[#allocation6 + $0x62] sm:$0xff] }
 0x77e   : > { %v7551_v2 = vld [vmem:[#allocation6 + $0x6f] sm:$0xff] }
 0x77f   : > { %v7527_v24 = vld [vmem:[#allocation6 + $0x6e] sm:$0xff]  ;;  %7512 = vst.msk [vmem:[#allocation6 + $0x78] sm:$0xff] %vm909_vm3, %v7496_v30  ;;  %v7307_v10 = vadd.f32 %v7289_v29, %v7153_v32  ;;  %10055 = vmatmul.msk.f32.gmra.mxu2 %vm909_vm3, %v7551_v2 }
 0x780   : > { %v7802_v35 = vld [vmem:[#allocation6 + $0x70] sm:$0xff]  ;;  %10071 = vmatmul.msk.f32.gmra.mxu3 %vm909_vm3, %v7527_v24  ;;  %v8320_v45 = vld [vmem:[%s13588_s13 + $0x8] sm:$0xff] }
 0x781   : > { %v7955_v55 = vld [vmem:[#allocation6 + $0x69] sm:$0xff]  ;;  %10095 = vmatmul.msk.f32.gmra.mxu0 %vm909_vm3, %v7802_v35  ;;  %v7461_v37 = vadd.f32 %v7443_v20, %v7307_v10  ;;  %v10146_v35 = vld [vmem:[%s13588_s13 + $0x40] sm:$0xff] }
 0x782   : > { %10118 = vmatmul.msk.f32.gmra.mxu1 %vm909_vm3, %v7955_v55  ;;  %v10187_v30 = vld [vmem:[%s13588_s13 + $0x88] sm:$0xff]  ;;  %8527 = vmatpush.msra.mxu0 %v8320_v45 }
 0x783   : > { %v7481_v59 = vadd.f32 %v12883_v43, %v7461_v37  ;;  %8665 = vmatpush.msra.mxu1 %v10187_v30  ;;  %v8109_v24 = vld [vmem:[#allocation6 + $0x6a] sm:$0xff]  ;;  %8415 = vmatpush.msra.mxu3 %v10146_v35 }
 0x785   : > { %v7497_v36 = vmax.f32 %v7481_v59, 0.0 }
 0x786   : > { %v7552_v17 = vld [vmem:[#allocation6 + $0x77] sm:$0xff] }
 0x787   : > { %v7528_v12 = vld [vmem:[#allocation6 + $0x76] sm:$0xff]  ;;  %7513 = vst.msk [vmem:[#allocation6 + $0x80] sm:$0xff] %vm909_vm3, %v7497_v36  ;;  %10056 = vmatmul.msk.f32.gmra.mxu2 %vm909_vm3, %v7552_v17  ;;  %v8319_v36 = vld [vmem:[%s13588_s13] sm:$0xff] }
 0x788   : > { %v7803_v9 = vld [vmem:[#allocation6 + $0x78] sm:$0xff]  ;;  %10072 = vmatmul.msk.f32.gmra.mxu3 %vm909_vm3, %v7528_v12  ;;  %v10186_v17 = vld [vmem:[%s13588_s13 + $0x80] sm:$0xff]  ;;  %8528 = vmatpush.msra.mxu0 %v8319_v36  ;;  %s9099_s13 = sshll.u32 %s847_s0, 4  ;;  %s9100_s13 = int_to_ptr.vmem [resolvable:$true] %s9099_s13 }
 0x789   : > { %v7956_v60 = vld [vmem:[#allocation6 + $0x71] sm:$0xff]  ;;  %10096 = vmatmul.msk.f32.gmra.mxu0 %vm909_vm3, %v7803_v9  ;;  %8666 = vmatpush.msra.mxu1 %v10186_v17 }
 0x78a   : > { %10119 = vmatmul.msk.f32.gmra.mxu1 %vm909_vm3, %v7956_v60  ;;  %v8110_v37 = vld [vmem:[#allocation6 + $0x72] sm:$0xff] }
 0x78e   : > { %v7553_v43 = vld [vmem:[#allocation6 + $0x7f] sm:$0xff] }
 0x78f   : > { %v7529_v28 = vld [vmem:[#allocation6 + $0x7e] sm:$0xff]  ;;  %10057 = vmatmul.msk.f32.gmra.mxu2 %vm909_vm3, %v7553_v43 }
 0x790   : > { %v7804_v33 = vld [vmem:[#allocation6 + $0x80] sm:$0xff]  ;;  %10073 = vmatmul.msk.f32.gmra.mxu3 %vm909_vm3, %v7529_v28 }
 0x791   : > { %v7957_v6 = vld [vmem:[#allocation6 + $0x79] sm:$0xff]  ;;  %10097 = vmatmul.msk.f32.gmra.mxu0 %vm909_vm3, %v7804_v33  ;;  %v7958_v47 = vld [vmem:[#allocation6 + $0x81] sm:$0xff] }
 0x792   : > { %10120 = vmatmul.msk.f32.gmra.mxu1 %vm909_vm3, %v7957_v6  ;;  %v8111_v15 = vld [vmem:[#allocation6 + $0x7a] sm:$0xff]  ;;  %v8112_v58 = vld [vmem:[#allocation6 + $0x82] sm:$0xff] }
 0x796   : > { %v7879_v2 = vpop.f32.mrf.mxu0 }
 0x797   : > { %10130 = vmatmul.msk.f32.vlgmr.msra.gmra.mxu2 %vm909_vm3, %v8097_v25 }
 0x79a   : > { %10121 = vmatmul.msk.f32.gmra.mxu1 %vm909_vm3, %v7958_v47  ;;  %v13054_v40 = vpop.f32.mrf.mxu2 }
 0x79b   : > { %v7741_v32 = vpop.f32.mrf.mxu3 }
 0x79c   : > { %v7742_v44 = vadd.f32 %v7741_v32, %v13054_v40 }
 0x79e   : > { %v7882_v59 = vpop.f32.mrf.mxu0  ;;  %v7927_v14 = vadd.f32 %v7879_v2, %v7742_v44 }
 0x79f   : > { %10131 = vmatmul.msk.f32.gmra.mxu2 %vm909_vm3, %v8098_v13  ;;  %v8033_v10 = vpop.f32.mrf.mxu1 }
 0x7a0   : > { %v8081_v53 = vadd.f32 %v8033_v10, %v7927_v14 }
 0x7a2   : > { %v13063_v26 = vpop.f32.mrf.mxu2 }
 0x7a3   : > { %v7744_v55 = vpop.f32.mrf.mxu3 }
 0x7a6   : > { %v7885_v43 = vpop.f32.mrf.mxu0 }
 0x7a7   : > { %10132 = vmatmul.msk.f32.gmra.mxu2 %vm909_vm3, %v8099_v16  ;;  %v8036_v9 = vpop.f32.mrf.mxu1  ;;  %v7745_v16 = vadd.f32 %v7744_v55, %v13063_v26 }
 0x7a9   : > { %v7928_v31 = vadd.f32 %v7882_v59, %v7745_v16 }
 0x7aa   : > { %v13069_v63 = vpop.f32.mrf.mxu2 }
 0x7ab   : > { %v7747_v60 = vpop.f32.mrf.mxu3 }
 0x7ac   : > { %v7748_v41 = vadd.f32 %v7747_v60, %v13069_v63 }
 0x7ae   : > { %v7888_v47 = vpop.f32.mrf.mxu0 }
 0x7af   : > { %10133 = vmatmul.msk.f32.gmra.mxu2 %vm909_vm3, %v8100_v3  ;;  %v8039_v33 = vpop.f32.mrf.mxu1 }
 0x7b2   : > { %v13078_v51 = vpop.f32.mrf.mxu2 }
 0x7b3   : > { %v7750_v6 = vpop.f32.mrf.mxu3 }
 0x7b4   : > { %v7751_v8 = vadd.f32 %v7750_v6, %v13078_v51 }
 0x7b6   : > { %v7891_v40 = vpop.f32.mrf.mxu0  ;;  %v7930_v45 = vadd.f32 %v7888_v47, %v7751_v8 }
 0x7b7   : > { %10134 = vmatmul.msk.f32.gmra.mxu2 %vm909_vm3, %v8101_v5  ;;  %v8042_v13 = vpop.f32.mrf.mxu1 }
 0x7b8   : > { %v8084_v10 = vadd.f32 %v8042_v13, %v7930_v45 }
 0x7ba   : > { %v13084_v18 = vpop.f32.mrf.mxu2 }
 0x7bb   : > { %v7753_v61 = vpop.f32.mrf.mxu3 }
 0x7bc   : > { %v7754_v51 = vadd.f32 %v7753_v61, %v13084_v18 }
 0x7be   : > { %v7931_v36 = vadd.f32 %v7891_v40, %v7754_v51 }
 0x7bf   : > { %10135 = vmatmul.msk.f32.gmra.mxu2 %vm909_vm3, %v8102_v42  ;;  %v8082_v42 = vadd.f32 %v8036_v9, %v7928_v31  ;;  %v8045_v57 = vpop.f32.mrf.mxu1 }
 0x7c0   : > { %v8085_v6 = vadd.f32 %v8045_v57, %v7931_v36 }
 0x7c2   : > { %v13093_v49 = vpop.f32.mrf.mxu2 }
 0x7c7   : > { %10136 = vmatmul.msk.f32.gmra.mxu2 %vm909_vm3, %v8103_v23  ;;  %v7756_v23 = vpop.f32.mrf.mxu3 }
 0x7ca   : > { %v13099_v62 = vpop.f32.mrf.mxu2 }
 0x7cf   : > { %10137 = vmatmul.msk.f32.gmra.mxu2 %vm909_vm3, %v8104_v21  ;;  %v7929_v21 = vadd.f32 %v7885_v43, %v7748_v41 }
 0x7d1   : > { %v8083_v22 = vadd.f32 %v8039_v33, %v7929_v21 }
 0x7d2   : > { %v13108_v39 = vpop.f32.mrf.mxu2 }
 0x7d7   : > { %10138 = vmatmul.msk.f32.gmra.mxu2 %vm909_vm3, %v8105_v7  ;;  %v7894_v7 = vpop.f32.mrf.mxu0 }
 0x7da   : > { %v13114_v11 = vpop.f32.mrf.mxu2 }
 0x7df   : > { %10139 = vmatmul.msk.f32.gmra.mxu2 %vm909_vm3, %v8106_v38  ;;  %v7897_v55 = vpop.f32.mrf.mxu0 }
 0x7e2   : > { %v13123_v19 = vpop.f32.mrf.mxu2 }
 0x7e7   : > { %10140 = vmatmul.msk.f32.gmra.mxu2 %vm909_vm3, %v8107_v48  ;;  %v8048_v48 = vpop.f32.mrf.mxu1  ;;  %v7900_v14 = vpop.f32.mrf.mxu0 }
 0x7ea   : > { %v13129_v46 = vpop.f32.mrf.mxu2 }
 0x7ef   : > { %10141 = vmatmul.msk.f32.gmra.mxu2 %vm909_vm3, %v8108_v4  ;;  %v7759_v4 = vpop.f32.mrf.mxu3  ;;  %v8051_v17 = vpop.f32.mrf.mxu1 }
 0x7f0   : > { %v7760_v40 = vadd.f32 %v7759_v4, %v13099_v62 }
 0x7f2   : > { %v13138_v29 = vpop.f32.mrf.mxu2  ;;  %v7933_v41 = vadd.f32 %v7897_v55, %v7760_v40 }
 0x7f7   : > { %10142 = vmatmul.msk.f32.gmra.mxu2 %vm909_vm3, %v8109_v24  ;;  %v7762_v60 = vpop.f32.mrf.mxu3 }
 0x7f8   : > { %v7763_v62 = vadd.f32 %v7762_v60, %v13108_v39 }
 0x7fa   : > { %v13144_v20 = vpop.f32.mrf.mxu2  ;;  %v7934_v8 = vadd.f32 %v7900_v14, %v7763_v62 }
 0x7ff   : > { %10143 = vmatmul.msk.f32.gmra.mxu2 %vm909_vm3, %v8110_v37 }
 0x802   : > { %v13153_v12 = vpop.f32.mrf.mxu2 }
 0x807   : > { %10144 = vmatmul.msk.f32.gmra.mxu2 %vm909_vm3, %v8111_v15 }
 0x80a   : > { %v13156_v28 = vpop.f32.mrf.mxu2 }
 0x80f   : > { %10145 = vmatmul.msk.f32.gmra.mxu2 %vm909_vm3, %v8112_v58  ;;  %v7757_v58 = vadd.f32 %v7756_v23, %v13093_v49  ;;  %v7903_v23 = vpop.f32.mrf.mxu0 }
 0x811   : > { %v7932_v13 = vadd.f32 %v7894_v7, %v7757_v58 }
 0x812   : > { %v13160_v25 = vpop.f32.mrf.mxu2 }
 0x81a   : > { %v8187_v3 = vpop.f32.mrf.mxu2 }
 0x81b   : > { %v8235_v27 = vadd.f32 %v8187_v3, %v8081_v53  ;;  %v8054_v53 = vpop.f32.mrf.mxu1  ;;  %v7765_v3 = vpop.f32.mrf.mxu3 }
 0x81d   : > { %v8255_v5 = vadd.f32 %v13166_v50, %v8235_v27 }
 0x81f   : > { %v8271_v34 = vmax.f32 %v8255_v5, 0.0  ;;  %v8086_v5 = vadd.f32 %v8048_v48, %v7932_v13 }
 0x821   : > { %8287 = vst.msk [vmem:[#allocation6 + $0x8] sm:$0xff] %vm909_vm3, %v8271_v34 }
 0x822   : > { %v8190_v26 = vpop.f32.mrf.mxu2 }
 0x823   : > { %v8236_v0 = vadd.f32 %v8190_v26, %v8082_v42  ;;  %v8057_v7 = vpop.f32.mrf.mxu1 }
 0x825   : > { %v8256_v56 = vadd.f32 %v13166_v50, %v8236_v0 }
 0x827   : > { %v8272_v52 = vmax.f32 %v8256_v56, 0.0 }
 0x828   : > { %v8327_v54 = vld [vmem:[#allocation6 + $0x8] sm:$0xff] }
 0x829   : > { %v8303_v38 = vld [vmem:[#allocation6 + $0x7] sm:$0xff]  ;;  %8288 = vst.msk [vmem:[#allocation6 + $0x10] sm:$0xff] %vm909_vm3, %v8272_v52  ;;  %10154 = vmatmul.msk.f32.vlgmr.msra.gmra.mxu3 %vm909_vm3, %v8327_v54  ;;  %v8087_v52 = vadd.f32 %v8051_v17, %v7933_v41  ;;  %v7768_v54 = vpop.f32.mrf.mxu3 }
 0x82a   : > { %10170 = vmatmul.msk.f32.vlgmr.msra.gmra.mxu0 %vm909_vm3, %v8303_v38  ;;  %v8193_v63 = vpop.f32.mrf.mxu2 }
 0x82b   : > { %v8237_v1 = vadd.f32 %v8193_v63, %v8083_v22 }
 0x82d   : > { %v8257_v30 = vadd.f32 %v13166_v50, %v8237_v1  ;;  %v7906_v1 = vpop.f32.mrf.mxu0 }
 0x82f   : > { %v8273_v32 = vmax.f32 %v8257_v30, 0.0  ;;  %v8088_v30 = vadd.f32 %v8054_v53, %v7934_v8 }
 0x830   : > { %v8328_v2 = vld [vmem:[#allocation6 + $0x10] sm:$0xff] }
 0x831   : > { %v8304_v24 = vld [vmem:[#allocation6 + $0xf] sm:$0xff]  ;;  %8289 = vst.msk [vmem:[#allocation6 + $0x18] sm:$0xff] %vm909_vm3, %v8273_v32  ;;  %10155 = vmatmul.msk.f32.gmra.mxu3 %vm909_vm3, %v8328_v2  ;;  %v7766_v32 = vadd.f32 %v7765_v3, %v13114_v11 }
 0x832   : > { %v8578_v35 = vld [vmem:[#allocation6 + $0x9] sm:$0xff]  ;;  %10171 = vmatmul.msk.f32.gmra.mxu0 %vm909_vm3, %v8304_v24  ;;  %v8196_v37 = vpop.f32.mrf.mxu2  ;;  %v8060_v24 = vpop.f32.mrf.mxu1 }
 0x833   : > { %10194 = vmatmul.msk.f32.vlgmr.msra.gmra.mxu1 %vm909_vm3, %v8578_v35  ;;  %v8238_v59 = vadd.f32 %v8196_v37, %v8084_v10  ;;  %v7771_v10 = vpop.f32.mrf.mxu3  ;;  %v7935_v51 = vadd.f32 %v7903_v23, %v7766_v32 }
 0x835   : > { %v8258_v9 = vadd.f32 %v13166_v50, %v8238_v59  ;;  %v8089_v11 = vadd.f32 %v8057_v7, %v7935_v51  ;;  %v7909_v60 = vpop.f32.mrf.mxu0 }
 0x837   : > { %v8274_v15 = vmax.f32 %v8258_v9, 0.0  ;;  %v7769_v9 = vadd.f32 %v7768_v54, %v13123_v19 }
 0x838   : > { %v8329_v43 = vld [vmem:[#allocation6 + $0x18] sm:$0xff] }
 0x839   : > { %v8305_v33 = vld [vmem:[#allocation6 + $0x17] sm:$0xff]  ;;  %8290 = vst.msk [vmem:[#allocation6 + $0x20] sm:$0xff] %vm909_vm3, %v8274_v15  ;;  %10156 = vmatmul.msk.f32.gmra.mxu3 %vm909_vm3, %v8329_v43 }
 0x83a   : > { %v8579_v18 = vld [vmem:[#allocation6 + $0x11] sm:$0xff]  ;;  %10172 = vmatmul.msk.f32.gmra.mxu0 %vm909_vm3, %v8305_v33  ;;  %v8199_v44 = vpop.f32.mrf.mxu2  ;;  %v7936_v33 = vadd.f32 %v7906_v1, %v7769_v9 }
 0x83b   : > { %10195 = vmatmul.msk.f32.gmra.mxu1 %vm909_vm3, %v8579_v18  ;;  %v8239_v47 = vadd.f32 %v8199_v44, %v8085_v6  ;;  %v8063_v18 = vpop.f32.mrf.mxu1  ;;  %v7774_v58 = vpop.f32.mrf.mxu3 }
 0x83c   : > { %v8090_v13 = vadd.f32 %v8060_v24, %v7936_v33 }
 0x83d   : > { %v8259_v61 = vadd.f32 %v13166_v50, %v8239_v47  ;;  %v7912_v3 = vpop.f32.mrf.mxu0 }
 0x83f   : > { %v8275_v16 = vmax.f32 %v8259_v61, 0.0  ;;  %v7772_v61 = vadd.f32 %v7771_v10, %v13129_v46 }
 0x840   : > { %v8330_v27 = vld [vmem:[#allocation6 + $0x20] sm:$0xff] }
 0x841   : > { %v8306_v31 = vld [vmem:[#allocation6 + $0x1f] sm:$0xff]  ;;  %8291 = vst.msk [vmem:[#allocation6 + $0x28] sm:$0xff] %vm909_vm3, %v8275_v16  ;;  %10157 = vmatmul.msk.f32.gmra.mxu3 %vm909_vm3, %v8330_v27  ;;  %v7937_v27 = vadd.f32 %v7909_v60, %v7772_v61 }
 0x842   : > { %v8580_v49 = vld [vmem:[#allocation6 + $0x19] sm:$0xff]  ;;  %10173 = vmatmul.msk.f32.gmra.mxu0 %vm909_vm3, %v8306_v31  ;;  %v8202_v34 = vpop.f32.mrf.mxu2 }
 0x843   : > { %10196 = vmatmul.msk.f32.gmra.mxu1 %vm909_vm3, %v8580_v49  ;;  %v8240_v42 = vadd.f32 %v8202_v34, %v8086_v5  ;;  %v8066_v49 = vpop.f32.mrf.mxu1  ;;  %v7777_v40 = vpop.f32.mrf.mxu3  ;;  %v8091_v41 = vadd.f32 %v8063_v18, %v7937_v27 }
 0x845   : > { %v8260_v57 = vadd.f32 %v13166_v50, %v8240_v42 }
 0x847   : > { %v8276_v26 = vmax.f32 %v8260_v57, 0.0  ;;  %v7775_v57 = vadd.f32 %v7774_v58, %v13138_v29  ;;  %v7778_v29 = vadd.f32 %v7777_v40, %v13144_v20 }
 0x848   : > { %v8331_v0 = vld [vmem:[#allocation6 + $0x28] sm:$0xff] }
 0x849   : > { %v8307_v21 = vld [vmem:[#allocation6 + $0x27] sm:$0xff]  ;;  %8292 = vst.msk [vmem:[#allocation6 + $0x30] sm:$0xff] %vm909_vm3, %v8276_v26  ;;  %10158 = vmatmul.msk.f32.gmra.mxu3 %vm909_vm3, %v8331_v0  ;;  %v7938_v0 = vadd.f32 %v7912_v3, %v7775_v57 }
 0x84a   : > { %v8581_v56 = vld [vmem:[#allocation6 + $0x21] sm:$0xff]  ;;  %10174 = vmatmul.msk.f32.gmra.mxu0 %vm909_vm3, %v8307_v21  ;;  %v8205_v38 = vpop.f32.mrf.mxu2 }
 0x84b   : > { %10197 = vmatmul.msk.f32.gmra.mxu1 %vm909_vm3, %v8581_v56  ;;  %v8241_v22 = vadd.f32 %v8205_v38, %v8087_v52  ;;  %v7915_v56 = vpop.f32.mrf.mxu0  ;;  %v8092_v38 = vadd.f32 %v8066_v49, %v7938_v0  ;;  %v7780_v8 = vpop.f32.mrf.mxu3 }
 0x84c   : > { %v7939_v1 = vadd.f32 %v7915_v56, %v7778_v29  ;;  %v7781_v24 = vadd.f32 %v7780_v8, %v13153_v12 }
 0x84d   : > { %v8261_v63 = vadd.f32 %v13166_v50, %v8241_v22  ;;  %v8069_v22 = vpop.f32.mrf.mxu1 }
 0x84f   : > { %v8277_v48 = vmax.f32 %v8261_v63, 0.0 }
 0x850   : > { %v8332_v4 = vld [vmem:[#allocation6 + $0x30] sm:$0xff] }
 0x851   : > { %v8308_v45 = vld [vmem:[#allocation6 + $0x2f] sm:$0xff]  ;;  %8293 = vst.msk [vmem:[#allocation6 + $0x38] sm:$0xff] %vm909_vm3, %v8277_v48  ;;  %10159 = vmatmul.msk.f32.gmra.mxu3 %vm909_vm3, %v8332_v4 }
 0x852   : > { %v8582_v39 = vld [vmem:[#allocation6 + $0x29] sm:$0xff]  ;;  %10175 = vmatmul.msk.f32.gmra.mxu0 %vm909_vm3, %v8308_v45  ;;  %v8208_v2 = vpop.f32.mrf.mxu2 }
 0x853   : > { %10198 = vmatmul.msk.f32.gmra.mxu1 %vm909_vm3, %v8582_v39  ;;  %v8242_v35 = vadd.f32 %v8208_v2, %v8088_v30  ;;  %v7918_v39 = vpop.f32.mrf.mxu0  ;;  %v8093_v2 = vadd.f32 %v8069_v22, %v7939_v1  ;;  %v8768_v22 = vld [vmem:[#allocation5 + $0x8] sm:$0xff] }
 0x855   : > { %v8262_v55 = vadd.f32 %v13166_v50, %v8242_v35  ;;  %v8072_v51 = vpop.f32.mrf.mxu1 }
 0x857   : > { %v8278_v37 = vmax.f32 %v8262_v55, 0.0  ;;  %v7783_v55 = vpop.f32.mrf.mxu3 }
 0x858   : > { %v8333_v59 = vld [vmem:[#allocation6 + $0x38] sm:$0xff]  ;;  %v7784_v60 = vadd.f32 %v7783_v55, %v13156_v28 }
 0x859   : > { %v8309_v36 = vld [vmem:[#allocation6 + $0x37] sm:$0xff]  ;;  %8294 = vst.msk [vmem:[#allocation6 + $0x40] sm:$0xff] %vm909_vm3, %v8278_v37  ;;  %10160 = vmatmul.msk.f32.gmra.mxu3 %vm909_vm3, %v8333_v59  ;;  %v7940_v37 = vadd.f32 %v7918_v39, %v7781_v24  ;;  %v8769_v24 = vld [vmem:[#allocation5 + $0x10] sm:$0xff] }
 0x85a   : > { %v8583_v17 = vld [vmem:[#allocation6 + $0x31] sm:$0xff]  ;;  %10176 = vmatmul.msk.f32.gmra.mxu0 %vm909_vm3, %v8309_v36  ;;  %v8211_v15 = vpop.f32.mrf.mxu2 }
 0x85b   : > { %10199 = vmatmul.msk.f32.gmra.mxu1 %vm909_vm3, %v8583_v17  ;;  %v8243_v43 = vadd.f32 %v8211_v15, %v8089_v11  ;;  %v8094_v12 = vadd.f32 %v8072_v51, %v7940_v37  ;;  %v7921_v15 = vpop.f32.mrf.mxu0 }
 0x85c   : > { %v7941_v18 = vadd.f32 %v7921_v15, %v7784_v60  ;;  %v8770_v15 = vld [vmem:[#allocation5 + $0x18] sm:$0xff] }
 0x85d   : > { %v8263_v6 = vadd.f32 %v13166_v50, %v8243_v43  ;;  %v8075_v58 = vpop.f32.mrf.mxu1 }
 0x85f   : > { %v8279_v44 = vmax.f32 %v8263_v6, 0.0 }
 0x860   : > { %v8334_v47 = vld [vmem:[#allocation6 + $0x40] sm:$0xff] }
 0x861   : > { %v8310_v14 = vld [vmem:[#allocation6 + $0x3f] sm:$0xff]  ;;  %8295 = vst.msk [vmem:[#allocation6 + $0x48] sm:$0xff] %vm909_vm3, %v8279_v44  ;;  %10161 = vmatmul.msk.f32.gmra.mxu3 %vm909_vm3, %v8334_v47  ;;  %v7786_v44 = vpop.f32.mrf.mxu3 }
 0x862   : > { %v8584_v19 = vld [vmem:[#allocation6 + $0x39] sm:$0xff]  ;;  %10177 = vmatmul.msk.f32.gmra.mxu0 %vm909_vm3, %v8310_v14  ;;  %v8214_v53 = vpop.f32.mrf.mxu2  ;;  %v7787_v61 = vadd.f32 %v7786_v44, %v13160_v25 }
 0x863   : > { %10200 = vmatmul.msk.f32.gmra.mxu1 %vm909_vm3, %v8584_v19  ;;  %v8244_v16 = vadd.f32 %v8214_v53, %v8090_v13  ;;  %v8095_v13 = vadd.f32 %v8075_v58, %v7941_v18  ;;  %v7924_v3 = vpop.f32.mrf.mxu0 }
 0x864   : > { %v7942_v27 = vadd.f32 %v7924_v3, %v7787_v61 }
 0x865   : > { %v8264_v31 = vadd.f32 %v13166_v50, %v8244_v16 }
 0x867   : > { %v8280_v5 = vmax.f32 %v8264_v31, 0.0 }
 0x868   : > { %v8335_v34 = vld [vmem:[#allocation6 + $0x48] sm:$0xff] }
 0x869   : > { %v8311_v42 = vld [vmem:[#allocation6 + $0x47] sm:$0xff]  ;;  %8296 = vst.msk [vmem:[#allocation6 + $0x50] sm:$0xff] %vm909_vm3, %v8280_v5  ;;  %10162 = vmatmul.msk.f32.gmra.mxu3 %vm909_vm3, %v8335_v34  ;;  %v8078_v5 = vpop.f32.mrf.mxu1 }
 0x86a   : > { %v8585_v46 = vld [vmem:[#allocation6 + $0x41] sm:$0xff]  ;;  %10178 = vmatmul.msk.f32.gmra.mxu0 %vm909_vm3, %v8311_v42  ;;  %v8217_v23 = vpop.f32.mrf.mxu2  ;;  %v8096_v25 = vadd.f32 %v8078_v5, %v7942_v27 }
 0x86b   : > { %10201 = vmatmul.msk.f32.gmra.mxu1 %vm909_vm3, %v8585_v46  ;;  %v8245_v26 = vadd.f32 %v8217_v23, %v8091_v41 }
 0x86d   : > { %v8265_v21 = vadd.f32 %v13166_v50, %v8245_v26 }
 0x86f   : > { %v8281_v52 = vmax.f32 %v8265_v21, 0.0 }
 0x870   : > { %v8336_v62 = vld [vmem:[#allocation6 + $0x50] sm:$0xff] }
 0x871   : > { %v8312_v7 = vld [vmem:[#allocation6 + $0x4f] sm:$0xff]  ;;  %8297 = vst.msk [vmem:[#allocation6 + $0x58] sm:$0xff] %vm909_vm3, %v8281_v52  ;;  %10163 = vmatmul.msk.f32.gmra.mxu3 %vm909_vm3, %v8336_v62 }
 0x872   : > { %v8586_v54 = vld [vmem:[#allocation6 + $0x49] sm:$0xff]  ;;  %10179 = vmatmul.msk.f32.gmra.mxu0 %vm909_vm3, %v8312_v7  ;;  %v8220_v63 = vpop.f32.mrf.mxu2 }
 0x873   : > { %10202 = vmatmul.msk.f32.gmra.mxu1 %vm909_vm3, %v8586_v54  ;;  %v8246_v48 = vadd.f32 %v8220_v63, %v8092_v38  ;;  %v13265_v38 = vld [vmem:[%s13513_s23] ss:$0 sm:$0xff] }
 0x874   : > { %v13270_v63 = vld [vmem:[%s13512_s22] ss:$0 sm:$0xff]  ;;  %v8790_v44 = vmul.f32 %v13265_v38, %v8770_v15 }
 0x875   : > { %v8266_v4 = vadd.f32 %v13166_v50, %v8246_v48 }
 0x877   : > { %v8282_v45 = vmax.f32 %v8266_v4, 0.0  ;;  %v8788_v4 = vmul.f32 %v13265_v38, %v8768_v22 }
 0x878   : > { %v8337_v30 = vld [vmem:[#allocation6 + $0x58] sm:$0xff] }
 0x879   : > { %v8313_v32 = vld [vmem:[#allocation6 + $0x57] sm:$0xff]  ;;  %8298 = vst.msk [vmem:[#allocation6 + $0x60] sm:$0xff] %vm909_vm3, %v8282_v45  ;;  %10164 = vmatmul.msk.f32.gmra.mxu3 %vm909_vm3, %v8337_v30  ;;  %v13276_v45 = vld [vmem:[%s13514_s24] ss:$0 sm:$0xff] }
 0x87a   : > { %v8587_v20 = vld [vmem:[#allocation6 + $0x51] sm:$0xff]  ;;  %10180 = vmatmul.msk.f32.gmra.mxu0 %vm909_vm3, %v8313_v32  ;;  %v8223_v35 = vpop.f32.mrf.mxu2 }
 0x87b   : > { %10203 = vmatmul.msk.f32.gmra.mxu1 %vm909_vm3, %v8587_v20  ;;  %v8247_v10 = vadd.f32 %v8223_v35, %v8093_v2  ;;  %v8808_v20 = vadd.f32 %v13276_v45, %v8788_v4 }
 0x87d   : > { %v8267_v59 = vadd.f32 %v13166_v50, %v8247_v10 }
 0x87f   : > { %v8283_v36 = vmax.f32 %v8267_v59, 0.0  ;;  %v8789_v59 = vmul.f32 %v13265_v38, %v8769_v24 }
 0x880   : > { %v8338_v17 = vld [vmem:[#allocation6 + $0x60] sm:$0xff] }
 0x881   : > { %v8314_v11 = vld [vmem:[#allocation6 + $0x5f] sm:$0xff]  ;;  %8299 = vst.msk [vmem:[#allocation6 + $0x68] sm:$0xff] %vm909_vm3, %v8283_v36  ;;  %10165 = vmatmul.msk.f32.gmra.mxu3 %vm909_vm3, %v8338_v17 }
 0x882   : > { %v8588_v9 = vld [vmem:[#allocation6 + $0x59] sm:$0xff]  ;;  %10181 = vmatmul.msk.f32.gmra.mxu0 %vm909_vm3, %v8314_v11  ;;  %v8226_v43 = vpop.f32.mrf.mxu2 }
 0x883   : > { %10204 = vmatmul.msk.f32.gmra.mxu1 %vm909_vm3, %v8588_v9  ;;  %v8248_v33 = vadd.f32 %v8226_v43, %v8094_v12  ;;  %v8809_v12 = vadd.f32 %v13276_v45, %v8789_v59 }
 0x885   : > { %v8268_v6 = vadd.f32 %v13166_v50, %v8248_v33 }
 0x887   : > { %v8284_v47 = vmax.f32 %v8268_v6, 0.0 }
 0x888   : > { %v8339_v14 = vld [vmem:[#allocation6 + $0x68] sm:$0xff] }
 0x889   : > { %v8315_v19 = vld [vmem:[#allocation6 + $0x67] sm:$0xff]  ;;  %8300 = vst.msk [vmem:[#allocation6 + $0x70] sm:$0xff] %vm909_vm3, %v8284_v47  ;;  %10166 = vmatmul.msk.f32.gmra.mxu3 %vm909_vm3, %v8339_v14 }
 0x88a   : > { %v8589_v28 = vld [vmem:[#allocation6 + $0x61] sm:$0xff]  ;;  %10182 = vmatmul.msk.f32.gmra.mxu0 %vm909_vm3, %v8315_v19  ;;  %v8229_v53 = vpop.f32.mrf.mxu2 }
 0x88b   : > { %10205 = vmatmul.msk.f32.gmra.mxu1 %vm909_vm3, %v8589_v28  ;;  %v8249_v16 = vadd.f32 %v8229_v53, %v8095_v13  ;;  %v8810_v13 = vadd.f32 %v13276_v45, %v8790_v44  ;;  %v8771_v53 = vld [vmem:[#allocation5 + $0x20] sm:$0xff] }
 0x88c   : > { %v8791_v5 = vmul.f32 %v13265_v38, %v8771_v53 }
 0x88d   : > { %v8269_v31 = vadd.f32 %v13166_v50, %v8249_v16 }
 0x88f   : > { %v8285_v49 = vmax.f32 %v8269_v31, 0.0 }
 0x890   : > { %v8340_v40 = vld [vmem:[#allocation6 + $0x70] sm:$0xff] }
 0x891   : > { %v8316_v34 = vld [vmem:[#allocation6 + $0x6f] sm:$0xff]  ;;  %8301 = vst.msk [vmem:[#allocation6 + $0x78] sm:$0xff] %vm909_vm3, %v8285_v49  ;;  %10167 = vmatmul.msk.f32.gmra.mxu3 %vm909_vm3, %v8340_v40 }
 0x892   : > { %v8590_v42 = vld [vmem:[#allocation6 + $0x69] sm:$0xff]  ;;  %10183 = vmatmul.msk.f32.gmra.mxu0 %vm909_vm3, %v8316_v34  ;;  %v8232_v46 = vpop.f32.mrf.mxu2 }
 0x893   : > { %10206 = vmatmul.msk.f32.gmra.mxu1 %vm909_vm3, %v8590_v42  ;;  %v8250_v41 = vadd.f32 %v8232_v46, %v8096_v25  ;;  %v8811_v46 = vadd.f32 %v13276_v45, %v8791_v5 }
 0x895   : > { %v8270_v57 = vadd.f32 %v13166_v50, %v8250_v41 }
 0x897   : > { %v8286_v23 = vmax.f32 %v8270_v57, 0.0  ;;  %v8772_v57 = vld [vmem:[#allocation5 + $0x28] sm:$0xff] }
 0x898   : > { %v8341_v26 = vld [vmem:[#allocation6 + $0x78] sm:$0xff] }
 0x899   : > { %v8317_v0 = vld [vmem:[#allocation6 + $0x77] sm:$0xff]  ;;  %8302 = vst.msk [vmem:[#allocation6 + $0x80] sm:$0xff] %vm909_vm3, %v8286_v23  ;;  %10168 = vmatmul.msk.f32.gmra.mxu3 %vm909_vm3, %v8341_v26 }
 0x89a   : > { %v8591_v21 = vld [vmem:[#allocation6 + $0x71] sm:$0xff]  ;;  %10184 = vmatmul.msk.f32.gmra.mxu0 %vm909_vm3, %v8317_v0 }
 0x89b   : > { %10207 = vmatmul.msk.f32.gmra.mxu1 %vm909_vm3, %v8591_v21 }
 0x8a0   : > { %v8342_v56 = vld [vmem:[#allocation6 + $0x80] sm:$0xff] }
 0x8a1   : > { %v8318_v52 = vld [vmem:[#allocation6 + $0x7f] sm:$0xff]  ;;  %10169 = vmatmul.msk.f32.gmra.mxu3 %vm909_vm3, %v8342_v56 }
 0x8a2   : > { %v8592_v62 = vld [vmem:[#allocation6 + $0x79] sm:$0xff]  ;;  %10185 = vmatmul.msk.f32.gmra.mxu0 %vm909_vm3, %v8318_v52  ;;  %v8593_v7 = vld [vmem:[#allocation6 + $0x81] sm:$0xff]  ;;  %v8792_v52 = vmul.f32 %v13265_v38, %v8772_v57 }
 0x8a3   : > { %10208 = vmatmul.msk.f32.gmra.mxu1 %vm909_vm3, %v8592_v62 }
 0x8a7   : > { %v8530_v50 = vpop.f32.mrf.mxu0 }
 0x8ab   : > { %10209 = vmatmul.msk.f32.gmra.mxu1 %vm909_vm3, %v8593_v7 }
 0x8ac   : > { %v8417_v54 = vpop.f32.mrf.mxu3 }
 0x8ad   : > { %v8531_v29 = vadd.f32 %v8530_v50, %v8417_v54 }
 0x8af   : > { %v8533_v8 = vpop.f32.mrf.mxu0 }
 0x8b0   : > { %v8668_v48 = vpop.f32.mrf.mxu1 }
 0x8b1   : > { %v8716_v1 = vadd.f32 %v8668_v48, %v8531_v29  ;;  %v8812_v29 = vadd.f32 %v13276_v45, %v8792_v52 }
 0x8b3   : > { %v8736_v39 = vadd.f32 %v13270_v63, %v8716_v1 }
 0x8b4   : > { %v8420_v32 = vpop.f32.mrf.mxu3 }
 0x8b5   : > { %v8752_v30 = vmax.f32 %v8736_v39, 0.0  ;;  %v8534_v2 = vadd.f32 %v8533_v8, %v8420_v32  ;;  %v8773_v8 = vld [vmem:[#allocation5 + $0x30] sm:$0xff] }
 0x8b6   : > { %v8793_v32 = vmul.f32 %v13265_v38, %v8773_v8 }
 0x8b7   : > { %v8536_v35 = vpop.f32.mrf.mxu0  ;;  %v8824_v10 = vadd.f32 %v8808_v20, %v8752_v30 }
 0x8b8   : > { %v8671_v51 = vpop.f32.mrf.mxu1 }
 0x8b9   : > { %v8717_v55 = vadd.f32 %v8671_v51, %v8534_v2  ;;  %v8840_v37 = vmax.f32 %v8824_v10, 0.0  ;;  %v8813_v10 = vadd.f32 %v13276_v45, %v8793_v32 }
 0x8bb   : > { %v8737_v36 = vadd.f32 %v13270_v63, %v8717_v55  ;;  %v8856_v17 = vsel %vm909_vm3, %v8840_v37, 0.0  ;;  %v8774_v55 = vld [vmem:[#allocation5 + $0x38] sm:$0xff] }
 0x8bc   : > { %8857 = vadd.xlane.f32.xlu0 %v8856_v17  ;;  %v8423_v9 = vpop.f32.mrf.mxu3 }
 0x8bd   : > { %v8753_v11 = vmax.f32 %v8737_v36, 0.0  ;;  %v8537_v60 = vadd.f32 %v8536_v35, %v8423_v9  ;;  %v8794_v9 = vmul.f32 %v13265_v38, %v8774_v55 }
 0x8bf   : > { %v8539_v43 = vpop.f32.mrf.mxu0  ;;  %v8825_v33 = vadd.f32 %v8809_v12, %v8753_v11 }
 0x8c0   : > { %v8674_v18 = vpop.f32.mrf.mxu1 }
 0x8c1   : > { %v8718_v6 = vadd.f32 %v8674_v18, %v8537_v60  ;;  %v8841_v58 = vmax.f32 %v8825_v33, 0.0  ;;  %v8814_v33 = vadd.f32 %v13276_v45, %v8794_v9 }
 0x8c3   : > { %v8738_v47 = vadd.f32 %v13270_v63, %v8718_v6  ;;  %v8859_v14 = vsel %vm909_vm3, %v8841_v58, 0.0  ;;  %v8775_v6 = vld [vmem:[#allocation5 + $0x40] sm:$0xff] }
 0x8c4   : > { %8860 = vadd.xlane.f32.xlu0 %v8859_v14  ;;  %v8426_v28 = vpop.f32.mrf.mxu3 }
 0x8c5   : > { %v8754_v19 = vmax.f32 %v8738_v47, 0.0  ;;  %v8540_v61 = vadd.f32 %v8539_v43, %v8426_v28  ;;  %v8795_v28 = vmul.f32 %v13265_v38, %v8775_v6 }
 0x8c7   : > { %v8542_v16 = vpop.f32.mrf.mxu0  ;;  %v8826_v3 = vadd.f32 %v8810_v13, %v8754_v19 }
 0x8c8   : > { %v8677_v27 = vpop.f32.mrf.mxu1 }
 0x8c9   : > { %v8719_v31 = vadd.f32 %v8677_v27, %v8540_v61  ;;  %v8842_v49 = vmax.f32 %v8826_v3, 0.0  ;;  %v8815_v3 = vadd.f32 %v13276_v45, %v8795_v28 }
 0x8cb   : > { %v8739_v40 = vadd.f32 %v13270_v63, %v8719_v31  ;;  %v8862_v34 = vsel %vm909_vm3, %v8842_v49, 0.0  ;;  %v8776_v31 = vld [vmem:[#allocation5 + $0x48] sm:$0xff] }
 0x8cc   : > { %8863 = vadd.xlane.f32.xlu1 %v8862_v34  ;;  %v8429_v25 = vpop.f32.mrf.mxu3 }
 0x8cd   : > { %v8755_v42 = vmax.f32 %v8739_v40, 0.0  ;;  %v8543_v41 = vadd.f32 %v8542_v16, %v8429_v25  ;;  %v8796_v25 = vmul.f32 %v13265_v38, %v8776_v31 }
 0x8cf   : > { %v8545_v23 = vpop.f32.mrf.mxu0  ;;  %v8827_v26 = vadd.f32 %v8811_v46, %v8755_v42 }
 0x8d0   : > { %v8680_v0 = vpop.f32.mrf.mxu1 }
 0x8d1   : > { %v8720_v21 = vadd.f32 %v8680_v0, %v8543_v41  ;;  %v8843_v56 = vmax.f32 %v8827_v26, 0.0  ;;  %v8816_v26 = vadd.f32 %v13276_v45, %v8796_v25  ;;  %v8781_v25 = vld [vmem:[#allocation5 + $0x70] sm:$0xff] }
 0x8d3   : > { %v8740_v62 = vadd.f32 %v13270_v63, %v8720_v21  ;;  %v8865_v50 = vsel %vm909_vm3, %v8843_v56, 0.0  ;;  %v8777_v21 = vld [vmem:[#allocation5 + $0x50] sm:$0xff] }
 0x8d4   : > { %8866 = vadd.xlane.f32.xlu1 %v8865_v50  ;;  %v8432_v54 = vpop.f32.mrf.mxu3 }
 0x8d5   : > { %v8756_v7 = vmax.f32 %v8740_v62, 0.0  ;;  %v8546_v22 = vadd.f32 %v8545_v23, %v8432_v54  ;;  %v8797_v54 = vmul.f32 %v13265_v38, %v8777_v21 }
 0x8d7   : > { %v8548_v48 = vpop.f32.mrf.mxu0  ;;  %v8828_v1 = vadd.f32 %v8812_v29, %v8756_v7 }
 0x8d8   : > { %v8683_v4 = vpop.f32.mrf.mxu1 }
 0x8d9   : > { %v8721_v39 = vadd.f32 %v8683_v4, %v8546_v22  ;;  %v8844_v30 = vmax.f32 %v8828_v1, 0.0  ;;  %v8817_v1 = vadd.f32 %v13276_v45, %v8797_v54 }
 0x8db   : > { %v8741_v20 = vadd.f32 %v13270_v63, %v8721_v39  ;;  %v8868_v2 = vsel %vm909_vm3, %v8844_v30, 0.0  ;;  %v8778_v39 = vld [vmem:[#allocation5 + $0x58] sm:$0xff] }
 0x8dc   : > { %8869 = vadd.xlane.f32.xlu2 %v8868_v2  ;;  %v8435_v35 = vpop.f32.mrf.mxu3 }
 0x8dd   : > { %v8757_v24 = vmax.f32 %v8741_v20, 0.0  ;;  %v8549_v51 = vadd.f32 %v8548_v48, %v8435_v35  ;;  %v8798_v35 = vmul.f32 %v13265_v38, %v8778_v39 }
 0x8df   : > { %v8551_v37 = vpop.f32.mrf.mxu0  ;;  %v8829_v59 = vadd.f32 %v8813_v10, %v8757_v24 }
 0x8e0   : > { %v8686_v36 = vpop.f32.mrf.mxu1 }
 0x8e1   : > { %v8722_v17 = vadd.f32 %v8686_v36, %v8549_v51  ;;  %v8845_v11 = vmax.f32 %v8829_v59, 0.0  ;;  %v8818_v59 = vadd.f32 %v13276_v45, %v8798_v35 }
 0x8e3   : > { %v8742_v12 = vadd.f32 %v13270_v63, %v8722_v17  ;;  %v8871_v60 = vsel %vm909_vm3, %v8845_v11, 0.0  ;;  %v8779_v17 = vld [vmem:[#allocation5 + $0x60] sm:$0xff] }
 0x8e4   : > { %8872 = vadd.xlane.f32.xlu2 %v8871_v60  ;;  %v8438_v43 = vpop.f32.mrf.mxu3 }
 0x8e5   : > { %v8758_v15 = vmax.f32 %v8742_v12, 0.0  ;;  %v8552_v18 = vadd.f32 %v8551_v37, %v8438_v43  ;;  %v8799_v43 = vmul.f32 %v13265_v38, %v8779_v17 }
 0x8e7   : > { %v8554_v58 = vpop.f32.mrf.mxu0  ;;  %v8830_v44 = vadd.f32 %v8814_v33, %v8758_v15 }
 0x8e8   : > { %v8689_v47 = vpop.f32.mrf.mxu1 }
 0x8e9   : > { %v8723_v14 = vadd.f32 %v8689_v47, %v8552_v18  ;;  %v8846_v19 = vmax.f32 %v8830_v44, 0.0  ;;  %v8819_v44 = vadd.f32 %v13276_v45, %v8799_v43  ;;  %v8942_v47 = vld [vmem:[%s13515_s25 + $0x78] sm:$0xff] }
 0x8ea   : > { %9024 = vmatpush.msrb.mxu2 %v8942_v47  ;;  %v8931_v47 = vld [vmem:[%s13515_s25 + $0x20] sm:$0xff] }
 0x8eb   : > { %v8743_v13 = vadd.f32 %v13270_v63, %v8723_v14  ;;  %v8874_v61 = vsel %vm909_vm3, %v8846_v19, 0.0  ;;  %v8780_v19 = vld [vmem:[#allocation5 + $0x68] sm:$0xff] }
 0x8ec   : > { %8875 = vadd.xlane.f32.xlu0 %v8874_v61  ;;  %v8441_v16 = vpop.f32.mrf.mxu3 }
 0x8ed   : > { %v8759_v53 = vmax.f32 %v8743_v13, 0.0  ;;  %v8555_v27 = vadd.f32 %v8554_v58, %v8441_v16 }
 0x8ef   : > { %v8557_v49 = vpop.f32.mrf.mxu0  ;;  %v8831_v5 = vadd.f32 %v8815_v3, %v8759_v53  ;;  %v8800_v3 = vmul.f32 %v13265_v38, %v8780_v19  ;;  %v8929_v19 = vld [vmem:[%s13515_s25 + $0x10] sm:$0xff] }
 0x8f0   : > { %v8692_v40 = vpop.f32.mrf.mxu1 }
 0x8f1   : > { %v8724_v34 = vadd.f32 %v8692_v40, %v8555_v27  ;;  %v8847_v42 = vmax.f32 %v8831_v5, 0.0 }
 0x8f3   : > { %v8744_v46 = vadd.f32 %v13270_v63, %v8724_v34  ;;  %v8877_v41 = vsel %vm909_vm3, %v8847_v42, 0.0  ;;  %v8820_v34 = vadd.f32 %v13276_v45, %v8800_v3 }
 0x8f4   : > { %8878 = vadd.xlane.f32.xlu1 %v8877_v41  ;;  %v8444_v23 = vpop.f32.mrf.mxu3 }
 0x8f5   : > { %v8760_v57 = vmax.f32 %v8744_v46, 0.0  ;;  %v8558_v0 = vadd.f32 %v8557_v49, %v8444_v23  ;;  %v8941_v49 = vld [vmem:[%s13515_s25 + $0x70] sm:$0xff] }
 0x8f6   : > { %9025 = vmatpush.msrb.mxu2 %v8941_v49 }
 0x8f7   : > { %v8560_v56 = vpop.f32.mrf.mxu0  ;;  %v8832_v52 = vadd.f32 %v8816_v26, %v8760_v57  ;;  %v8801_v26 = vmul.f32 %v13265_v38, %v8781_v25  ;;  %v8960_v25 = vlaneseq }
 0x8f8   : > { %v8695_v62 = vpop.f32.mrf.mxu1 }
 0x8f9   : > { %v8725_v50 = vadd.f32 %v8695_v62, %v8558_v0  ;;  %v8848_v7 = vmax.f32 %v8832_v52, 0.0  ;;  %v8940_v52 = vld [vmem:[%s13515_s25 + $0x68] sm:$0xff] }
 0x8fa   : > { %9026 = vmatpush.msrb.mxu2 %v8940_v52 }
 0x8fb   : > { %v8745_v29 = vadd.f32 %v13270_v63, %v8725_v50  ;;  %v8880_v22 = vsel %vm909_vm3, %v8848_v7, 0.0  ;;  %v8821_v7 = vadd.f32 %v13276_v45, %v8801_v26  ;;  %v13389_v26 = vand.u32 127, %v8960_v25 }
 0x8fc   : > { %8881 = vadd.xlane.f32.xlu2 %v8880_v22  ;;  %v8447_v48 = vpop.f32.mrf.mxu3 }
 0x8fd   : > { %v8761_v8 = vmax.f32 %v8745_v29, 0.0  ;;  %v8561_v4 = vadd.f32 %v8560_v56, %v8447_v48  ;;  %v8782_v29 = vld [vmem:[#allocation5 + $0x78] sm:$0xff] }
 0x8ff   : > { %v8563_v30 = vpop.f32.mrf.mxu0  ;;  %v8833_v32 = vadd.f32 %v8817_v1, %v8761_v8 }
 0x900   : > { %v8698_v20 = vpop.f32.mrf.mxu1 }
 0x901   : > { %v8726_v2 = vadd.f32 %v8698_v20, %v8561_v4  ;;  %v8849_v24 = vmax.f32 %v8833_v32, 0.0  ;;  %v8802_v4 = vmul.f32 %v13265_v38, %v8782_v29  ;;  %v8939_v32 = vld [vmem:[%s13515_s25 + $0x60] sm:$0xff] }
 0x902   : > { %9027 = vmatpush.msrb.mxu2 %v8939_v32 }
 0x903   : > { %v8746_v10 = vadd.f32 %v13270_v63, %v8726_v2  ;;  %v8883_v51 = vsel %vm909_vm3, %v8849_v24, 0.0  ;;  %v8822_v35 = vadd.f32 %v13276_v45, %v8802_v4 }
 0x904   : > { %8884 = vadd.xlane.f32.xlu0 %v8883_v51  ;;  %v8450_v37 = vpop.f32.mrf.mxu3  ;;  %v8783_v51 = vld [vmem:[#allocation5 + $0x80] sm:$0xff] }
 0x905   : > { %v8762_v55 = vmax.f32 %v8746_v10, 0.0  ;;  %v8564_v36 = vadd.f32 %v8563_v30, %v8450_v37  ;;  %v8803_v17 = vmul.f32 %v13265_v38, %v8783_v51  ;;  %v8937_v38 = vld [vmem:[%s13515_s25 + $0x50] sm:$0xff] }
 0x907   : > { %v8566_v11 = vpop.f32.mrf.mxu0  ;;  %v8834_v9 = vadd.f32 %v8818_v59, %v8762_v55 }
 0x908   : > { %v8701_v12 = vpop.f32.mrf.mxu1 }
 0x909   : > { %v8727_v60 = vadd.f32 %v8701_v12, %v8564_v36  ;;  %v8850_v15 = vmax.f32 %v8834_v9, 0.0  ;;  %v8938_v12 = vld [vmem:[%s13515_s25 + $0x58] sm:$0xff] }
 0x90a   : > { %9028 = vmatpush.msrb.mxu2 %v8938_v12  ;;  %v8995_v12 = vadd.s32 4294967224, %v13389_v26 }
 0x90b   : > { %v8747_v33 = vadd.f32 %v13270_v63, %v8727_v60  ;;  %v8886_v18 = vsel %vm909_vm3, %v8850_v15, 0.0  ;;  %v8823_v15 = vadd.f32 %v13276_v45, %v8803_v17  ;;  %v8935_v45 = vld [vmem:[%s13515_s25 + $0x40] sm:$0xff] }
 0x90c   : > { %8887 = vadd.xlane.f32.xlu1 %v8886_v18  ;;  %v8453_v58 = vpop.f32.mrf.mxu3  ;;  %9029 = vmatpush.msrb.mxu2 %v8937_v38 }
 0x90d   : > { %v8763_v6 = vmax.f32 %v8747_v33, 0.0  ;;  %v8567_v14 = vadd.f32 %v8566_v11, %v8453_v58  ;;  %v8933_v58 = vld [vmem:[%s13515_s25 + $0x30] sm:$0xff] }
 0x90f   : > { %v8835_v28 = vadd.f32 %v8819_v44, %v8763_v6  ;;  %v8569_v61 = vpop.f32.mrf.mxu0  ;;  %v8934_v6 = vld [vmem:[%s13515_s25 + $0x38] sm:$0xff]  ;;  %v8932_v44 = vld [vmem:[%s13515_s25 + $0x28] sm:$0xff] }
 0x910   : > { %v8704_v13 = vpop.f32.mrf.mxu1 }
 0x911   : > { %v8728_v53 = vadd.f32 %v8704_v13, %v8567_v14  ;;  %v8851_v16 = vmax.f32 %v8835_v28, 0.0  ;;  %v8930_v14 = vld [vmem:[%s13515_s25 + $0x18] sm:$0xff]  ;;  %v10377_v28 = vmov 64.0  }
 0x912   : > { %10274 = vrcp.f32 %v10377_v28 }
 0x913   : > { %v8748_v27 = vadd.f32 %v13270_v63, %v8728_v53  ;;  %v8889_v31 = vsel %vm909_vm3, %v8851_v16, 0.0 }
 0x914   : > { %8890 = vadd.xlane.f32.xlu2 %v8889_v31  ;;  %v8456_v40 = vpop.f32.mrf.mxu3  ;;  %v8927_v31 = vld [vmem:[%s13515_s25] sm:$0xff] }
 0x915   : > { %v8764_v5 = vmax.f32 %v8748_v27, 0.0  ;;  %v8570_v42 = vadd.f32 %v8569_v61, %v8456_v40  ;;  %v8928_v61 = vld [vmem:[%s13515_s25 + $0x8] sm:$0xff] }
 0x917   : > { %v8836_v46 = vadd.f32 %v8820_v34, %v8764_v5  ;;  %v8572_v0 = vpop.f32.mrf.mxu0 }
 0x918   : > { %v8707_v41 = vpop.f32.mrf.mxu1  ;;  %v10275_v3 = vpop.eup %10274 }
 0x919   : > { %v8729_v57 = vadd.f32 %v8707_v41, %v8570_v42  ;;  %v8852_v23 = vmax.f32 %v8836_v46, 0.0  ;;  %v8905_v27 = vmul.f32 64.0, %v10275_v3  ;;  %vm8909_vm4 = vweird.f32 %v10275_v3 }
 0x91b   : > { %v8749_v21 = vadd.f32 %v13270_v63, %v8729_v57  ;;  %v8892_v56 = vsel %vm909_vm3, %v8852_v23, 0.0  ;;  %v8906_v49 = vsub.f32 1.0, %v8905_v27  ;;  %v9015_v27 = vadd.s32 4294967184, %v13389_v26 }
 0x91c   : > { %8893 = vadd.xlane.f32.xlu0 %v8892_v56  ;;  %v8459_v50 = vpop.f32.mrf.mxu3 }
 0x91d   : > { %v8765_v62 = vmax.f32 %v8749_v21, 0.0  ;;  %v8573_v54 = vadd.f32 %v8572_v0, %v8459_v50  ;;  %v8907_v42 = vmul.f32 %v10275_v3, %v8906_v49  ;;  %v8963_v21 = vadd.s32 4294967288, %v13389_v26 }
 0x91f   : > { %v8837_v22 = vadd.f32 %v8821_v7, %v8765_v62  ;;  %v8575_v20 = vpop.f32.mrf.mxu0  ;;  %v8908_v46 = vadd.f32 %v10275_v3, %v8907_v42  ;;  %v8967_v62 = vadd.s32 4294967280, %v13389_v26  ;;  %v8971_v7 = vadd.s32 4294967272, %v13389_v26 }
 0x920   : > { %v8710_v8 = vpop.f32.mrf.mxu1 }
 0x921   : > { %v8730_v48 = vadd.f32 %v8710_v8, %v8573_v54  ;;  %v8853_v1 = vmax.f32 %v8837_v22, 0.0  ;;  %v13391_v0 = vsel %vm8909_vm4, %v10275_v3, %v8908_v46  ;;  %v9019_v46 = vadd.s32 4294967176, %v13389_v26 }
 0x922   : > { %vm9044_vm4 = vcmask 73728  }
 0x923   : > { %v8750_v39 = vadd.f32 %v13270_v63, %v8730_v48  ;;  %v8895_v30 = vsel %vm909_vm3, %v8853_v1, 0.0  ;;  %v8975_v48 = vadd.s32 4294967264, %v13389_v26 }
 0x924   : > { %8896 = vadd.xlane.f32.xlu1 %v8895_v30  ;;  %v8462_v24 = vpop.f32.mrf.mxu3 }
 0x925   : > { %v8766_v2 = vmax.f32 %v8750_v39, 0.0  ;;  %v8576_v10 = vadd.f32 %v8575_v20, %v8462_v24  ;;  %v8979_v20 = vadd.s32 4294967256, %v13389_v26 }
 0x927   : > { %v8838_v55 = vadd.f32 %v8822_v35, %v8766_v2  ;;  %v8983_v35 = vadd.s32 4294967248, %v13389_v26 }
 0x928   : > { %v8713_v37 = vpop.f32.mrf.mxu1 }
 0x929   : > { %v8731_v59 = vadd.f32 %v8713_v37, %v8576_v10  ;;  %v8854_v36 = vmax.f32 %v8838_v55, 0.0  ;;  %v8987_v55 = vadd.s32 4294967240, %v13389_v26 }
 0x92b   : > { %v8751_v11 = vadd.f32 %v13270_v63, %v8731_v59  ;;  %v8898_v9 = vsel %vm909_vm3, %v8854_v36, 0.0  ;;  %v8936_v63 = vld [vmem:[%s13515_s25 + $0x48] sm:$0xff]  ;;  %v8991_v36 = vadd.s32 4294967232, %v13389_v26 }
 0x92c   : > { %8899 = vadd.xlane.f32.xlu2 %v8898_v9  ;;  %9030 = vmatpush.msrb.mxu2 %v8936_v63 }
 0x92d   : > { %v8767_v60 = vmax.f32 %v8751_v11, 0.0 }
 0x92e   : > { %9031 = vmatpush.msrb.mxu2 %v8935_v45 }
 0x92f   : > { %v8839_v43 = vadd.f32 %v8823_v15, %v8767_v60  ;;  %v8858_v13 = vpop.xlane.xlu0 %8857 }
 0x930   : > { %9032 = vmatpush.msrb.mxu2 %v8934_v6  ;;  %v8911_v52 = vmul.f32 %v13391_v0, %v8858_v13  ;;  %v9003_v6 = vadd.s32 4294967208, %v13389_v26 }
 0x931   : > { %v8855_v33 = vmax.f32 %v8839_v43, 0.0 }
 0x932   : > { %9033 = vmatpush.msrb.mxu2 %v8933_v58  ;;  %v8962_v39 = vperm.slane %v8911_v52, %v13389_v26 }
 0x933   : > { %v8901_v18 = vsel %vm909_vm3, %v8855_v33, 0.0  ;;  %v8999_v33 = vadd.s32 4294967216, %v13389_v26  ;;  %vm9021_vm3 = vcmask 1048512  }
 0x934   : > { %8902 = vadd.xlane.f32.xlu0 %v8901_v18  ;;  %9034 = vmatpush.msrb.mxu2 %v8932_v44 }
 0x936   : > { %9035 = vmatpush.msrb.mxu2 %v8931_v47 }
 0x937   : > { %v8861_v5 = vpop.xlane.xlu0 %8860 }
 0x938   : > { %9036 = vmatpush.msrb.mxu2 %v8930_v14  ;;  %v8912_v56 = vmul.f32 %v13391_v0, %v8861_v5  ;;  %v9007_v14 = vadd.s32 4294967200, %v13389_v26 }
 0x93a   : > { %9037 = vmatpush.msrb.mxu2 %v8929_v19  ;;  %v8964_v22 = vperm.slane %v8912_v56, %v8963_v21 }
 0x93c   : > { %9038 = vmatpush.msrb.mxu2 %v8928_v61  ;;  %v8966_v24 = vsel %vm8965_vm5, %v8964_v22, %v8962_v39  ;;  %v9011_v61 = vadd.s32 4294967192, %v13389_v26  ;;  %v8943_v26 = vld [vmem:[%s13516_s26] sm:$0x1] }
 0x93e   : > { %9039 = vmatpush.msrb.mxu2 %v8927_v31 }
 0x93f   : > { %v8864_v53 = vpop.xlane.xlu1 %8863 }
 0x940   : > { %v8913_v50 = vmul.f32 %v13391_v0, %v8864_v53 }
 0x942   : > { %v8968_v30 = vperm.slane %v8913_v50, %v8967_v62 }
 0x944   : > { %v8970_v59 = vsel %vm8969_vm6, %v8968_v30, %v8966_v24 }
 0x947   : > { %v8867_v40 = vpop.xlane.xlu1 %8866 }
 0x948   : > { %v8914_v54 = vmul.f32 %v13391_v0, %v8867_v40 }
 0x94a   : > { %v8972_v32 = vperm.slane %v8914_v54, %v8971_v7 }
 0x94c   : > { %v8974_v11 = vsel %vm8973_vm7, %v8972_v32, %v8970_v59 }
 0x94f   : > { %v8870_v16 = vpop.xlane.xlu2 %8869 }
 0x950   : > { %v8915_v1 = vmul.f32 %v13391_v0, %v8870_v16 }
 0x952   : > { %v8976_v51 = vperm.slane %v8915_v1, %v8975_v48 }
 0x954   : > { %v8978_v63 = vsel %vm8977_vm8, %v8976_v51, %v8974_v11 }
 0x957   : > { %v8873_v34 = vpop.xlane.xlu2 %8872 }
 0x958   : > { %v8916_v2 = vmul.f32 %v13391_v0, %v8873_v34 }
 0x95a   : > { %v8980_v9 = vperm.slane %v8916_v2, %v8979_v20 }
 0x95c   : > { %v8982_v28 = vsel %vm8981_vm9, %v8980_v9, %v8978_v63 }
 0x95f   : > { %v8876_v41 = vpop.xlane.xlu0 %8875 }
 0x960   : > { %v8917_v10 = vmul.f32 %v13391_v0, %v8876_v41 }
 0x962   : > { %v8984_v43 = vperm.slane %v8917_v10, %v8983_v35 }
 0x964   : > { %v8986_v16 = vsel %vm8985_vm10, %v8984_v43, %v8982_v28 }
 0x967   : > { %v8879_v57 = vpop.xlane.xlu1 %8878 }
 0x968   : > { %v8918_v37 = vmul.f32 %v13391_v0, %v8879_v57 }
 0x96a   : > { %v8988_v45 = vperm.slane %v8918_v37, %v8987_v55 }
 0x96c   : > { %v8990_v49 = vsel %vm8989_vm11, %v8988_v45, %v8986_v16 }
 0x96f   : > { %v8882_v23 = vpop.xlane.xlu2 %8881 }
 0x970   : > { %v8919_v17 = vmul.f32 %v13391_v0, %v8882_v23 }
 0x972   : > { %v8992_v47 = vperm.slane %v8919_v17, %v8991_v36 }
 0x974   : > { %v8994_v40 = vsel %vm8993_vm12, %v8992_v47, %v8990_v49 }
 0x977   : > { %v8885_v29 = vpop.xlane.xlu0 %8884 }
 0x978   : > { %v8920_v60 = vmul.f32 %v13391_v0, %v8885_v29 }
 0x97a   : > { %v8996_v13 = vperm.slane %v8920_v60, %v8995_v12 }
 0x97c   : > { %v8998_v42 = vsel %vm8997_vm13, %v8996_v13, %v8994_v40 }
 0x97f   : > { %v8888_v8 = vpop.xlane.xlu1 %8887 }
 0x980   : > { %v8921_v18 = vmul.f32 %v13391_v0, %v8888_v8 }
 0x982   : > { %v9000_v3 = vperm.slane %v8921_v18, %v8999_v33 }
 0x984   : > { %v9002_v41 = vsel %vm9001_vm14, %v9000_v3, %v8998_v42 }
 0x987   : > { %v8891_v4 = vpop.xlane.xlu2 %8890 }
 0x988   : > { %v8922_v58 = vmul.f32 %v13391_v0, %v8891_v4 }
 0x98a   : > { %v9004_v5 = vperm.slane %v8922_v58, %v9003_v6 }
 0x98c   : > { %v9006_v21 = vsel %vm9005_vm15, %v9004_v5, %v9002_v41 }
 0x98f   : > { %v8894_v15 = vpop.xlane.xlu0 %8893 }
 0x990   : > { %v8923_v19 = vmul.f32 %v13391_v0, %v8894_v15 }
 0x992   : > { %v9008_v34 = vperm.slane %v8923_v19, %v9007_v14 }
 0x994   : > { %v9010_v52 = vsel %vm9009_vm0, %v9008_v34, %v9006_v21 }
 0x997   : > { %v8897_v38 = vpop.xlane.xlu1 %8896 }
 0x998   : > { %v8924_v53 = vmul.f32 %v13391_v0, %v8897_v38 }
 0x99a   : > { %v9012_v25 = vperm.slane %v8924_v53, %v9011_v61 }
 0x99c   : > { %v9014_v62 = vsel %vm9013_vm1, %v9012_v25, %v9010_v52 }
 0x99f   : > { %v8900_v44 = vpop.xlane.xlu2 %8899 }
 0x9a0   : > { %v8925_v31 = vmul.f32 %v13391_v0, %v8900_v44 }
 0x9a2   : > { %v9016_v57 = vperm.slane %v8925_v31, %v9015_v27 }
 0x9a4   : > { %v9018_v7 = vsel %vm9017_vm2, %v9016_v57, %v9014_v62 }
 0x9a7   : > { %v8903_v23 = vpop.xlane.xlu0 %8902 }
 0x9a8   : > { %v8926_v56 = vmul.f32 %v13391_v0, %v8903_v23 }
 0x9aa   : > { %v9020_v50 = vperm.slane %v8926_v56, %v9019_v46 }
 0x9ac   : > { %v9022_v54 = vsel %vm9021_vm3, %v9020_v50, %v9018_v7 }
 0x9ad   : > { %9040 = vmatmul.f32.vlgmr.msrb.gmra.mxu2 %v9022_v54  ;;  %9070 = vst [vmem:[%s847_s0] sm:$0x1] %v9022_v54 }
 0xa30   : > { %v9041_v29 = vpop.f32.mrf.mxu2 }
 0xa31   : > { %v9042_v22 = vadd.f32 %v9041_v29, %v8943_v26 }
 0xa33   : > { %v9045_v0 = vsel %vm9044_vm4, %v9042_v22, -inf }
 0xa34   : > { %9046 = vmax.xlane.f32.xlu1 %v9045_v0 }
 0xaa7   : > { %v9047_v8 = vpop.xlane.xlu1 %9046 }
 0xaa8   : > { %v9048_v48 = vsub.f32 %v9042_v22, %v9047_v8 }
 0xaaa   : > { %v9049_v1 = vmul.f32 1.442695, %v9048_v48 }
 0xaac   : > { %10276 = vpow2.f32 %v9049_v1 }
 0xab2   : > { %v10277_v4 = vpop.eup %10276 }
 0xab3   : > { %v9051_v39 = vsel %vm9044_vm4, %v10277_v4, 0.0 }
 0xab4   : > { %9052 = vadd.xlane.f32.xlu2 %v9051_v39 }
 0xab5   : > { %10307 = shalt.err (!%p10304_p3)
}
 0xab6   : > { %10216 = dma.vmem_to_hbm [thread:$0]  (%p10561_p5), %s9100_s13, 16, %s9102_s11, %s9076_s9  }
 0xab7   : > { %s9084_s16 = scalar_lea.hbm %s13517_s27, %s10544_s3  ;;  %s841_s17 = scalar_lea.vmem [#allocation7], %s13432_s4 }
 0xab8   : > { %s9086_s18 = sshll.u32 %s841_s17, 4  ;;  %s9088_s0 = sshll.u32 %s9084_s16, 4  ;;  %s9087_s18 = int_to_ptr.vmem [resolvable:$true] %s9086_s18  ;;  %s9089_s0 = int_to_ptr.hbm [resolvable:$true] %s9088_s0 }
 0xab9   : > { %s9072_s6 = scalar_lea.sflag [#allocation8], %s13432_s4  ;;  %s10322_s12 = sshra.s32 %s9089_s0, 4  ;;  %s10323_s12 = int_to_ptr.hbm [resolvable:$true] %s10322_s12 }
 0xaba   : > { %s10324_s3 = scalar_lea.hbm %s10323_s12, 1  ;;  %s10328_s11 = scalar_lea.hbm %s13517_s27, 2 }
 0xabb   : > { %p10325_p4 = scmp.ne.s32.totalorder %s10323_s12, %s10324_s3  ;;  %p10329_p9 = scmp.lt.s32.totalorder %s10323_s12, %s13517_s27 }
 0xabc   : > { %p10330_p10 = scmp.lt.s32.totalorder %s10328_s11, %s10324_s3 }
 0xabd   : > { %p10326_p7 = pnand %p10325_p4, %p10561_p5 }
 0xabe   : > { %p10331_p11 = por %p10330_p10, %p10329_p9 }
 0xabf   : > { %p10327_p8 = pneg %p10326_p7 }
 0xac1   : > { %p10332_p12 = pnand %p10331_p11, %p10327_p8 }
 0xb27   : > { %v9053_v30 = vpop.xlane.xlu2 %9052 }
 0xb28   : > { %10278 = vrcp.f32 %v9053_v30  ;;  %v9065_v24 = vand.u32 2147483648, %v9053_v30  ;;  %v9063_v10 = vand.u32 2147483647, %v9053_v30  ;;  %vm9059_vm6 = vweird.f32 %v9053_v30 }
 0xb2a   : > { %v9066_v55 = vor.u32 1.1754944e-38, %v9065_v24  ;;  %vm9064_vm8 = vcmp.eq.f32.partialorder %v9063_v10, 8.507059e+37 }
 0xb2e   : > { %v10279_v32 = vpop.eup %10278 }
 0xb2f   : > { %v9055_v20 = vmul.f32 %v10279_v32, %v9053_v30  ;;  %vm9060_vm5 = vweird.f32 %v10279_v32 }
 0xb30   : > { %vm9061_vm7 = vmor %vm9059_vm6, %vm9060_vm5 }
 0xb31   : > { %v9056_v2 = vsub.f32 1.0, %v9055_v20 }
 0xb33   : > { %v9057_v35 = vmul.f32 %v10279_v32, %v9056_v2 }
 0xb35   : > { %v9058_v51 = vadd.f32 %v10279_v32, %v9057_v35 }
 0xb37   : > { %v9062_v37 = vsel %vm9061_vm7, %v10279_v32, %v9058_v51 }
 0xb38   : > { %v9067_v59 = vsel %vm9064_vm8, %v9066_v55, %v9062_v37 }
 0xb39   : > { %v9068_v36 = vmul.f32 %v10277_v4, %v9067_v59 }
 0xb3b   : > { %9069 = vst.msk [vmem:[%s841_s17] sm:$0x1] %vm9044_vm4, %v9068_v36 }
 0xb3c   : > { %10335 = shalt.err (!%p10332_p12)
}
 0xb3d   : > { %10215 = dma.vmem_to_hbm [thread:$0]  (%p10561_p5), %s9087_s18, 16, %s9089_s0, %s9072_s6  }
 0xb3e PF: > { %p10226_p13 = scmp.ge.s32.totalorder %s10374_s30, 2  ;;  %s9113_s4 = sand.u32 1, %s10362_s8  }
 0xb3f   : > { %s9114_s1 = scalar_lea.sflag [#allocation8], %s9113_s4 }
 0xb40   : > { %p10220_p0 = pnand %p10226_p13, %p10565_p6 }
 0xb42   : > { %p10221_p1 = pneg %p10220_p0 }
 0xb44   : > { %10353 = dma.done.wait (%p10221_p1), %s9114_s1, 16  }
 0xb45   : > { %10355 = vsyncadd (%p10221_p1), %s9114_s1, 4294967280  ;;  %s9123_s14 = scalar_lea.sflag [#allocation10], %s9113_s4 }
 0xb46   : > { %10357 = dma.done.wait (%p10221_p1), %s9123_s14, 16  }
 0xb47   : > { %10359 = vsyncadd (%p10221_p1), %s9123_s14, 4294967280  ;;  %s13589_s30 = sld [smem:[#allocation14_spill]]  ;;  %s13592_s8 = smov %s10366_s5 }
 0xb48   : > { %s13590_s15 = sld [smem:[#allocation13_spill]] }
 0xb49   : > { %s13591_s9 = sld [smem:[#allocation15_spill]] }
 0xb4d   : > { %p42_p5 = scmp.ge.s32.totalorder %s13589_s30, 4  }
 0xb4e   : > { %s13593_s5 = smov %s13590_s15 }
 0xb4f   :  { %44 = sbr.rel (!%p42_p5) target bundleno = 25 (0x19), region = 219 }
 0xb54   :  { %9128 = vsyncpa [#allocation8], 1 }
 0xb55   :  { %9130 = vsyncpa [#allocation8 + $0x1], 1 }
 0xb56   :  { %9131 = vsyncpa [#allocation10], 1 }
 0xb57   :  { %9133 = vsyncpa [#allocation10 + $0x1], 1 }

</bundles_post_ra>
